<compile_context>
chip_gen: v5e
topology: v5e:2x2
jax: 0.10.0
libtpu: 0.0.40
codegen_flags: <defaults>
</compile_context>

<pallas_src>
import math
import functools

import jax
import jax.numpy as jnp
from jax import lax
from jax.experimental import pallas as pl
from jax.experimental.pallas import tpu as pltpu

_EPS = 1e-5          # PyTorch nn.LayerNorm default eps
_TM_MAX = 128        # row-tile cap: 128-aligned (matches v5e MXU; fine on v6e/v7x)
_TN_MAX = 512        # column-tile cap for very wide linears (multiple of 128)


def _round_up(x, m):
    return ((x + m - 1) // m) * m


def _vmem_limit_bytes():
    # <= 3/4 of physical per-core VMEM: ~96 MiB on v5e/v6e, ~48 MiB on v7x.
    try:
        cap = pltpu.get_tpu_info().vmem_capacity_bytes
        return int(min(3 * cap // 4, 96 * 1024 * 1024))
    except Exception:
        return 48 * 1024 * 1024


_VMEM_LIMIT = _vmem_limit_bytes()


def _cparams(sem):
    return pltpu.CompilerParams(dimension_semantics=sem,
                                vmem_limit_bytes=_VMEM_LIMIT)


def _pick_tm(m):
    """Row tile: multiple of 16 (bf16 sublane packing), capped at _TM_MAX.
    If a single tile would cover all of m >= 32 rows, split it so the parallel
    grid has >= 2 steps (keeps both v7x TensorCores busy; harmless elsewhere)."""
    tm = min(_TM_MAX, _round_up(m, 16))
    if tm >= m and m >= 32:
        tm = _round_up(pl.cdiv(m, 2), 16)
    return tm


# ----------------------------- Pallas kernels -----------------------------

def _linear_kernel(x_ref, w_ref, b_ref, o_ref, *, relu):
    acc = jnp.dot(x_ref[...], w_ref[...], preferred_element_type=jnp.float32)
    acc = acc + b_ref[...]
    if relu:
        acc = jnp.maximum(acc, 0.0)
    o_ref[...] = acc.astype(o_ref.dtype)


def linear_pallas(x, w, b, relu=False):
    """y = x @ w + b (optional fused ReLU).  x: (M, K) bf16, w: (K, N) bf16 -> bf16."""
    M, K = x.shape
    N = w.shape[1]
    TM = _pick_tm(M)
    TN = min(N, _TN_MAX)
    grid = (pl.cdiv(M, TM), pl.cdiv(N, TN))
    return pl.pallas_call(
        functools.partial(_linear_kernel, relu=relu),
        out_shape=jax.ShapeDtypeStruct((M, N), jnp.bfloat16),
        grid=grid,
        in_specs=[
            pl.BlockSpec((TM, K), lambda i, j: (i, 0)),
            pl.BlockSpec((K, TN), lambda i, j: (0, j)),
            pl.BlockSpec((1, TN), lambda i, j: (0, j)),
        ],
        out_specs=pl.BlockSpec((TM, TN), lambda i, j: (i, j)),
        compiler_params=_cparams(("parallel", "parallel")),
    )(x, w, b.reshape(1, N))


def _patch_embed_kernel(v_ref, g1_ref, b1_ref, w_ref, bb_ref, g2_ref, b2_ref, o_ref):
    # Fused LN(patch_dim) -> Linear -> LN(dim); single-pass variance.
    x = v_ref[...].astype(jnp.float32)
    mean = jnp.mean(x, axis=-1, keepdims=True)
    var = jnp.mean(x * x, axis=-1, keepdims=True) - mean * mean
    x = (x - mean) * lax.rsqrt(var + _EPS) * g1_ref[...] + b1_ref[...]
    y = jnp.dot(x.astype(jnp.bfloat16), w_ref[...],
                preferred_element_type=jnp.float32) + bb_ref[...]
    mean2 = jnp.mean(y, axis=-1, keepdims=True)
    var2 = jnp.mean(y * y, axis=-1, keepdims=True) - mean2 * mean2
    y = (y - mean2) * lax.rsqrt(var2 + _EPS) * g2_ref[...] + b2_ref[...]
    o_ref[...] = y.astype(o_ref.dtype)


def patch_embed_pallas(v, g1, b1, w, b, g2, b2):
    """to_patch_embedding (LN -> Linear -> LN) fused.  v: (M, patch_dim) f32 -> bf16."""
    M, PD = v.shape
    D = w.shape[1]
    TM = _pick_tm(M)
    return pl.pallas_call(
        _patch_embed_kernel,
        out_shape=jax.ShapeDtypeStruct((M, D), jnp.bfloat16),
        grid=(pl.cdiv(M, TM),),
        in_specs=[
            pl.BlockSpec((TM, PD), lambda i: (i, 0)),
            pl.BlockSpec((1, PD), lambda i: (0, 0)),
            pl.BlockSpec((1, PD), lambda i: (0, 0)),
            pl.BlockSpec((PD, D), lambda i: (0, 0)),
            pl.BlockSpec((1, D), lambda i: (0, 0)),
            pl.BlockSpec((1, D), lambda i: (0, 0)),
            pl.BlockSpec((1, D), lambda i: (0, 0)),
        ],
        out_specs=pl.BlockSpec((TM, D), lambda i: (i, 0)),
        compiler_params=_cparams(("parallel",)),
    )(v, g1.reshape(1, PD), b1.reshape(1, PD), w, b.reshape(1, D),
      g2.reshape(1, D), b2.reshape(1, D))


def _ffn_addln_kernel(x_ref, w1_ref, b1_ref, w2_ref, b2_ref, g_ref, bln_ref, o_ref):
    # Fused W1 -> ReLU -> W2 -> residual-add -> LayerNorm (post-norm).
    x = x_ref[...]                                                  # (TM, D) bf16 (also residual)
    h = jnp.dot(x, w1_ref[...], preferred_element_type=jnp.float32) + b1_ref[...]
    h = jnp.maximum(h, 0.0)
    y = jnp.dot(h.astype(jnp.bfloat16), w2_ref[...],
                preferred_element_type=jnp.float32) + b2_ref[...]
    z = y + x.astype(jnp.float32)
    mean = jnp.mean(z, axis=-1, keepdims=True)
    var = jnp.mean(z * z, axis=-1, keepdims=True) - mean * mean
    out = (z - mean) * lax.rsqrt(var + _EPS) * g_ref[...] + bln_ref[...]
    o_ref[...] = out.astype(o_ref.dtype)


def ffn_addln_pallas(x, w1, b1, w2, b2, g, bln):
    """LayerNorm(x + FFN(x)).  x: (M, D) bf16 -> bf16."""
    M, D = x.shape
    F = w1.shape[1]
    TM = _pick_tm(M)
    return pl.pallas_call(
        _ffn_addln_kernel,
        out_shape=jax.ShapeDtypeStruct((M, D), jnp.bfloat16),
        grid=(pl.cdiv(M, TM),),
        in_specs=[
            pl.BlockSpec((TM, D), lambda i: (i, 0)),
            pl.BlockSpec((D, F), lambda i: (0, 0)),
            pl.BlockSpec((1, F), lambda i: (0, 0)),
            pl.BlockSpec((F, D), lambda i: (0, 0)),
            pl.BlockSpec((1, D), lambda i: (0, 0)),
            pl.BlockSpec((1, D), lambda i: (0, 0)),
            pl.BlockSpec((1, D), lambda i: (0, 0)),
        ],
        out_specs=pl.BlockSpec((TM, D), lambda i: (i, 0)),
        compiler_params=_cparams(("parallel",)),
    )(x, w1, b1.reshape(1, F), w2, b2.reshape(1, D),
      g.reshape(1, D), bln.reshape(1, D))


def _attn_block_kernel(*refs, scale, has_mask):
    # One grid step = one batch element, ALL heads (head-major layout).
    # Fuses: scores -> softmax -> @V -> output projection -> residual add -> LN.
    if has_mask:
        (q_ref, k_ref, v_ref, w_ref, bo_ref, r_ref, g_ref, bln_ref,
         m_ref, o_ref) = refs
    else:
        (q_ref, k_ref, v_ref, w_ref, bo_ref, r_ref, g_ref, bln_ref,
         o_ref) = refs
        m_ref = None
    q = q_ref[0] * scale                                            # (H, Lq, hd) bf16
    k = k_ref[0]                                                    # (H, Lk, hd) bf16
    v = v_ref[0]                                                    # (H, Lk, hd) bf16
    # All heads at once: batched matmuls over the head axis (no lane slicing).
    s = jnp.einsum("hqd,hkd->hqk", q, k, preferred_element_type=jnp.float32)
    if m_ref is not None:
        s = s + m_ref[...]                                          # broadcast (Lq, Lk)
    s = s - jnp.max(s, axis=-1, keepdims=True)
    e = jnp.exp(s)
    p = e * pl.reciprocal(jnp.sum(e, axis=-1, keepdims=True), approx=True)
    o = jnp.einsum("hqk,hkd->hqd", p.astype(jnp.bfloat16), v,
                   preferred_element_type=jnp.float32)              # (H, Lq, hd)
    # Fused output projection: concat_h(o_h) @ W_out == sum_h o_h @ W_out[h].
    proj = jnp.einsum("hqd,hdo->hqo", o.astype(jnp.bfloat16), w_ref[...],
                      preferred_element_type=jnp.float32)           # (H, Lq, dim)
    out = jnp.sum(proj, axis=0) + bo_ref[...]
    # Fused residual add + LayerNorm (f32 math, single-pass variance).
    z = out + r_ref[0].astype(jnp.float32)
    mean = jnp.mean(z, axis=-1, keepdims=True)
    var = jnp.mean(z * z, axis=-1, keepdims=True) - mean * mean
    y = (z - mean) * lax.rsqrt(var + _EPS) * g_ref[...] + bln_ref[...]
    o_ref[0] = y.astype(o_ref.dtype)


def attention_block_pallas(q, k, v, w_out_h, b_out, resid, ln_g, ln_b, scale, mask=None):
    """LayerNorm(resid + MHA(q, k, v) @ W_out + b_out).  q/k/v: (B, H, L, hd) bf16."""
    B, H, Lq, hd = q.shape
    Lk = k.shape[2]
    dim = H * hd
    has_mask = mask is not None
    in_specs = [
        pl.BlockSpec((1, H, Lq, hd), lambda i: (i, 0, 0, 0)),
        pl.BlockSpec((1, H, Lk, hd), lambda i: (i, 0, 0, 0)),
        pl.BlockSpec((1, H, Lk, hd), lambda i: (i, 0, 0, 0)),
        pl.BlockSpec((H, hd, dim), lambda i: (0, 0, 0)),
        pl.BlockSpec((1, dim), lambda i: (0, 0)),
        pl.BlockSpec((1, Lq, dim), lambda i: (i, 0, 0)),
        pl.BlockSpec((1, dim), lambda i: (0, 0)),
        pl.BlockSpec((1, dim), lambda i: (0, 0)),
    ]
    args = [q, k, v, w_out_h, b_out.reshape(1, dim), resid,
            ln_g.reshape(1, dim), ln_b.reshape(1, dim)]
    if has_mask:
        in_specs.append(pl.BlockSpec((Lq, Lk), lambda i: (0, 0)))
        args.append(mask)
    return pl.pallas_call(
        functools.partial(_attn_block_kernel, scale=scale, has_mask=has_mask),
        out_shape=jax.ShapeDtypeStruct((B, Lq, dim), jnp.bfloat16),
        grid=(B,),
        in_specs=in_specs,
        out_specs=pl.BlockSpec((1, Lq, dim), lambda i: (i, 0, 0)),
        compiler_params=_cparams(("parallel",)),
    )(*args)


# --------------------------- model building blocks ---------------------------

def _split_heads(x, b, l, heads, hd):
    # (b*l, heads*hd) -> (b, heads, l, hd)  (wrapper-side layout plumbing)
    return x.reshape(b, l, heads, hd).transpose(0, 2, 1, 3)


def mha_self_block(x, p, heads, ln_g, ln_b, mask=None):
    """Self-attention + out-proj + residual + LayerNorm, fused QKV projection."""
    b, l, dim = x.shape
    hd = dim // heads
    qkv = linear_pallas(x.reshape(b * l, dim), p["in_w"], p["in_b"])     # (b*l, 3*dim)
    qkv = qkv.reshape(b, l, 3, heads, hd).transpose(2, 0, 3, 1, 4)       # (3, b, H, l, hd)
    return attention_block_pallas(qkv[0], qkv[1], qkv[2], p["out_w_h"], p["out_b"],
                                  x, ln_g, ln_b, 1.0 / math.sqrt(hd), mask)


def mha_cross_block(y, mem, p, heads, ln_g, ln_b):
    """Cross-attention + out-proj + residual + LayerNorm; K/V projection fused."""
    b, lq, dim = y.shape
    lk = mem.shape[1]
    hd = dim // heads
    q = _split_heads(linear_pallas(y.reshape(b * lq, dim), p["q_w"], p["q_b"]),
                     b, lq, heads, hd)
    kv = linear_pallas(mem.reshape(b * lk, dim), p["kv_w"], p["kv_b"])   # (b*lk, 2*dim)
    kv = kv.reshape(b, lk, 2, heads, hd).transpose(2, 0, 3, 1, 4)        # (2, b, H, lk, hd)
    return attention_block_pallas(q, kv[0], kv[1], p["out_w_h"], p["out_b"],
                                  y, ln_g, ln_b, 1.0 / math.sqrt(hd), None)


def encoder_layer(x, p, heads):
    """nn.TransformerEncoderLayer (post-norm, ReLU, eval)."""
    b, l, d = x.shape
    x = mha_self_block(x, p["self"], heads, p["ln1_g"], p["ln1_b"])
    x = ffn_addln_pallas(x.reshape(b * l, d), p["ff_w1"], p["ff_b1"],
                         p["ff_w2"], p["ff_b2"],
                         p["ln2_g"], p["ln2_b"]).reshape(b, l, d)
    return x


def decoder_layer(y, mem, p, heads, mask):
    """nn.TransformerDecoderLayer (post-norm, ReLU, eval)."""
    b, l, d = y.shape
    y = mha_self_block(y, p["self"], heads, p["ln1_g"], p["ln1_b"], mask)
    y = mha_cross_block(y, mem, p["cross"], heads, p["ln2_g"], p["ln2_b"])
    y = ffn_addln_pallas(y.reshape(b * l, d), p["ff_w1"], p["ff_b1"],
                         p["ff_w2"], p["ff_b2"],
                         p["ln3_g"], p["ln3_b"]).reshape(b, l, d)
    return y


def posemb_sincos_3d(f, h, w, dim, temperature=10000.0):
    z, y, x = jnp.meshgrid(jnp.arange(f, dtype=jnp.float32),
                           jnp.arange(h, dtype=jnp.float32),
                           jnp.arange(w, dtype=jnp.float32), indexing="ij")
    fourier_dim = dim // 6
    omega = jnp.arange(fourier_dim, dtype=jnp.float32) / (fourier_dim - 1)
    omega = 1.0 / (temperature ** omega)
    z = z.reshape(-1, 1) * omega[None, :]
    y = y.reshape(-1, 1) * omega[None, :]
    x = x.reshape(-1, 1) * omega[None, :]
    pe = jnp.concatenate([jnp.sin(x), jnp.cos(x), jnp.sin(y), jnp.cos(y),
                          jnp.sin(z), jnp.cos(z)], axis=1)
    return jnp.pad(pe, ((0, 0), (0, dim - fourier_dim * 6)))


def simple_vit_forward(params, video, tgt, *, heads, patch_hw, frame_patch):
    """SimpleViT.forward(video, tgt, train=True)."""
    b, F, H, W = video.shape
    p1, p2 = patch_hw
    pf = frame_patch
    f, h, w = F // pf, H // p1, W // p2
    patch_dim = p1 * p2 * pf
    dim = params["patch_w"].shape[1]

    # Rearrange 'b (f pf) (h p1) (w p2) -> b f h w (p1 p2 pf)'
    v = video.reshape(b, f, pf, h, p1, w, p2)
    v = v.transpose(0, 1, 3, 5, 4, 6, 2).reshape(b * f * h * w, patch_dim)

    # to_patch_embedding: fused LN -> Linear -> LN (single Pallas kernel, bf16 out)
    x = patch_embed_pallas(v, params["patch_ln1_g"], params["patch_ln1_b"],
                           params["patch_w"], params["patch_b"],
                           params["patch_ln2_g"], params["patch_ln2_b"])

    n = f * h * w
    x = (x.astype(jnp.float32).reshape(b, n, dim)
         + posemb_sincos_3d(f, h, w, dim)[None]).astype(jnp.bfloat16)

    for lp in params["enc_layers"]:
        x = encoder_layer(x, lp, heads)
    memory = x                                                         # bf16

    # generate_sequence (train=True path)
    t = tgt.shape[1]
    # Tiny (M=b*t, K=2, N=dim) projection: plain JAX (pure launch overhead in Pallas).
    tgt_e = (tgt.reshape(b * t, 2) @ params["tgt_w"] + params["tgt_b"]).reshape(b, t, dim)
    sos = jnp.ones((b, 1, dim), jnp.float32)
    tg = jnp.concatenate([sos, tgt_e], axis=1)                         # (b, t+1, dim)
    t1 = t + 1
    # Reference mask: +1.0 on/below diagonal, -inf above (additive float mask).
    tril = jnp.tril(jnp.ones((t1, t1), jnp.float32))
    mask = jnp.where(tril == 0, -jnp.inf, 1.0).astype(jnp.float32)
    # PositionalEncoding: x + pe[:x.size(0)] (reference's batch-indexed add).
    tg = (tg + params["pe_table"][:b][:, None, :]).astype(jnp.bfloat16)

    y = tg
    for lp in params["dec_layers"]:
        y = decoder_layer(y, memory, lp, heads, mask)

    # Final head (N=2): plain JAX (lane-sparse output; pure launch overhead in Pallas).
    out = (y[:, :-1, :].reshape(b * t, dim).astype(jnp.float32)
           @ params["head_w"] + params["head_b"])
    return out.reshape(b, t, 2)


# ----------------------------- parameter init -----------------------------

def init_params(key, *, patch_dim, dim, heads, depth, mlp_dim, dec_ff, max_len=5000):
    keys = iter(jax.random.split(key, 4096))
    hd = dim // heads

    def w(shape, dtype=jnp.float32, scale=0.02):
        return (scale * jax.random.normal(next(keys), shape)).astype(dtype)

    def mha_self_p():
        # MXU weights stored in bf16 (f32 accumulation in-kernel); biases f32.
        # out_w stored head-major (heads, hd, dim) for the fused in-kernel projection.
        return dict(in_w=w((dim, 3 * dim), jnp.bfloat16), in_b=w((3 * dim,)),
                    out_w_h=w((dim, dim), jnp.bfloat16).reshape(heads, hd, dim),
                    out_b=w((dim,)))

    def mha_cross_p():
        # Pre-split q / kv projections (no per-step weight slicing).
        return dict(q_w=w((dim, dim), jnp.bfloat16), q_b=w((dim,)),
                    kv_w=w((dim, 2 * dim), jnp.bfloat16), kv_b=w((2 * dim,)),
                    out_w_h=w((dim, dim), jnp.bfloat16).reshape(heads, hd, dim),
                    out_b=w((dim,)))

    def ln_p(d):
        return jnp.ones((d,), jnp.float32), jnp.zeros((d,), jnp.float32)

    enc_layers = []
    for _ in range(depth):
        g1, b1 = ln_p(dim)
        g2, b2 = ln_p(dim)
        enc_layers.append(dict(
            self=mha_self_p(),
            ff_w1=w((dim, mlp_dim), jnp.bfloat16), ff_b1=w((mlp_dim,)),
            ff_w2=w((mlp_dim, dim), jnp.bfloat16), ff_b2=w((dim,)),
            ln1_g=g1, ln1_b=b1, ln2_g=g2, ln2_b=b2))

    dec_layers = []
    for _ in range(depth):
        g1, b1 = ln_p(dim)
        g2, b2 = ln_p(dim)
        g3, b3 = ln_p(dim)
        dec_layers.append(dict(
            self=mha_self_p(), cross=mha_cross_p(),
            ff_w1=w((dim, dec_ff), jnp.bfloat16), ff_b1=w((dec_ff,)),
            ff_w2=w((dec_ff, dim), jnp.bfloat16), ff_b2=w((dim,)),
            ln1_g=g1, ln1_b=b1, ln2_g=g2, ln2_b=b2, ln3_g=g3, ln3_b=b3))

    pg1, pb1 = ln_p(patch_dim)
    pg2, pb2 = ln_p(dim)

    # PositionalEncoding sin/cos table.  The reference hardcodes d_model=1024;
    # the add `tgt + pe[:batch]` only broadcasts when d_model == dim, so it is
    # built with d_model = dim here.
    pos = jnp.arange(max_len, dtype=jnp.float32)[:, None]
    div = jnp.exp(jnp.arange(0, dim, 2, dtype=jnp.float32) * (-math.log(10000.0) / dim))
    pe = jnp.stack([jnp.sin(pos * div), jnp.cos(pos * div)], axis=-1).reshape(max_len, dim)

    return dict(
        patch_ln1_g=pg1, patch_ln1_b=pb1,
        patch_w=w((patch_dim, dim), jnp.bfloat16), patch_b=w((dim,)),
        patch_ln2_g=pg2, patch_ln2_b=pb2,
        enc_layers=enc_layers, dec_layers=dec_layers,
        tgt_w=w((2, dim)), tgt_b=w((dim,)),
        head_w=w((dim, 2)), head_b=w((2,)),
        pe_table=pe)


# ---------------------------------- main ----------------------------------

if __name__ == "__main__":
    B, FRAMES, H, W = 2, 4, 16, 16       # video: (batch, frames, height, width)
    P1 = P2 = 8                           # image_patch_size
    PF = 1                                # frame_patch_size
    DIM = 128                             # dim (multiple of 128 -> lane-dense blocks)
    HEADS = 8                             # head_dim = 16
    DEPTH = 2                             # reference default 6; shrunk for demo
    MLP_DIM = 256                         # encoder dim_feedforward
    DEC_FF = 256                          # reference decoder default 2048; shrunk for demo
    T_TGT = 3                             # tgt: (batch, T_TGT, 2)

    key = jax.random.PRNGKey(0)
    k_video, k_tgt, k_params = jax.random.split(key, 3)
    video = jax.random.normal(k_video, (B, FRAMES, H, W), jnp.float32)
    tgt = jax.random.normal(k_tgt, (B, T_TGT, 2), jnp.float32)

    patch_dim = P1 * P2 * PF
    params = init_params(k_params, patch_dim=patch_dim, dim=DIM, heads=HEADS,
                         depth=DEPTH, mlp_dim=MLP_DIM, dec_ff=DEC_FF)

    fwd = jax.jit(functools.partial(simple_vit_forward, heads=HEADS,
                                    patch_hw=(P1, P2), frame_patch=PF))
    out = fwd(params, video, tgt)
    jax.block_until_ready(out)

    assert out.shape == (B, T_TGT, 2), out.shape
    assert bool(jnp.all(jnp.isfinite(out)))
    print("KERNEL_OK")
</pallas_src>

<mosaic_0001>
module attributes {stable_mosaic.version = 11 : i64} {
  func.func @_patch_embed_kernel(%arg0: i32, %arg1: memref<16x64xf32, #tpu.memory_space<vmem>>, %arg2: memref<1x64xf32, #tpu.memory_space<vmem>>, %arg3: memref<1x64xf32, #tpu.memory_space<vmem>>, %arg4: memref<64x128xbf16, #tpu.memory_space<vmem>>, %arg5: memref<1x128xf32, #tpu.memory_space<vmem>>, %arg6: memref<1x128xf32, #tpu.memory_space<vmem>>, %arg7: memref<1x128xf32, #tpu.memory_space<vmem>>, %arg8: memref<16x128xbf16, #tpu.memory_space<vmem>>) attributes {dimension_semantics = [#tpu.dimension_semantics<parallel>], iteration_bounds = array<i64: 2>, scalar_prefetch = 0 : i64, scratch_operands = 0 : i64, tpu.core_type = #tpu.core_type<tc>, window_params = [{transform_indices = @transform_0, window_bounds = array<i64: 16, 64>}, {pipeline_mode = #tpu.pipeline_mode<synchronous>, transform_indices = @transform_1, window_bounds = array<i64: 1, 64>}, {pipeline_mode = #tpu.pipeline_mode<synchronous>, transform_indices = @transform_2, window_bounds = array<i64: 1, 64>}, {pipeline_mode = #tpu.pipeline_mode<synchronous>, transform_indices = @transform_3, window_bounds = array<i64: 64, 128>}, {pipeline_mode = #tpu.pipeline_mode<synchronous>, transform_indices = @transform_4, window_bounds = array<i64: 1, 128>}, {pipeline_mode = #tpu.pipeline_mode<synchronous>, transform_indices = @transform_5, window_bounds = array<i64: 1, 128>}, {pipeline_mode = #tpu.pipeline_mode<synchronous>, transform_indices = @transform_6, window_bounds = array<i64: 1, 128>}, {transform_indices = @transform_7, window_bounds = array<i64: 16, 128>}]} {
    %c0 = arith.constant 0 : index
    %c0_0 = arith.constant 0 : index
    %0 = vector.load %arg1[%c0, %c0_0] : memref<16x64xf32, #tpu.memory_space<vmem>>, vector<16x64xf32>
    %cst = arith.constant dense<0.000000e+00> : vector<16xf32>
    %1 = vector.multi_reduction <add>, %0, %cst [1] : vector<16x64xf32> to vector<16xf32>
    %2 = vector.shape_cast %1 : vector<16xf32> to vector<16x1xf32>
    %cst_1 = arith.constant 6.400000e+01 : f32
    %3 = vector.broadcast %cst_1 : f32 to vector<16x1xf32>
    %4 = arith.divf %2, %3 : vector<16x1xf32>
    %5 = arith.mulf %0, %0 : vector<16x64xf32>
    %cst_2 = arith.constant dense<0.000000e+00> : vector<16xf32>
    %6 = vector.multi_reduction <add>, %5, %cst_2 [1] : vector<16x64xf32> to vector<16xf32>
    %7 = vector.shape_cast %6 : vector<16xf32> to vector<16x1xf32>
    %cst_3 = arith.constant 6.400000e+01 : f32
    %8 = vector.broadcast %cst_3 : f32 to vector<16x1xf32>
    %9 = arith.divf %7, %8 : vector<16x1xf32>
    %10 = arith.mulf %4, %4 : vector<16x1xf32>
    %11 = arith.subf %9, %10 : vector<16x1xf32>
    %12 = vector.broadcast %4 : vector<16x1xf32> to vector<16x64xf32>
    %13 = arith.subf %0, %12 : vector<16x64xf32>
    %cst_4 = arith.constant 9.99999974E-6 : f32
    %14 = vector.broadcast %cst_4 : f32 to vector<16x1xf32>
    %15 = arith.addf %11, %14 : vector<16x1xf32>
    %16 = math.rsqrt %15 : vector<16x1xf32>
    %17 = vector.broadcast %16 : vector<16x1xf32> to vector<16x64xf32>
    %18 = arith.mulf %13, %17 : vector<16x64xf32>
    %c0_5 = arith.constant 0 : index
    %c0_6 = arith.constant 0 : index
    %19 = vector.load %arg2[%c0_5, %c0_6] : memref<1x64xf32, #tpu.memory_space<vmem>>, vector<1x64xf32>
    %20 = vector.broadcast %19 : vector<1x64xf32> to vector<16x64xf32>
    %21 = arith.mulf %18, %20 : vector<16x64xf32>
    %c0_7 = arith.constant 0 : index
    %c0_8 = arith.constant 0 : index
    %22 = vector.load %arg3[%c0_7, %c0_8] : memref<1x64xf32, #tpu.memory_space<vmem>>, vector<1x64xf32>
    %23 = vector.broadcast %22 : vector<1x64xf32> to vector<16x64xf32>
    %24 = arith.addf %21, %23 : vector<16x64xf32>
    %25 = arith.truncf %24 : vector<16x64xf32> to vector<16x64xbf16>
    %c0_9 = arith.constant 0 : index
    %c0_10 = arith.constant 0 : index
    %26 = vector.load %arg4[%c0_9, %c0_10] : memref<64x128xbf16, #tpu.memory_space<vmem>>, vector<64x128xbf16>
    %cst_11 = arith.constant dense<0.000000e+00> : vector<16x128xf32>
    %27 = tpu.matmul %25, %26, %cst_11 {dimension_numbers = #tpu.dot_dimension_numbers<[1], [0], [0], [1], [0, 0, 1, 1], [], []>} : vector<16x64xbf16>, vector<64x128xbf16>, vector<16x128xf32> -> vector<16x128xf32>
    %c0_12 = arith.constant 0 : index
    %c0_13 = arith.constant 0 : index
    %28 = vector.load %arg5[%c0_12, %c0_13] : memref<1x128xf32, #tpu.memory_space<vmem>>, vector<1x128xf32>
    %29 = vector.broadcast %28 : vector<1x128xf32> to vector<16x128xf32>
    %30 = arith.addf %27, %29 : vector<16x128xf32>
    %cst_14 = arith.constant dense<0.000000e+00> : vector<16xf32>
    %31 = vector.multi_reduction <add>, %30, %cst_14 [1] : vector<16x128xf32> to vector<16xf32>
    %32 = vector.shape_cast %31 : vector<16xf32> to vector<16x1xf32>
    %cst_15 = arith.constant 1.280000e+02 : f32
    %33 = vector.broadcast %cst_15 : f32 to vector<16x1xf32>
    %34 = arith.divf %32, %33 : vector<16x1xf32>
    %35 = arith.mulf %30, %30 : vector<16x128xf32>
    %cst_16 = arith.constant dense<0.000000e+00> : vector<16xf32>
    %36 = vector.multi_reduction <add>, %35, %cst_16 [1] : vector<16x128xf32> to vector<16xf32>
    %37 = vector.shape_cast %36 : vector<16xf32> to vector<16x1xf32>
    %cst_17 = arith.constant 1.280000e+02 : f32
    %38 = vector.broadcast %cst_17 : f32 to vector<16x1xf32>
    %39 = arith.divf %37, %38 : vector<16x1xf32>
    %40 = arith.mulf %34, %34 : vector<16x1xf32>
    %41 = arith.subf %39, %40 : vector<16x1xf32>
    %42 = vector.broadcast %34 : vector<16x1xf32> to vector<16x128xf32>
    %43 = arith.subf %30, %42 : vector<16x128xf32>
    %cst_18 = arith.constant 9.99999974E-6 : f32
    %44 = vector.broadcast %cst_18 : f32 to vector<16x1xf32>
    %45 = arith.addf %41, %44 : vector<16x1xf32>
    %46 = math.rsqrt %45 : vector<16x1xf32>
    %47 = vector.broadcast %46 : vector<16x1xf32> to vector<16x128xf32>
    %48 = arith.mulf %43, %47 : vector<16x128xf32>
    %c0_19 = arith.constant 0 : index
    %c0_20 = arith.constant 0 : index
    %49 = vector.load %arg6[%c0_19, %c0_20] : memref<1x128xf32, #tpu.memory_space<vmem>>, vector<1x128xf32>
    %50 = vector.broadcast %49 : vector<1x128xf32> to vector<16x128xf32>
    %51 = arith.mulf %48, %50 : vector<16x128xf32>
    %c0_21 = arith.constant 0 : index
    %c0_22 = arith.constant 0 : index
    %52 = vector.load %arg7[%c0_21, %c0_22] : memref<1x128xf32, #tpu.memory_space<vmem>>, vector<1x128xf32>
    %53 = vector.broadcast %52 : vector<1x128xf32> to vector<16x128xf32>
    %54 = arith.addf %51, %53 : vector<16x128xf32>
    %55 = arith.truncf %54 : vector<16x128xf32> to vector<16x128xbf16>
    %c0_23 = arith.constant 0 : index
    %c0_24 = arith.constant 0 : index
    %56 = vector.load %arg8[%c0_23, %c0_24] : memref<16x128xbf16, #tpu.memory_space<vmem>>, vector<16x128xbf16>
    tpu.vector_store %arg8[%c0_23, %c0_24], %55 {strides = array<i32>} : memref<16x128xbf16, #tpu.memory_space<vmem>>, vector<16x128xbf16>,
    return
  }
  func.func @transform_0(%arg0: i32) -> (i32, i32) {
    %c0_i32 = arith.constant 0 : i32
    %c0_i32_0 = arith.constant 0 : i32
    return %arg0, %c0_i32 : i32, i32
  }
  func.func @transform_1(%arg0: i32) -> (i32, i32) {
    %c0_i32 = arith.constant 0 : i32
    %c0_i32_0 = arith.constant 0 : i32
    %c0_i32_1 = arith.constant 0 : i32
    return %c0_i32, %c0_i32_0 : i32, i32
  }
  func.func @transform_2(%arg0: i32) -> (i32, i32) {
    %c0_i32 = arith.constant 0 : i32
    %c0_i32_0 = arith.constant 0 : i32
    %c0_i32_1 = arith.constant 0 : i32
    return %c0_i32, %c0_i32_0 : i32, i32
  }
  func.func @transform_3(%arg0: i32) -> (i32, i32) {
    %c0_i32 = arith.constant 0 : i32
    %c0_i32_0 = arith.constant 0 : i32
    %c0_i32_1 = arith.constant 0 : i32
    return %c0_i32, %c0_i32_0 : i32, i32
  }
  func.func @transform_4(%arg0: i32) -> (i32, i32) {
    %c0_i32 = arith.constant 0 : i32
    %c0_i32_0 = arith.constant 0 : i32
    %c0_i32_1 = arith.constant 0 : i32
    return %c0_i32, %c0_i32_0 : i32, i32
  }
  func.func @transform_5(%arg0: i32) -> (i32, i32) {
    %c0_i32 = arith.constant 0 : i32
    %c0_i32_0 = arith.constant 0 : i32
    %c0_i32_1 = arith.constant 0 : i32
    return %c0_i32, %c0_i32_0 : i32, i32
  }
  func.func @transform_6(%arg0: i32) -> (i32, i32) {
    %c0_i32 = arith.constant 0 : i32
    %c0_i32_0 = arith.constant 0 : i32
    %c0_i32_1 = arith.constant 0 : i32
    return %c0_i32, %c0_i32_0 : i32, i32
  }
  func.func @transform_7(%arg0: i32) -> (i32, i32) {
    %c0_i32 = arith.constant 0 : i32
    %c0_i32_0 = arith.constant 0 : i32
    return %arg0, %c0_i32 : i32, i32
  }
}

module attributes {stable_mosaic.version = 11 : i64} {
  func.func @_linear_kernel(%arg0: i32, %arg1: i32, %arg2: memref<16x128xbf16, #tpu.memory_space<vmem>>, %arg3: memref<128x384xbf16, #tpu.memory_space<vmem>>, %arg4: memref<1x384xf32, #tpu.memory_space<vmem>>, %arg5: memref<16x384xbf16, #tpu.memory_space<vmem>>) attributes {dimension_semantics = [#tpu.dimension_semantics<parallel>, #tpu.dimension_semantics<parallel>], iteration_bounds = array<i64: 2, 1>, scalar_prefetch = 0 : i64, scratch_operands = 0 : i64, tpu.core_type = #tpu.core_type<tc>, window_params = [{transform_indices = @transform_0, window_bounds = array<i64: 16, 128>}, {transform_indices = @transform_1, window_bounds = array<i64: 128, 384>}, {transform_indices = @transform_2, window_bounds = array<i64: 1, 384>}, {transform_indices = @transform_3, window_bounds = array<i64: 16, 384>}]} {
    %c0 = arith.constant 0 : index
    %c0_0 = arith.constant 0 : index
    %0 = vector.load %arg2[%c0, %c0_0] : memref<16x128xbf16, #tpu.memory_space<vmem>>, vector<16x128xbf16>
    %c0_1 = arith.constant 0 : index
    %c0_2 = arith.constant 0 : index
    %1 = vector.load %arg3[%c0_1, %c0_2] : memref<128x384xbf16, #tpu.memory_space<vmem>>, vector<128x384xbf16>
    %cst = arith.constant dense<0.000000e+00> : vector<16x384xf32>
    %2 = tpu.matmul %0, %1, %cst {dimension_numbers = #tpu.dot_dimension_numbers<[1], [0], [0], [1], [0, 0, 1, 1], [], []>} : vector<16x128xbf16>, vector<128x384xbf16>, vector<16x384xf32> -> vector<16x384xf32>
    %c0_3 = arith.constant 0 : index
    %c0_4 = arith.constant 0 : index
    %3 = vector.load %arg4[%c0_3, %c0_4] : memref<1x384xf32, #tpu.memory_space<vmem>>, vector<1x384xf32>
    %4 = vector.broadcast %3 : vector<1x384xf32> to vector<16x384xf32>
    %5 = arith.addf %2, %4 : vector<16x384xf32>
    %6 = arith.truncf %5 : vector<16x384xf32> to vector<16x384xbf16>
    %c0_5 = arith.constant 0 : index
    %c0_6 = arith.constant 0 : index
    %7 = vector.load %arg5[%c0_5, %c0_6] : memref<16x384xbf16, #tpu.memory_space<vmem>>, vector<16x384xbf16>
    tpu.vector_store %arg5[%c0_5, %c0_6], %6 {strides = array<i32>} : memref<16x384xbf16, #tpu.memory_space<vmem>>, vector<16x384xbf16>,
    return
  }
  func.func @transform_0(%arg0: i32, %arg1: i32) -> (i32, i32) {
    %c0_i32 = arith.constant 0 : i32
    %c0_i32_0 = arith.constant 0 : i32
    return %arg0, %c0_i32 : i32, i32
  }
  func.func @transform_1(%arg0: i32, %arg1: i32) -> (i32, i32) {
    %c0_i32 = arith.constant 0 : i32
    %c0_i32_0 = arith.constant 0 : i32
    return %c0_i32, %arg1 : i32, i32
  }
  func.func @transform_2(%arg0: i32, %arg1: i32) -> (i32, i32) {
    %c0_i32 = arith.constant 0 : i32
    %c0_i32_0 = arith.constant 0 : i32
    return %c0_i32, %arg1 : i32, i32
  }
  func.func @transform_3(%arg0: i32, %arg1: i32) -> (i32, i32) {
    %c0_i32 = arith.constant 0 : i32
    return %arg0, %arg1 : i32, i32
  }
}

module attributes {stable_mosaic.version = 11 : i64} {
  func.func @_attn_block_kernel(%arg0: i32, %arg1: memref<1x8x16x16xbf16, #tpu.memory_space<vmem>>, %arg2: memref<1x8x16x16xbf16, #tpu.memory_space<vmem>>, %arg3: memref<1x8x16x16xbf16, #tpu.memory_space<vmem>>, %arg4: memref<8x16x128xbf16, #tpu.memory_space<vmem>>, %arg5: memref<1x128xf32, #tpu.memory_space<vmem>>, %arg6: memref<1x16x128xbf16, #tpu.memory_space<vmem>>, %arg7: memref<1x128xf32, #tpu.memory_space<vmem>>, %arg8: memref<1x128xf32, #tpu.memory_space<vmem>>, %arg9: memref<1x16x128xbf16, #tpu.memory_space<vmem>>) attributes {dimension_semantics = [#tpu.dimension_semantics<parallel>], iteration_bounds = array<i64: 2>, scalar_prefetch = 0 : i64, scratch_operands = 0 : i64, tpu.core_type = #tpu.core_type<tc>, window_params = [{transform_indices = @transform_0, window_bounds = array<i64: 1, 8, 16, 16>}, {transform_indices = @transform_1, window_bounds = array<i64: 1, 8, 16, 16>}, {transform_indices = @transform_2, window_bounds = array<i64: 1, 8, 16, 16>}, {pipeline_mode = #tpu.pipeline_mode<synchronous>, transform_indices = @transform_3, window_bounds = array<i64: 8, 16, 128>}, {pipeline_mode = #tpu.pipeline_mode<synchronous>, transform_indices = @transform_4, window_bounds = array<i64: 1, 128>}, {transform_indices = @transform_5, window_bounds = array<i64: 1, 16, 128>}, {pipeline_mode = #tpu.pipeline_mode<synchronous>, transform_indices = @transform_6, window_bounds = array<i64: 1, 128>}, {pipeline_mode = #tpu.pipeline_mode<synchronous>, transform_indices = @transform_7, window_bounds = array<i64: 1, 128>}, {transform_indices = @transform_8, window_bounds = array<i64: 1, 16, 128>}]} {
    %c0 = arith.constant 0 : index
    %c0_0 = arith.constant 0 : index
    %c0_1 = arith.constant 0 : index
    %c0_2 = arith.constant 0 : index
    %0 = vector.load %arg1[%c0, %c0_0, %c0_1, %c0_2] : memref<1x8x16x16xbf16, #tpu.memory_space<vmem>>, vector<1x8x16x16xbf16>
    %1 = vector.shape_cast %0 : vector<1x8x16x16xbf16> to vector<8x16x16xbf16>
    %cst = arith.constant 2.500000e-01 : bf16
    %2 = vector.broadcast %cst : bf16 to vector<8x16x16xbf16>
    %3 = arith.mulf %1, %2 : vector<8x16x16xbf16>
    %c0_3 = arith.constant 0 : index
    %c0_4 = arith.constant 0 : index
    %c0_5 = arith.constant 0 : index
    %c0_6 = arith.constant 0 : index
    %4 = vector.load %arg2[%c0_3, %c0_4, %c0_5, %c0_6] : memref<1x8x16x16xbf16, #tpu.memory_space<vmem>>, vector<1x8x16x16xbf16>
    %5 = vector.shape_cast %4 : vector<1x8x16x16xbf16> to vector<8x16x16xbf16>
    %c0_7 = arith.constant 0 : index
    %c0_8 = arith.constant 0 : index
    %c0_9 = arith.constant 0 : index
    %c0_10 = arith.constant 0 : index
    %6 = vector.load %arg3[%c0_7, %c0_8, %c0_9, %c0_10] : memref<1x8x16x16xbf16, #tpu.memory_space<vmem>>, vector<1x8x16x16xbf16>
    %7 = vector.shape_cast %6 : vector<1x8x16x16xbf16> to vector<8x16x16xbf16>
    "tpu.trace_start"() <{level = 10 : i32, message = "hqd,hkd->hqk"}> : () -> ()
    %cst_11 = arith.constant dense<0.000000e+00> : vector<8x16x16xf32>
    %8 = tpu.matmul %3, %5, %cst_11 {dimension_numbers = #tpu.dot_dimension_numbers<[2], [2], [1], [1], [0, 0, 0, 1, 1, 1], [0], [0]>} : vector<8x16x16xbf16>, vector<8x16x16xbf16>, vector<8x16x16xf32> -> vector<8x16x16xf32>
    "tpu.trace_stop"() : () -> ()
    %cst_12 = arith.constant dense<0xFF800000> : vector<8x16xf32>
    %9 = vector.multi_reduction <maximumf>, %8, %cst_12 [2] : vector<8x16x16xf32> to vector<8x16xf32>
    %10 = vector.shape_cast %9 : vector<8x16xf32> to vector<8x16x1xf32>
    %11 = vector.broadcast %10 : vector<8x16x1xf32> to vector<8x16x16xf32>
    %12 = arith.subf %8, %11 : vector<8x16x16xf32>
    %13 = math.exp %12 : vector<8x16x16xf32>
    %cst_13 = arith.constant dense<0.000000e+00> : vector<8x16xf32>
    %14 = vector.multi_reduction <add>, %13, %cst_13 [2] : vector<8x16x16xf32> to vector<8x16xf32>
    %15 = vector.shape_cast %14 : vector<8x16xf32> to vector<8x16x1xf32>
    %16 = tpu.reciprocal %15 {approx = true} : vector<8x16x1xf32> -> vector<8x16x1xf32>
    %17 = vector.broadcast %16 : vector<8x16x1xf32> to vector<8x16x16xf32>
    %18 = arith.mulf %13, %17 : vector<8x16x16xf32>
    %19 = arith.truncf %18 : vector<8x16x16xf32> to vector<8x16x16xbf16>
    "tpu.trace_start"() <{level = 10 : i32, message = "hqk,hkd->hqd"}> : () -> ()
    %cst_14 = arith.constant dense<0.000000e+00> : vector<8x16x16xf32>
    %20 = tpu.matmul %19, %7, %cst_14 {dimension_numbers = #tpu.dot_dimension_numbers<[2], [1], [1], [2], [0, 0, 0, 1, 1, 2], [0], [0]>} : vector<8x16x16xbf16>, vector<8x16x16xbf16>, vector<8x16x16xf32> -> vector<8x16x16xf32>
    "tpu.trace_stop"() : () -> ()
    %21 = arith.truncf %20 : vector<8x16x16xf32> to vector<8x16x16xbf16>
    %c0_15 = arith.constant 0 : index
    %c0_16 = arith.constant 0 : index
    %c0_17 = arith.constant 0 : index
    %22 = vector.load %arg4[%c0_15, %c0_16, %c0_17] : memref<8x16x128xbf16, #tpu.memory_space<vmem>>, vector<8x16x128xbf16>
    "tpu.trace_start"() <{level = 10 : i32, message = "hqd,hdo->hqo"}> : () -> ()
    %cst_18 = arith.constant dense<0.000000e+00> : vector<8x16x128xf32>
    %23 = tpu.matmul %21, %22, %cst_18 {dimension_numbers = #tpu.dot_dimension_numbers<[2], [1], [1], [2], [0, 0, 0, 1, 1, 2], [0], [0]>} : vector<8x16x16xbf16>, vector<8x16x128xbf16>, vector<8x16x128xf32> -> vector<8x16x128xf32>
    "tpu.trace_stop"() : () -> ()
    %cst_19 = arith.constant dense<0.000000e+00> : vector<16x128xf32>
    %24 = vector.multi_reduction <add>, %23, %cst_19 [0] : vector<8x16x128xf32> to vector<16x128xf32>
    %c0_20 = arith.constant 0 : index
    %c0_21 = arith.constant 0 : index
    %25 = vector.load %arg5[%c0_20, %c0_21] : memref<1x128xf32, #tpu.memory_space<vmem>>, vector<1x128xf32>
    %26 = vector.broadcast %25 : vector<1x128xf32> to vector<16x128xf32>
    %27 = arith.addf %24, %26 : vector<16x128xf32>
    %c0_22 = arith.constant 0 : index
    %c0_23 = arith.constant 0 : index
    %c0_24 = arith.constant 0 : index
    %28 = vector.load %arg6[%c0_22, %c0_23, %c0_24] : memref<1x16x128xbf16, #tpu.memory_space<vmem>>, vector<1x16x128xbf16>
    %29 = vector.shape_cast %28 : vector<1x16x128xbf16> to vector<16x128xbf16>
    %30 = arith.extf %29 : vector<16x128xbf16> to vector<16x128xf32>
    %31 = arith.addf %27, %30 : vector<16x128xf32>
    %cst_25 = arith.constant dense<0.000000e+00> : vector<16xf32>
    %32 = vector.multi_reduction <add>, %31, %cst_25 [1] : vector<16x128xf32> to vector<16xf32>
    %33 = vector.shape_cast %32 : vector<16xf32> to vector<16x1xf32>
    %cst_26 = arith.constant 1.280000e+02 : f32
    %34 = vector.broadcast %cst_26 : f32 to vector<16x1xf32>
    %35 = arith.divf %33, %34 : vector<16x1xf32>
    %36 = arith.mulf %31, %31 : vector<16x128xf32>
    %cst_27 = arith.constant dense<0.000000e+00> : vector<16xf32>
    %37 = vector.multi_reduction <add>, %36, %cst_27 [1] : vector<16x128xf32> to vector<16xf32>
    %38 = vector.shape_cast %37 : vector<16xf32> to vector<16x1xf32>
    %cst_28 = arith.constant 1.280000e+02 : f32
    %39 = vector.broadcast %cst_28 : f32 to vector<16x1xf32>
    %40 = arith.divf %38, %39 : vector<16x1xf32>
    %41 = arith.mulf %35, %35 : vector<16x1xf32>
    %42 = arith.subf %40, %41 : vector<16x1xf32>
    %43 = vector.broadcast %35 : vector<16x1xf32> to vector<16x128xf32>
    %44 = arith.subf %31, %43 : vector<16x128xf32>
    %cst_29 = arith.constant 9.99999974E-6 : f32
    %45 = vector.broadcast %cst_29 : f32 to vector<16x1xf32>
    %46 = arith.addf %42, %45 : vector<16x1xf32>
    %47 = math.rsqrt %46 : vector<16x1xf32>
    %48 = vector.broadcast %47 : vector<16x1xf32> to vector<16x128xf32>
    %49 = arith.mulf %44, %48 : vector<16x128xf32>
    %c0_30 = arith.constant 0 : index
    %c0_31 = arith.constant 0 : index
    %50 = vector.load %arg7[%c0_30, %c0_31] : memref<1x128xf32, #tpu.memory_space<vmem>>, vector<1x128xf32>
    %51 = vector.broadcast %50 : vector<1x128xf32> to vector<16x128xf32>
    %52 = arith.mulf %49, %51 : vector<16x128xf32>
    %c0_32 = arith.constant 0 : index
    %c0_33 = arith.constant 0 : index
    %53 = vector.load %arg8[%c0_32, %c0_33] : memref<1x128xf32, #tpu.memory_space<vmem>>, vector<1x128xf32>
    %54 = vector.broadcast %53 : vector<1x128xf32> to vector<16x128xf32>
    %55 = arith.addf %52, %54 : vector<16x128xf32>
    %56 = arith.truncf %55 : vector<16x128xf32> to vector<16x128xbf16>
    %c0_34 = arith.constant 0 : index
    %c0_35 = arith.constant 0 : index
    %c0_36 = arith.constant 0 : index
    %57 = vector.load %arg9[%c0_34, %c0_35, %c0_36] : memref<1x16x128xbf16, #tpu.memory_space<vmem>>, vector<1x16x128xbf16>
    %58 = vector.shape_cast %57 : vector<1x16x128xbf16> to vector<16x128xbf16>
    %59 = vector.shape_cast %56 : vector<16x128xbf16> to vector<1x16x128xbf16>
    tpu.vector_store %arg9[%c0_34, %c0_35, %c0_36], %59 {strides = array<i32>} : memref<1x16x128xbf16, #tpu.memory_space<vmem>>, vector<1x16x128xbf16>,
    return
  }
  func.func @transform_0(%arg0: i32) -> (i32, i32, i32, i32) {
    %c0_i32 = arith.constant 0 : i32
    %c0_i32_0 = arith.constant 0 : i32
    %c0_i32_1 = arith.constant 0 : i32
    %c0_i32_2 = arith.constant 0 : i32
    return %arg0, %c0_i32, %c0_i32_0, %c0_i32_1 : i32, i32, i32, i32
  }
  func.func @transform_1(%arg0: i32) -> (i32, i32, i32, i32) {
    %c0_i32 = arith.constant 0 : i32
    %c0_i32_0 = arith.constant 0 : i32
    %c0_i32_1 = arith.constant 0 : i32
    %c0_i32_2 = arith.constant 0 : i32
    return %arg0, %c0_i32, %c0_i32_0, %c0_i32_1 : i32, i32, i32, i32
  }
  func.func @transform_2(%arg0: i32) -> (i32, i32, i32, i32) {
    %c0_i32 = arith.constant 0 : i32
    %c0_i32_0 = arith.constant 0 : i32
    %c0_i32_1 = arith.constant 0 : i32
    %c0_i32_2 = arith.constant 0 : i32
    return %arg0, %c0_i32, %c0_i32_0, %c0_i32_1 : i32, i32, i32, i32
  }
  func.func @transform_3(%arg0: i32) -> (i32, i32, i32) {
    %c0_i32 = arith.constant 0 : i32
    %c0_i32_0 = arith.constant 0 : i32
    %c0_i32_1 = arith.constant 0 : i32
    %c0_i32_2 = arith.constant 0 : i32
    return %c0_i32, %c0_i32_0, %c0_i32_1 : i32, i32, i32
  }
  func.func @transform_4(%arg0: i32) -> (i32, i32) {
    %c0_i32 = arith.constant 0 : i32
    %c0_i32_0 = arith.constant 0 : i32
    %c0_i32_1 = arith.constant 0 : i32
    return %c0_i32, %c0_i32_0 : i32, i32
  }
  func.func @transform_5(%arg0: i32) -> (i32, i32, i32) {
    %c0_i32 = arith.constant 0 : i32
    %c0_i32_0 = arith.constant 0 : i32
    %c0_i32_1 = arith.constant 0 : i32
    return %arg0, %c0_i32, %c0_i32_0 : i32, i32, i32
  }
  func.func @transform_6(%arg0: i32) -> (i32, i32) {
    %c0_i32 = arith.constant 0 : i32
    %c0_i32_0 = arith.constant 0 : i32
    %c0_i32_1 = arith.constant 0 : i32
    return %c0_i32, %c0_i32_0 : i32, i32
  }
  func.func @transform_7(%arg0: i32) -> (i32, i32) {
    %c0_i32 = arith.constant 0 : i32
    %c0_i32_0 = arith.constant 0 : i32
    %c0_i32_1 = arith.constant 0 : i32
    return %c0_i32, %c0_i32_0 : i32, i32
  }
  func.func @transform_8(%arg0: i32) -> (i32, i32, i32) {
    %c0_i32 = arith.constant 0 : i32
    %c0_i32_0 = arith.constant 0 : i32
    %c0_i32_1 = arith.constant 0 : i32
    return %arg0, %c0_i32, %c0_i32_0 : i32, i32, i32
  }
}

module attributes {stable_mosaic.version = 11 : i64} {
  func.func @_ffn_addln_kernel(%arg0: i32, %arg1: memref<16x128xbf16, #tpu.memory_space<vmem>>, %arg2: memref<128x256xbf16, #tpu.memory_space<vmem>>, %arg3: memref<1x256xf32, #tpu.memory_space<vmem>>, %arg4: memref<256x128xbf16, #tpu.memory_space<vmem>>, %arg5: memref<1x128xf32, #tpu.memory_space<vmem>>, %arg6: memref<1x128xf32, #tpu.memory_space<vmem>>, %arg7: memref<1x128xf32, #tpu.memory_space<vmem>>, %arg8: memref<16x128xbf16, #tpu.memory_space<vmem>>) attributes {dimension_semantics = [#tpu.dimension_semantics<parallel>], iteration_bounds = array<i64: 2>, scalar_prefetch = 0 : i64, scratch_operands = 0 : i64, tpu.core_type = #tpu.core_type<tc>, window_params = [{transform_indices = @transform_0, window_bounds = array<i64: 16, 128>}, {pipeline_mode = #tpu.pipeline_mode<synchronous>, transform_indices = @transform_1, window_bounds = array<i64: 128, 256>}, {pipeline_mode = #tpu.pipeline_mode<synchronous>, transform_indices = @transform_2, window_bounds = array<i64: 1, 256>}, {pipeline_mode = #tpu.pipeline_mode<synchronous>, transform_indices = @transform_3, window_bounds = array<i64: 256, 128>}, {pipeline_mode = #tpu.pipeline_mode<synchronous>, transform_indices = @transform_4, window_bounds = array<i64: 1, 128>}, {pipeline_mode = #tpu.pipeline_mode<synchronous>, transform_indices = @transform_5, window_bounds = array<i64: 1, 128>}, {pipeline_mode = #tpu.pipeline_mode<synchronous>, transform_indices = @transform_6, window_bounds = array<i64: 1, 128>}, {transform_indices = @transform_7, window_bounds = array<i64: 16, 128>}]} {
    %c0 = arith.constant 0 : index
    %c0_0 = arith.constant 0 : index
    %0 = vector.load %arg1[%c0, %c0_0] : memref<16x128xbf16, #tpu.memory_space<vmem>>, vector<16x128xbf16>
    %c0_1 = arith.constant 0 : index
    %c0_2 = arith.constant 0 : index
    %1 = vector.load %arg2[%c0_1, %c0_2] : memref<128x256xbf16, #tpu.memory_space<vmem>>, vector<128x256xbf16>
    %cst = arith.constant dense<0.000000e+00> : vector<16x256xf32>
    %2 = tpu.matmul %0, %1, %cst {dimension_numbers = #tpu.dot_dimension_numbers<[1], [0], [0], [1], [0, 0, 1, 1], [], []>} : vector<16x128xbf16>, vector<128x256xbf16>, vector<16x256xf32> -> vector<16x256xf32>
    %c0_3 = arith.constant 0 : index
    %c0_4 = arith.constant 0 : index
    %3 = vector.load %arg3[%c0_3, %c0_4] : memref<1x256xf32, #tpu.memory_space<vmem>>, vector<1x256xf32>
    %4 = vector.broadcast %3 : vector<1x256xf32> to vector<16x256xf32>
    %5 = arith.addf %2, %4 : vector<16x256xf32>
    %cst_5 = arith.constant 0.000000e+00 : f32
    %6 = vector.broadcast %cst_5 : f32 to vector<16x256xf32>
    %7 = arith.maximumf %5, %6 : vector<16x256xf32>
    %8 = arith.truncf %7 : vector<16x256xf32> to vector<16x256xbf16>
    %c0_6 = arith.constant 0 : index
    %c0_7 = arith.constant 0 : index
    %9 = vector.load %arg4[%c0_6, %c0_7] : memref<256x128xbf16, #tpu.memory_space<vmem>>, vector<256x128xbf16>
    %cst_8 = arith.constant dense<0.000000e+00> : vector<16x128xf32>
    %10 = tpu.matmul %8, %9, %cst_8 {dimension_numbers = #tpu.dot_dimension_numbers<[1], [0], [0], [1], [0, 0, 1, 1], [], []>} : vector<16x256xbf16>, vector<256x128xbf16>, vector<16x128xf32> -> vector<16x128xf32>
    %c0_9 = arith.constant 0 : index
    %c0_10 = arith.constant 0 : index
    %11 = vector.load %arg5[%c0_9, %c0_10] : memref<1x128xf32, #tpu.memory_space<vmem>>, vector<1x128xf32>
    %12 = vector.broadcast %11 : vector<1x128xf32> to vector<16x128xf32>
    %13 = arith.addf %10, %12 : vector<16x128xf32>
    %14 = arith.extf %0 : vector<16x128xbf16> to vector<16x128xf32>
    %15 = arith.addf %13, %14 : vector<16x128xf32>
    %cst_11 = arith.constant dense<0.000000e+00> : vector<16xf32>
    %16 = vector.multi_reduction <add>, %15, %cst_11 [1] : vector<16x128xf32> to vector<16xf32>
    %17 = vector.shape_cast %16 : vector<16xf32> to vector<16x1xf32>
    %cst_12 = arith.constant 1.280000e+02 : f32
    %18 = vector.broadcast %cst_12 : f32 to vector<16x1xf32>
    %19 = arith.divf %17, %18 : vector<16x1xf32>
    %20 = arith.mulf %15, %15 : vector<16x128xf32>
    %cst_13 = arith.constant dense<0.000000e+00> : vector<16xf32>
    %21 = vector.multi_reduction <add>, %20, %cst_13 [1] : vector<16x128xf32> to vector<16xf32>
    %22 = vector.shape_cast %21 : vector<16xf32> to vector<16x1xf32>
    %cst_14 = arith.constant 1.280000e+02 : f32
    %23 = vector.broadcast %cst_14 : f32 to vector<16x1xf32>
    %24 = arith.divf %22, %23 : vector<16x1xf32>
    %25 = arith.mulf %19, %19 : vector<16x1xf32>
    %26 = arith.subf %24, %25 : vector<16x1xf32>
    %27 = vector.broadcast %19 : vector<16x1xf32> to vector<16x128xf32>
    %28 = arith.subf %15, %27 : vector<16x128xf32>
    %cst_15 = arith.constant 9.99999974E-6 : f32
    %29 = vector.broadcast %cst_15 : f32 to vector<16x1xf32>
    %30 = arith.addf %26, %29 : vector<16x1xf32>
    %31 = math.rsqrt %30 : vector<16x1xf32>
    %32 = vector.broadcast %31 : vector<16x1xf32> to vector<16x128xf32>
    %33 = arith.mulf %28, %32 : vector<16x128xf32>
    %c0_16 = arith.constant 0 : index
    %c0_17 = arith.constant 0 : index
    %34 = vector.load %arg6[%c0_16, %c0_17] : memref<1x128xf32, #tpu.memory_space<vmem>>, vector<1x128xf32>
    %35 = vector.broadcast %34 : vector<1x128xf32> to vector<16x128xf32>
    %36 = arith.mulf %33, %35 : vector<16x128xf32>
    %c0_18 = arith.constant 0 : index
    %c0_19 = arith.constant 0 : index
    %37 = vector.load %arg7[%c0_18, %c0_19] : memref<1x128xf32, #tpu.memory_space<vmem>>, vector<1x128xf32>
    %38 = vector.broadcast %37 : vector<1x128xf32> to vector<16x128xf32>
    %39 = arith.addf %36, %38 : vector<16x128xf32>
    %40 = arith.truncf %39 : vector<16x128xf32> to vector<16x128xbf16>
    %c0_20 = arith.constant 0 : index
    %c0_21 = arith.constant 0 : index
    %41 = vector.load %arg8[%c0_20, %c0_21] : memref<16x128xbf16, #tpu.memory_space<vmem>>, vector<16x128xbf16>
    tpu.vector_store %arg8[%c0_20, %c0_21], %40 {strides = array<i32>} : memref<16x128xbf16, #tpu.memory_space<vmem>>, vector<16x128xbf16>,
    return
  }
  func.func @transform_0(%arg0: i32) -> (i32, i32) {
    %c0_i32 = arith.constant 0 : i32
    %c0_i32_0 = arith.constant 0 : i32
    return %arg0, %c0_i32 : i32, i32
  }
  func.func @transform_1(%arg0: i32) -> (i32, i32) {
    %c0_i32 = arith.constant 0 : i32
    %c0_i32_0 = arith.constant 0 : i32
    %c0_i32_1 = arith.constant 0 : i32
    return %c0_i32, %c0_i32_0 : i32, i32
  }
  func.func @transform_2(%arg0: i32) -> (i32, i32) {
    %c0_i32 = arith.constant 0 : i32
    %c0_i32_0 = arith.constant 0 : i32
    %c0_i32_1 = arith.constant 0 : i32
    return %c0_i32, %c0_i32_0 : i32, i32
  }
  func.func @transform_3(%arg0: i32) -> (i32, i32) {
    %c0_i32 = arith.constant 0 : i32
    %c0_i32_0 = arith.constant 0 : i32
    %c0_i32_1 = arith.constant 0 : i32
    return %c0_i32, %c0_i32_0 : i32, i32
  }
  func.func @transform_4(%arg0: i32) -> (i32, i32) {
    %c0_i32 = arith.constant 0 : i32
    %c0_i32_0 = arith.constant 0 : i32
    %c0_i32_1 = arith.constant 0 : i32
    return %c0_i32, %c0_i32_0 : i32, i32
  }
  func.func @transform_5(%arg0: i32) -> (i32, i32) {
    %c0_i32 = arith.constant 0 : i32
    %c0_i32_0 = arith.constant 0 : i32
    %c0_i32_1 = arith.constant 0 : i32
    return %c0_i32, %c0_i32_0 : i32, i32
  }
  func.func @transform_6(%arg0: i32) -> (i32, i32) {
    %c0_i32 = arith.constant 0 : i32
    %c0_i32_0 = arith.constant 0 : i32
    %c0_i32_1 = arith.constant 0 : i32
    return %c0_i32, %c0_i32_0 : i32, i32
  }
  func.func @transform_7(%arg0: i32) -> (i32, i32) {
    %c0_i32 = arith.constant 0 : i32
    %c0_i32_0 = arith.constant 0 : i32
    return %arg0, %c0_i32 : i32, i32
  }
}

module attributes {stable_mosaic.version = 11 : i64} {
  func.func @_attn_block_kernel(%arg0: i32, %arg1: memref<1x8x16x16xbf16, #tpu.memory_space<vmem>>, %arg2: memref<1x8x16x16xbf16, #tpu.memory_space<vmem>>, %arg3: memref<1x8x16x16xbf16, #tpu.memory_space<vmem>>, %arg4: memref<8x16x128xbf16, #tpu.memory_space<vmem>>, %arg5: memref<1x128xf32, #tpu.memory_space<vmem>>, %arg6: memref<1x16x128xbf16, #tpu.memory_space<vmem>>, %arg7: memref<1x128xf32, #tpu.memory_space<vmem>>, %arg8: memref<1x128xf32, #tpu.memory_space<vmem>>, %arg9: memref<1x16x128xbf16, #tpu.memory_space<vmem>>) attributes {dimension_semantics = [#tpu.dimension_semantics<parallel>], iteration_bounds = array<i64: 2>, scalar_prefetch = 0 : i64, scratch_operands = 0 : i64, tpu.core_type = #tpu.core_type<tc>, window_params = [{transform_indices = @transform_0, window_bounds = array<i64: 1, 8, 16, 16>}, {transform_indices = @transform_1, window_bounds = array<i64: 1, 8, 16, 16>}, {transform_indices = @transform_2, window_bounds = array<i64: 1, 8, 16, 16>}, {pipeline_mode = #tpu.pipeline_mode<synchronous>, transform_indices = @transform_3, window_bounds = array<i64: 8, 16, 128>}, {pipeline_mode = #tpu.pipeline_mode<synchronous>, transform_indices = @transform_4, window_bounds = array<i64: 1, 128>}, {transform_indices = @transform_5, window_bounds = array<i64: 1, 16, 128>}, {pipeline_mode = #tpu.pipeline_mode<synchronous>, transform_indices = @transform_6, window_bounds = array<i64: 1, 128>}, {pipeline_mode = #tpu.pipeline_mode<synchronous>, transform_indices = @transform_7, window_bounds = array<i64: 1, 128>}, {transform_indices = @transform_8, window_bounds = array<i64: 1, 16, 128>}]} {
    %c0 = arith.constant 0 : index
    %c0_0 = arith.constant 0 : index
    %c0_1 = arith.constant 0 : index
    %c0_2 = arith.constant 0 : index
    %0 = vector.load %arg1[%c0, %c0_0, %c0_1, %c0_2] : memref<1x8x16x16xbf16, #tpu.memory_space<vmem>>, vector<1x8x16x16xbf16>
    %1 = vector.shape_cast %0 : vector<1x8x16x16xbf16> to vector<8x16x16xbf16>
    %cst = arith.constant 2.500000e-01 : bf16
    %2 = vector.broadcast %cst : bf16 to vector<8x16x16xbf16>
    %3 = arith.mulf %1, %2 : vector<8x16x16xbf16>
    %c0_3 = arith.constant 0 : index
    %c0_4 = arith.constant 0 : index
    %c0_5 = arith.constant 0 : index
    %c0_6 = arith.constant 0 : index
    %4 = vector.load %arg2[%c0_3, %c0_4, %c0_5, %c0_6] : memref<1x8x16x16xbf16, #tpu.memory_space<vmem>>, vector<1x8x16x16xbf16>
    %5 = vector.shape_cast %4 : vector<1x8x16x16xbf16> to vector<8x16x16xbf16>
    %c0_7 = arith.constant 0 : index
    %c0_8 = arith.constant 0 : index
    %c0_9 = arith.constant 0 : index
    %c0_10 = arith.constant 0 : index
    %6 = vector.load %arg3[%c0_7, %c0_8, %c0_9, %c0_10] : memref<1x8x16x16xbf16, #tpu.memory_space<vmem>>, vector<1x8x16x16xbf16>
    %7 = vector.shape_cast %6 : vector<1x8x16x16xbf16> to vector<8x16x16xbf16>
    "tpu.trace_start"() <{level = 10 : i32, message = "hqd,hkd->hqk"}> : () -> ()
    %cst_11 = arith.constant dense<0.000000e+00> : vector<8x16x16xf32>
    %8 = tpu.matmul %3, %5, %cst_11 {dimension_numbers = #tpu.dot_dimension_numbers<[2], [2], [1], [1], [0, 0, 0, 1, 1, 1], [0], [0]>} : vector<8x16x16xbf16>, vector<8x16x16xbf16>, vector<8x16x16xf32> -> vector<8x16x16xf32>
    "tpu.trace_stop"() : () -> ()
    %cst_12 = arith.constant dense<0xFF800000> : vector<8x16xf32>
    %9 = vector.multi_reduction <maximumf>, %8, %cst_12 [2] : vector<8x16x16xf32> to vector<8x16xf32>
    %10 = vector.shape_cast %9 : vector<8x16xf32> to vector<8x16x1xf32>
    %11 = vector.broadcast %10 : vector<8x16x1xf32> to vector<8x16x16xf32>
    %12 = arith.subf %8, %11 : vector<8x16x16xf32>
    %13 = math.exp %12 : vector<8x16x16xf32>
    %cst_13 = arith.constant dense<0.000000e+00> : vector<8x16xf32>
    %14 = vector.multi_reduction <add>, %13, %cst_13 [2] : vector<8x16x16xf32> to vector<8x16xf32>
    %15 = vector.shape_cast %14 : vector<8x16xf32> to vector<8x16x1xf32>
    %16 = tpu.reciprocal %15 {approx = true} : vector<8x16x1xf32> -> vector<8x16x1xf32>
    %17 = vector.broadcast %16 : vector<8x16x1xf32> to vector<8x16x16xf32>
    %18 = arith.mulf %13, %17 : vector<8x16x16xf32>
    %19 = arith.truncf %18 : vector<8x16x16xf32> to vector<8x16x16xbf16>
    "tpu.trace_start"() <{level = 10 : i32, message = "hqk,hkd->hqd"}> : () -> ()
    %cst_14 = arith.constant dense<0.000000e+00> : vector<8x16x16xf32>
    %20 = tpu.matmul %19, %7, %cst_14 {dimension_numbers = #tpu.dot_dimension_numbers<[2], [1], [1], [2], [0, 0, 0, 1, 1, 2], [0], [0]>} : vector<8x16x16xbf16>, vector<8x16x16xbf16>, vector<8x16x16xf32> -> vector<8x16x16xf32>
    "tpu.trace_stop"() : () -> ()
    %21 = arith.truncf %20 : vector<8x16x16xf32> to vector<8x16x16xbf16>
    %c0_15 = arith.constant 0 : index
    %c0_16 = arith.constant 0 : index
    %c0_17 = arith.constant 0 : index
    %22 = vector.load %arg4[%c0_15, %c0_16, %c0_17] : memref<8x16x128xbf16, #tpu.memory_space<vmem>>, vector<8x16x128xbf16>
    "tpu.trace_start"() <{level = 10 : i32, message = "hqd,hdo->hqo"}> : () -> ()
    %cst_18 = arith.constant dense<0.000000e+00> : vector<8x16x128xf32>
    %23 = tpu.matmul %21, %22, %cst_18 {dimension_numbers = #tpu.dot_dimension_numbers<[2], [1], [1], [2], [0, 0, 0, 1, 1, 2], [0], [0]>} : vector<8x16x16xbf16>, vector<8x16x128xbf16>, vector<8x16x128xf32> -> vector<8x16x128xf32>
    "tpu.trace_stop"() : () -> ()
    %cst_19 = arith.constant dense<0.000000e+00> : vector<16x128xf32>
    %24 = vector.multi_reduction <add>, %23, %cst_19 [0] : vector<8x16x128xf32> to vector<16x128xf32>
    %c0_20 = arith.constant 0 : index
    %c0_21 = arith.constant 0 : index
    %25 = vector.load %arg5[%c0_20, %c0_21] : memref<1x128xf32, #tpu.memory_space<vmem>>, vector<1x128xf32>
    %26 = vector.broadcast %25 : vector<1x128xf32> to vector<16x128xf32>
    %27 = arith.addf %24, %26 : vector<16x128xf32>
    %c0_22 = arith.constant 0 : index
    %c0_23 = arith.constant 0 : index
    %c0_24 = arith.constant 0 : index
    %28 = vector.load %arg6[%c0_22, %c0_23, %c0_24] : memref<1x16x128xbf16, #tpu.memory_space<vmem>>, vector<1x16x128xbf16>
    %29 = vector.shape_cast %28 : vector<1x16x128xbf16> to vector<16x128xbf16>
    %30 = arith.extf %29 : vector<16x128xbf16> to vector<16x128xf32>
    %31 = arith.addf %27, %30 : vector<16x128xf32>
    %cst_25 = arith.constant dense<0.000000e+00> : vector<16xf32>
    %32 = vector.multi_reduction <add>, %31, %cst_25 [1] : vector<16x128xf32> to vector<16xf32>
    %33 = vector.shape_cast %32 : vector<16xf32> to vector<16x1xf32>
    %cst_26 = arith.constant 1.280000e+02 : f32
    %34 = vector.broadcast %cst_26 : f32 to vector<16x1xf32>
    %35 = arith.divf %33, %34 : vector<16x1xf32>
    %36 = arith.mulf %31, %31 : vector<16x128xf32>
    %cst_27 = arith.constant dense<0.000000e+00> : vector<16xf32>
    %37 = vector.multi_reduction <add>, %36, %cst_27 [1] : vector<16x128xf32> to vector<16xf32>
    %38 = vector.shape_cast %37 : vector<16xf32> to vector<16x1xf32>
    %cst_28 = arith.constant 1.280000e+02 : f32
    %39 = vector.broadcast %cst_28 : f32 to vector<16x1xf32>
    %40 = arith.divf %38, %39 : vector<16x1xf32>
    %41 = arith.mulf %35, %35 : vector<16x1xf32>
    %42 = arith.subf %40, %41 : vector<16x1xf32>
    %43 = vector.broadcast %35 : vector<16x1xf32> to vector<16x128xf32>
    %44 = arith.subf %31, %43 : vector<16x128xf32>
    %cst_29 = arith.constant 9.99999974E-6 : f32
    %45 = vector.broadcast %cst_29 : f32 to vector<16x1xf32>
    %46 = arith.addf %42, %45 : vector<16x1xf32>
    %47 = math.rsqrt %46 : vector<16x1xf32>
    %48 = vector.broadcast %47 : vector<16x1xf32> to vector<16x128xf32>
    %49 = arith.mulf %44, %48 : vector<16x128xf32>
    %c0_30 = arith.constant 0 : index
    %c0_31 = arith.constant 0 : index
    %50 = vector.load %arg7[%c0_30, %c0_31] : memref<1x128xf32, #tpu.memory_space<vmem>>, vector<1x128xf32>
    %51 = vector.broadcast %50 : vector<1x128xf32> to vector<16x128xf32>
    %52 = arith.mulf %49, %51 : vector<16x128xf32>
    %c0_32 = arith.constant 0 : index
    %c0_33 = arith.constant 0 : index
    %53 = vector.load %arg8[%c0_32, %c0_33] : memref<1x128xf32, #tpu.memory_space<vmem>>, vector<1x128xf32>
    %54 = vector.broadcast %53 : vector<1x128xf32> to vector<16x128xf32>
    %55 = arith.addf %52, %54 : vector<16x128xf32>
    %56 = arith.truncf %55 : vector<16x128xf32> to vector<16x128xbf16>
    %c0_34 = arith.constant 0 : index
    %c0_35 = arith.constant 0 : index
    %c0_36 = arith.constant 0 : index
    %57 = vector.load %arg9[%c0_34, %c0_35, %c0_36] : memref<1x16x128xbf16, #tpu.memory_space<vmem>>, vector<1x16x128xbf16>
    %58 = vector.shape_cast %57 : vector<1x16x128xbf16> to vector<16x128xbf16>
    %59 = vector.shape_cast %56 : vector<16x128xbf16> to vector<1x16x128xbf16>
    tpu.vector_store %arg9[%c0_34, %c0_35, %c0_36], %59 {strides = array<i32>} : memref<1x16x128xbf16, #tpu.memory_space<vmem>>, vector<1x16x128xbf16>,
    return
  }
  func.func @transform_0(%arg0: i32) -> (i32, i32, i32, i32) {
    %c0_i32 = arith.constant 0 : i32
    %c0_i32_0 = arith.constant 0 : i32
    %c0_i32_1 = arith.constant 0 : i32
    %c0_i32_2 = arith.constant 0 : i32
    return %arg0, %c0_i32, %c0_i32_0, %c0_i32_1 : i32, i32, i32, i32
  }
  func.func @transform_1(%arg0: i32) -> (i32, i32, i32, i32) {
    %c0_i32 = arith.constant 0 : i32
    %c0_i32_0 = arith.constant 0 : i32
    %c0_i32_1 = arith.constant 0 : i32
    %c0_i32_2 = arith.constant 0 : i32
    return %arg0, %c0_i32, %c0_i32_0, %c0_i32_1 : i32, i32, i32, i32
  }
  func.func @transform_2(%arg0: i32) -> (i32, i32, i32, i32) {
    %c0_i32 = arith.constant 0 : i32
    %c0_i32_0 = arith.constant 0 : i32
    %c0_i32_1 = arith.constant 0 : i32
    %c0_i32_2 = arith.constant 0 : i32
    return %arg0, %c0_i32, %c0_i32_0, %c0_i32_1 : i32, i32, i32, i32
  }
  func.func @transform_3(%arg0: i32) -> (i32, i32, i32) {
    %c0_i32 = arith.constant 0 : i32
    %c0_i32_0 = arith.constant 0 : i32
    %c0_i32_1 = arith.constant 0 : i32
    %c0_i32_2 = arith.constant 0 : i32
    return %c0_i32, %c0_i32_0, %c0_i32_1 : i32, i32, i32
  }
  func.func @transform_4(%arg0: i32) -> (i32, i32) {
    %c0_i32 = arith.constant 0 : i32
    %c0_i32_0 = arith.constant 0 : i32
    %c0_i32_1 = arith.constant 0 : i32
    return %c0_i32, %c0_i32_0 : i32, i32
  }
  func.func @transform_5(%arg0: i32) -> (i32, i32, i32) {
    %c0_i32 = arith.constant 0 : i32
    %c0_i32_0 = arith.constant 0 : i32
    %c0_i32_1 = arith.constant 0 : i32
    return %arg0, %c0_i32, %c0_i32_0 : i32, i32, i32
  }
  func.func @transform_6(%arg0: i32) -> (i32, i32) {
    %c0_i32 = arith.constant 0 : i32
    %c0_i32_0 = arith.constant 0 : i32
    %c0_i32_1 = arith.constant 0 : i32
    return %c0_i32, %c0_i32_0 : i32, i32
  }
  func.func @transform_7(%arg0: i32) -> (i32, i32) {
    %c0_i32 = arith.constant 0 : i32
    %c0_i32_0 = arith.constant 0 : i32
    %c0_i32_1 = arith.constant 0 : i32
    return %c0_i32, %c0_i32_0 : i32, i32
  }
  func.func @transform_8(%arg0: i32) -> (i32, i32, i32) {
    %c0_i32 = arith.constant 0 : i32
    %c0_i32_0 = arith.constant 0 : i32
    %c0_i32_1 = arith.constant 0 : i32
    return %arg0, %c0_i32, %c0_i32_0 : i32, i32, i32
  }
}

module attributes {stable_mosaic.version = 11 : i64} {
  func.func @_ffn_addln_kernel(%arg0: i32, %arg1: memref<16x128xbf16, #tpu.memory_space<vmem>>, %arg2: memref<128x256xbf16, #tpu.memory_space<vmem>>, %arg3: memref<1x256xf32, #tpu.memory_space<vmem>>, %arg4: memref<256x128xbf16, #tpu.memory_space<vmem>>, %arg5: memref<1x128xf32, #tpu.memory_space<vmem>>, %arg6: memref<1x128xf32, #tpu.memory_space<vmem>>, %arg7: memref<1x128xf32, #tpu.memory_space<vmem>>, %arg8: memref<16x128xbf16, #tpu.memory_space<vmem>>) attributes {dimension_semantics = [#tpu.dimension_semantics<parallel>], iteration_bounds = array<i64: 2>, scalar_prefetch = 0 : i64, scratch_operands = 0 : i64, tpu.core_type = #tpu.core_type<tc>, window_params = [{transform_indices = @transform_0, window_bounds = array<i64: 16, 128>}, {pipeline_mode = #tpu.pipeline_mode<synchronous>, transform_indices = @transform_1, window_bounds = array<i64: 128, 256>}, {pipeline_mode = #tpu.pipeline_mode<synchronous>, transform_indices = @transform_2, window_bounds = array<i64: 1, 256>}, {pipeline_mode = #tpu.pipeline_mode<synchronous>, transform_indices = @transform_3, window_bounds = array<i64: 256, 128>}, {pipeline_mode = #tpu.pipeline_mode<synchronous>, transform_indices = @transform_4, window_bounds = array<i64: 1, 128>}, {pipeline_mode = #tpu.pipeline_mode<synchronous>, transform_indices = @transform_5, window_bounds = array<i64: 1, 128>}, {pipeline_mode = #tpu.pipeline_mode<synchronous>, transform_indices = @transform_6, window_bounds = array<i64: 1, 128>}, {transform_indices = @transform_7, window_bounds = array<i64: 16, 128>}]} {
    %c0 = arith.constant 0 : index
    %c0_0 = arith.constant 0 : index
    %0 = vector.load %arg1[%c0, %c0_0] : memref<16x128xbf16, #tpu.memory_space<vmem>>, vector<16x128xbf16>
    %c0_1 = arith.constant 0 : index
    %c0_2 = arith.constant 0 : index
    %1 = vector.load %arg2[%c0_1, %c0_2] : memref<128x256xbf16, #tpu.memory_space<vmem>>, vector<128x256xbf16>
    %cst = arith.constant dense<0.000000e+00> : vector<16x256xf32>
    %2 = tpu.matmul %0, %1, %cst {dimension_numbers = #tpu.dot_dimension_numbers<[1], [0], [0], [1], [0, 0, 1, 1], [], []>} : vector<16x128xbf16>, vector<128x256xbf16>, vector<16x256xf32> -> vector<16x256xf32>
    %c0_3 = arith.constant 0 : index
    %c0_4 = arith.constant 0 : index
    %3 = vector.load %arg3[%c0_3, %c0_4] : memref<1x256xf32, #tpu.memory_space<vmem>>, vector<1x256xf32>
    %4 = vector.broadcast %3 : vector<1x256xf32> to vector<16x256xf32>
    %5 = arith.addf %2, %4 : vector<16x256xf32>
    %cst_5 = arith.constant 0.000000e+00 : f32
    %6 = vector.broadcast %cst_5 : f32 to vector<16x256xf32>
    %7 = arith.maximumf %5, %6 : vector<16x256xf32>
    %8 = arith.truncf %7 : vector<16x256xf32> to vector<16x256xbf16>
    %c0_6 = arith.constant 0 : index
    %c0_7 = arith.constant 0 : index
    %9 = vector.load %arg4[%c0_6, %c0_7] : memref<256x128xbf16, #tpu.memory_space<vmem>>, vector<256x128xbf16>
    %cst_8 = arith.constant dense<0.000000e+00> : vector<16x128xf32>
    %10 = tpu.matmul %8, %9, %cst_8 {dimension_numbers = #tpu.dot_dimension_numbers<[1], [0], [0], [1], [0, 0, 1, 1], [], []>} : vector<16x256xbf16>, vector<256x128xbf16>, vector<16x128xf32> -> vector<16x128xf32>
    %c0_9 = arith.constant 0 : index
    %c0_10 = arith.constant 0 : index
    %11 = vector.load %arg5[%c0_9, %c0_10] : memref<1x128xf32, #tpu.memory_space<vmem>>, vector<1x128xf32>
    %12 = vector.broadcast %11 : vector<1x128xf32> to vector<16x128xf32>
    %13 = arith.addf %10, %12 : vector<16x128xf32>
    %14 = arith.extf %0 : vector<16x128xbf16> to vector<16x128xf32>
    %15 = arith.addf %13, %14 : vector<16x128xf32>
    %cst_11 = arith.constant dense<0.000000e+00> : vector<16xf32>
    %16 = vector.multi_reduction <add>, %15, %cst_11 [1] : vector<16x128xf32> to vector<16xf32>
    %17 = vector.shape_cast %16 : vector<16xf32> to vector<16x1xf32>
    %cst_12 = arith.constant 1.280000e+02 : f32
    %18 = vector.broadcast %cst_12 : f32 to vector<16x1xf32>
    %19 = arith.divf %17, %18 : vector<16x1xf32>
    %20 = arith.mulf %15, %15 : vector<16x128xf32>
    %cst_13 = arith.constant dense<0.000000e+00> : vector<16xf32>
    %21 = vector.multi_reduction <add>, %20, %cst_13 [1] : vector<16x128xf32> to vector<16xf32>
    %22 = vector.shape_cast %21 : vector<16xf32> to vector<16x1xf32>
    %cst_14 = arith.constant 1.280000e+02 : f32
    %23 = vector.broadcast %cst_14 : f32 to vector<16x1xf32>
    %24 = arith.divf %22, %23 : vector<16x1xf32>
    %25 = arith.mulf %19, %19 : vector<16x1xf32>
    %26 = arith.subf %24, %25 : vector<16x1xf32>
    %27 = vector.broadcast %19 : vector<16x1xf32> to vector<16x128xf32>
    %28 = arith.subf %15, %27 : vector<16x128xf32>
    %cst_15 = arith.constant 9.99999974E-6 : f32
    %29 = vector.broadcast %cst_15 : f32 to vector<16x1xf32>
    %30 = arith.addf %26, %29 : vector<16x1xf32>
    %31 = math.rsqrt %30 : vector<16x1xf32>
    %32 = vector.broadcast %31 : vector<16x1xf32> to vector<16x128xf32>
    %33 = arith.mulf %28, %32 : vector<16x128xf32>
    %c0_16 = arith.constant 0 : index
    %c0_17 = arith.constant 0 : index
    %34 = vector.load %arg6[%c0_16, %c0_17] : memref<1x128xf32, #tpu.memory_space<vmem>>, vector<1x128xf32>
    %35 = vector.broadcast %34 : vector<1x128xf32> to vector<16x128xf32>
    %36 = arith.mulf %33, %35 : vector<16x128xf32>
    %c0_18 = arith.constant 0 : index
    %c0_19 = arith.constant 0 : index
    %37 = vector.load %arg7[%c0_18, %c0_19] : memref<1x128xf32, #tpu.memory_space<vmem>>, vector<1x128xf32>
    %38 = vector.broadcast %37 : vector<1x128xf32> to vector<16x128xf32>
    %39 = arith.addf %36, %38 : vector<16x128xf32>
    %40 = arith.truncf %39 : vector<16x128xf32> to vector<16x128xbf16>
    %c0_20 = arith.constant 0 : index
    %c0_21 = arith.constant 0 : index
    %41 = vector.load %arg8[%c0_20, %c0_21] : memref<16x128xbf16, #tpu.memory_space<vmem>>, vector<16x128xbf16>
    tpu.vector_store %arg8[%c0_20, %c0_21], %40 {strides = array<i32>} : memref<16x128xbf16, #tpu.memory_space<vmem>>, vector<16x128xbf16>,
    return
  }
  func.func @transform_0(%arg0: i32) -> (i32, i32) {
    %c0_i32 = arith.constant 0 : i32
    %c0_i32_0 = arith.constant 0 : i32
    return %arg0, %c0_i32 : i32, i32
  }
  func.func @transform_1(%arg0: i32) -> (i32, i32) {
    %c0_i32 = arith.constant 0 : i32
    %c0_i32_0 = arith.constant 0 : i32
    %c0_i32_1 = arith.constant 0 : i32
    return %c0_i32, %c0_i32_0 : i32, i32
  }
  func.func @transform_2(%arg0: i32) -> (i32, i32) {
    %c0_i32 = arith.constant 0 : i32
    %c0_i32_0 = arith.constant 0 : i32
    %c0_i32_1 = arith.constant 0 : i32
    return %c0_i32, %c0_i32_0 : i32, i32
  }
  func.func @transform_3(%arg0: i32) -> (i32, i32) {
    %c0_i32 = arith.constant 0 : i32
    %c0_i32_0 = arith.constant 0 : i32
    %c0_i32_1 = arith.constant 0 : i32
    return %c0_i32, %c0_i32_0 : i32, i32
  }
  func.func @transform_4(%arg0: i32) -> (i32, i32) {
    %c0_i32 = arith.constant 0 : i32
    %c0_i32_0 = arith.constant 0 : i32
    %c0_i32_1 = arith.constant 0 : i32
    return %c0_i32, %c0_i32_0 : i32, i32
  }
  func.func @transform_5(%arg0: i32) -> (i32, i32) {
    %c0_i32 = arith.constant 0 : i32
    %c0_i32_0 = arith.constant 0 : i32
    %c0_i32_1 = arith.constant 0 : i32
    return %c0_i32, %c0_i32_0 : i32, i32
  }
  func.func @transform_6(%arg0: i32) -> (i32, i32) {
    %c0_i32 = arith.constant 0 : i32
    %c0_i32_0 = arith.constant 0 : i32
    %c0_i32_1 = arith.constant 0 : i32
    return %c0_i32, %c0_i32_0 : i32, i32
  }
  func.func @transform_7(%arg0: i32) -> (i32, i32) {
    %c0_i32 = arith.constant 0 : i32
    %c0_i32_0 = arith.constant 0 : i32
    return %arg0, %c0_i32 : i32, i32
  }
}

module attributes {stable_mosaic.version = 11 : i64} {
  func.func @_linear_kernel(%arg0: i32, %arg1: i32, %arg2: memref<16x128xbf16, #tpu.memory_space<vmem>>, %arg3: memref<128x256xbf16, #tpu.memory_space<vmem>>, %arg4: memref<1x256xf32, #tpu.memory_space<vmem>>, %arg5: memref<16x256xbf16, #tpu.memory_space<vmem>>) attributes {dimension_semantics = [#tpu.dimension_semantics<parallel>, #tpu.dimension_semantics<parallel>], iteration_bounds = array<i64: 2, 1>, scalar_prefetch = 0 : i64, scratch_operands = 0 : i64, tpu.core_type = #tpu.core_type<tc>, window_params = [{transform_indices = @transform_0, window_bounds = array<i64: 16, 128>}, {transform_indices = @transform_1, window_bounds = array<i64: 128, 256>}, {transform_indices = @transform_2, window_bounds = array<i64: 1, 256>}, {transform_indices = @transform_3, window_bounds = array<i64: 16, 256>}]} {
    %c0 = arith.constant 0 : index
    %c0_0 = arith.constant 0 : index
    %0 = vector.load %arg2[%c0, %c0_0] : memref<16x128xbf16, #tpu.memory_space<vmem>>, vector<16x128xbf16>
    %c0_1 = arith.constant 0 : index
    %c0_2 = arith.constant 0 : index
    %1 = vector.load %arg3[%c0_1, %c0_2] : memref<128x256xbf16, #tpu.memory_space<vmem>>, vector<128x256xbf16>
    %cst = arith.constant dense<0.000000e+00> : vector<16x256xf32>
    %2 = tpu.matmul %0, %1, %cst {dimension_numbers = #tpu.dot_dimension_numbers<[1], [0], [0], [1], [0, 0, 1, 1], [], []>} : vector<16x128xbf16>, vector<128x256xbf16>, vector<16x256xf32> -> vector<16x256xf32>
    %c0_3 = arith.constant 0 : index
    %c0_4 = arith.constant 0 : index
    %3 = vector.load %arg4[%c0_3, %c0_4] : memref<1x256xf32, #tpu.memory_space<vmem>>, vector<1x256xf32>
    %4 = vector.broadcast %3 : vector<1x256xf32> to vector<16x256xf32>
    %5 = arith.addf %2, %4 : vector<16x256xf32>
    %6 = arith.truncf %5 : vector<16x256xf32> to vector<16x256xbf16>
    %c0_5 = arith.constant 0 : index
    %c0_6 = arith.constant 0 : index
    %7 = vector.load %arg5[%c0_5, %c0_6] : memref<16x256xbf16, #tpu.memory_space<vmem>>, vector<16x256xbf16>
    tpu.vector_store %arg5[%c0_5, %c0_6], %6 {strides = array<i32>} : memref<16x256xbf16, #tpu.memory_space<vmem>>, vector<16x256xbf16>,
    return
  }
  func.func @transform_0(%arg0: i32, %arg1: i32) -> (i32, i32) {
    %c0_i32 = arith.constant 0 : i32
    %c0_i32_0 = arith.constant 0 : i32
    return %arg0, %c0_i32 : i32, i32
  }
  func.func @transform_1(%arg0: i32, %arg1: i32) -> (i32, i32) {
    %c0_i32 = arith.constant 0 : i32
    %c0_i32_0 = arith.constant 0 : i32
    return %c0_i32, %arg1 : i32, i32
  }
  func.func @transform_2(%arg0: i32, %arg1: i32) -> (i32, i32) {
    %c0_i32 = arith.constant 0 : i32
    %c0_i32_0 = arith.constant 0 : i32
    return %c0_i32, %arg1 : i32, i32
  }
  func.func @transform_3(%arg0: i32, %arg1: i32) -> (i32, i32) {
    %c0_i32 = arith.constant 0 : i32
    return %arg0, %arg1 : i32, i32
  }
}

module attributes {stable_mosaic.version = 11 : i64} {
  func.func @_linear_kernel(%arg0: i32, %arg1: i32, %arg2: memref<16x128xbf16, #tpu.memory_space<vmem>>, %arg3: memref<128x384xbf16, #tpu.memory_space<vmem>>, %arg4: memref<1x384xf32, #tpu.memory_space<vmem>>, %arg5: memref<16x384xbf16, #tpu.memory_space<vmem>>) attributes {dimension_semantics = [#tpu.dimension_semantics<parallel>, #tpu.dimension_semantics<parallel>], iteration_bounds = array<i64: 1, 1>, scalar_prefetch = 0 : i64, scratch_operands = 0 : i64, tpu.core_type = #tpu.core_type<tc>, window_params = [{transform_indices = @transform_0, window_bounds = array<i64: 16, 128>}, {transform_indices = @transform_1, window_bounds = array<i64: 128, 384>}, {transform_indices = @transform_2, window_bounds = array<i64: 1, 384>}, {transform_indices = @transform_3, window_bounds = array<i64: 16, 384>}]} {
    %c0 = arith.constant 0 : index
    %c0_0 = arith.constant 0 : index
    %0 = vector.load %arg2[%c0, %c0_0] : memref<16x128xbf16, #tpu.memory_space<vmem>>, vector<16x128xbf16>
    %c0_1 = arith.constant 0 : index
    %c0_2 = arith.constant 0 : index
    %1 = vector.load %arg3[%c0_1, %c0_2] : memref<128x384xbf16, #tpu.memory_space<vmem>>, vector<128x384xbf16>
    %cst = arith.constant dense<0.000000e+00> : vector<16x384xf32>
    %2 = tpu.matmul %0, %1, %cst {dimension_numbers = #tpu.dot_dimension_numbers<[1], [0], [0], [1], [0, 0, 1, 1], [], []>} : vector<16x128xbf16>, vector<128x384xbf16>, vector<16x384xf32> -> vector<16x384xf32>
    %c0_3 = arith.constant 0 : index
    %c0_4 = arith.constant 0 : index
    %3 = vector.load %arg4[%c0_3, %c0_4] : memref<1x384xf32, #tpu.memory_space<vmem>>, vector<1x384xf32>
    %4 = vector.broadcast %3 : vector<1x384xf32> to vector<16x384xf32>
    %5 = arith.addf %2, %4 : vector<16x384xf32>
    %6 = arith.truncf %5 : vector<16x384xf32> to vector<16x384xbf16>
    %c0_5 = arith.constant 0 : index
    %c0_6 = arith.constant 0 : index
    %7 = vector.load %arg5[%c0_5, %c0_6] : memref<16x384xbf16, #tpu.memory_space<vmem>>, vector<16x384xbf16>
    tpu.vector_store %arg5[%c0_5, %c0_6], %6 {strides = array<i32>} : memref<16x384xbf16, #tpu.memory_space<vmem>>, vector<16x384xbf16>,
    return
  }
  func.func @transform_0(%arg0: i32, %arg1: i32) -> (i32, i32) {
    %c0_i32 = arith.constant 0 : i32
    %c0_i32_0 = arith.constant 0 : i32
    return %arg0, %c0_i32 : i32, i32
  }
  func.func @transform_1(%arg0: i32, %arg1: i32) -> (i32, i32) {
    %c0_i32 = arith.constant 0 : i32
    %c0_i32_0 = arith.constant 0 : i32
    return %c0_i32, %arg1 : i32, i32
  }
  func.func @transform_2(%arg0: i32, %arg1: i32) -> (i32, i32) {
    %c0_i32 = arith.constant 0 : i32
    %c0_i32_0 = arith.constant 0 : i32
    return %c0_i32, %arg1 : i32, i32
  }
  func.func @transform_3(%arg0: i32, %arg1: i32) -> (i32, i32) {
    %c0_i32 = arith.constant 0 : i32
    return %arg0, %arg1 : i32, i32
  }
}

module attributes {stable_mosaic.version = 11 : i64} {
  func.func @_linear_kernel(%arg0: i32, %arg1: i32, %arg2: memref<16x128xbf16, #tpu.memory_space<vmem>>, %arg3: memref<128x128xbf16, #tpu.memory_space<vmem>>, %arg4: memref<1x128xf32, #tpu.memory_space<vmem>>, %arg5: memref<16x128xbf16, #tpu.memory_space<vmem>>) attributes {dimension_semantics = [#tpu.dimension_semantics<parallel>, #tpu.dimension_semantics<parallel>], iteration_bounds = array<i64: 1, 1>, scalar_prefetch = 0 : i64, scratch_operands = 0 : i64, tpu.core_type = #tpu.core_type<tc>, window_params = [{transform_indices = @transform_0, window_bounds = array<i64: 16, 128>}, {transform_indices = @transform_1, window_bounds = array<i64: 128, 128>}, {transform_indices = @transform_2, window_bounds = array<i64: 1, 128>}, {transform_indices = @transform_3, window_bounds = array<i64: 16, 128>}]} {
    %c0 = arith.constant 0 : index
    %c0_0 = arith.constant 0 : index
    %0 = vector.load %arg2[%c0, %c0_0] : memref<16x128xbf16, #tpu.memory_space<vmem>>, vector<16x128xbf16>
    %c0_1 = arith.constant 0 : index
    %c0_2 = arith.constant 0 : index
    %1 = vector.load %arg3[%c0_1, %c0_2] : memref<128x128xbf16, #tpu.memory_space<vmem>>, vector<128x128xbf16>
    %cst = arith.constant dense<0.000000e+00> : vector<16x128xf32>
    %2 = tpu.matmul %0, %1, %cst {dimension_numbers = #tpu.dot_dimension_numbers<[1], [0], [0], [1], [0, 0, 1, 1], [], []>} : vector<16x128xbf16>, vector<128x128xbf16>, vector<16x128xf32> -> vector<16x128xf32>
    %c0_3 = arith.constant 0 : index
    %c0_4 = arith.constant 0 : index
    %3 = vector.load %arg4[%c0_3, %c0_4] : memref<1x128xf32, #tpu.memory_space<vmem>>, vector<1x128xf32>
    %4 = vector.broadcast %3 : vector<1x128xf32> to vector<16x128xf32>
    %5 = arith.addf %2, %4 : vector<16x128xf32>
    %6 = arith.truncf %5 : vector<16x128xf32> to vector<16x128xbf16>
    %c0_5 = arith.constant 0 : index
    %c0_6 = arith.constant 0 : index
    %7 = vector.load %arg5[%c0_5, %c0_6] : memref<16x128xbf16, #tpu.memory_space<vmem>>, vector<16x128xbf16>
    tpu.vector_store %arg5[%c0_5, %c0_6], %6 {strides = array<i32>} : memref<16x128xbf16, #tpu.memory_space<vmem>>, vector<16x128xbf16>,
    return
  }
  func.func @transform_0(%arg0: i32, %arg1: i32) -> (i32, i32) {
    %c0_i32 = arith.constant 0 : i32
    %c0_i32_0 = arith.constant 0 : i32
    return %arg0, %c0_i32 : i32, i32
  }
  func.func @transform_1(%arg0: i32, %arg1: i32) -> (i32, i32) {
    %c0_i32 = arith.constant 0 : i32
    %c0_i32_0 = arith.constant 0 : i32
    return %c0_i32, %arg1 : i32, i32
  }
  func.func @transform_2(%arg0: i32, %arg1: i32) -> (i32, i32) {
    %c0_i32 = arith.constant 0 : i32
    %c0_i32_0 = arith.constant 0 : i32
    return %c0_i32, %arg1 : i32, i32
  }
  func.func @transform_3(%arg0: i32, %arg1: i32) -> (i32, i32) {
    %c0_i32 = arith.constant 0 : i32
    return %arg0, %arg1 : i32, i32
  }
}

module attributes {stable_mosaic.version = 11 : i64} {
  func.func @_attn_block_kernel(%arg0: i32, %arg1: memref<1x8x4x16xbf16, #tpu.memory_space<vmem>>, %arg2: memref<1x8x4x16xbf16, #tpu.memory_space<vmem>>, %arg3: memref<1x8x4x16xbf16, #tpu.memory_space<vmem>>, %arg4: memref<8x16x128xbf16, #tpu.memory_space<vmem>>, %arg5: memref<1x128xf32, #tpu.memory_space<vmem>>, %arg6: memref<1x4x128xbf16, #tpu.memory_space<vmem>>, %arg7: memref<1x128xf32, #tpu.memory_space<vmem>>, %arg8: memref<1x128xf32, #tpu.memory_space<vmem>>, %arg9: memref<4x4xf32, #tpu.memory_space<vmem>>, %arg10: memref<1x4x128xbf16, #tpu.memory_space<vmem>>) attributes {dimension_semantics = [#tpu.dimension_semantics<parallel>], iteration_bounds = array<i64: 2>, scalar_prefetch = 0 : i64, scratch_operands = 0 : i64, tpu.core_type = #tpu.core_type<tc>, window_params = [{transform_indices = @transform_0, window_bounds = array<i64: 1, 8, 4, 16>}, {transform_indices = @transform_1, window_bounds = array<i64: 1, 8, 4, 16>}, {transform_indices = @transform_2, window_bounds = array<i64: 1, 8, 4, 16>}, {pipeline_mode = #tpu.pipeline_mode<synchronous>, transform_indices = @transform_3, window_bounds = array<i64: 8, 16, 128>}, {pipeline_mode = #tpu.pipeline_mode<synchronous>, transform_indices = @transform_4, window_bounds = array<i64: 1, 128>}, {transform_indices = @transform_5, window_bounds = array<i64: 1, 4, 128>}, {pipeline_mode = #tpu.pipeline_mode<synchronous>, transform_indices = @transform_6, window_bounds = array<i64: 1, 128>}, {pipeline_mode = #tpu.pipeline_mode<synchronous>, transform_indices = @transform_7, window_bounds = array<i64: 1, 128>}, {pipeline_mode = #tpu.pipeline_mode<synchronous>, transform_indices = @transform_8, window_bounds = array<i64: 4, 4>}, {transform_indices = @transform_9, window_bounds = array<i64: 1, 4, 128>}]} {
    %c0 = arith.constant 0 : index
    %c0_0 = arith.constant 0 : index
    %c0_1 = arith.constant 0 : index
    %c0_2 = arith.constant 0 : index
    %0 = vector.load %arg1[%c0, %c0_0, %c0_1, %c0_2] : memref<1x8x4x16xbf16, #tpu.memory_space<vmem>>, vector<1x8x4x16xbf16>
    %1 = vector.shape_cast %0 : vector<1x8x4x16xbf16> to vector<8x4x16xbf16>
    %cst = arith.constant 2.500000e-01 : bf16
    %2 = vector.broadcast %cst : bf16 to vector<8x4x16xbf16>
    %3 = arith.mulf %1, %2 : vector<8x4x16xbf16>
    %c0_3 = arith.constant 0 : index
    %c0_4 = arith.constant 0 : index
    %c0_5 = arith.constant 0 : index
    %c0_6 = arith.constant 0 : index
    %4 = vector.load %arg2[%c0_3, %c0_4, %c0_5, %c0_6] : memref<1x8x4x16xbf16, #tpu.memory_space<vmem>>, vector<1x8x4x16xbf16>
    %5 = vector.shape_cast %4 : vector<1x8x4x16xbf16> to vector<8x4x16xbf16>
    %c0_7 = arith.constant 0 : index
    %c0_8 = arith.constant 0 : index
    %c0_9 = arith.constant 0 : index
    %c0_10 = arith.constant 0 : index
    %6 = vector.load %arg3[%c0_7, %c0_8, %c0_9, %c0_10] : memref<1x8x4x16xbf16, #tpu.memory_space<vmem>>, vector<1x8x4x16xbf16>
    %7 = vector.shape_cast %6 : vector<1x8x4x16xbf16> to vector<8x4x16xbf16>
    "tpu.trace_start"() <{level = 10 : i32, message = "hqd,hkd->hqk"}> : () -> ()
    %cst_11 = arith.constant dense<0.000000e+00> : vector<8x4x4xf32>
    %8 = tpu.matmul %3, %5, %cst_11 {dimension_numbers = #tpu.dot_dimension_numbers<[2], [2], [1], [1], [0, 0, 0, 1, 1, 1], [0], [0]>} : vector<8x4x16xbf16>, vector<8x4x16xbf16>, vector<8x4x4xf32> -> vector<8x4x4xf32>
    "tpu.trace_stop"() : () -> ()
    %c0_12 = arith.constant 0 : index
    %c0_13 = arith.constant 0 : index
    %9 = vector.load %arg9[%c0_12, %c0_13] : memref<4x4xf32, #tpu.memory_space<vmem>>, vector<4x4xf32>
    %10 = vector.shape_cast %9 : vector<4x4xf32> to vector<1x4x4xf32>
    %11 = vector.broadcast %10 : vector<1x4x4xf32> to vector<8x4x4xf32>
    %12 = arith.addf %8, %11 : vector<8x4x4xf32>
    %cst_14 = arith.constant dense<0xFF800000> : vector<8x4xf32>
    %13 = vector.multi_reduction <maximumf>, %12, %cst_14 [2] : vector<8x4x4xf32> to vector<8x4xf32>
    %14 = vector.shape_cast %13 : vector<8x4xf32> to vector<8x4x1xf32>
    %15 = vector.broadcast %14 : vector<8x4x1xf32> to vector<8x4x4xf32>
    %16 = arith.subf %12, %15 : vector<8x4x4xf32>
    %17 = math.exp %16 : vector<8x4x4xf32>
    %cst_15 = arith.constant dense<0.000000e+00> : vector<8x4xf32>
    %18 = vector.multi_reduction <add>, %17, %cst_15 [2] : vector<8x4x4xf32> to vector<8x4xf32>
    %19 = vector.shape_cast %18 : vector<8x4xf32> to vector<8x4x1xf32>
    %20 = tpu.reciprocal %19 {approx = true} : vector<8x4x1xf32> -> vector<8x4x1xf32>
    %21 = vector.broadcast %20 : vector<8x4x1xf32> to vector<8x4x4xf32>
    %22 = arith.mulf %17, %21 : vector<8x4x4xf32>
    %23 = arith.truncf %22 : vector<8x4x4xf32> to vector<8x4x4xbf16>
    "tpu.trace_start"() <{level = 10 : i32, message = "hqk,hkd->hqd"}> : () -> ()
    %cst_16 = arith.constant dense<0.000000e+00> : vector<8x4x16xf32>
    %24 = tpu.matmul %23, %7, %cst_16 {dimension_numbers = #tpu.dot_dimension_numbers<[2], [1], [1], [2], [0, 0, 0, 1, 1, 2], [0], [0]>} : vector<8x4x4xbf16>, vector<8x4x16xbf16>, vector<8x4x16xf32> -> vector<8x4x16xf32>
    "tpu.trace_stop"() : () -> ()
    %25 = arith.truncf %24 : vector<8x4x16xf32> to vector<8x4x16xbf16>
    %c0_17 = arith.constant 0 : index
    %c0_18 = arith.constant 0 : index
    %c0_19 = arith.constant 0 : index
    %26 = vector.load %arg4[%c0_17, %c0_18, %c0_19] : memref<8x16x128xbf16, #tpu.memory_space<vmem>>, vector<8x16x128xbf16>
    "tpu.trace_start"() <{level = 10 : i32, message = "hqd,hdo->hqo"}> : () -> ()
    %cst_20 = arith.constant dense<0.000000e+00> : vector<8x4x128xf32>
    %27 = tpu.matmul %25, %26, %cst_20 {dimension_numbers = #tpu.dot_dimension_numbers<[2], [1], [1], [2], [0, 0, 0, 1, 1, 2], [0], [0]>} : vector<8x4x16xbf16>, vector<8x16x128xbf16>, vector<8x4x128xf32> -> vector<8x4x128xf32>
    "tpu.trace_stop"() : () -> ()
    %cst_21 = arith.constant dense<0.000000e+00> : vector<4x128xf32>
    %28 = vector.multi_reduction <add>, %27, %cst_21 [0] : vector<8x4x128xf32> to vector<4x128xf32>
    %c0_22 = arith.constant 0 : index
    %c0_23 = arith.constant 0 : index
    %29 = vector.load %arg5[%c0_22, %c0_23] : memref<1x128xf32, #tpu.memory_space<vmem>>, vector<1x128xf32>
    %30 = vector.broadcast %29 : vector<1x128xf32> to vector<4x128xf32>
    %31 = arith.addf %28, %30 : vector<4x128xf32>
    %c0_24 = arith.constant 0 : index
    %c0_25 = arith.constant 0 : index
    %c0_26 = arith.constant 0 : index
    %32 = vector.load %arg6[%c0_24, %c0_25, %c0_26] : memref<1x4x128xbf16, #tpu.memory_space<vmem>>, vector<1x4x128xbf16>
    %33 = vector.shape_cast %32 : vector<1x4x128xbf16> to vector<4x128xbf16>
    %34 = arith.extf %33 : vector<4x128xbf16> to vector<4x128xf32>
    %35 = arith.addf %31, %34 : vector<4x128xf32>
    %cst_27 = arith.constant dense<0.000000e+00> : vector<4xf32>
    %36 = vector.multi_reduction <add>, %35, %cst_27 [1] : vector<4x128xf32> to vector<4xf32>
    %37 = vector.shape_cast %36 : vector<4xf32> to vector<4x1xf32>
    %cst_28 = arith.constant 1.280000e+02 : f32
    %38 = vector.broadcast %cst_28 : f32 to vector<4x1xf32>
    %39 = arith.divf %37, %38 : vector<4x1xf32>
    %40 = arith.mulf %35, %35 : vector<4x128xf32>
    %cst_29 = arith.constant dense<0.000000e+00> : vector<4xf32>
    %41 = vector.multi_reduction <add>, %40, %cst_29 [1] : vector<4x128xf32> to vector<4xf32>
    %42 = vector.shape_cast %41 : vector<4xf32> to vector<4x1xf32>
    %cst_30 = arith.constant 1.280000e+02 : f32
    %43 = vector.broadcast %cst_30 : f32 to vector<4x1xf32>
    %44 = arith.divf %42, %43 : vector<4x1xf32>
    %45 = arith.mulf %39, %39 : vector<4x1xf32>
    %46 = arith.subf %44, %45 : vector<4x1xf32>
    %47 = vector.broadcast %39 : vector<4x1xf32> to vector<4x128xf32>
    %48 = arith.subf %35, %47 : vector<4x128xf32>
    %cst_31 = arith.constant 9.99999974E-6 : f32
    %49 = vector.broadcast %cst_31 : f32 to vector<4x1xf32>
    %50 = arith.addf %46, %49 : vector<4x1xf32>
    %51 = math.rsqrt %50 : vector<4x1xf32>
    %52 = vector.broadcast %51 : vector<4x1xf32> to vector<4x128xf32>
    %53 = arith.mulf %48, %52 : vector<4x128xf32>
    %c0_32 = arith.constant 0 : index
    %c0_33 = arith.constant 0 : index
    %54 = vector.load %arg7[%c0_32, %c0_33] : memref<1x128xf32, #tpu.memory_space<vmem>>, vector<1x128xf32>
    %55 = vector.broadcast %54 : vector<1x128xf32> to vector<4x128xf32>
    %56 = arith.mulf %53, %55 : vector<4x128xf32>
    %c0_34 = arith.constant 0 : index
    %c0_35 = arith.constant 0 : index
    %57 = vector.load %arg8[%c0_34, %c0_35] : memref<1x128xf32, #tpu.memory_space<vmem>>, vector<1x128xf32>
    %58 = vector.broadcast %57 : vector<1x128xf32> to vector<4x128xf32>
    %59 = arith.addf %56, %58 : vector<4x128xf32>
    %60 = arith.truncf %59 : vector<4x128xf32> to vector<4x128xbf16>
    %c0_36 = arith.constant 0 : index
    %c0_37 = arith.constant 0 : index
    %c0_38 = arith.constant 0 : index
    %61 = vector.load %arg10[%c0_36, %c0_37, %c0_38] : memref<1x4x128xbf16, #tpu.memory_space<vmem>>, vector<1x4x128xbf16>
    %62 = vector.shape_cast %61 : vector<1x4x128xbf16> to vector<4x128xbf16>
    %63 = vector.shape_cast %60 : vector<4x128xbf16> to vector<1x4x128xbf16>
    tpu.vector_store %arg10[%c0_36, %c0_37, %c0_38], %63 {strides = array<i32>} : memref<1x4x128xbf16, #tpu.memory_space<vmem>>, vector<1x4x128xbf16>,
    return
  }
  func.func @transform_0(%arg0: i32) -> (i32, i32, i32, i32) {
    %c0_i32 = arith.constant 0 : i32
    %c0_i32_0 = arith.constant 0 : i32
    %c0_i32_1 = arith.constant 0 : i32
    %c0_i32_2 = arith.constant 0 : i32
    return %arg0, %c0_i32, %c0_i32_0, %c0_i32_1 : i32, i32, i32, i32
  }
  func.func @transform_1(%arg0: i32) -> (i32, i32, i32, i32) {
    %c0_i32 = arith.constant 0 : i32
    %c0_i32_0 = arith.constant 0 : i32
    %c0_i32_1 = arith.constant 0 : i32
    %c0_i32_2 = arith.constant 0 : i32
    return %arg0, %c0_i32, %c0_i32_0, %c0_i32_1 : i32, i32, i32, i32
  }
  func.func @transform_2(%arg0: i32) -> (i32, i32, i32, i32) {
    %c0_i32 = arith.constant 0 : i32
    %c0_i32_0 = arith.constant 0 : i32
    %c0_i32_1 = arith.constant 0 : i32
    %c0_i32_2 = arith.constant 0 : i32
    return %arg0, %c0_i32, %c0_i32_0, %c0_i32_1 : i32, i32, i32, i32
  }
  func.func @transform_3(%arg0: i32) -> (i32, i32, i32) {
    %c0_i32 = arith.constant 0 : i32
    %c0_i32_0 = arith.constant 0 : i32
    %c0_i32_1 = arith.constant 0 : i32
    %c0_i32_2 = arith.constant 0 : i32
    return %c0_i32, %c0_i32_0, %c0_i32_1 : i32, i32, i32
  }
  func.func @transform_4(%arg0: i32) -> (i32, i32) {
    %c0_i32 = arith.constant 0 : i32
    %c0_i32_0 = arith.constant 0 : i32
    %c0_i32_1 = arith.constant 0 : i32
    return %c0_i32, %c0_i32_0 : i32, i32
  }
  func.func @transform_5(%arg0: i32) -> (i32, i32, i32) {
    %c0_i32 = arith.constant 0 : i32
    %c0_i32_0 = arith.constant 0 : i32
    %c0_i32_1 = arith.constant 0 : i32
    return %arg0, %c0_i32, %c0_i32_0 : i32, i32, i32
  }
  func.func @transform_6(%arg0: i32) -> (i32, i32) {
    %c0_i32 = arith.constant 0 : i32
    %c0_i32_0 = arith.constant 0 : i32
    %c0_i32_1 = arith.constant 0 : i32
    return %c0_i32, %c0_i32_0 : i32, i32
  }
  func.func @transform_7(%arg0: i32) -> (i32, i32) {
    %c0_i32 = arith.constant 0 : i32
    %c0_i32_0 = arith.constant 0 : i32
    %c0_i32_1 = arith.constant 0 : i32
    return %c0_i32, %c0_i32_0 : i32, i32
  }
  func.func @transform_8(%arg0: i32) -> (i32, i32) {
    %c0_i32 = arith.constant 0 : i32
    %c0_i32_0 = arith.constant 0 : i32
    %c0_i32_1 = arith.constant 0 : i32
    return %c0_i32, %c0_i32_0 : i32, i32
  }
  func.func @transform_9(%arg0: i32) -> (i32, i32, i32) {
    %c0_i32 = arith.constant 0 : i32
    %c0_i32_0 = arith.constant 0 : i32
    %c0_i32_1 = arith.constant 0 : i32
    return %arg0, %c0_i32, %c0_i32_0 : i32, i32, i32
  }
}

module attributes {stable_mosaic.version = 11 : i64} {
  func.func @_attn_block_kernel(%arg0: i32, %arg1: memref<1x8x4x16xbf16, #tpu.memory_space<vmem>>, %arg2: memref<1x8x16x16xbf16, #tpu.memory_space<vmem>>, %arg3: memref<1x8x16x16xbf16, #tpu.memory_space<vmem>>, %arg4: memref<8x16x128xbf16, #tpu.memory_space<vmem>>, %arg5: memref<1x128xf32, #tpu.memory_space<vmem>>, %arg6: memref<1x4x128xbf16, #tpu.memory_space<vmem>>, %arg7: memref<1x128xf32, #tpu.memory_space<vmem>>, %arg8: memref<1x128xf32, #tpu.memory_space<vmem>>, %arg9: memref<1x4x128xbf16, #tpu.memory_space<vmem>>) attributes {dimension_semantics = [#tpu.dimension_semantics<parallel>], iteration_bounds = array<i64: 2>, scalar_prefetch = 0 : i64, scratch_operands = 0 : i64, tpu.core_type = #tpu.core_type<tc>, window_params = [{transform_indices = @transform_0, window_bounds = array<i64: 1, 8, 4, 16>}, {transform_indices = @transform_1, window_bounds = array<i64: 1, 8, 16, 16>}, {transform_indices = @transform_2, window_bounds = array<i64: 1, 8, 16, 16>}, {pipeline_mode = #tpu.pipeline_mode<synchronous>, transform_indices = @transform_3, window_bounds = array<i64: 8, 16, 128>}, {pipeline_mode = #tpu.pipeline_mode<synchronous>, transform_indices = @transform_4, window_bounds = array<i64: 1, 128>}, {transform_indices = @transform_5, window_bounds = array<i64: 1, 4, 128>}, {pipeline_mode = #tpu.pipeline_mode<synchronous>, transform_indices = @transform_6, window_bounds = array<i64: 1, 128>}, {pipeline_mode = #tpu.pipeline_mode<synchronous>, transform_indices = @transform_7, window_bounds = array<i64: 1, 128>}, {transform_indices = @transform_8, window_bounds = array<i64: 1, 4, 128>}]} {
    %c0 = arith.constant 0 : index
    %c0_0 = arith.constant 0 : index
    %c0_1 = arith.constant 0 : index
    %c0_2 = arith.constant 0 : index
    %0 = vector.load %arg1[%c0, %c0_0, %c0_1, %c0_2] : memref<1x8x4x16xbf16, #tpu.memory_space<vmem>>, vector<1x8x4x16xbf16>
    %1 = vector.shape_cast %0 : vector<1x8x4x16xbf16> to vector<8x4x16xbf16>
    %cst = arith.constant 2.500000e-01 : bf16
    %2 = vector.broadcast %cst : bf16 to vector<8x4x16xbf16>
    %3 = arith.mulf %1, %2 : vector<8x4x16xbf16>
    %c0_3 = arith.constant 0 : index
    %c0_4 = arith.constant 0 : index
    %c0_5 = arith.constant 0 : index
    %c0_6 = arith.constant 0 : index
    %4 = vector.load %arg2[%c0_3, %c0_4, %c0_5, %c0_6] : memref<1x8x16x16xbf16, #tpu.memory_space<vmem>>, vector<1x8x16x16xbf16>
    %5 = vector.shape_cast %4 : vector<1x8x16x16xbf16> to vector<8x16x16xbf16>
    %c0_7 = arith.constant 0 : index
    %c0_8 = arith.constant 0 : index
    %c0_9 = arith.constant 0 : index
    %c0_10 = arith.constant 0 : index
    %6 = vector.load %arg3[%c0_7, %c0_8, %c0_9, %c0_10] : memref<1x8x16x16xbf16, #tpu.memory_space<vmem>>, vector<1x8x16x16xbf16>
    %7 = vector.shape_cast %6 : vector<1x8x16x16xbf16> to vector<8x16x16xbf16>
    "tpu.trace_start"() <{level = 10 : i32, message = "hqd,hkd->hqk"}> : () -> ()
    %cst_11 = arith.constant dense<0.000000e+00> : vector<8x4x16xf32>
    %8 = tpu.matmul %3, %5, %cst_11 {dimension_numbers = #tpu.dot_dimension_numbers<[2], [2], [1], [1], [0, 0, 0, 1, 1, 1], [0], [0]>} : vector<8x4x16xbf16>, vector<8x16x16xbf16>, vector<8x4x16xf32> -> vector<8x4x16xf32>
    "tpu.trace_stop"() : () -> ()
    %cst_12 = arith.constant dense<0xFF800000> : vector<8x4xf32>
    %9 = vector.multi_reduction <maximumf>, %8, %cst_12 [2] : vector<8x4x16xf32> to vector<8x4xf32>
    %10 = vector.shape_cast %9 : vector<8x4xf32> to vector<8x4x1xf32>
    %11 = vector.broadcast %10 : vector<8x4x1xf32> to vector<8x4x16xf32>
    %12 = arith.subf %8, %11 : vector<8x4x16xf32>
    %13 = math.exp %12 : vector<8x4x16xf32>
    %cst_13 = arith.constant dense<0.000000e+00> : vector<8x4xf32>
    %14 = vector.multi_reduction <add>, %13, %cst_13 [2] : vector<8x4x16xf32> to vector<8x4xf32>
    %15 = vector.shape_cast %14 : vector<8x4xf32> to vector<8x4x1xf32>
    %16 = tpu.reciprocal %15 {approx = true} : vector<8x4x1xf32> -> vector<8x4x1xf32>
    %17 = vector.broadcast %16 : vector<8x4x1xf32> to vector<8x4x16xf32>
    %18 = arith.mulf %13, %17 : vector<8x4x16xf32>
    %19 = arith.truncf %18 : vector<8x4x16xf32> to vector<8x4x16xbf16>
    "tpu.trace_start"() <{level = 10 : i32, message = "hqk,hkd->hqd"}> : () -> ()
    %cst_14 = arith.constant dense<0.000000e+00> : vector<8x4x16xf32>
    %20 = tpu.matmul %19, %7, %cst_14 {dimension_numbers = #tpu.dot_dimension_numbers<[2], [1], [1], [2], [0, 0, 0, 1, 1, 2], [0], [0]>} : vector<8x4x16xbf16>, vector<8x16x16xbf16>, vector<8x4x16xf32> -> vector<8x4x16xf32>
    "tpu.trace_stop"() : () -> ()
    %21 = arith.truncf %20 : vector<8x4x16xf32> to vector<8x4x16xbf16>
    %c0_15 = arith.constant 0 : index
    %c0_16 = arith.constant 0 : index
    %c0_17 = arith.constant 0 : index
    %22 = vector.load %arg4[%c0_15, %c0_16, %c0_17] : memref<8x16x128xbf16, #tpu.memory_space<vmem>>, vector<8x16x128xbf16>
    "tpu.trace_start"() <{level = 10 : i32, message = "hqd,hdo->hqo"}> : () -> ()
    %cst_18 = arith.constant dense<0.000000e+00> : vector<8x4x128xf32>
    %23 = tpu.matmul %21, %22, %cst_18 {dimension_numbers = #tpu.dot_dimension_numbers<[2], [1], [1], [2], [0, 0, 0, 1, 1, 2], [0], [0]>} : vector<8x4x16xbf16>, vector<8x16x128xbf16>, vector<8x4x128xf32> -> vector<8x4x128xf32>
    "tpu.trace_stop"() : () -> ()
    %cst_19 = arith.constant dense<0.000000e+00> : vector<4x128xf32>
    %24 = vector.multi_reduction <add>, %23, %cst_19 [0] : vector<8x4x128xf32> to vector<4x128xf32>
    %c0_20 = arith.constant 0 : index
    %c0_21 = arith.constant 0 : index
    %25 = vector.load %arg5[%c0_20, %c0_21] : memref<1x128xf32, #tpu.memory_space<vmem>>, vector<1x128xf32>
    %26 = vector.broadcast %25 : vector<1x128xf32> to vector<4x128xf32>
    %27 = arith.addf %24, %26 : vector<4x128xf32>
    %c0_22 = arith.constant 0 : index
    %c0_23 = arith.constant 0 : index
    %c0_24 = arith.constant 0 : index
    %28 = vector.load %arg6[%c0_22, %c0_23, %c0_24] : memref<1x4x128xbf16, #tpu.memory_space<vmem>>, vector<1x4x128xbf16>
    %29 = vector.shape_cast %28 : vector<1x4x128xbf16> to vector<4x128xbf16>
    %30 = arith.extf %29 : vector<4x128xbf16> to vector<4x128xf32>
    %31 = arith.addf %27, %30 : vector<4x128xf32>
    %cst_25 = arith.constant dense<0.000000e+00> : vector<4xf32>
    %32 = vector.multi_reduction <add>, %31, %cst_25 [1] : vector<4x128xf32> to vector<4xf32>
    %33 = vector.shape_cast %32 : vector<4xf32> to vector<4x1xf32>
    %cst_26 = arith.constant 1.280000e+02 : f32
    %34 = vector.broadcast %cst_26 : f32 to vector<4x1xf32>
    %35 = arith.divf %33, %34 : vector<4x1xf32>
    %36 = arith.mulf %31, %31 : vector<4x128xf32>
    %cst_27 = arith.constant dense<0.000000e+00> : vector<4xf32>
    %37 = vector.multi_reduction <add>, %36, %cst_27 [1] : vector<4x128xf32> to vector<4xf32>
    %38 = vector.shape_cast %37 : vector<4xf32> to vector<4x1xf32>
    %cst_28 = arith.constant 1.280000e+02 : f32
    %39 = vector.broadcast %cst_28 : f32 to vector<4x1xf32>
    %40 = arith.divf %38, %39 : vector<4x1xf32>
    %41 = arith.mulf %35, %35 : vector<4x1xf32>
    %42 = arith.subf %40, %41 : vector<4x1xf32>
    %43 = vector.broadcast %35 : vector<4x1xf32> to vector<4x128xf32>
    %44 = arith.subf %31, %43 : vector<4x128xf32>
    %cst_29 = arith.constant 9.99999974E-6 : f32
    %45 = vector.broadcast %cst_29 : f32 to vector<4x1xf32>
    %46 = arith.addf %42, %45 : vector<4x1xf32>
    %47 = math.rsqrt %46 : vector<4x1xf32>
    %48 = vector.broadcast %47 : vector<4x1xf32> to vector<4x128xf32>
    %49 = arith.mulf %44, %48 : vector<4x128xf32>
    %c0_30 = arith.constant 0 : index
    %c0_31 = arith.constant 0 : index
    %50 = vector.load %arg7[%c0_30, %c0_31] : memref<1x128xf32, #tpu.memory_space<vmem>>, vector<1x128xf32>
    %51 = vector.broadcast %50 : vector<1x128xf32> to vector<4x128xf32>
    %52 = arith.mulf %49, %51 : vector<4x128xf32>
    %c0_32 = arith.constant 0 : index
    %c0_33 = arith.constant 0 : index
    %53 = vector.load %arg8[%c0_32, %c0_33] : memref<1x128xf32, #tpu.memory_space<vmem>>, vector<1x128xf32>
    %54 = vector.broadcast %53 : vector<1x128xf32> to vector<4x128xf32>
    %55 = arith.addf %52, %54 : vector<4x128xf32>
    %56 = arith.truncf %55 : vector<4x128xf32> to vector<4x128xbf16>
    %c0_34 = arith.constant 0 : index
    %c0_35 = arith.constant 0 : index
    %c0_36 = arith.constant 0 : index
    %57 = vector.load %arg9[%c0_34, %c0_35, %c0_36] : memref<1x4x128xbf16, #tpu.memory_space<vmem>>, vector<1x4x128xbf16>
    %58 = vector.shape_cast %57 : vector<1x4x128xbf16> to vector<4x128xbf16>
    %59 = vector.shape_cast %56 : vector<4x128xbf16> to vector<1x4x128xbf16>
    tpu.vector_store %arg9[%c0_34, %c0_35, %c0_36], %59 {strides = array<i32>} : memref<1x4x128xbf16, #tpu.memory_space<vmem>>, vector<1x4x128xbf16>,
    return
  }
  func.func @transform_0(%arg0: i32) -> (i32, i32, i32, i32) {
    %c0_i32 = arith.constant 0 : i32
    %c0_i32_0 = arith.constant 0 : i32
    %c0_i32_1 = arith.constant 0 : i32
    %c0_i32_2 = arith.constant 0 : i32
    return %arg0, %c0_i32, %c0_i32_0, %c0_i32_1 : i32, i32, i32, i32
  }
  func.func @transform_1(%arg0: i32) -> (i32, i32, i32, i32) {
    %c0_i32 = arith.constant 0 : i32
    %c0_i32_0 = arith.constant 0 : i32
    %c0_i32_1 = arith.constant 0 : i32
    %c0_i32_2 = arith.constant 0 : i32
    return %arg0, %c0_i32, %c0_i32_0, %c0_i32_1 : i32, i32, i32, i32
  }
  func.func @transform_2(%arg0: i32) -> (i32, i32, i32, i32) {
    %c0_i32 = arith.constant 0 : i32
    %c0_i32_0 = arith.constant 0 : i32
    %c0_i32_1 = arith.constant 0 : i32
    %c0_i32_2 = arith.constant 0 : i32
    return %arg0, %c0_i32, %c0_i32_0, %c0_i32_1 : i32, i32, i32, i32
  }
  func.func @transform_3(%arg0: i32) -> (i32, i32, i32) {
    %c0_i32 = arith.constant 0 : i32
    %c0_i32_0 = arith.constant 0 : i32
    %c0_i32_1 = arith.constant 0 : i32
    %c0_i32_2 = arith.constant 0 : i32
    return %c0_i32, %c0_i32_0, %c0_i32_1 : i32, i32, i32
  }
  func.func @transform_4(%arg0: i32) -> (i32, i32) {
    %c0_i32 = arith.constant 0 : i32
    %c0_i32_0 = arith.constant 0 : i32
    %c0_i32_1 = arith.constant 0 : i32
    return %c0_i32, %c0_i32_0 : i32, i32
  }
  func.func @transform_5(%arg0: i32) -> (i32, i32, i32) {
    %c0_i32 = arith.constant 0 : i32
    %c0_i32_0 = arith.constant 0 : i32
    %c0_i32_1 = arith.constant 0 : i32
    return %arg0, %c0_i32, %c0_i32_0 : i32, i32, i32
  }
  func.func @transform_6(%arg0: i32) -> (i32, i32) {
    %c0_i32 = arith.constant 0 : i32
    %c0_i32_0 = arith.constant 0 : i32
    %c0_i32_1 = arith.constant 0 : i32
    return %c0_i32, %c0_i32_0 : i32, i32
  }
  func.func @transform_7(%arg0: i32) -> (i32, i32) {
    %c0_i32 = arith.constant 0 : i32
    %c0_i32_0 = arith.constant 0 : i32
    %c0_i32_1 = arith.constant 0 : i32
    return %c0_i32, %c0_i32_0 : i32, i32
  }
  func.func @transform_8(%arg0: i32) -> (i32, i32, i32) {
    %c0_i32 = arith.constant 0 : i32
    %c0_i32_0 = arith.constant 0 : i32
    %c0_i32_1 = arith.constant 0 : i32
    return %arg0, %c0_i32, %c0_i32_0 : i32, i32, i32
  }
}

module attributes {stable_mosaic.version = 11 : i64} {
  func.func @_ffn_addln_kernel(%arg0: i32, %arg1: memref<16x128xbf16, #tpu.memory_space<vmem>>, %arg2: memref<128x256xbf16, #tpu.memory_space<vmem>>, %arg3: memref<1x256xf32, #tpu.memory_space<vmem>>, %arg4: memref<256x128xbf16, #tpu.memory_space<vmem>>, %arg5: memref<1x128xf32, #tpu.memory_space<vmem>>, %arg6: memref<1x128xf32, #tpu.memory_space<vmem>>, %arg7: memref<1x128xf32, #tpu.memory_space<vmem>>, %arg8: memref<16x128xbf16, #tpu.memory_space<vmem>>) attributes {dimension_semantics = [#tpu.dimension_semantics<parallel>], iteration_bounds = array<i64: 1>, scalar_prefetch = 0 : i64, scratch_operands = 0 : i64, tpu.core_type = #tpu.core_type<tc>, window_params = [{transform_indices = @transform_0, window_bounds = array<i64: 16, 128>}, {pipeline_mode = #tpu.pipeline_mode<synchronous>, transform_indices = @transform_1, window_bounds = array<i64: 128, 256>}, {pipeline_mode = #tpu.pipeline_mode<synchronous>, transform_indices = @transform_2, window_bounds = array<i64: 1, 256>}, {pipeline_mode = #tpu.pipeline_mode<synchronous>, transform_indices = @transform_3, window_bounds = array<i64: 256, 128>}, {pipeline_mode = #tpu.pipeline_mode<synchronous>, transform_indices = @transform_4, window_bounds = array<i64: 1, 128>}, {pipeline_mode = #tpu.pipeline_mode<synchronous>, transform_indices = @transform_5, window_bounds = array<i64: 1, 128>}, {pipeline_mode = #tpu.pipeline_mode<synchronous>, transform_indices = @transform_6, window_bounds = array<i64: 1, 128>}, {transform_indices = @transform_7, window_bounds = array<i64: 16, 128>}]} {
    %c0 = arith.constant 0 : index
    %c0_0 = arith.constant 0 : index
    %0 = vector.load %arg1[%c0, %c0_0] : memref<16x128xbf16, #tpu.memory_space<vmem>>, vector<16x128xbf16>
    %c0_1 = arith.constant 0 : index
    %c0_2 = arith.constant 0 : index
    %1 = vector.load %arg2[%c0_1, %c0_2] : memref<128x256xbf16, #tpu.memory_space<vmem>>, vector<128x256xbf16>
    %cst = arith.constant dense<0.000000e+00> : vector<16x256xf32>
    %2 = tpu.matmul %0, %1, %cst {dimension_numbers = #tpu.dot_dimension_numbers<[1], [0], [0], [1], [0, 0, 1, 1], [], []>} : vector<16x128xbf16>, vector<128x256xbf16>, vector<16x256xf32> -> vector<16x256xf32>
    %c0_3 = arith.constant 0 : index
    %c0_4 = arith.constant 0 : index
    %3 = vector.load %arg3[%c0_3, %c0_4] : memref<1x256xf32, #tpu.memory_space<vmem>>, vector<1x256xf32>
    %4 = vector.broadcast %3 : vector<1x256xf32> to vector<16x256xf32>
    %5 = arith.addf %2, %4 : vector<16x256xf32>
    %cst_5 = arith.constant 0.000000e+00 : f32
    %6 = vector.broadcast %cst_5 : f32 to vector<16x256xf32>
    %7 = arith.maximumf %5, %6 : vector<16x256xf32>
    %8 = arith.truncf %7 : vector<16x256xf32> to vector<16x256xbf16>
    %c0_6 = arith.constant 0 : index
    %c0_7 = arith.constant 0 : index
    %9 = vector.load %arg4[%c0_6, %c0_7] : memref<256x128xbf16, #tpu.memory_space<vmem>>, vector<256x128xbf16>
    %cst_8 = arith.constant dense<0.000000e+00> : vector<16x128xf32>
    %10 = tpu.matmul %8, %9, %cst_8 {dimension_numbers = #tpu.dot_dimension_numbers<[1], [0], [0], [1], [0, 0, 1, 1], [], []>} : vector<16x256xbf16>, vector<256x128xbf16>, vector<16x128xf32> -> vector<16x128xf32>
    %c0_9 = arith.constant 0 : index
    %c0_10 = arith.constant 0 : index
    %11 = vector.load %arg5[%c0_9, %c0_10] : memref<1x128xf32, #tpu.memory_space<vmem>>, vector<1x128xf32>
    %12 = vector.broadcast %11 : vector<1x128xf32> to vector<16x128xf32>
    %13 = arith.addf %10, %12 : vector<16x128xf32>
    %14 = arith.extf %0 : vector<16x128xbf16> to vector<16x128xf32>
    %15 = arith.addf %13, %14 : vector<16x128xf32>
    %cst_11 = arith.constant dense<0.000000e+00> : vector<16xf32>
    %16 = vector.multi_reduction <add>, %15, %cst_11 [1] : vector<16x128xf32> to vector<16xf32>
    %17 = vector.shape_cast %16 : vector<16xf32> to vector<16x1xf32>
    %cst_12 = arith.constant 1.280000e+02 : f32
    %18 = vector.broadcast %cst_12 : f32 to vector<16x1xf32>
    %19 = arith.divf %17, %18 : vector<16x1xf32>
    %20 = arith.mulf %15, %15 : vector<16x128xf32>
    %cst_13 = arith.constant dense<0.000000e+00> : vector<16xf32>
    %21 = vector.multi_reduction <add>, %20, %cst_13 [1] : vector<16x128xf32> to vector<16xf32>
    %22 = vector.shape_cast %21 : vector<16xf32> to vector<16x1xf32>
    %cst_14 = arith.constant 1.280000e+02 : f32
    %23 = vector.broadcast %cst_14 : f32 to vector<16x1xf32>
    %24 = arith.divf %22, %23 : vector<16x1xf32>
    %25 = arith.mulf %19, %19 : vector<16x1xf32>
    %26 = arith.subf %24, %25 : vector<16x1xf32>
    %27 = vector.broadcast %19 : vector<16x1xf32> to vector<16x128xf32>
    %28 = arith.subf %15, %27 : vector<16x128xf32>
    %cst_15 = arith.constant 9.99999974E-6 : f32
    %29 = vector.broadcast %cst_15 : f32 to vector<16x1xf32>
    %30 = arith.addf %26, %29 : vector<16x1xf32>
    %31 = math.rsqrt %30 : vector<16x1xf32>
    %32 = vector.broadcast %31 : vector<16x1xf32> to vector<16x128xf32>
    %33 = arith.mulf %28, %32 : vector<16x128xf32>
    %c0_16 = arith.constant 0 : index
    %c0_17 = arith.constant 0 : index
    %34 = vector.load %arg6[%c0_16, %c0_17] : memref<1x128xf32, #tpu.memory_space<vmem>>, vector<1x128xf32>
    %35 = vector.broadcast %34 : vector<1x128xf32> to vector<16x128xf32>
    %36 = arith.mulf %33, %35 : vector<16x128xf32>
    %c0_18 = arith.constant 0 : index
    %c0_19 = arith.constant 0 : index
    %37 = vector.load %arg7[%c0_18, %c0_19] : memref<1x128xf32, #tpu.memory_space<vmem>>, vector<1x128xf32>
    %38 = vector.broadcast %37 : vector<1x128xf32> to vector<16x128xf32>
    %39 = arith.addf %36, %38 : vector<16x128xf32>
    %40 = arith.truncf %39 : vector<16x128xf32> to vector<16x128xbf16>
    %c0_20 = arith.constant 0 : index
    %c0_21 = arith.constant 0 : index
    %41 = vector.load %arg8[%c0_20, %c0_21] : memref<16x128xbf16, #tpu.memory_space<vmem>>, vector<16x128xbf16>
    tpu.vector_store %arg8[%c0_20, %c0_21], %40 {strides = array<i32>} : memref<16x128xbf16, #tpu.memory_space<vmem>>, vector<16x128xbf16>,
    return
  }
  func.func @transform_0(%arg0: i32) -> (i32, i32) {
    %c0_i32 = arith.constant 0 : i32
    %c0_i32_0 = arith.constant 0 : i32
    return %arg0, %c0_i32 : i32, i32
  }
  func.func @transform_1(%arg0: i32) -> (i32, i32) {
    %c0_i32 = arith.constant 0 : i32
    %c0_i32_0 = arith.constant 0 : i32
    %c0_i32_1 = arith.constant 0 : i32
    return %c0_i32, %c0_i32_0 : i32, i32
  }
  func.func @transform_2(%arg0: i32) -> (i32, i32) {
    %c0_i32 = arith.constant 0 : i32
    %c0_i32_0 = arith.constant 0 : i32
    %c0_i32_1 = arith.constant 0 : i32
    return %c0_i32, %c0_i32_0 : i32, i32
  }
  func.func @transform_3(%arg0: i32) -> (i32, i32) {
    %c0_i32 = arith.constant 0 : i32
    %c0_i32_0 = arith.constant 0 : i32
    %c0_i32_1 = arith.constant 0 : i32
    return %c0_i32, %c0_i32_0 : i32, i32
  }
  func.func @transform_4(%arg0: i32) -> (i32, i32) {
    %c0_i32 = arith.constant 0 : i32
    %c0_i32_0 = arith.constant 0 : i32
    %c0_i32_1 = arith.constant 0 : i32
    return %c0_i32, %c0_i32_0 : i32, i32
  }
  func.func @transform_5(%arg0: i32) -> (i32, i32) {
    %c0_i32 = arith.constant 0 : i32
    %c0_i32_0 = arith.constant 0 : i32
    %c0_i32_1 = arith.constant 0 : i32
    return %c0_i32, %c0_i32_0 : i32, i32
  }
  func.func @transform_6(%arg0: i32) -> (i32, i32) {
    %c0_i32 = arith.constant 0 : i32
    %c0_i32_0 = arith.constant 0 : i32
    %c0_i32_1 = arith.constant 0 : i32
    return %c0_i32, %c0_i32_0 : i32, i32
  }
  func.func @transform_7(%arg0: i32) -> (i32, i32) {
    %c0_i32 = arith.constant 0 : i32
    %c0_i32_0 = arith.constant 0 : i32
    return %arg0, %c0_i32 : i32, i32
  }
}

module attributes {stable_mosaic.version = 11 : i64} {
  func.func @_attn_block_kernel(%arg0: i32, %arg1: memref<1x8x4x16xbf16, #tpu.memory_space<vmem>>, %arg2: memref<1x8x4x16xbf16, #tpu.memory_space<vmem>>, %arg3: memref<1x8x4x16xbf16, #tpu.memory_space<vmem>>, %arg4: memref<8x16x128xbf16, #tpu.memory_space<vmem>>, %arg5: memref<1x128xf32, #tpu.memory_space<vmem>>, %arg6: memref<1x4x128xbf16, #tpu.memory_space<vmem>>, %arg7: memref<1x128xf32, #tpu.memory_space<vmem>>, %arg8: memref<1x128xf32, #tpu.memory_space<vmem>>, %arg9: memref<4x4xf32, #tpu.memory_space<vmem>>, %arg10: memref<1x4x128xbf16, #tpu.memory_space<vmem>>) attributes {dimension_semantics = [#tpu.dimension_semantics<parallel>], iteration_bounds = array<i64: 2>, scalar_prefetch = 0 : i64, scratch_operands = 0 : i64, tpu.core_type = #tpu.core_type<tc>, window_params = [{transform_indices = @transform_0, window_bounds = array<i64: 1, 8, 4, 16>}, {transform_indices = @transform_1, window_bounds = array<i64: 1, 8, 4, 16>}, {transform_indices = @transform_2, window_bounds = array<i64: 1, 8, 4, 16>}, {pipeline_mode = #tpu.pipeline_mode<synchronous>, transform_indices = @transform_3, window_bounds = array<i64: 8, 16, 128>}, {pipeline_mode = #tpu.pipeline_mode<synchronous>, transform_indices = @transform_4, window_bounds = array<i64: 1, 128>}, {transform_indices = @transform_5, window_bounds = array<i64: 1, 4, 128>}, {pipeline_mode = #tpu.pipeline_mode<synchronous>, transform_indices = @transform_6, window_bounds = array<i64: 1, 128>}, {pipeline_mode = #tpu.pipeline_mode<synchronous>, transform_indices = @transform_7, window_bounds = array<i64: 1, 128>}, {pipeline_mode = #tpu.pipeline_mode<synchronous>, transform_indices = @transform_8, window_bounds = array<i64: 4, 4>}, {transform_indices = @transform_9, window_bounds = array<i64: 1, 4, 128>}]} {
    %c0 = arith.constant 0 : index
    %c0_0 = arith.constant 0 : index
    %c0_1 = arith.constant 0 : index
    %c0_2 = arith.constant 0 : index
    %0 = vector.load %arg1[%c0, %c0_0, %c0_1, %c0_2] : memref<1x8x4x16xbf16, #tpu.memory_space<vmem>>, vector<1x8x4x16xbf16>
    %1 = vector.shape_cast %0 : vector<1x8x4x16xbf16> to vector<8x4x16xbf16>
    %cst = arith.constant 2.500000e-01 : bf16
    %2 = vector.broadcast %cst : bf16 to vector<8x4x16xbf16>
    %3 = arith.mulf %1, %2 : vector<8x4x16xbf16>
    %c0_3 = arith.constant 0 : index
    %c0_4 = arith.constant 0 : index
    %c0_5 = arith.constant 0 : index
    %c0_6 = arith.constant 0 : index
    %4 = vector.load %arg2[%c0_3, %c0_4, %c0_5, %c0_6] : memref<1x8x4x16xbf16, #tpu.memory_space<vmem>>, vector<1x8x4x16xbf16>
    %5 = vector.shape_cast %4 : vector<1x8x4x16xbf16> to vector<8x4x16xbf16>
    %c0_7 = arith.constant 0 : index
    %c0_8 = arith.constant 0 : index
    %c0_9 = arith.constant 0 : index
    %c0_10 = arith.constant 0 : index
    %6 = vector.load %arg3[%c0_7, %c0_8, %c0_9, %c0_10] : memref<1x8x4x16xbf16, #tpu.memory_space<vmem>>, vector<1x8x4x16xbf16>
    %7 = vector.shape_cast %6 : vector<1x8x4x16xbf16> to vector<8x4x16xbf16>
    "tpu.trace_start"() <{level = 10 : i32, message = "hqd,hkd->hqk"}> : () -> ()
    %cst_11 = arith.constant dense<0.000000e+00> : vector<8x4x4xf32>
    %8 = tpu.matmul %3, %5, %cst_11 {dimension_numbers = #tpu.dot_dimension_numbers<[2], [2], [1], [1], [0, 0, 0, 1, 1, 1], [0], [0]>} : vector<8x4x16xbf16>, vector<8x4x16xbf16>, vector<8x4x4xf32> -> vector<8x4x4xf32>
    "tpu.trace_stop"() : () -> ()
    %c0_12 = arith.constant 0 : index
    %c0_13 = arith.constant 0 : index
    %9 = vector.load %arg9[%c0_12, %c0_13] : memref<4x4xf32, #tpu.memory_space<vmem>>, vector<4x4xf32>
    %10 = vector.shape_cast %9 : vector<4x4xf32> to vector<1x4x4xf32>
    %11 = vector.broadcast %10 : vector<1x4x4xf32> to vector<8x4x4xf32>
    %12 = arith.addf %8, %11 : vector<8x4x4xf32>
    %cst_14 = arith.constant dense<0xFF800000> : vector<8x4xf32>
    %13 = vector.multi_reduction <maximumf>, %12, %cst_14 [2] : vector<8x4x4xf32> to vector<8x4xf32>
    %14 = vector.shape_cast %13 : vector<8x4xf32> to vector<8x4x1xf32>
    %15 = vector.broadcast %14 : vector<8x4x1xf32> to vector<8x4x4xf32>
    %16 = arith.subf %12, %15 : vector<8x4x4xf32>
    %17 = math.exp %16 : vector<8x4x4xf32>
    %cst_15 = arith.constant dense<0.000000e+00> : vector<8x4xf32>
    %18 = vector.multi_reduction <add>, %17, %cst_15 [2] : vector<8x4x4xf32> to vector<8x4xf32>
    %19 = vector.shape_cast %18 : vector<8x4xf32> to vector<8x4x1xf32>
    %20 = tpu.reciprocal %19 {approx = true} : vector<8x4x1xf32> -> vector<8x4x1xf32>
    %21 = vector.broadcast %20 : vector<8x4x1xf32> to vector<8x4x4xf32>
    %22 = arith.mulf %17, %21 : vector<8x4x4xf32>
    %23 = arith.truncf %22 : vector<8x4x4xf32> to vector<8x4x4xbf16>
    "tpu.trace_start"() <{level = 10 : i32, message = "hqk,hkd->hqd"}> : () -> ()
    %cst_16 = arith.constant dense<0.000000e+00> : vector<8x4x16xf32>
    %24 = tpu.matmul %23, %7, %cst_16 {dimension_numbers = #tpu.dot_dimension_numbers<[2], [1], [1], [2], [0, 0, 0, 1, 1, 2], [0], [0]>} : vector<8x4x4xbf16>, vector<8x4x16xbf16>, vector<8x4x16xf32> -> vector<8x4x16xf32>
    "tpu.trace_stop"() : () -> ()
    %25 = arith.truncf %24 : vector<8x4x16xf32> to vector<8x4x16xbf16>
    %c0_17 = arith.constant 0 : index
    %c0_18 = arith.constant 0 : index
    %c0_19 = arith.constant 0 : index
    %26 = vector.load %arg4[%c0_17, %c0_18, %c0_19] : memref<8x16x128xbf16, #tpu.memory_space<vmem>>, vector<8x16x128xbf16>
    "tpu.trace_start"() <{level = 10 : i32, message = "hqd,hdo->hqo"}> : () -> ()
    %cst_20 = arith.constant dense<0.000000e+00> : vector<8x4x128xf32>
    %27 = tpu.matmul %25, %26, %cst_20 {dimension_numbers = #tpu.dot_dimension_numbers<[2], [1], [1], [2], [0, 0, 0, 1, 1, 2], [0], [0]>} : vector<8x4x16xbf16>, vector<8x16x128xbf16>, vector<8x4x128xf32> -> vector<8x4x128xf32>
    "tpu.trace_stop"() : () -> ()
    %cst_21 = arith.constant dense<0.000000e+00> : vector<4x128xf32>
    %28 = vector.multi_reduction <add>, %27, %cst_21 [0] : vector<8x4x128xf32> to vector<4x128xf32>
    %c0_22 = arith.constant 0 : index
    %c0_23 = arith.constant 0 : index
    %29 = vector.load %arg5[%c0_22, %c0_23] : memref<1x128xf32, #tpu.memory_space<vmem>>, vector<1x128xf32>
    %30 = vector.broadcast %29 : vector<1x128xf32> to vector<4x128xf32>
    %31 = arith.addf %28, %30 : vector<4x128xf32>
    %c0_24 = arith.constant 0 : index
    %c0_25 = arith.constant 0 : index
    %c0_26 = arith.constant 0 : index
    %32 = vector.load %arg6[%c0_24, %c0_25, %c0_26] : memref<1x4x128xbf16, #tpu.memory_space<vmem>>, vector<1x4x128xbf16>
    %33 = vector.shape_cast %32 : vector<1x4x128xbf16> to vector<4x128xbf16>
    %34 = arith.extf %33 : vector<4x128xbf16> to vector<4x128xf32>
    %35 = arith.addf %31, %34 : vector<4x128xf32>
    %cst_27 = arith.constant dense<0.000000e+00> : vector<4xf32>
    %36 = vector.multi_reduction <add>, %35, %cst_27 [1] : vector<4x128xf32> to vector<4xf32>
    %37 = vector.shape_cast %36 : vector<4xf32> to vector<4x1xf32>
    %cst_28 = arith.constant 1.280000e+02 : f32
    %38 = vector.broadcast %cst_28 : f32 to vector<4x1xf32>
    %39 = arith.divf %37, %38 : vector<4x1xf32>
    %40 = arith.mulf %35, %35 : vector<4x128xf32>
    %cst_29 = arith.constant dense<0.000000e+00> : vector<4xf32>
    %41 = vector.multi_reduction <add>, %40, %cst_29 [1] : vector<4x128xf32> to vector<4xf32>
    %42 = vector.shape_cast %41 : vector<4xf32> to vector<4x1xf32>
    %cst_30 = arith.constant 1.280000e+02 : f32
    %43 = vector.broadcast %cst_30 : f32 to vector<4x1xf32>
    %44 = arith.divf %42, %43 : vector<4x1xf32>
    %45 = arith.mulf %39, %39 : vector<4x1xf32>
    %46 = arith.subf %44, %45 : vector<4x1xf32>
    %47 = vector.broadcast %39 : vector<4x1xf32> to vector<4x128xf32>
    %48 = arith.subf %35, %47 : vector<4x128xf32>
    %cst_31 = arith.constant 9.99999974E-6 : f32
    %49 = vector.broadcast %cst_31 : f32 to vector<4x1xf32>
    %50 = arith.addf %46, %49 : vector<4x1xf32>
    %51 = math.rsqrt %50 : vector<4x1xf32>
    %52 = vector.broadcast %51 : vector<4x1xf32> to vector<4x128xf32>
    %53 = arith.mulf %48, %52 : vector<4x128xf32>
    %c0_32 = arith.constant 0 : index
    %c0_33 = arith.constant 0 : index
    %54 = vector.load %arg7[%c0_32, %c0_33] : memref<1x128xf32, #tpu.memory_space<vmem>>, vector<1x128xf32>
    %55 = vector.broadcast %54 : vector<1x128xf32> to vector<4x128xf32>
    %56 = arith.mulf %53, %55 : vector<4x128xf32>
    %c0_34 = arith.constant 0 : index
    %c0_35 = arith.constant 0 : index
    %57 = vector.load %arg8[%c0_34, %c0_35] : memref<1x128xf32, #tpu.memory_space<vmem>>, vector<1x128xf32>
    %58 = vector.broadcast %57 : vector<1x128xf32> to vector<4x128xf32>
    %59 = arith.addf %56, %58 : vector<4x128xf32>
    %60 = arith.truncf %59 : vector<4x128xf32> to vector<4x128xbf16>
    %c0_36 = arith.constant 0 : index
    %c0_37 = arith.constant 0 : index
    %c0_38 = arith.constant 0 : index
    %61 = vector.load %arg10[%c0_36, %c0_37, %c0_38] : memref<1x4x128xbf16, #tpu.memory_space<vmem>>, vector<1x4x128xbf16>
    %62 = vector.shape_cast %61 : vector<1x4x128xbf16> to vector<4x128xbf16>
    %63 = vector.shape_cast %60 : vector<4x128xbf16> to vector<1x4x128xbf16>
    tpu.vector_store %arg10[%c0_36, %c0_37, %c0_38], %63 {strides = array<i32>} : memref<1x4x128xbf16, #tpu.memory_space<vmem>>, vector<1x4x128xbf16>,
    return
  }
  func.func @transform_0(%arg0: i32) -> (i32, i32, i32, i32) {
    %c0_i32 = arith.constant 0 : i32
    %c0_i32_0 = arith.constant 0 : i32
    %c0_i32_1 = arith.constant 0 : i32
    %c0_i32_2 = arith.constant 0 : i32
    return %arg0, %c0_i32, %c0_i32_0, %c0_i32_1 : i32, i32, i32, i32
  }
  func.func @transform_1(%arg0: i32) -> (i32, i32, i32, i32) {
    %c0_i32 = arith.constant 0 : i32
    %c0_i32_0 = arith.constant 0 : i32
    %c0_i32_1 = arith.constant 0 : i32
    %c0_i32_2 = arith.constant 0 : i32
    return %arg0, %c0_i32, %c0_i32_0, %c0_i32_1 : i32, i32, i32, i32
  }
  func.func @transform_2(%arg0: i32) -> (i32, i32, i32, i32) {
    %c0_i32 = arith.constant 0 : i32
    %c0_i32_0 = arith.constant 0 : i32
    %c0_i32_1 = arith.constant 0 : i32
    %c0_i32_2 = arith.constant 0 : i32
    return %arg0, %c0_i32, %c0_i32_0, %c0_i32_1 : i32, i32, i32, i32
  }
  func.func @transform_3(%arg0: i32) -> (i32, i32, i32) {
    %c0_i32 = arith.constant 0 : i32
    %c0_i32_0 = arith.constant 0 : i32
    %c0_i32_1 = arith.constant 0 : i32
    %c0_i32_2 = arith.constant 0 : i32
    return %c0_i32, %c0_i32_0, %c0_i32_1 : i32, i32, i32
  }
  func.func @transform_4(%arg0: i32) -> (i32, i32) {
    %c0_i32 = arith.constant 0 : i32
    %c0_i32_0 = arith.constant 0 : i32
    %c0_i32_1 = arith.constant 0 : i32
    return %c0_i32, %c0_i32_0 : i32, i32
  }
  func.func @transform_5(%arg0: i32) -> (i32, i32, i32) {
    %c0_i32 = arith.constant 0 : i32
    %c0_i32_0 = arith.constant 0 : i32
    %c0_i32_1 = arith.constant 0 : i32
    return %arg0, %c0_i32, %c0_i32_0 : i32, i32, i32
  }
  func.func @transform_6(%arg0: i32) -> (i32, i32) {
    %c0_i32 = arith.constant 0 : i32
    %c0_i32_0 = arith.constant 0 : i32
    %c0_i32_1 = arith.constant 0 : i32
    return %c0_i32, %c0_i32_0 : i32, i32
  }
  func.func @transform_7(%arg0: i32) -> (i32, i32) {
    %c0_i32 = arith.constant 0 : i32
    %c0_i32_0 = arith.constant 0 : i32
    %c0_i32_1 = arith.constant 0 : i32
    return %c0_i32, %c0_i32_0 : i32, i32
  }
  func.func @transform_8(%arg0: i32) -> (i32, i32) {
    %c0_i32 = arith.constant 0 : i32
    %c0_i32_0 = arith.constant 0 : i32
    %c0_i32_1 = arith.constant 0 : i32
    return %c0_i32, %c0_i32_0 : i32, i32
  }
  func.func @transform_9(%arg0: i32) -> (i32, i32, i32) {
    %c0_i32 = arith.constant 0 : i32
    %c0_i32_0 = arith.constant 0 : i32
    %c0_i32_1 = arith.constant 0 : i32
    return %arg0, %c0_i32, %c0_i32_0 : i32, i32, i32
  }
}

module attributes {stable_mosaic.version = 11 : i64} {
  func.func @_linear_kernel(%arg0: i32, %arg1: i32, %arg2: memref<16x128xbf16, #tpu.memory_space<vmem>>, %arg3: memref<128x128xbf16, #tpu.memory_space<vmem>>, %arg4: memref<1x128xf32, #tpu.memory_space<vmem>>, %arg5: memref<16x128xbf16, #tpu.memory_space<vmem>>) attributes {dimension_semantics = [#tpu.dimension_semantics<parallel>, #tpu.dimension_semantics<parallel>], iteration_bounds = array<i64: 1, 1>, scalar_prefetch = 0 : i64, scratch_operands = 0 : i64, tpu.core_type = #tpu.core_type<tc>, window_params = [{transform_indices = @transform_0, window_bounds = array<i64: 16, 128>}, {transform_indices = @transform_1, window_bounds = array<i64: 128, 128>}, {transform_indices = @transform_2, window_bounds = array<i64: 1, 128>}, {transform_indices = @transform_3, window_bounds = array<i64: 16, 128>}]} {
    %c0 = arith.constant 0 : index
    %c0_0 = arith.constant 0 : index
    %0 = vector.load %arg2[%c0, %c0_0] : memref<16x128xbf16, #tpu.memory_space<vmem>>, vector<16x128xbf16>
    %c0_1 = arith.constant 0 : index
    %c0_2 = arith.constant 0 : index
    %1 = vector.load %arg3[%c0_1, %c0_2] : memref<128x128xbf16, #tpu.memory_space<vmem>>, vector<128x128xbf16>
    %cst = arith.constant dense<0.000000e+00> : vector<16x128xf32>
    %2 = tpu.matmul %0, %1, %cst {dimension_numbers = #tpu.dot_dimension_numbers<[1], [0], [0], [1], [0, 0, 1, 1], [], []>} : vector<16x128xbf16>, vector<128x128xbf16>, vector<16x128xf32> -> vector<16x128xf32>
    %c0_3 = arith.constant 0 : index
    %c0_4 = arith.constant 0 : index
    %3 = vector.load %arg4[%c0_3, %c0_4] : memref<1x128xf32, #tpu.memory_space<vmem>>, vector<1x128xf32>
    %4 = vector.broadcast %3 : vector<1x128xf32> to vector<16x128xf32>
    %5 = arith.addf %2, %4 : vector<16x128xf32>
    %6 = arith.truncf %5 : vector<16x128xf32> to vector<16x128xbf16>
    %c0_5 = arith.constant 0 : index
    %c0_6 = arith.constant 0 : index
    %7 = vector.load %arg5[%c0_5, %c0_6] : memref<16x128xbf16, #tpu.memory_space<vmem>>, vector<16x128xbf16>
    tpu.vector_store %arg5[%c0_5, %c0_6], %6 {strides = array<i32>} : memref<16x128xbf16, #tpu.memory_space<vmem>>, vector<16x128xbf16>,
    return
  }
  func.func @transform_0(%arg0: i32, %arg1: i32) -> (i32, i32) {
    %c0_i32 = arith.constant 0 : i32
    %c0_i32_0 = arith.constant 0 : i32
    return %arg0, %c0_i32 : i32, i32
  }
  func.func @transform_1(%arg0: i32, %arg1: i32) -> (i32, i32) {
    %c0_i32 = arith.constant 0 : i32
    %c0_i32_0 = arith.constant 0 : i32
    return %c0_i32, %arg1 : i32, i32
  }
  func.func @transform_2(%arg0: i32, %arg1: i32) -> (i32, i32) {
    %c0_i32 = arith.constant 0 : i32
    %c0_i32_0 = arith.constant 0 : i32
    return %c0_i32, %arg1 : i32, i32
  }
  func.func @transform_3(%arg0: i32, %arg1: i32) -> (i32, i32) {
    %c0_i32 = arith.constant 0 : i32
    return %arg0, %arg1 : i32, i32
  }
}

</mosaic_0001>

<bundles_post_ra>
// kernel: mul.22
= control target key start
LH: loop header
LB: loop body
LE: loop exit
PB: predicated region body
PF: predicated region fallthrough
CT: control target
= control target key end

     0   :  { %vm19_vm0 = vcmask 15360   ;;  %s80_s14 = smov 10   ;;  %s81_s15 = smov 6   ;;  %vm25_vm1 = vcmask 130160   ;;  %vm31_vm2 = vcmask 113760   ;;  %vm37_vm3 = vcmask 97360   ;;  %s111_s0 = inlined_call_operand.vmem [shape: f32[4,2,2], index: 0, kind: input, shape index: {}]   ;;  %s112_s1 = inlined_call_operand.vmem [shape: f32[16], index: 1, kind: output, shape index: {}]  }
   0x1   :  { %v69_v0 = vld [vmem:[%s111_s0 + $0x6] sm:$0x3]  ;;  %v70_v1 = vld [vmem:[%s111_s0 + $0x4] sm:$0x3]  ;;  %v16_v2 = vld [vmem:[%s111_s0] sm:$0x3] }
   0x2   :  { %7 = vst [vmem:[#allocation1 + $0x18] sm:$0x3] %v69_v0  ;;  %v71_v3 = vld [vmem:[%s111_s0 + $0x2] sm:$0x3]  ;;  %s79_s0 = smov 14   ;;  %s82_s16 = smov 12  }
   0x3   :  { %11 = vst [vmem:[#allocation1 + $0x10] sm:$0x3] %v70_v1  ;;  %s83_s17 = smov 8   ;;  %s84_s18 = smov 4   ;;  %vm43_vm4 = vcmask 80960   ;;  %vm49_vm5 = vcmask 64560  }
   0x4   :  { %17 = vst [vmem:[#allocation1] sm:$0x3] %v16_v2  ;;  %s85_s19 = smov 2   ;;  %vm55_vm6 = vcmask 48160   ;;  %vm61_vm7 = vcmask 31760  }
   0x5   :  { %15 = vst [vmem:[#allocation1 + $0x8] sm:$0x3] %v71_v3 }
   0x9   :  { %v22_v4 = vld [vmem:[#allocation1 + $0x19] sm:$0x1]   ;;  %v28_v8 = vld [vmem:[#allocation1 + $0x18] sm:$0x1]  }
   0xa   :  { %23 = vrot.lane.b32.xlu0 %v22_v4, %s79_s0  ;;  %v34_v5 = vld [vmem:[#allocation1 + $0x11] sm:$0x1]   ;;  %v40_v9 = vld [vmem:[#allocation1 + $0x10] sm:$0x1]  }
   0xb   :  { %35 = vrot.lane.b32.xlu1 %v34_v5, %s80_s14  ;;  %v18_v6 = vld [vmem:[#allocation1] sm:$0x1]   ;;  %v58_v11 = vld [vmem:[#allocation1 + $0x1] sm:$0x1]  }
   0xc   :  { %v46_v7 = vld [vmem:[#allocation1 + $0x9] sm:$0x1]   ;;  %20 = vst.msk [vmem:[#allocation0] sm:$0x1] %vm19_vm0, %v18_v6   ;;  %v52_v10 = vld [vmem:[#allocation1 + $0x8] sm:$0x1]  }
   0xd   :  { %47 = vrot.lane.b32.xlu2 %v46_v7, %s81_s15 }
  0x12   :  { %29 = vrot.lane.b32.xlu0 %v28_v8, %s82_s16 }
  0x13   :  { %41 = vrot.lane.b32.xlu1 %v40_v9, %s83_s17 }
  0x15   :  { %53 = vrot.lane.b32.xlu2 %v52_v10, %s84_s18 }
  0x1a   :  { %59 = vrot.lane.b32.xlu0 %v58_v11, %s85_s19 }
  0x67   :  { %v48_v12 = vpop.permute.xlu2 %47  }
  0x6f   :  { %v54_v13 = vpop.permute.xlu2 %53  }
  0x7c   :  { %v24_v14 = vpop.permute.xlu0 %23  }
  0x7d   :  { %26 = vst.msk [vmem:[#allocation0] sm:$0x1] %vm25_vm1, %v24_v14   ;;  %v36_v15 = vpop.permute.xlu1 %35  }
  0x84   :  { %v30_v16 = vpop.permute.xlu0 %29  }
  0x85   :  { %32 = vst.msk [vmem:[#allocation0] sm:$0x1] %vm31_vm2, %v30_v16   ;;  %v42_v17 = vpop.permute.xlu1 %41  }
  0x86   :  { %38 = vst.msk [vmem:[#allocation0] sm:$0x1] %vm37_vm3, %v36_v15  }
  0x87   :  { %44 = vst.msk [vmem:[#allocation0] sm:$0x1] %vm43_vm4, %v42_v17  }
  0x88   :  { %50 = vst.msk [vmem:[#allocation0] sm:$0x1] %vm49_vm5, %v48_v12  }
  0x89   :  { %56 = vst.msk [vmem:[#allocation0] sm:$0x1] %vm55_vm6, %v54_v13  }
  0x8c   :  { %v60_v18 = vpop.permute.xlu0 %59  }
  0x8d   :  { %62 = vst.msk [vmem:[#allocation0] sm:$0x1] %vm61_vm7, %v60_v18  }
  0x94   :  { %v65_v19 = vld [vmem:[#allocation0] sm:$0x1] }
  0x95   :  { %68 = vst [vmem:[%s112_s1] sm:$0x1] %v65_v19 }

// kernel: simple_vit_forward.19
= control target key start
LH: loop header
LB: loop body
LE: loop exit
PB: predicated region body
PF: predicated region fallthrough
CT: control target
= control target key end

     0   :  { %12 = vsyncpa [#allocation3], 0  ;;  %s1179_s0 = inlined_call_operand.vmem [shape: f32[32,64], index: 0, kind: input, shape index: {}]   ;;  %s1180_s1 = inlined_call_operand.hbm [shape: f32[1,64], index: 1, kind: input, shape index: {}]   ;;  %s1181_s2 = inlined_call_operand.hbm [shape: f32[1,64], index: 2, kind: input, shape index: {}]   ;;  %s1182_s3 = inlined_call_operand.hbm [shape: bf16[64,128], index: 3, kind: input, shape index: {}]   ;;  %s1183_s4 = inlined_call_operand.hbm [shape: f32[1,128], index: 4, kind: input, shape index: {}]   ;;  %s1184_s5 = inlined_call_operand.hbm [shape: f32[1,128], index: 5, kind: input, shape index: {}]   ;;  %s1185_s6 = inlined_call_operand.hbm [shape: f32[1,128], index: 6, kind: input, shape index: {}]   ;;  %s1186_s7 = inlined_call_operand.vmem [shape: bf16[32,128], index: 7, kind: output, shape index: {}]  }
   0x1   :  { %13 = vsyncpa [#allocation5], 0 }
   0x2   :  { %14 = vsyncpa [#allocation8], 0 }
   0x3   :  { %15 = vsyncpa [#allocation11], 0  ;;  %s1073_s24 = smov 0  }
   0x4 LB: > { %s228_s27 = sshll.u32 %s1181_s2, 4  ;;  %s680_s28 = sadd.s32 4294967295, %s1021_s24   ;;  %s1021_s24 = sphi %s1073_s24, %s21_s24   ;;  %s229_s27 = int_to_ptr.hbm [resolvable:$true] %s228_s27 }
   0x5   : > { %p682_p0 = scmp.ge.s32.totalorder %s1021_s24, 1  ;;  %p204_p1 = scmp.lt.s32.totalorder %s1021_s24, 3 }
   0x6   : > { %p1086_p2 = scmp.eq.s32.totalorder %s680_s28, 0  ;;  %s1023_s8 = smov [#allocation4]  }
   0x7   : > { %p1090_p3 = pnand %p682_p0, %p204_p1  ;;  %s230_s9 = sshll.u32 %s1023_s8, 4  ;;  %s231_s9 = int_to_ptr.vmem [resolvable:$true] %s230_s9 }
   0x8   : > { %s254_s12 = sshll.u32 %s1183_s4, 4  ;;  %s216_s15 = sshll.u32 %s1180_s1, 4  ;;  %s255_s12 = int_to_ptr.hbm [resolvable:$true] %s254_s12  ;;  %s217_s15 = int_to_ptr.hbm [resolvable:$true] %s216_s15 }
   0x9   : > { %p753_p4 = pneg %p1090_p3  ;;  %s1024_s17 = smov [#allocation7]  }
   0xa   : > { %s256_s18 = sshll.u32 %s1024_s17, 4  ;;  %s1025_s19 = smov [#allocation2]   ;;  %s257_s18 = int_to_ptr.vmem [resolvable:$true] %s256_s18 }
   0xb   : > { %p1104_p5 = pnand %p1086_p2, %p753_p4  ;;  %s218_s20 = sshll.u32 %s1025_s19, 4  ;;  %s219_s20 = int_to_ptr.vmem [resolvable:$true] %s218_s20 }
   0xc   : > { %s239_s23 = sshll.u32 %s1182_s3, 4  ;;  %s1026_s25 = smov [#allocation6]   ;;  %s240_s23 = int_to_ptr.hbm [resolvable:$true] %s239_s23 }
   0xd   : > { %759 = dma.hbm_to_vmem [thread:$0]  (!%p1104_p5), %s229_s27, 16, %s231_s9, [#allocation5]  }
   0xe   : > { %765 = dma.hbm_to_vmem [thread:$0]  (!%p1104_p5), %s255_s12, 16, %s257_s18, [#allocation8]  }
   0xf   : > { %756 = dma.hbm_to_vmem [thread:$0]  (!%p1104_p5), %s217_s15, 16, %s219_s20, [#allocation3]  }
  0x10   : > { %s241_s26 = sshll.u32 %s1026_s25, 4  ;;  %s266_s27 = sshll.u32 %s1184_s5, 4  ;;  %s242_s26 = int_to_ptr.vmem [resolvable:$true] %s241_s26  ;;  %s267_s27 = int_to_ptr.hbm [resolvable:$true] %s266_s27 }
  0x11   : > { %s1027_s9 = smov 64   ;;  %s1028_s11 = smov 4  }
  0x12   : > { %762 = dma.hbm_to_vmem [thread:$0]  (!%p1104_p5), %s240_s23, 512, %s242_s26, [#allocation5], %s1027_s9, %s1027_s9, %s1028_s11  }
  0x13   : > { %s1029_s12 = smov [#allocation9]   ;;  %s278_s18 = sshll.u32 %s1185_s6, 4  ;;  %s279_s18 = int_to_ptr.hbm [resolvable:$true] %s278_s18 }
  0x14   : > { %s268_s13 = sshll.u32 %s1029_s12, 4  ;;  %s1030_s15 = smov [#allocation10]   ;;  %s269_s13 = int_to_ptr.vmem [resolvable:$true] %s268_s13 }
  0x15   : > { %768 = dma.hbm_to_vmem [thread:$0]  (!%p1104_p5), %s267_s27, 16, %s269_s13, [#allocation8]  }
  0x16   : > { %s280_s19 = sshll.u32 %s1030_s15, 4  ;;  %302 = sbr.rel (%p1090_p3) target bundleno = 487 (0x1e7), region = 48  ;;  %s281_s19 = int_to_ptr.vmem [resolvable:$true] %s280_s19 }
  0x17   : > { %771 = dma.hbm_to_vmem [thread:$0]  (!%p1104_p5), %s279_s18, 16, %s281_s19, [#allocation11]  }
  0x1b   : > { %1004 = dma.done.wait (%p1086_p2), [#allocation3], 16  }
  0x1c   : > { %1006 = vsyncadd (%p1086_p2), [#allocation3], 4294967280 }
  0x1d   : > { %1008 = dma.done.wait (%p1086_p2), [#allocation5], 528  }
  0x1e   : > { %1010 = vsyncadd (%p1086_p2), [#allocation5], 4294966768 }
  0x1f   : > { %1012 = dma.done.wait (%p1086_p2), [#allocation8], 32  }
  0x20   : > { %1014 = vsyncadd (%p1086_p2), [#allocation8], 4294967264 }
  0x21   : > { %1016 = dma.done.wait (%p1086_p2), [#allocation11], 16  }
  0x22   : > { %1018 = vsyncadd (%p1086_p2), [#allocation11], 4294967280  ;;  %s697_s30 = sshll.u32 %s680_s28, 1  ;;  %vm375_vm0 = vcmask 523264   ;;  %v1031_v8 = vmov 64.0   ;;  %v723_v14 = vld [vmem:[#allocation6 + $0x18] sm:$0xff] }
  0x23   : > { %p361_p6 = scmp.lt.s32.totalorder %s697_s30, 3  ;;  %807 = vrcp.f32 %v1031_v8  ;;  %487 = vmatpush.bf16.msra.mxu0 %v723_v14  ;;  %v722_v16 = vld [vmem:[#allocation6 + $0x10] sm:$0xff]  ;;  %v721_v20 = vld [vmem:[#allocation6 + $0x8] sm:$0xff]  ;;  %v720_v23 = vld [vmem:[#allocation6] sm:$0xff] }
  0x24   : > { %v802_v47 = vld [vmem:[#allocation2] ss:$0 sm:$0xff]  ;;  %v803_v53 = vld [vmem:[#allocation4] ss:$0 sm:$0xff]  ;;  %v804_v58 = vld [vmem:[#allocation7] ss:$0 sm:$0xff] }
  0x25   : > { %s1191_s30 = smov (!%p361_p6, %s697_s30), 3 }
  0x26   : > { %s698_s16 = sshll.u32 %s1191_s30, 3  ;;  %s700_s28 = sshll.u32 %s1191_s30, 2 }
  0x27   : > { %s364_s22 = scalar_lea.vmem %s1179_s0, %s698_s16  ;;  %488 = vmatpush.bf16.msra.mxu0 %v722_v16  ;;  %s370_s25 = scalar_lea.vmem %s1186_s7, %s700_s28 }
  0x28   : > { %v1155_v0 = vld [vmem:[%s364_s22] sm:$0xff]  ;;  %v1161_v3 = vld [vmem:[%s364_s22 + $0x8] sm:$0xff] }
  0x29   : > { %v376_v1 = vsel %vm375_vm0, %v1155_v0, 0.0  ;;  %v391_v2 = vmul.f32 %v1155_v0, %v1155_v0  ;;  %v392_v5 = vmul.f32 %v1161_v3, %v1161_v3  ;;  %v379_v6 = vsel %vm375_vm0, %v1161_v3, 0.0  ;;  %v808_v9 = vpop.eup %807 }
  0x2a   : > { %377 = vadd.xlane.f32.xlu0 %v376_v1  ;;  %v383_v10 = vmul.f32 64.0, %v808_v9  ;;  %vm387_vm1 = vweird.f32 %v808_v9  ;;  %v1032_v1 = vmov 128.0  }
  0x2b   : > { %v393_v4 = vsel %vm375_vm0, %v391_v2, 0.0  ;;  %v396_v7 = vsel %vm375_vm0, %v392_v5, 0.0  ;;  %489 = vmatpush.bf16.msra.mxu0 %v721_v20 }
  0x2c   : > { %394 = vadd.xlane.f32.xlu1 %v393_v4  ;;  %v384_v11 = vsub.f32 1.0, %v383_v10 }
  0x2e   : > { %v385_v12 = vmul.f32 %v808_v9, %v384_v11 }
  0x2f   : > { %490 = vmatpush.bf16.msra.mxu0 %v720_v23 }
  0x30   : > { %v386_v13 = vadd.f32 %v808_v9, %v385_v12 }
  0x32   : > { %380 = vadd.xlane.f32.xlu0 %v379_v6  ;;  %v388_v15 = vsel %vm387_vm1, %v808_v9, %v386_v13 }
  0x34   : > { %397 = vadd.xlane.f32.xlu1 %v396_v7 }
  0x9d   : > { %v378_v17 = vpop.xlane.xlu0 %377 }
  0x9e   : > { %v389_v18 = vmul.f32 %v388_v15, %v378_v17 }
  0x9f   : > { %v395_v19 = vpop.xlane.xlu1 %394 }
  0xa0   : > { %v401_v21 = vmul.f32 %v389_v18, %v389_v18  ;;  %v399_v22 = vmul.f32 %v395_v19, %v388_v15  ;;  %v405_v44 = vsub.f32 %v1155_v0, %v389_v18 }
  0xa2   : > { %v403_v24 = vsub.f32 %v399_v22, %v401_v21 }
  0xa4   : > { %v407_v25 = vadd.f32 1e-05, %v403_v24 }
  0xa5   : > { %v381_v26 = vpop.xlane.xlu0 %380 }
  0xa6   : > { %809 = vrsqrt.f32 %v407_v25  ;;  %v390_v27 = vmul.f32 %v388_v15, %v381_v26  ;;  %vm415_vm3 = vweird.f32 %v407_v25 }
  0xa7   : > { %v398_v28 = vpop.xlane.xlu1 %397 }
  0xa8   : > { %v402_v29 = vmul.f32 %v390_v27, %v390_v27  ;;  %v400_v30 = vmul.f32 %v398_v28, %v388_v15  ;;  %v406_v49 = vsub.f32 %v1161_v3, %v390_v27 }
  0xaa   : > { %v404_v31 = vsub.f32 %v400_v30, %v402_v29 }
  0xac   : > { %v810_v32 = vpop.eup %809  ;;  %v408_v33 = vadd.f32 1e-05, %v404_v31 }
  0xad   : > { %v410_v34 = vmul.f32 %v810_v32, %v407_v25  ;;  %vm416_vm2 = vweird.f32 %v810_v32 }
  0xae   : > { %811 = vrsqrt.f32 %v408_v33  ;;  %vm417_vm4 = vmor %vm415_vm3, %vm416_vm2  ;;  %vm425_vm6 = vweird.f32 %v408_v33 }
  0xaf   : > { %v411_v35 = vmul.f32 %v810_v32, %v410_v34  ;;  %813 = vrcp.f32 %v1032_v1 }
  0xb1   : > { %v412_v36 = vmul.f32 0.5, %v411_v35  ;;  %v805_v35 = vld [vmem:[#allocation9] ss:$0 sm:$0xff] }
  0xb3   : > { %v413_v37 = vsub.f32 1.5, %v412_v36 }
  0xb4   : > { %v812_v38 = vpop.eup %811 }
  0xb5   : > { %v414_v39 = vmul.f32 %v810_v32, %v413_v37  ;;  %v420_v40 = vmul.f32 %v812_v38, %v408_v33  ;;  %vm426_vm5 = vweird.f32 %v812_v38  ;;  %v814_v2 = vpop.eup %813 }
  0xb6   : > { %vm427_vm7 = vmor %vm425_vm6, %vm426_vm5  ;;  %v502_v3 = vmul.f32 128.0, %v814_v2  ;;  %vm506_vm8 = vweird.f32 %v814_v2 }
  0xb7   : > { %v421_v41 = vmul.f32 %v812_v38, %v420_v40  ;;  %v418_v42 = vsel %vm417_vm4, %v810_v32, %v414_v39  ;;  %v806_v40 = vld [vmem:[#allocation10] ss:$0 sm:$0xff] }
  0xb8   : > { %v429_v46 = vmul.f32 %v418_v42, %v405_v44  ;;  %v503_v4 = vsub.f32 1.0, %v502_v3 }
  0xb9   : > { %v422_v43 = vmul.f32 0.5, %v421_v41 }
  0xba   : > { %v435_v52 = vmul.f32 %v802_v47, %v429_v46  ;;  %v504_v5 = vmul.f32 %v814_v2, %v503_v4 }
  0xbb   : > { %v423_v45 = vsub.f32 1.5, %v422_v43 }
  0xbc   : > { %v441_v55 = vadd.f32 %v803_v53, %v435_v52  ;;  %v505_v6 = vadd.f32 %v814_v2, %v504_v5 }
  0xbd   : > { %v424_v48 = vmul.f32 %v812_v38, %v423_v45 }
  0xbe   : > { %v507_v7 = vsel %vm506_vm8, %v814_v2, %v505_v6 }
  0xbf   : > { %v428_v50 = vsel %vm427_vm7, %v812_v38, %v424_v48 }
  0xc0   : > { %v430_v51 = vmul.f32 %v428_v50, %v406_v49 }
  0xc2   : > { %v436_v54 = vmul.f32 %v802_v47, %v430_v51 }
  0xc4   : > { %v442_v56 = vadd.f32 %v803_v53, %v436_v54 }
  0xc6   : > { %v443_v57 = vpack.c.bf16 %v442_v56, %v441_v55 }
  0xc8   : > { %717 = vmatmul.msk.bf16.vlgmr.msra.gmra.mxu0 %vm375_vm0, %v443_v57 }
 0x145   : > { %v492_v59 = vpop.f32.mrf.mxu0 }
 0x146   : > { %v493_v60 = vadd.f32 %v804_v58, %v492_v59 }
 0x148   : > { %497 = vadd.xlane.f32.xlu2 %v493_v60  ;;  %v510_v61 = vmul.f32 %v493_v60, %v493_v60 }
 0x14a   : > { %512 = vadd.xlane.f32.xlu0 %v510_v61 }
 0x14d   : > { %v494_v62 = vpop.f32.mrf.mxu0 }
 0x14e   : > { %v495_v63 = vadd.f32 %v804_v58, %v494_v62 }
 0x150   : > { %499 = vadd.xlane.f32.xlu2 %v495_v63  ;;  %v511_v0 = vmul.f32 %v495_v63, %v495_v63 }
 0x152   : > { %514 = vadd.xlane.f32.xlu1 %v511_v0 }
 0x1bb   : > { %v498_v8 = vpop.xlane.xlu2 %497 }
 0x1bc   : > { %v508_v9 = vmul.f32 %v507_v7, %v498_v8 }
 0x1bd   : > { %v513_v10 = vpop.xlane.xlu0 %512 }
 0x1be   : > { %v518_v11 = vmul.f32 %v508_v9, %v508_v9  ;;  %v516_v12 = vmul.f32 %v513_v10, %v507_v7  ;;  %v522_v33 = vsub.f32 %v493_v60, %v508_v9 }
 0x1c0   : > { %v520_v13 = vsub.f32 %v516_v12, %v518_v11 }
 0x1c2   : > { %v524_v14 = vadd.f32 1e-05, %v520_v13 }
 0x1c3   : > { %v500_v15 = vpop.xlane.xlu2 %499 }
 0x1c4   : > { %815 = vrsqrt.f32 %v524_v14  ;;  %v509_v16 = vmul.f32 %v507_v7, %v500_v15  ;;  %vm532_vm10 = vweird.f32 %v524_v14 }
 0x1c5   : > { %v515_v17 = vpop.xlane.xlu1 %514 }
 0x1c6   : > { %v519_v18 = vmul.f32 %v509_v16, %v509_v16  ;;  %v517_v19 = vmul.f32 %v515_v17, %v507_v7  ;;  %v523_v38 = vsub.f32 %v495_v63, %v509_v16 }
 0x1c8   : > { %v521_v20 = vsub.f32 %v517_v19, %v519_v18 }
 0x1ca   : > { %v816_v21 = vpop.eup %815  ;;  %v525_v22 = vadd.f32 1e-05, %v521_v20 }
 0x1cb   : > { %v527_v23 = vmul.f32 %v816_v21, %v524_v14  ;;  %vm533_vm9 = vweird.f32 %v816_v21 }
 0x1cc   : > { %817 = vrsqrt.f32 %v525_v22  ;;  %vm534_vm11 = vmor %vm532_vm10, %vm533_vm9  ;;  %vm542_vm13 = vweird.f32 %v525_v22 }
 0x1cd   : > { %v528_v24 = vmul.f32 %v816_v21, %v527_v23 }
 0x1cf   : > { %v529_v25 = vmul.f32 0.5, %v528_v24 }
 0x1d1   : > { %v530_v26 = vsub.f32 1.5, %v529_v25 }
 0x1d2   : > { %v818_v27 = vpop.eup %817 }
 0x1d3   : > { %v531_v28 = vmul.f32 %v816_v21, %v530_v26  ;;  %v537_v29 = vmul.f32 %v818_v27, %v525_v22  ;;  %vm543_vm12 = vweird.f32 %v818_v27 }
 0x1d4   : > { %vm544_vm14 = vmor %vm542_vm13, %vm543_vm12 }
 0x1d5   : > { %v538_v30 = vmul.f32 %v818_v27, %v537_v29  ;;  %v535_v31 = vsel %vm534_vm11, %v816_v21, %v531_v28 }
 0x1d6   : > { %v546_v36 = vmul.f32 %v535_v31, %v522_v33 }
 0x1d7   : > { %v539_v32 = vmul.f32 0.5, %v538_v30 }
 0x1d8   : > { %v552_v41 = vmul.f32 %v805_v35, %v546_v36 }
 0x1d9   : > { %v540_v34 = vsub.f32 1.5, %v539_v32 }
 0x1da   : > { %v558_v44 = vadd.f32 %v806_v40, %v552_v41 }
 0x1db   : > { %v541_v37 = vmul.f32 %v818_v27, %v540_v34 }
 0x1dd   : > { %v545_v39 = vsel %vm544_vm14, %v818_v27, %v541_v37 }
 0x1de   : > { %v547_v42 = vmul.f32 %v545_v39, %v523_v38 }
 0x1e0   : > { %v553_v43 = vmul.f32 %v805_v35, %v547_v42 }
 0x1e2   : > { %v559_v45 = vadd.f32 %v806_v40, %v553_v43 }
 0x1e4   : > { %v727_v46 = vpack.c.bf16 %v559_v45, %v558_v44 }
 0x1e6   : > { %728 = vst [vmem:[%s370_s25] sm:$0xff] %v727_v46  }
 0x1e7 PF: > { %s21_s24 = sadd.s32 1, %s1021_s24  }
 0x1e8   : > { %p18_p7 = scmp.ge.s32.totalorder %s21_s24, 4  }
 0x1ea   :  { %20 = sbr.rel (!%p18_p7) target bundleno = 4 (0x4), region = 103 }
 0x1ef   :  { %586 = vsyncpa [#allocation3], 1 }
 0x1f0   :  { %588 = vsyncpa [#allocation3 + $0x1], 1 }
 0x1f1   :  { %589 = vsyncpa [#allocation5], 1 }
 0x1f2   :  { %590 = vsyncpa [#allocation8], 1 }
 0x1f3   :  { %591 = vsyncpa [#allocation11], 1 }

// kernel: simple_vit_forward.20
= control target key start
LH: loop header
LB: loop body
LE: loop exit
PB: predicated region body
PF: predicated region fallthrough
CT: control target
= control target key end

     0   :  { %8 = vsyncpa [#allocation3], 0  ;;  %s838_s12 = smov 0   ;;  %s840_s13 = smov 0   ;;  %s885_s0 = inlined_call_operand.vmem [shape: bf16[32,128], index: 0, kind: input, shape index: {}]   ;;  %s886_s1 = inlined_call_operand.hbm [shape: bf16[128,384], index: 1, kind: input, shape index: {}]   ;;  %s887_s2 = inlined_call_operand.vmem [shape: f32[1,384], index: 2, kind: input, shape index: {}]   ;;  %s888_s3 = inlined_call_operand.vmem [shape: bf16[32,384], index: 3, kind: output, shape index: {}]  }
   0x1   :  { %s842_s14 = smov 0  }
   0x2 LB: > { %s580_s15 = sadd.s32 4294967295, %s813_s14   ;;  %s26_s16 = sadd.s32 1, %s809_s13  ;;  %s813_s14 = sphi %s842_s14, %s14_s14   ;;  %s809_s13 = sphi %s840_s13, %s890_s13   ;;  %s805_s12 = sphi %s838_s12, %s889_s12  }
   0x3   : > { %p28_p0 = scmp.ge.s32.totalorder %s26_s16, 2  ;;  %p582_p1 = scmp.ge.s32.totalorder %s813_s14, 1 }
   0x4   : > { %p137_p2 = scmp.lt.s32.totalorder %s813_s14, 3  ;;  %p728_p4 = scmp.eq.s32.totalorder %s580_s15, 0 }
   0x5   : > { %s892_s16 = smov (%p28_p0, %s26_s16), 0  ;;  %s151_s19 = sshll.u32 %s886_s1, 4  ;;  %s152_s19 = int_to_ptr.hbm [resolvable:$true] %s151_s19 }
   0x6   : > { %p138_p3 = pnand %p582_p1, %p137_p2  ;;  %s815_s20 = smov [#allocation2]  }
   0x7   : > { %s153_s21 = sshll.u32 %s815_s20, 4  ;;  %s816_s22 = smov 192   ;;  %s154_s21 = int_to_ptr.vmem [resolvable:$true] %s153_s21 }
   0x8   : > { %p724_p5 = pneg %p138_p3  ;;  %s817_s23 = smov 12  }
   0x9   : > { %186 = sbr.rel (%p138_p3) target bundleno = 196 (0xc4), region = 32 }
   0xa   : > { %p725_p6 = pnand %p728_p4, %p724_p5 }
   0xc   : > { %727 = dma.hbm_to_vmem [thread:$0]  (!%p725_p6), %s152_s19, 3072, %s154_s21, [#allocation3], %s816_s22, %s816_s22, %s817_s23  }
   0xe   : > { %800 = dma.done.wait (%p728_p4), [#allocation3], 3072  }
   0xf   : > { %802 = vsyncadd (%p728_p4), [#allocation3], 4294964224  ;;  %v682_v0 = vld [vmem:[#allocation2 + $0xa8] sm:$0xf]  ;;  %v717_v1 = vld [vmem:[#allocation2 + $0xb0] sm:$0xf0] }
  0x10   : > { %v716_v2 = vld [vmem:[#allocation2 + $0xac] sm:$0xf]  ;;  %v683_v3 = vor.u32 %v717_v1, %v682_v0  ;;  %v684_v4 = vld [vmem:[#allocation2 + $0xb4] sm:$0xf0]  ;;  %v690_v5 = vld [vmem:[#allocation2 + $0xb0] sm:$0xf] }
  0x11   : > { %v718_v6 = vld [vmem:[#allocation2 + $0xb8] sm:$0xf0]  ;;  %v687_v7 = vor.u32 %v716_v2, %v684_v4  ;;  %v670_v9 = vld [vmem:[#allocation2 + $0x90] sm:$0xf]  ;;  %v713_v11 = vld [vmem:[#allocation2 + $0x94] sm:$0xf] }
  0x12   : > { %v691_v8 = vor.u32 %v718_v6, %v690_v5  ;;  %v714_v10 = vld [vmem:[#allocation2 + $0x98] sm:$0xf0]  ;;  %420 = vmatpush.bf16.msra.mxu0 %v683_v3  ;;  %v672_v13 = vld [vmem:[#allocation2 + $0x9c] sm:$0xf0]  ;;  %v678_v14 = vld [vmem:[#allocation2 + $0x98] sm:$0xf] }
  0x13   : > { %v671_v12 = vor.u32 %v714_v10, %v670_v9  ;;  %v715_v15 = vld [vmem:[#allocation2 + $0xa0] sm:$0xf0]  ;;  %434 = vmatpush.bf16.msra.mxu1 %v687_v7  ;;  %v675_v16 = vor.u32 %v713_v11, %v672_v13  ;;  %v658_v18 = vld [vmem:[#allocation2 + $0x78] sm:$0xf]  ;;  %v710_v20 = vld [vmem:[#allocation2 + $0x7c] sm:$0xf] }
  0x14   : > { %448 = vmatpush.bf16.msra.mxu2 %v691_v8  ;;  %v679_v17 = vor.u32 %v715_v15, %v678_v14  ;;  %v711_v19 = vld [vmem:[#allocation2 + $0x80] sm:$0xf0]  ;;  %v660_v21 = vld [vmem:[#allocation2 + $0x84] sm:$0xf0]  ;;  %v666_v22 = vld [vmem:[#allocation2 + $0x80] sm:$0xf] }
  0x15   : > { %v712_v23 = vld [vmem:[#allocation2 + $0x88] sm:$0xf0]  ;;  %v659_v24 = vor.u32 %v711_v19, %v658_v18  ;;  %v663_v25 = vor.u32 %v710_v20, %v660_v21  ;;  %v646_v27 = vld [vmem:[#allocation2 + $0x60] sm:$0xf]  ;;  %v707_v29 = vld [vmem:[#allocation2 + $0x64] sm:$0xf] }
  0x16   : > { %421 = vmatpush.bf16.msra.mxu0 %v671_v12  ;;  %v667_v26 = vor.u32 %v712_v23, %v666_v22  ;;  %v708_v28 = vld [vmem:[#allocation2 + $0x68] sm:$0xf0]  ;;  %v648_v30 = vld [vmem:[#allocation2 + $0x6c] sm:$0xf0]  ;;  %v654_v31 = vld [vmem:[#allocation2 + $0x68] sm:$0xf] }
  0x17   : > { %435 = vmatpush.bf16.msra.mxu1 %v675_v16  ;;  %v709_v32 = vld [vmem:[#allocation2 + $0x70] sm:$0xf0]  ;;  %v647_v33 = vor.u32 %v708_v28, %v646_v27  ;;  %s588_s24 = sshll.u32 %s805_s12, 1  ;;  %v651_v34 = vor.u32 %v707_v29, %v648_v30  ;;  %v634_v36 = vld [vmem:[#allocation2 + $0x48] sm:$0xf] }
  0x18   : > { %449 = vmatpush.bf16.msra.mxu2 %v679_v17  ;;  %v655_v35 = vor.u32 %v709_v32, %v654_v31  ;;  %v705_v37 = vld [vmem:[#allocation2 + $0x50] sm:$0xf0]  ;;  %v704_v38 = vld [vmem:[#allocation2 + $0x4c] sm:$0xf]  ;;  %v636_v39 = vld [vmem:[#allocation2 + $0x54] sm:$0xf0] }
  0x19   : > { %v642_v40 = vld [vmem:[#allocation2 + $0x50] sm:$0xf]  ;;  %v706_v41 = vld [vmem:[#allocation2 + $0x58] sm:$0xf0]  ;;  %v635_v42 = vor.u32 %v705_v37, %v634_v36  ;;  %p221_p7 = scmp.lt.s32.totalorder %s588_s24, 3  ;;  %v639_v43 = vor.u32 %v704_v38, %v636_v39 }
  0x1a   : > { %422 = vmatpush.bf16.msra.mxu0 %v659_v24  ;;  %v643_v44 = vor.u32 %v706_v41, %v642_v40  ;;  %v622_v45 = vld [vmem:[#allocation2 + $0x30] sm:$0xf]  ;;  %v702_v46 = vld [vmem:[#allocation2 + $0x38] sm:$0xf0]  ;;  %v701_v47 = vld [vmem:[#allocation2 + $0x34] sm:$0xf] }
  0x1b   : > { %436 = vmatpush.bf16.msra.mxu1 %v663_v25  ;;  %v624_v48 = vld [vmem:[#allocation2 + $0x3c] sm:$0xf0]  ;;  %v630_v49 = vld [vmem:[#allocation2 + $0x38] sm:$0xf]  ;;  %v703_v50 = vld [vmem:[#allocation2 + $0x40] sm:$0xf0]  ;;  %v623_v51 = vor.u32 %v702_v46, %v622_v45 }
  0x1c   : > { %450 = vmatpush.bf16.msra.mxu2 %v667_v26  ;;  %s894_s24 = smov (!%p221_p7, %s588_s24), 3  ;;  %v627_v52 = vor.u32 %v701_v47, %v624_v48  ;;  %v631_v53 = vor.u32 %v703_v50, %v630_v49  ;;  %v610_v54 = vld [vmem:[#allocation2 + $0x18] sm:$0xf]  ;;  %v699_v55 = vld [vmem:[#allocation2 + $0x20] sm:$0xf0] }
  0x1d   : > { %v698_v56 = vld [vmem:[#allocation2 + $0x1c] sm:$0xf]  ;;  %v612_v57 = vld [vmem:[#allocation2 + $0x24] sm:$0xf0]  ;;  %v618_v58 = vld [vmem:[#allocation2 + $0x20] sm:$0xf]  ;;  %v611_v60 = vor.u32 %v699_v55, %v610_v54 }
  0x1e   : > { %423 = vmatpush.bf16.msra.mxu0 %v647_v33  ;;  %v700_v59 = vld [vmem:[#allocation2 + $0x28] sm:$0xf0]  ;;  %s589_s25 = sshll.u32 %s894_s24, 2  ;;  %v615_v61 = vor.u32 %v698_v56, %v612_v57  ;;  %v598_v63 = vld [vmem:[#allocation2] sm:$0xf]  ;;  %s719_s4 = smul.u32 12, %s894_s24 }
  0x1f   : > { %437 = vmatpush.bf16.msra.mxu1 %v651_v34  ;;  %v619_v62 = vor.u32 %v700_v59, %v618_v58  ;;  %v696_v0 = vld [vmem:[#allocation2 + $0x8] sm:$0xf0]  ;;  %v695_v1 = vld [vmem:[#allocation2 + $0x4] sm:$0xf]  ;;  %v600_v2 = vld [vmem:[#allocation2 + $0xc] sm:$0xf0]  ;;  %s224_s28 = scalar_lea.vmem %s885_s0, %s589_s25 }
  0x20   : > { %451 = vmatpush.bf16.msra.mxu2 %v655_v35  ;;  %v606_v3 = vld [vmem:[#allocation2 + $0x8] sm:$0xf]  ;;  %v697_v4 = vld [vmem:[#allocation2 + $0x10] sm:$0xf0]  ;;  %v599_v5 = vor.u32 %v696_v0, %v598_v63  ;;  %v603_v6 = vor.u32 %v695_v1, %v600_v2  ;;  %v694_v8 = vld [vmem:[%s224_s28] sm:$0xff]  ;;  %s241_s7 = scalar_lea.vmem %s888_s3, %s719_s4 }
  0x21   : > { %v607_v7 = vor.u32 %v697_v4, %v606_v3  ;;  %v278_v9 = vld [vmem:[%s887_s2] sm:$0x7] }
  0x22   : > { %424 = vmatpush.bf16.msra.mxu0 %v635_v42  ;;  %v280_v10 = vperm.slane %v278_v9, 0  ;;  %v281_v11 = vperm.slane %v278_v9, 1  ;;  %v282_v17 = vperm.slane %v278_v9, 2 }
  0x23   : > { %438 = vmatpush.bf16.msra.mxu1 %v639_v43 }
  0x24   : > { %452 = vmatpush.bf16.msra.mxu2 %v643_v44 }
  0x26   : > { %425 = vmatpush.bf16.msra.mxu0 %v623_v51 }
  0x27   : > { %439 = vmatpush.bf16.msra.mxu1 %v627_v52 }
  0x28   : > { %453 = vmatpush.bf16.msra.mxu2 %v631_v53 }
  0x2a   : > { %426 = vmatpush.bf16.msra.mxu0 %v611_v60 }
  0x2b   : > { %440 = vmatpush.bf16.msra.mxu1 %v615_v61 }
  0x2c   : > { %454 = vmatpush.bf16.msra.mxu2 %v619_v62 }
  0x2e   : > { %427 = vmatpush.bf16.msra.mxu0 %v599_v5 }
  0x2f   : > { %441 = vmatpush.bf16.msra.mxu1 %v603_v6 }
  0x30   : > { %455 = vmatpush.bf16.msra.mxu2 %v607_v7 }
  0x31   : > { %428 = vmatmul.bf16.vlgmr.msra.gmra.mxu0 %v694_v8 }
  0x32   : > { %442 = vmatmul.bf16.vlgmr.msra.gmra.mxu1 %v694_v8 }
  0x33   : > { %456 = vmatmul.bf16.vlgmr.msra.gmra.mxu2 %v694_v8 }
  0xae   : > { %v429_v12 = vpop.f32.mrf.mxu0 }
  0xaf   : > { %v430_v13 = vadd.f32 %v429_v12, %v280_v10  ;;  %v443_v14 = vpop.f32.mrf.mxu1 }
  0xb0   : > { %v444_v15 = vadd.f32 %v443_v14, %v281_v11 }
  0xb2   : > { %v462_v16 = vpack.c.bf16 %v444_v15, %v430_v13 }
  0xb4   : > { %466 = vst [vmem:[%s241_s7] sm:$0xff] %v462_v16 }
  0xb6   : > { %v457_v18 = vpop.f32.mrf.mxu2  ;;  %v431_v20 = vpop.f32.mrf.mxu0 }
  0xb7   : > { %v458_v19 = vadd.f32 %v457_v18, %v282_v17  ;;  %v432_v21 = vadd.f32 %v431_v20, %v280_v10  ;;  %v445_v22 = vpop.f32.mrf.mxu1 }
  0xb8   : > { %v446_v24 = vadd.f32 %v445_v22, %v281_v11 }
  0xb9   : > { %v463_v23 = vpack.c.bf16 %v458_v19, %v458_v19 }
  0xba   : > { %v464_v25 = vpack.c.bf16 %v446_v24, %v432_v21 }
  0xbb   : > { %467 = vst [vmem:[%s241_s7 + $0x8] sm:$0xf] %v463_v23 }
  0xbc   : > { %468 = vst [vmem:[%s241_s7 + $0xc] sm:$0xff] %v464_v25 }
  0xbe   : > { %v459_v26 = vpop.f32.mrf.mxu2 }
  0xbf   : > { %v460_v27 = vadd.f32 %v459_v26, %v282_v17 }
  0xc1   : > { %v465_v28 = vpack.c.bf16 %v460_v27, %v460_v27 }
  0xc3   : > { %469 = vst [vmem:[%s241_s7 + $0x14] sm:$0xf] %v465_v28 }
  0xc4 PF: > { %s14_s14 = sadd.s32 1, %s813_s14   ;;  %s889_s12 = smov %s809_s13 }
  0xc5   : > { %p11_p8 = scmp.ge.s32.totalorder %s14_s14, 4   ;;  %s890_s13 = smov %s892_s16 }
  0xc7   :  { %13 = sbr.rel (!%p11_p8) target bundleno = 2 (0x2), region = 71 }
  0xcc   :  { %503 = vsyncpa [#allocation3], 1 }
  0xcd   :  { %505 = vsyncpa [#allocation3 + $0x1], 1 }

// kernel: simple_vit_forward.22
= control target key start
LH: loop header
LB: loop body
LE: loop exit
PB: predicated region body
PF: predicated region fallthrough
CT: control target
= control target key end

     0   :  { %12 = vsyncpa [#allocation3], 0  ;;  %s1492_s0 = inlined_call_operand.vmem [shape: bf16[32,128], index: 0, kind: input, shape index: {}]   ;;  %s1493_s1 = inlined_call_operand.hbm [shape: bf16[128,256], index: 1, kind: input, shape index: {}]   ;;  %s1494_s2 = inlined_call_operand.hbm [shape: f32[1,256], index: 2, kind: input, shape index: {}]   ;;  %s1495_s3 = inlined_call_operand.hbm [shape: bf16[256,128], index: 3, kind: input, shape index: {}]   ;;  %s1496_s4 = inlined_call_operand.hbm [shape: f32[1,128], index: 4, kind: input, shape index: {}]   ;;  %s1497_s5 = inlined_call_operand.hbm [shape: f32[1,128], index: 5, kind: input, shape index: {}]   ;;  %s1498_s6 = inlined_call_operand.hbm [shape: f32[1,128], index: 6, kind: input, shape index: {}]   ;;  %s1499_s7 = inlined_call_operand.vmem [shape: bf16[32,128], index: 7, kind: output, shape index: {}]  }
   0x1   :  { %13 = vsyncpa [#allocation5], 0 }
   0x2   :  { %14 = vsyncpa [#allocation8], 0 }
   0x3   :  { %15 = vsyncpa [#allocation11], 0  ;;  %s1396_s24 = smov 0  }
   0x4 LB: > { %s230_s27 = sshll.u32 %s1494_s2, 4  ;;  %s865_s28 = sadd.s32 4294967295, %s1343_s24   ;;  %s1343_s24 = sphi %s1396_s24, %s21_s24   ;;  %s231_s27 = int_to_ptr.hbm [resolvable:$true] %s230_s27 }
   0x5   : > { %p867_p0 = scmp.ge.s32.totalorder %s1343_s24, 1  ;;  %p204_p1 = scmp.lt.s32.totalorder %s1343_s24, 3 }
   0x6   : > { %p1409_p2 = scmp.eq.s32.totalorder %s865_s28, 0  ;;  %s1345_s8 = smov [#allocation4]  }
   0x7   : > { %p1413_p3 = pnand %p867_p0, %p204_p1  ;;  %s232_s9 = sshll.u32 %s1345_s8, 4  ;;  %s233_s9 = int_to_ptr.vmem [resolvable:$true] %s232_s9 }
   0x8   : > { %s256_s12 = sshll.u32 %s1496_s4, 4  ;;  %s215_s15 = sshll.u32 %s1493_s1, 4  ;;  %s257_s12 = int_to_ptr.hbm [resolvable:$true] %s256_s12  ;;  %s216_s15 = int_to_ptr.hbm [resolvable:$true] %s215_s15 }
   0x9   : > { %p1082_p4 = pneg %p1413_p3  ;;  %s1346_s17 = smov [#allocation7]  }
   0xa   : > { %s258_s18 = sshll.u32 %s1346_s17, 4  ;;  %s1347_s19 = smov [#allocation2]   ;;  %s259_s18 = int_to_ptr.vmem [resolvable:$true] %s258_s18 }
   0xb   : > { %p1427_p5 = pnand %p1409_p2, %p1082_p4  ;;  %s217_s20 = sshll.u32 %s1347_s19, 4  ;;  %s218_s20 = int_to_ptr.vmem [resolvable:$true] %s217_s20 }
   0xc   : > { %s1348_s21 = smov 128   ;;  %s1349_s22 = smov 8  }
   0xd   : > { %1088 = dma.hbm_to_vmem [thread:$0]  (!%p1427_p5), %s231_s27, 32, %s233_s9, [#allocation5]  }
   0xe   : > { %1094 = dma.hbm_to_vmem [thread:$0]  (!%p1427_p5), %s257_s12, 16, %s259_s18, [#allocation8]  }
   0xf   : > { %1085 = dma.hbm_to_vmem [thread:$0]  (!%p1427_p5), %s216_s15, 2048, %s218_s20, [#allocation3], %s1348_s21, %s1348_s21, %s1349_s22  }
  0x10   : > { %s241_s26 = sshll.u32 %s1495_s3, 4  ;;  %s1350_s8 = smov [#allocation6]   ;;  %s242_s26 = int_to_ptr.hbm [resolvable:$true] %s241_s26 }
  0x11   : > { %s243_s10 = sshll.u32 %s1350_s8, 4  ;;  %s268_s11 = sshll.u32 %s1497_s5, 4  ;;  %s244_s10 = int_to_ptr.vmem [resolvable:$true] %s243_s10  ;;  %s269_s11 = int_to_ptr.hbm [resolvable:$true] %s268_s11 }
  0x12   : > { %s1351_s12 = smov 64   ;;  %s1352_s13 = smov 4  }
  0x13   : > { %1091 = dma.hbm_to_vmem [thread:$0]  (!%p1427_p5), %s242_s26, 2048, %s244_s10, [#allocation5], %s1351_s12, %s1351_s12, %s1352_s13  }
  0x14   : > { %s1353_s14 = smov [#allocation9]   ;;  %s280_s19 = sshll.u32 %s1498_s6, 4  ;;  %s281_s19 = int_to_ptr.hbm [resolvable:$true] %s280_s19 }
  0x15   : > { %s270_s15 = sshll.u32 %s1353_s14, 4  ;;  %s1354_s20 = smov [#allocation10]   ;;  %s271_s15 = int_to_ptr.vmem [resolvable:$true] %s270_s15 }
  0x16   : > { %1097 = dma.hbm_to_vmem [thread:$0]  (!%p1427_p5), %s269_s11, 16, %s271_s15, [#allocation8]  }
  0x17   : > { %s282_s21 = sshll.u32 %s1354_s20, 4  ;;  %304 = sbr.rel (%p1413_p3) target bundleno = 506 (0x1fa), region = 48  ;;  %s283_s21 = int_to_ptr.vmem [resolvable:$true] %s282_s21 }
  0x18   : > { %1100 = dma.hbm_to_vmem [thread:$0]  (!%p1427_p5), %s281_s19, 16, %s283_s21, [#allocation11]  }
  0x1c   : > { %1326 = dma.done.wait (%p1409_p2), [#allocation3], 2048  }
  0x1d   : > { %1328 = vsyncadd (%p1409_p2), [#allocation3], 4294965248 }
  0x1e   : > { %1330 = dma.done.wait (%p1409_p2), [#allocation5], 2080  }
  0x1f   : > { %1332 = vsyncadd (%p1409_p2), [#allocation5], 4294965216 }
  0x20   : > { %1334 = dma.done.wait (%p1409_p2), [#allocation8], 32  }
  0x21   : > { %1336 = vsyncadd (%p1409_p2), [#allocation8], 4294967264 }
  0x22   : > { %1338 = dma.done.wait (%p1409_p2), [#allocation11], 16  }
  0x23   : > { %1340 = vsyncadd (%p1409_p2), [#allocation11], 4294967280  ;;  %v948_v0 = vld [vmem:[#allocation2 + $0x70] sm:$0xf]  ;;  %v1036_v1 = vld [vmem:[#allocation2 + $0x74] sm:$0xf0] }
  0x24   : > { %v1035_v2 = vld [vmem:[#allocation2 + $0x74] sm:$0xf]  ;;  %v949_v3 = vor.u32 %v1036_v1, %v948_v0  ;;  %v950_v4 = vld [vmem:[#allocation2 + $0x78] sm:$0xf0]  ;;  %v940_v5 = vld [vmem:[#allocation2 + $0x60] sm:$0xf] }
  0x25   : > { %v1034_v6 = vld [vmem:[#allocation2 + $0x64] sm:$0xf0]  ;;  %v953_v7 = vor.u32 %v1035_v2, %v950_v4  ;;  %v1033_v8 = vld [vmem:[#allocation2 + $0x64] sm:$0xf]  ;;  %v942_v9 = vld [vmem:[#allocation2 + $0x68] sm:$0xf0] }
  0x26   : > { %484 = vmatpush.bf16.msra.mxu0 %v949_v3  ;;  %v941_v10 = vor.u32 %v1034_v6, %v940_v5  ;;  %v945_v11 = vor.u32 %v1033_v8, %v942_v9  ;;  %v932_v12 = vld [vmem:[#allocation2 + $0x50] sm:$0xf]  ;;  %v1032_v13 = vld [vmem:[#allocation2 + $0x54] sm:$0xf0]  ;;  %v1031_v14 = vld [vmem:[#allocation2 + $0x54] sm:$0xf] }
  0x27   : > { %498 = vmatpush.bf16.msra.mxu1 %v953_v7  ;;  %v934_v15 = vld [vmem:[#allocation2 + $0x58] sm:$0xf0]  ;;  %v933_v16 = vor.u32 %v1032_v13, %v932_v12  ;;  %v924_v18 = vld [vmem:[#allocation2 + $0x40] sm:$0xf]  ;;  %v1030_v19 = vld [vmem:[#allocation2 + $0x44] sm:$0xf0] }
  0x28   : > { %v937_v17 = vor.u32 %v1031_v14, %v934_v15  ;;  %v1029_v20 = vld [vmem:[#allocation2 + $0x44] sm:$0xf]  ;;  %v926_v21 = vld [vmem:[#allocation2 + $0x48] sm:$0xf0]  ;;  %v925_v22 = vor.u32 %v1030_v19, %v924_v18  ;;  %s882_s29 = sshll.u32 %s865_s28, 1  ;;  %v1044_v23 = vld [vmem:[#allocation6 + $0x38] sm:$0xff] }
  0x29   : > { %v1052_v24 = vld [vmem:[#allocation6 + $0x78] sm:$0xff]  ;;  %v929_v25 = vor.u32 %v1029_v20, %v926_v21  ;;  %v916_v26 = vld [vmem:[#allocation2 + $0x30] sm:$0xf]  ;;  %v1027_v28 = vld [vmem:[#allocation2 + $0x34] sm:$0xf]  ;;  %650 = vmatpush.bf16.msra.mxu2 %v1044_v23  ;;  %p363_p6 = scmp.lt.s32.totalorder %s882_s29, 3 }
  0x2a   : > { %485 = vmatpush.bf16.msra.mxu0 %v941_v10  ;;  %v1028_v27 = vld [vmem:[#allocation2 + $0x34] sm:$0xf0]  ;;  %v918_v29 = vld [vmem:[#allocation2 + $0x38] sm:$0xf0]  ;;  %664 = vmatpush.bf16.msra.mxu3 %v1052_v24  ;;  %v908_v34 = vld [vmem:[#allocation2 + $0x20] sm:$0xf] }
  0x2b   : > { %499 = vmatpush.bf16.msra.mxu1 %v945_v11  ;;  %v1043_v30 = vld [vmem:[#allocation6 + $0x30] sm:$0xff]  ;;  %v917_v32 = vor.u32 %v1028_v27, %v916_v26  ;;  %v921_v33 = vor.u32 %v1027_v28, %v918_v29  ;;  %v1026_v35 = vld [vmem:[#allocation2 + $0x24] sm:$0xf0]  ;;  %v1025_v36 = vld [vmem:[#allocation2 + $0x24] sm:$0xf]  ;;  %s1504_s29 = smov (!%p363_p6, %s882_s29), 3 }
  0x2c   : > { %v1051_v31 = vld [vmem:[#allocation6 + $0x70] sm:$0xff]  ;;  %v910_v37 = vld [vmem:[#allocation2 + $0x28] sm:$0xf0]  ;;  %v909_v40 = vor.u32 %v1026_v35, %v908_v34  ;;  %v902_v45 = vld [vmem:[#allocation2 + $0x18] sm:$0xf0]  ;;  %s883_s28 = sshll.u32 %s1504_s29, 2 }
  0x2d   : > { %651 = vmatpush.bf16.msra.mxu2 %v1043_v30  ;;  %v1042_v38 = vld [vmem:[#allocation6 + $0x28] sm:$0xff]  ;;  %v913_v41 = vor.u32 %v1025_v36, %v910_v37  ;;  %v1024_v43 = vld [vmem:[#allocation2 + $0x14] sm:$0xf0]  ;;  %v1023_v44 = vld [vmem:[#allocation2 + $0x14] sm:$0xf]  ;;  %s1480_s22 = scalar_lea.vmem %s1492_s0, %s883_s28  ;;  %v1355_v34 = vmov 128.0   ;;  %s372_s26 = scalar_lea.vmem %s1499_s7, %s883_s28 }
  0x2e   : > { %486 = vmatpush.bf16.msra.mxu0 %v933_v16  ;;  %665 = vmatpush.bf16.msra.mxu3 %v1051_v31  ;;  %v1050_v39 = vld [vmem:[#allocation6 + $0x68] sm:$0xff]  ;;  %v1041_v46 = vld [vmem:[#allocation6 + $0x20] sm:$0xff]  ;;  %v905_v49 = vor.u32 %v1023_v44, %v902_v45  ;;  %v1040_v57 = vld [vmem:[#allocation6 + $0x18] sm:$0xff]  ;;  %1135 = vrcp.f32 %v1355_v34 }
  0x2f   : > { %500 = vmatpush.bf16.msra.mxu1 %v937_v17  ;;  %v900_v42 = vld [vmem:[#allocation2 + $0x10] sm:$0xf]  ;;  %v1049_v47 = vld [vmem:[#allocation6 + $0x60] sm:$0xff]  ;;  %v894_v53 = vld [vmem:[#allocation2 + $0x8] sm:$0xf0] }
  0x30   : > { %v901_v48 = vor.u32 %v1024_v43, %v900_v42  ;;  %v892_v50 = vld [vmem:[#allocation2] sm:$0xf]  ;;  %v1022_v51 = vld [vmem:[#allocation2 + $0x4] sm:$0xf0]  ;;  %v1021_v52 = vld [vmem:[#allocation2 + $0x4] sm:$0xf] }
  0x31   : > { %652 = vmatpush.bf16.msra.mxu2 %v1042_v38  ;;  %v893_v54 = vor.u32 %v1022_v51, %v892_v50  ;;  %v897_v55 = vor.u32 %v1021_v52, %v894_v53  ;;  %v1020_v56 = vld [vmem:[%s1480_s22] sm:$0xff]  ;;  %v1039_v59 = vld [vmem:[#allocation6 + $0x10] sm:$0xff]  ;;  %v1038_v61 = vld [vmem:[#allocation6 + $0x8] sm:$0xff] }
  0x32   : > { %487 = vmatpush.bf16.msra.mxu0 %v925_v22  ;;  %666 = vmatpush.bf16.msra.mxu3 %v1050_v39  ;;  %v1048_v58 = vld [vmem:[#allocation6 + $0x58] sm:$0xff]  ;;  %v1047_v60 = vld [vmem:[#allocation6 + $0x50] sm:$0xff]  ;;  %v1046_v62 = vld [vmem:[#allocation6 + $0x48] sm:$0xff] }
  0x33   : > { %501 = vmatpush.bf16.msra.mxu1 %v929_v25  ;;  %v1037_v63 = vld [vmem:[#allocation6] sm:$0xff]  ;;  %v392_v1 = vld [vmem:[#allocation4] sm:$0x3] }
  0x34   : > { %v1045_v0 = vld [vmem:[#allocation6 + $0x40] sm:$0xff]  ;;  %v394_v4 = vperm.slane %v392_v1, 0  ;;  %v395_v5 = vperm.slane %v392_v1, 1  ;;  %v1136_v35 = vpop.eup %1135 }
  0x35   : > { %653 = vmatpush.bf16.msra.mxu2 %v1041_v46  ;;  %v1132_v18 = vld [vmem:[#allocation7] ss:$0 sm:$0xff]  ;;  %v687_v36 = vmul.f32 128.0, %v1136_v35  ;;  %vm691_vm0 = vweird.f32 %v1136_v35 }
  0x36   : > { %488 = vmatpush.bf16.msra.mxu0 %v917_v32  ;;  %667 = vmatpush.bf16.msra.mxu3 %v1049_v47  ;;  %v374_v19 = vld [vmem:[%s1480_s22] sm:$0xff]  }
  0x37   : > { %502 = vmatpush.bf16.msra.mxu1 %v921_v33  ;;  %v678_v23 = vunpack.c.l.bf16 %v374_v19  ;;  %v679_v29 = vunpack.c.h.bf16 %v374_v19  ;;  %v688_v37 = vsub.f32 1.0, %v687_v36 }
  0x39   : > { %654 = vmatpush.bf16.msra.mxu2 %v1040_v57  ;;  %v689_v38 = vmul.f32 %v1136_v35, %v688_v37 }
  0x3a   : > { %489 = vmatpush.bf16.msra.mxu0 %v909_v40  ;;  %668 = vmatpush.bf16.msra.mxu3 %v1048_v58 }
  0x3b   : > { %503 = vmatpush.bf16.msra.mxu1 %v913_v41  ;;  %v690_v39 = vadd.f32 %v1136_v35, %v689_v38 }
  0x3d   : > { %655 = vmatpush.bf16.msra.mxu2 %v1039_v59  ;;  %v692_v40 = vsel %vm691_vm0, %v1136_v35, %v690_v39 }
  0x3e   : > { %490 = vmatpush.bf16.msra.mxu0 %v901_v48  ;;  %669 = vmatpush.bf16.msra.mxu3 %v1047_v60 }
  0x3f   : > { %504 = vmatpush.bf16.msra.mxu1 %v905_v49 }
  0x41   : > { %656 = vmatpush.bf16.msra.mxu2 %v1038_v61 }
  0x42   : > { %491 = vmatpush.bf16.msra.mxu0 %v893_v54  ;;  %670 = vmatpush.bf16.msra.mxu3 %v1046_v62 }
  0x43   : > { %505 = vmatpush.bf16.msra.mxu1 %v897_v55 }
  0x45   : > { %492 = vmatmul.bf16.vlgmr.msra.gmra.mxu0 %v1020_v56  ;;  %657 = vmatpush.bf16.msra.mxu2 %v1037_v63 }
  0x46   : > { %506 = vmatmul.bf16.vlgmr.msra.gmra.mxu1 %v1020_v56  ;;  %671 = vmatpush.bf16.msra.mxu3 %v1045_v0 }
  0xc2   : > { %v493_v2 = vpop.f32.mrf.mxu0 }
  0xc3   : > { %v507_v3 = vpop.f32.mrf.mxu1  ;;  %v494_v6 = vadd.f32 %v493_v2, %v394_v4 }
  0xc4   : > { %v508_v7 = vadd.f32 %v507_v3, %v395_v5 }
  0xc5   : > { %v512_v12 = vmax.f32 %v494_v6, 0.0 }
  0xc6   : > { %v513_v14 = vmax.f32 %v508_v7, 0.0 }
  0xca   : > { %v495_v8 = vpop.f32.mrf.mxu0 }
  0xcb   : > { %v496_v9 = vadd.f32 %v495_v8, %v394_v4  ;;  %v509_v10 = vpop.f32.mrf.mxu1  ;;  %v1133_v4 = vld [vmem:[#allocation9] ss:$0 sm:$0xff] }
  0xcc   : > { %v510_v11 = vadd.f32 %v509_v10, %v395_v5 }
  0xcd   : > { %v514_v13 = vmax.f32 %v496_v9, 0.0  ;;  %v1134_v9 = vld [vmem:[#allocation10] ss:$0 sm:$0xff] }
  0xce   : > { %v515_v15 = vmax.f32 %v510_v11, 0.0 }
  0xcf   : > { %v516_v16 = vpack.c.bf16 %v514_v13, %v512_v12 }
  0xd0   : > { %v517_v17 = vpack.c.bf16 %v515_v15, %v513_v14 }
  0xd1   : > { %658 = vmatmul.bf16.vlgmr.msra.gmra.mxu2 %v516_v16 }
  0xd2   : > { %672 = vmatmul.bf16.vlgmr.msra.gmra.mxu3 %v517_v17 }
 0x154   : > { %v659_v20 = vpop.f32.mrf.mxu2 }
 0x155   : > { %v660_v21 = vadd.f32 %v1132_v18, %v659_v20  ;;  %v673_v22 = vpop.f32.mrf.mxu3 }
 0x157   : > { %v674_v24 = vadd.f32 %v673_v22, %v660_v21 }
 0x159   : > { %v680_v25 = vadd.f32 %v678_v23, %v674_v24 }
 0x15b   : > { %682 = vadd.xlane.f32.xlu0 %v680_v25  ;;  %v695_v26 = vmul.f32 %v680_v25, %v680_v25 }
 0x15c   : > { %v661_v27 = vpop.f32.mrf.mxu2 }
 0x15d   : > { %v662_v28 = vadd.f32 %v1132_v18, %v661_v27  ;;  %697 = vadd.xlane.f32.xlu1 %v695_v26  ;;  %v675_v30 = vpop.f32.mrf.mxu3 }
 0x15f   : > { %v676_v31 = vadd.f32 %v675_v30, %v662_v28 }
 0x161   : > { %v681_v32 = vadd.f32 %v679_v29, %v676_v31 }
 0x163   : > { %684 = vadd.xlane.f32.xlu0 %v681_v32  ;;  %v696_v33 = vmul.f32 %v681_v32, %v681_v32 }
 0x165   : > { %699 = vadd.xlane.f32.xlu1 %v696_v33 }
 0x1ce   : > { %v683_v41 = vpop.xlane.xlu0 %682 }
 0x1cf   : > { %v693_v42 = vmul.f32 %v692_v40, %v683_v41 }
 0x1d0   : > { %v698_v43 = vpop.xlane.xlu1 %697 }
 0x1d1   : > { %v703_v44 = vmul.f32 %v693_v42, %v693_v42  ;;  %v701_v45 = vmul.f32 %v698_v43, %v692_v40  ;;  %v707_v2 = vsub.f32 %v680_v25, %v693_v42 }
 0x1d3   : > { %v705_v46 = vsub.f32 %v701_v45, %v703_v44 }
 0x1d5   : > { %v709_v47 = vadd.f32 1e-05, %v705_v46 }
 0x1d6   : > { %v685_v48 = vpop.xlane.xlu0 %684 }
 0x1d7   : > { %1137 = vrsqrt.f32 %v709_v47  ;;  %v694_v49 = vmul.f32 %v692_v40, %v685_v48  ;;  %vm717_vm2 = vweird.f32 %v709_v47 }
 0x1d8   : > { %v700_v50 = vpop.xlane.xlu1 %699 }
 0x1d9   : > { %v704_v51 = vmul.f32 %v694_v49, %v694_v49  ;;  %v702_v52 = vmul.f32 %v700_v50, %v692_v40  ;;  %v708_v7 = vsub.f32 %v681_v32, %v694_v49 }
 0x1db   : > { %v706_v53 = vsub.f32 %v702_v52, %v704_v51 }
 0x1dd   : > { %v1138_v54 = vpop.eup %1137  ;;  %v710_v55 = vadd.f32 1e-05, %v706_v53 }
 0x1de   : > { %v712_v56 = vmul.f32 %v1138_v54, %v709_v47  ;;  %vm718_vm1 = vweird.f32 %v1138_v54 }
 0x1df   : > { %1139 = vrsqrt.f32 %v710_v55  ;;  %vm719_vm3 = vmor %vm717_vm2, %vm718_vm1  ;;  %vm727_vm5 = vweird.f32 %v710_v55 }
 0x1e0   : > { %v713_v57 = vmul.f32 %v1138_v54, %v712_v56 }
 0x1e2   : > { %v714_v58 = vmul.f32 0.5, %v713_v57 }
 0x1e4   : > { %v715_v59 = vsub.f32 1.5, %v714_v58 }
 0x1e5   : > { %v1140_v60 = vpop.eup %1139 }
 0x1e6   : > { %v716_v61 = vmul.f32 %v1138_v54, %v715_v59  ;;  %v722_v62 = vmul.f32 %v1140_v60, %v710_v55  ;;  %vm728_vm4 = vweird.f32 %v1140_v60 }
 0x1e7   : > { %vm729_vm6 = vmor %vm727_vm5, %vm728_vm4 }
 0x1e8   : > { %v723_v63 = vmul.f32 %v1140_v60, %v722_v62  ;;  %v720_v0 = vsel %vm719_vm3, %v1138_v54, %v716_v61 }
 0x1e9   : > { %v731_v5 = vmul.f32 %v720_v0, %v707_v2 }
 0x1ea   : > { %v724_v1 = vmul.f32 0.5, %v723_v63 }
 0x1eb   : > { %v737_v10 = vmul.f32 %v1133_v4, %v731_v5 }
 0x1ec   : > { %v725_v3 = vsub.f32 1.5, %v724_v1 }
 0x1ed   : > { %v743_v13 = vadd.f32 %v1134_v9, %v737_v10 }
 0x1ee   : > { %v726_v6 = vmul.f32 %v1140_v60, %v725_v3 }
 0x1f0   : > { %v730_v8 = vsel %vm729_vm6, %v1140_v60, %v726_v6 }
 0x1f1   : > { %v732_v11 = vmul.f32 %v730_v8, %v708_v7 }
 0x1f3   : > { %v738_v12 = vmul.f32 %v1133_v4, %v732_v11 }
 0x1f5   : > { %v744_v14 = vadd.f32 %v1134_v9, %v738_v12 }
 0x1f7   : > { %v1056_v15 = vpack.c.bf16 %v744_v14, %v743_v13 }
 0x1f9   : > { %1057 = vst [vmem:[%s372_s26] sm:$0xff] %v1056_v15  }
 0x1fa PF: > { %s21_s24 = sadd.s32 1, %s1343_s24  }
 0x1fb   : > { %p18_p7 = scmp.ge.s32.totalorder %s21_s24, 4  }
 0x1fd   :  { %20 = sbr.rel (!%p18_p7) target bundleno = 4 (0x4), region = 103 }
 0x202   :  { %771 = vsyncpa [#allocation3], 1 }
 0x203   :  { %773 = vsyncpa [#allocation3 + $0x1], 1 }
 0x204   :  { %774 = vsyncpa [#allocation5], 1 }
 0x205   :  { %775 = vsyncpa [#allocation8], 1 }
 0x206   :  { %776 = vsyncpa [#allocation11], 1 }

// kernel: simple_vit_forward.21
= control target key start
LH: loop header
LB: loop body
LE: loop exit
PB: predicated region body
PF: predicated region fallthrough
CT: control target
= control target key end

     0   :  { %13 = vsyncpa [#allocation3], 0  ;;  %s2493_s0 = inlined_call_operand.vmem [shape: bf16[2,8,16,16], index: 0, kind: input, shape index: {}]   ;;  %s2494_s1 = inlined_call_operand.vmem [shape: bf16[2,8,16,16], index: 1, kind: input, shape index: {}]   ;;  %s2495_s2 = inlined_call_operand.vmem [shape: bf16[2,8,16,16], index: 2, kind: input, shape index: {}]   ;;  %s2496_s3 = inlined_call_operand.hbm [shape: bf16[8,16,128], index: 3, kind: input, shape index: {}]   ;;  %s2497_s4 = inlined_call_operand.hbm [shape: f32[1,128], index: 4, kind: input, shape index: {}]   ;;  %s2498_s5 = inlined_call_operand.vmem [shape: bf16[2,16,128], index: 5, kind: input, shape index: {}]   ;;  %s2499_s6 = inlined_call_operand.hbm [shape: f32[1,128], index: 6, kind: input, shape index: {}]   ;;  %s2500_s7 = inlined_call_operand.hbm [shape: f32[1,128], index: 7, kind: input, shape index: {}]   ;;  %s2501_s8 = inlined_call_operand.vmem [shape: bf16[2,16,128], index: 8, kind: output, shape index: {}]  }
   0x1   :  { %14 = vsyncpa [#allocation5], 0 }
   0x2   :  { %15 = vsyncpa [#allocation8], 0  ;;  %s2201_s27 = smov 0  }
   0x3 LB: > { %s266_s30 = sshll.u32 %s2497_s4, 4  ;;  %s2210_s9 = sadd.s32 4294967295, %s2147_s27   ;;  %s2147_s27 = sphi %s2201_s27, %s21_s27   ;;  %s267_s30 = int_to_ptr.hbm [resolvable:$true] %s266_s30 }
   0x4   : > { %p1664_p0 = scmp.ge.s32.totalorder %s2147_s27, 1  ;;  %p240_p1 = scmp.lt.s32.totalorder %s2147_s27, 3 }
   0x5   : > { %p1913_p2 = scmp.eq.s32.totalorder %s2210_s9, 0  ;;  %s2149_s11 = smov [#allocation4]  }
   0x6   : > { %p2215_p3 = pnand %p1664_p0, %p240_p1  ;;  %s268_s12 = sshll.u32 %s2149_s11, 4  ;;  %s269_s12 = int_to_ptr.vmem [resolvable:$true] %s268_s12 }
   0x7   : > { %s251_s15 = sshll.u32 %s2496_s3, 4  ;;  %s2150_s17 = smov [#allocation2]   ;;  %s252_s15 = int_to_ptr.hbm [resolvable:$true] %s251_s15 }
   0x8   : > { %p1900_p4 = pneg %p2215_p3  ;;  %s253_s18 = sshll.u32 %s2150_s17, 4  ;;  %s254_s18 = int_to_ptr.vmem [resolvable:$true] %s253_s18 }
   0x9   : > { %s278_s21 = sshll.u32 %s2499_s6, 4  ;;  %s2151_s22 = smov 64   ;;  %s279_s21 = int_to_ptr.hbm [resolvable:$true] %s278_s21 }
   0xa   : > { %p2226_p5 = pnand %p1913_p2, %p1900_p4  ;;  %s2152_s23 = smov 4  }
   0xb   : > { %s2153_s24 = smov [#allocation6]   ;;  %s290_s29 = sshll.u32 %s2500_s7, 4  ;;  %s291_s29 = int_to_ptr.hbm [resolvable:$true] %s290_s29 }
   0xc   : > { %1906 = dma.hbm_to_vmem [thread:$0]  (!%p2226_p5), %s267_s30, 16, %s269_s12, [#allocation5]  }
   0xd   : > { %1903 = dma.hbm_to_vmem [thread:$0]  (!%p2226_p5), %s252_s15, 1024, %s254_s18, [#allocation3], %s2151_s22, %s2151_s22, %s2152_s23  }
   0xe   : > { %s280_s25 = sshll.u32 %s2153_s24, 4  ;;  %s2154_s11 = smov [#allocation7]   ;;  %s281_s25 = int_to_ptr.vmem [resolvable:$true] %s280_s25 }
   0xf   : > { %1909 = dma.hbm_to_vmem [thread:$0]  (!%p2226_p5), %s279_s21, 16, %s281_s25, [#allocation5]  }
  0x10   : > { %s292_s13 = sshll.u32 %s2154_s11, 4  ;;  %337 = sbr.rel (%p2215_p3) target bundleno = 926 (0x39e), region = 52  ;;  %s293_s13 = int_to_ptr.vmem [resolvable:$true] %s292_s13 }
  0x11   : > { %1912 = dma.hbm_to_vmem [thread:$0]  (!%p2226_p5), %s291_s29, 16, %s293_s13, [#allocation8]  }
  0x15   : > { %2134 = dma.done.wait (%p1913_p2), [#allocation3], 1024  }
  0x16   : > { %2136 = vsyncadd (%p1913_p2), [#allocation3], 4294966272 }
  0x17   : > { %2138 = dma.done.wait (%p1913_p2), [#allocation5], 32  }
  0x18   : > { %2140 = vsyncadd (%p1913_p2), [#allocation5], 4294967264 }
  0x19   : > { %2142 = dma.done.wait (%p1913_p2), [#allocation8], 16  }
  0x1a   : > { %2144 = vsyncadd (%p1913_p2), [#allocation8], 4294967280  ;;  %p402_p6 = scmp.lt.s32.totalorder %s2210_s9, 1  ;;  %vm534_vm0 = vcmask 130048  }
  0x1c   : > { %s2505_s9 = smov (!%p402_p6, %s2210_s9), 1 }
  0x1d   : > { %s2263_s30 = sshll.u32 %s2505_s9, 6  ;;  %s1810_s21 = sshll.u32 %s2505_s9, 3 }
  0x1e   : > { %s2269_s14 = scalar_lea.vmem %s2494_s1, %s2263_s30  ;;  %s2275_s17 = scalar_lea.vmem %s2493_s0, %s2263_s30 }
  0x1f   : > { %v1812_v0 = vld [vmem:[%s2269_s14] sm:$0xff]  ;;  %v1814_v1 = vld [vmem:[%s2269_s14 + $0x10] sm:$0xff]  ;;  %v1815_v2 = vld [vmem:[%s2269_s14 + $0x18] sm:$0xff]  ;;  %s2437_s20 = scalar_lea.vmem %s2495_s2, %s2263_s30  ;;  %s421_s24 = scalar_lea.vmem %s2498_s5, %s1810_s21 }
  0x20   : > { %v1837_v3 = vld [vmem:[%s2275_s17] sm:$0xff]   ;;  %v1878_v4 = vld [vmem:[%s2275_s17 + $0x10] sm:$0xff]   ;;  %v1879_v5 = vld [vmem:[%s2275_s17 + $0x18] sm:$0xff]   ;;  %v539_v6 = vsel %vm534_vm0, %v1812_v0, 0  ;;  %v599_v7 = vsel %vm534_vm0, %v1814_v1, 0  ;;  %v629_v8 = vsel %vm534_vm0, %v1815_v2, 0  ;;  %s426_s28 = scalar_lea.vmem %s2501_s8, %s1810_s21 }
  0x21   : > { %v1838_v9 = vunpack.c.l.bf16 %v1837_v3  ;;  %v1813_v10 = vld [vmem:[%s2269_s14 + $0x8] sm:$0xff]  ;;  %v1818_v11 = vld [vmem:[%s2269_s14 + $0x30] sm:$0xff]  ;;  %v1819_v12 = vld [vmem:[%s2269_s14 + $0x38] sm:$0xff]  ;;  %548 = vmatpush.bf16.xpose.msra.mxu0 %v539_v6  ;;  %608 = vmatpush.bf16.xpose.msra.mxu2 %v599_v7  ;;  %v1839_v13 = vunpack.c.h.bf16 %v1837_v3  ;;  %v1846_v14 = vunpack.c.l.bf16 %v1878_v4  ;;  %v1847_v15 = vunpack.c.h.bf16 %v1878_v4 }
  0x22   : > { %v1850_v16 = vunpack.c.l.bf16 %v1879_v5  ;;  %v1877_v17 = vld [vmem:[%s2275_s17 + $0x8] sm:$0xff]   ;;  %638 = vmatpush.bf16.xpose.msra.mxu3 %v629_v8  ;;  %v1851_v19 = vunpack.c.h.bf16 %v1879_v5  ;;  %v569_v20 = vsel %vm534_vm0, %v1813_v10, 0  ;;  %v719_v21 = vsel %vm534_vm0, %v1818_v11, 0  ;;  %v1882_v34 = vld [vmem:[%s2275_s17 + $0x30] sm:$0xff]   ;;  %v1883_v39 = vld [vmem:[%s2275_s17 + $0x38] sm:$0xff]  }
  0x23   : > { %v460_v18 = vmul.f32 0.25, %v1838_v9  ;;  %v461_v22 = vmul.f32 0.25, %v1839_v13  ;;  %v464_v23 = vmul.f32 0.25, %v1846_v14  ;;  %v465_v24 = vmul.f32 0.25, %v1847_v15  ;;  %578 = vmatpush.bf16.xpose.msra.mxu1 %v569_v20  ;;  %v1816_v44 = vld [vmem:[%s2269_s14 + $0x20] sm:$0xff]  ;;  %v1817_v54 = vld [vmem:[%s2269_s14 + $0x28] sm:$0xff] }
  0x24   : > { %v466_v25 = vmul.f32 0.25, %v1850_v16  ;;  %v467_v27 = vmul.f32 0.25, %v1851_v19  ;;  %v749_v28 = vsel %vm534_vm0, %v1819_v12, 0  ;;  %v1842_v29 = vunpack.c.l.bf16 %v1877_v17  ;;  %v1880_v53 = vld [vmem:[%s2275_s17 + $0x20] sm:$0xff]   ;;  %v1881_v2 = vld [vmem:[%s2275_s17 + $0x28] sm:$0xff]  }
  0x25   : > { %v476_v26 = vpack.c.bf16 %v460_v18, %v460_v18  ;;  %v477_v30 = vpack.c.bf16 %v461_v22, %v461_v22  ;;  %v480_v31 = vpack.c.bf16 %v464_v23, %v464_v23  ;;  %v481_v32 = vpack.c.bf16 %v465_v24, %v465_v24 }
  0x26   : > { %v482_v33 = vpack.c.bf16 %v466_v25, %v466_v25  ;;  %v483_v36 = vpack.c.bf16 %v467_v27, %v467_v27  ;;  %v1843_v37 = vunpack.c.h.bf16 %v1877_v17  ;;  %v462_v38 = vmul.f32 0.25, %v1842_v29 }
  0x27   : > { %v526_v35 = vunpack.c.l.b16 %v476_v26  ;;  %v527_v40 = vunpack.c.l.b16 %v477_v30  ;;  %v587_v41 = vunpack.c.l.b16 %v480_v31  ;;  %v588_v42 = vunpack.c.l.b16 %v481_v32 }
  0x28   : > { %v617_v43 = vunpack.c.l.b16 %v482_v33  ;;  %v618_v45 = vunpack.c.l.b16 %v483_v36  ;;  %v463_v46 = vmul.f32 0.25, %v1843_v37  ;;  %v478_v47 = vpack.c.bf16 %v462_v38, %v462_v38 }
  0x29   : > { %728 = vmatpush.bf16.xpose.msrb.mxu2 %v719_v21  ;;  %v1862_v48 = vunpack.c.l.bf16 %v1882_v34  ;;  %v528_v49 = vpack.c.b16 %v527_v40, %v526_v35  ;;  %v589_v50 = vpack.c.b16 %v588_v42, %v587_v41  ;;  %v1863_v51 = vunpack.c.h.bf16 %v1882_v34 }
  0x2a   : > { %758 = vmatpush.bf16.xpose.msrb.mxu3 %v749_v28  ;;  %v1866_v52 = vunpack.c.l.bf16 %v1883_v39  ;;  %v619_v55 = vpack.c.b16 %v618_v45, %v617_v43  ;;  %v479_v56 = vpack.c.bf16 %v463_v46, %v463_v46  ;;  %v557_v57 = vunpack.c.l.b16 %v478_v47 }
  0x2b   : > { %v472_v58 = vmul.f32 0.25, %v1862_v48  ;;  %1689 = vmatmul.msk.bf16.vlgmr.msra.gmra.mxu0 %vm534_vm0, %v528_v49  ;;  %1699 = vmatmul.msk.bf16.vlgmr.msra.gmra.mxu2 %vm534_vm0, %v589_v50  ;;  %v473_v59 = vmul.f32 0.25, %v1863_v51  ;;  %v1867_v60 = vunpack.c.h.bf16 %v1883_v39  ;;  %v659_v62 = vsel %vm534_vm0, %v1816_v44, 0 }
  0x2c   : > { %v474_v61 = vmul.f32 0.25, %v1866_v52  ;;  %1704 = vmatmul.msk.bf16.vlgmr.msra.gmra.mxu3 %vm534_vm0, %v619_v55  ;;  %v558_v63 = vunpack.c.l.b16 %v479_v56  ;;  %668 = vmatpush.bf16.xpose.msrb.mxu0 %v659_v62  ;;  %v1854_v0 = vunpack.c.l.bf16 %v1880_v53  ;;  %v1855_v1 = vunpack.c.h.bf16 %v1880_v53 }
  0x2d   : > { %v475_v3 = vmul.f32 0.25, %v1867_v60  ;;  %v689_v4 = vsel %vm534_vm0, %v1817_v54, 0  ;;  %v488_v8 = vpack.c.bf16 %v472_v58, %v472_v58  ;;  %v489_v9 = vpack.c.bf16 %v473_v59, %v473_v59 }
  0x2e   : > { %v559_v5 = vpack.c.b16 %v558_v63, %v557_v57  ;;  %v468_v6 = vmul.f32 0.25, %v1854_v0  ;;  %v469_v7 = vmul.f32 0.25, %v1855_v1  ;;  %698 = vmatpush.bf16.xpose.msrb.mxu1 %v689_v4  ;;  %v490_v10 = vpack.c.bf16 %v474_v61, %v474_v61 }
  0x2f   : > { %v1858_v11 = vunpack.c.l.bf16 %v1881_v2  ;;  %v491_v12 = vpack.c.bf16 %v475_v3, %v475_v3  ;;  %v1859_v15 = vunpack.c.h.bf16 %v1881_v2  ;;  %v707_v18 = vunpack.c.l.b16 %v488_v8 }
  0x30   : > { %1694 = vmatmul.msk.bf16.vlgmr.msra.gmra.mxu1 %vm534_vm0, %v559_v5  ;;  %v484_v13 = vpack.c.bf16 %v468_v6, %v468_v6  ;;  %v485_v14 = vpack.c.bf16 %v469_v7, %v469_v7  ;;  %v708_v19 = vunpack.c.l.b16 %v489_v9  ;;  %v737_v22 = vunpack.c.l.b16 %v490_v10 }
  0x31   : > { %v470_v16 = vmul.f32 0.25, %v1858_v11  ;;  %v471_v17 = vmul.f32 0.25, %v1859_v15  ;;  %v738_v23 = vunpack.c.l.b16 %v491_v12 }
  0x32   : > { %v647_v20 = vunpack.c.l.b16 %v484_v13  ;;  %v648_v21 = vunpack.c.l.b16 %v485_v14  ;;  %v709_v26 = vpack.c.b16 %v708_v19, %v707_v18 }
  0x33   : > { %v486_v24 = vpack.c.bf16 %v470_v16, %v470_v16  ;;  %v487_v25 = vpack.c.bf16 %v471_v17, %v471_v17  ;;  %v739_v28 = vpack.c.b16 %v738_v23, %v737_v22 }
  0x34   : > { %v649_v27 = vpack.c.b16 %v648_v21, %v647_v20 }
  0x35   : > { %v677_v29 = vunpack.c.l.b16 %v486_v24  ;;  %v678_v30 = vunpack.c.l.b16 %v487_v25 }
  0x37   : > { %v679_v31 = vpack.c.b16 %v678_v30, %v677_v29 }
  0x3b   : > { %1719 = vmatmul.msk.bf16.vlgmr.msrb.gmra.mxu2 %vm534_vm0, %v709_v26  ;;  %1709 = vmatmul.msk.bf16.vlgmr.msrb.gmra.mxu0 %vm534_vm0, %v649_v27 }
  0x3c   : > { %1724 = vmatmul.msk.bf16.vlgmr.msrb.gmra.mxu3 %vm534_vm0, %v739_v28 }
  0x40   : > { %1714 = vmatmul.msk.bf16.vlgmr.msrb.gmra.mxu1 %vm534_vm0, %v679_v31 }
  0xa8   : > { %v550_v32 = vpop.f32.mrf.mxu0 }
  0xa9   : > { %v765_v33 = vsel %vm534_vm0, %v550_v32, -inf }
  0xaa   : > { %766 = vmax.xlane.f32.xlu2 %v765_v33 }
  0xad   : > { %v2316_v40 = vpop.f32.mrf.mxu1 }
  0xae   : > { %v2310_v34 = vpop.f32.mrf.mxu2  ;;  %v771_v46 = vsel %vm534_vm0, %v2316_v40, -inf }
  0xaf   : > { %v640_v35 = vpop.f32.mrf.mxu3  ;;  %v777_v36 = vsel %vm534_vm0, %v2310_v34, -inf }
  0xb0   : > { %v783_v37 = vsel %vm534_vm0, %v640_v35, -inf  ;;  %778 = vmax.xlane.f32.xlu0 %v777_v36  ;;  %v552_v38 = vpop.f32.mrf.mxu0 }
  0xb1   : > { %784 = vmax.xlane.f32.xlu1 %v783_v37  ;;  %v768_v39 = vsel %vm534_vm0, %v552_v38, -inf }
  0xb2   : > { %769 = vmax.xlane.f32.xlu2 %v768_v39 }
  0xb5   : > { %v2323_v45 = vpop.f32.mrf.mxu1 }
  0xb6   : > { %v612_v41 = vpop.f32.mrf.mxu2  ;;  %v774_v48 = vsel %vm534_vm0, %v2323_v45, -inf }
  0xb7   : > { %v2318_v42 = vpop.f32.mrf.mxu3  ;;  %v780_v43 = vsel %vm534_vm0, %v612_v41, -inf }
  0xb8   : > { %v786_v44 = vsel %vm534_vm0, %v2318_v42, -inf  ;;  %781 = vmax.xlane.f32.xlu0 %v780_v43  ;;  %v2332_v51 = vpop.f32.mrf.mxu0 }
  0xb9   : > { %787 = vmax.xlane.f32.xlu1 %v786_v44  ;;  %v789_v59 = vsel %vm534_vm0, %v2332_v51, -inf }
  0xbd   : > { %v2344_v57 = vpop.f32.mrf.mxu1 }
  0xbe   : > { %v730_v47 = vpop.f32.mrf.mxu2  ;;  %v795_v60 = vsel %vm534_vm0, %v2344_v57, -inf }
  0xbf   : > { %v2329_v49 = vpop.f32.mrf.mxu3  ;;  %v801_v50 = vsel %vm534_vm0, %v730_v47, -inf }
  0xc0   : > { %772 = vmax.xlane.f32.xlu0 %v771_v46  ;;  %802 = vmax.xlane.f32.xlu2 %v801_v50  ;;  %v807_v53 = vsel %vm534_vm0, %v2329_v49, -inf  ;;  %v2346_v58 = vpop.f32.mrf.mxu0 }
  0xc1   : > { %775 = vmax.xlane.f32.xlu1 %v774_v48  ;;  %v792_v61 = vsel %vm534_vm0, %v2346_v58, -inf }
  0xc5   : > { %v2354_v62 = vpop.f32.mrf.mxu1 }
  0xc6   : > { %v2334_v52 = vpop.f32.mrf.mxu2  ;;  %v798_v63 = vsel %vm534_vm0, %v2354_v62, -inf }
  0xc7   : > { %v2338_v54 = vpop.f32.mrf.mxu3  ;;  %v804_v55 = vsel %vm534_vm0, %v2334_v52, -inf }
  0xc8   : > { %805 = vmax.xlane.f32.xlu0 %v804_v55  ;;  %v810_v56 = vsel %vm534_vm0, %v2338_v54, -inf }
  0xc9   : > { %808 = vmax.xlane.f32.xlu1 %v807_v53  ;;  %811 = vmax.xlane.f32.xlu2 %v810_v56 }
  0xd0   : > { %790 = vmax.xlane.f32.xlu0 %v789_v59 }
  0xd1   : > { %796 = vmax.xlane.f32.xlu2 %v795_v60  ;;  %793 = vmax.xlane.f32.xlu1 %v792_v61 }
  0xd8   : > { %799 = vmax.xlane.f32.xlu0 %v798_v63 }
 0x11d   : > { %v767_v0 = vpop.xlane.xlu2 %766 }
 0x11e   : > { %v813_v1 = vsub.f32 %v550_v32, %v767_v0 }
 0x120   : > { %v829_v2 = vmul.f32 1.442695, %v813_v1 }
 0x122   : > { %1939 = vpow2.f32 %v829_v2 }
 0x123   : > { %v779_v3 = vpop.xlane.xlu0 %778 }
 0x124   : > { %v785_v4 = vpop.xlane.xlu1 %784  ;;  %v817_v26 = vsub.f32 %v2310_v34, %v779_v3 }
 0x125   : > { %v819_v5 = vsub.f32 %v640_v35, %v785_v4  ;;  %v770_v6 = vpop.xlane.xlu2 %769 }
 0x126   : > { %v814_v8 = vsub.f32 %v552_v38, %v770_v6  ;;  %v837_v32 = vmul.f32 1.442695, %v817_v26  ;;  %v1823_v26 = vld [vmem:[%s2437_s20 + $0x18] sm:$0xff] }
 0x127   : > { %v841_v7 = vmul.f32 1.442695, %v819_v5  ;;  %1062 = vmatpush.bf16.msra.mxu3 %v1823_v26 }
 0x128   : > { %v2358_v9 = vpop.eup %1939  ;;  %v831_v11 = vmul.f32 1.442695, %v814_v8 }
 0x129   : > { %1941 = vpow2.f32 %v841_v7  ;;  %v861_v10 = vsel %vm534_vm0, %v2358_v9, 0.0 }
 0x12a   : > { %862 = vadd.xlane.f32.xlu2 %v861_v10  ;;  %1943 = vpow2.f32 %v831_v11 }
 0x12b   : > { %v782_v12 = vpop.xlane.xlu0 %781 }
 0x12c   : > { %v788_v13 = vpop.xlane.xlu1 %787  ;;  %v818_v14 = vsub.f32 %v612_v41, %v782_v12 }
 0x12d   : > { %v820_v38 = vsub.f32 %v2318_v42, %v788_v13 }
 0x12e   : > { %v839_v15 = vmul.f32 1.442695, %v818_v14 }
 0x12f   : > { %v2362_v16 = vpop.eup %1941  ;;  %v843_v42 = vmul.f32 1.442695, %v820_v38 }
 0x130   : > { %1945 = vpow2.f32 %v839_v15  ;;  %v879_v17 = vsel %vm534_vm0, %v2362_v16, 0.0  ;;  %v2367_v23 = vpop.eup %1943 }
 0x131   : > { %880 = vadd.xlane.f32.xlu0 %v879_v17  ;;  %v864_v31 = vsel %vm534_vm0, %v2367_v23, 0.0 }
 0x133   : > { %v773_v18 = vpop.xlane.xlu0 %772  ;;  %v803_v19 = vpop.xlane.xlu2 %802 }
 0x134   : > { %v815_v20 = vsub.f32 %v2316_v40, %v773_v18  ;;  %v776_v21 = vpop.xlane.xlu1 %775  ;;  %v825_v22 = vsub.f32 %v730_v47, %v803_v19  ;;  %v1821_v19 = vld [vmem:[%s2437_s20 + $0x8] sm:$0xff] }
 0x135   : > { %v816_v24 = vsub.f32 %v2323_v45, %v776_v21  ;;  %1006 = vmatpush.bf16.msra.mxu1 %v1821_v19 }
 0x136   : > { %v2370_v25 = vpop.eup %1945  ;;  %v833_v27 = vmul.f32 1.442695, %v815_v20  ;;  %v853_v28 = vmul.f32 1.442695, %v825_v22  ;;  %v1822_v22 = vld [vmem:[%s2437_s20 + $0x10] sm:$0xff] }
 0x137   : > { %v835_v29 = vmul.f32 1.442695, %v816_v24  ;;  %v876_v30 = vsel %vm534_vm0, %v2370_v25, 0.0  ;;  %1034 = vmatpush.bf16.msra.mxu2 %v1822_v22 }
 0x138   : > { %1947 = vpow2.f32 %v833_v27  ;;  %877 = vadd.xlane.f32.xlu2 %v876_v30 }
 0x139   : > { %1949 = vpow2.f32 %v835_v29  ;;  %865 = vadd.xlane.f32.xlu0 %v864_v31 }
 0x13a   : > { %1951 = vpow2.f32 %v853_v28 }
 0x13b   : > { %1953 = vpow2.f32 %v837_v32  ;;  %v806_v40 = vpop.xlane.xlu0 %805 }
 0x13c   : > { %v809_v33 = vpop.xlane.xlu1 %808  ;;  %v812_v35 = vpop.xlane.xlu2 %811  ;;  %v826_v55 = vsub.f32 %v2334_v52, %v806_v40  ;;  %v1826_v40 = vld [vmem:[%s2437_s20 + $0x30] sm:$0xff] }
 0x13d   : > { %v827_v36 = vsub.f32 %v2329_v49, %v809_v33  ;;  %v828_v34 = vsub.f32 %v2338_v54, %v812_v35  ;;  %1146 = vmatpush.bf16.msrb.mxu2 %v1826_v40 }
 0x13e   : > { %v2379_v37 = vpop.eup %1947  ;;  %v855_v52 = vmul.f32 1.442695, %v826_v55 }
 0x13f   : > { %v2382_v39 = vpop.eup %1949  ;;  %v857_v41 = vmul.f32 1.442695, %v827_v36  ;;  %v859_v43 = vmul.f32 1.442695, %v828_v34  ;;  %v867_v44 = vsel %vm534_vm0, %v2379_v37, 0.0 }
 0x140   : > { %v2386_v45 = vpop.eup %1951  ;;  %v870_v46 = vsel %vm534_vm0, %v2382_v39, 0.0  ;;  %868 = vadd.xlane.f32.xlu1 %v867_v44 }
 0x141   : > { %1955 = vpow2.f32 %v857_v41  ;;  %871 = vadd.xlane.f32.xlu2 %v870_v46  ;;  %v897_v47 = vsel %vm534_vm0, %v2386_v45, 0.0  ;;  %v2392_v48 = vpop.eup %1953  ;;  %v1827_v41 = vld [vmem:[%s2437_s20 + $0x38] sm:$0xff] }
 0x142   : > { %1957 = vpow2.f32 %v859_v43  ;;  %898 = vadd.xlane.f32.xlu0 %v897_v47  ;;  %v873_v61 = vsel %vm534_vm0, %v2392_v48, 0.0  ;;  %1174 = vmatpush.bf16.msrb.mxu3 %v1827_v41 }
 0x143   : > { %1959 = vpow2.f32 %v843_v42 }
 0x144   : > { %v797_v49 = vpop.xlane.xlu2 %796  ;;  %v794_v50 = vpop.xlane.xlu1 %793 }
 0x145   : > { %v823_v53 = vsub.f32 %v2344_v57, %v797_v49  ;;  %v822_v54 = vsub.f32 %v2346_v58, %v794_v50  ;;  %v791_v57 = vpop.xlane.xlu0 %790 }
 0x146   : > { %v821_v2 = vsub.f32 %v2332_v51, %v791_v57 }
 0x147   : > { %v2397_v56 = vpop.eup %1955  ;;  %v849_v59 = vmul.f32 1.442695, %v823_v53  ;;  %v847_v60 = vmul.f32 1.442695, %v822_v54 }
 0x148   : > { %v2401_v63 = vpop.eup %1957  ;;  %v903_v0 = vsel %vm534_vm0, %v2397_v56, 0.0  ;;  %874 = vadd.xlane.f32.xlu1 %v873_v61  ;;  %v845_v8 = vmul.f32 1.442695, %v821_v2  ;;  %v1825_v61 = vld [vmem:[%s2437_s20 + $0x28] sm:$0xff] }
 0x149   : > { %1961 = vpow2.f32 %v849_v59  ;;  %904 = vadd.xlane.f32.xlu2 %v903_v0  ;;  %v906_v58 = vsel %vm534_vm0, %v2401_v63, 0.0  ;;  %v2407_v1 = vpop.eup %1959  ;;  %1118 = vmatpush.bf16.msrb.mxu1 %v1825_v61  ;;  %v1830_v61 = vld [vmem:[#allocation2 + $0x10] sm:$0xff] }
 0x14a   : > { %1963 = vpow2.f32 %v847_v60  ;;  %907 = vadd.xlane.f32.xlu0 %v906_v58  ;;  %v882_v4 = vsel %vm534_vm0, %v2407_v1, 0.0  ;;  %v1824_v60 = vld [vmem:[%s2437_s20 + $0x20] sm:$0xff] }
 0x14b   : > { %1965 = vpow2.f32 %v855_v52 }
 0x14c   : > { %1967 = vpow2.f32 %v845_v8 }
 0x14d   : > { %v800_v10 = vpop.xlane.xlu0 %799 }
 0x14e   : > { %v824_v11 = vsub.f32 %v2354_v62, %v800_v10  ;;  %v1820_v62 = vld [vmem:[%s2437_s20] sm:$0xff] }
 0x14f   : > { %v2410_v3 = vpop.eup %1961  ;;  %978 = vmatpush.bf16.msra.mxu0 %v1820_v62 }
 0x150   : > { %v2414_v5 = vpop.eup %1963  ;;  %v891_v6 = vsel %vm534_vm0, %v2410_v3, 0.0  ;;  %883 = vadd.xlane.f32.xlu1 %v882_v4  ;;  %v851_v13 = vmul.f32 1.442695, %v824_v11 }
 0x151   : > { %v888_v7 = vsel %vm534_vm0, %v2414_v5, 0.0  ;;  %v2420_v51 = vpop.eup %1965 }
 0x152   : > { %892 = vadd.xlane.f32.xlu0 %v891_v6  ;;  %889 = vadd.xlane.f32.xlu2 %v888_v7  ;;  %v900_v12 = vsel %vm534_vm0, %v2420_v51, 0.0  ;;  %v2425_v14 = vpop.eup %1967  ;;  %1969 = vpow2.f32 %v851_v13 }
 0x153   : > { %v885_v15 = vsel %vm534_vm0, %v2425_v14, 0.0  ;;  %1090 = vmatpush.bf16.msrb.mxu0 %v1824_v60  ;;  %v1828_v60 = vld [vmem:[#allocation2] sm:$0xff] }
 0x158   : > { %901 = vadd.xlane.f32.xlu1 %v900_v12  ;;  %v2429_v17 = vpop.eup %1969 }
 0x159   : > { %v894_v18 = vsel %vm534_vm0, %v2429_v17, 0.0 }
 0x160   : > { %886 = vadd.xlane.f32.xlu1 %v885_v15 }
 0x168   : > { %895 = vadd.xlane.f32.xlu1 %v894_v18 }
 0x19d   : > { %v863_v20 = vpop.xlane.xlu2 %862 }
 0x19e   : > { %1971 = vrcp.f32 %v863_v20 }
 0x1a4   : > { %v881_v21 = vpop.xlane.xlu0 %880  ;;  %v1972_v28 = vpop.eup %1971 }
 0x1a5   : > { %v925_v29 = vmul.f32 %v1972_v28, %v2358_v9 }
 0x1a7   : > { %v941_v32 = vpack.c.bf16 %v925_v29, %v925_v29 }
 0x1a9   : > { %v959_v34 = vunpack.c.l.b16 %v941_v32 }
 0x1ab   : > { %v878_v24 = vpop.xlane.xlu2 %877 }
 0x1ac   : > { %v866_v27 = vpop.xlane.xlu0 %865 }
 0x1ad   : > { %1973 = vrcp.f32 %v866_v27 }
 0x1b3   : > { %v1974_v30 = vpop.eup %1973  ;;  %v869_v31 = vpop.xlane.xlu1 %868 }
 0x1b4   : > { %v926_v33 = vmul.f32 %v1974_v30, %v2367_v23  ;;  %v872_v35 = vpop.xlane.xlu2 %871  ;;  %1975 = vrcp.f32 %v869_v31 }
 0x1b5   : > { %1977 = vrcp.f32 %v872_v35  ;;  %v899_v53 = vpop.xlane.xlu0 %898 }
 0x1b6   : > { %1979 = vrcp.f32 %v878_v24  ;;  %v942_v36 = vpack.c.bf16 %v926_v33, %v926_v33 }
 0x1b8   : > { %v960_v38 = vunpack.c.l.b16 %v942_v36 }
 0x1ba   : > { %v1976_v43 = vpop.eup %1975  ;;  %v961_v44 = vpack.c.b16 %v960_v38, %v959_v34 }
 0x1bb   : > { %v1978_v46 = vpop.eup %1977  ;;  %v927_v47 = vmul.f32 %v1976_v43, %v2379_v37  ;;  %v875_v9 = vpop.xlane.xlu1 %874 }
 0x1bc   : > { %v1980_v23 = vpop.eup %1979  ;;  %v928_v42 = vmul.f32 %v1978_v46, %v2382_v39  ;;  %1729 = vmatmul.msk.bf16.vlgmr.msra.gmra.mxu0 %vm534_vm0, %v961_v44  ;;  %1981 = vrcp.f32 %v875_v9  ;;  %v905_v37 = vpop.xlane.xlu2 %904 }
 0x1bd   : > { %v943_v49 = vpack.c.bf16 %v927_v47, %v927_v47  ;;  %1983 = vrcp.f32 %v881_v21  ;;  %v930_v54 = vmul.f32 %v1980_v23, %v2370_v25  ;;  %v908_v8 = vpop.xlane.xlu0 %907  ;;  %1234 = vmatpush.bf16.msra.mxu0 %v1828_v60 }
 0x1be   : > { %v944_v50 = vpack.c.bf16 %v928_v42, %v928_v42 }
 0x1bf   : > { %v987_v55 = vunpack.c.l.b16 %v943_v49  ;;  %v946_v58 = vpack.c.bf16 %v930_v54, %v930_v54 }
 0x1c0   : > { %v988_v59 = vunpack.c.l.b16 %v944_v50 }
 0x1c1   : > { %v1016_v6 = vunpack.c.l.b16 %v946_v58 }
 0x1c2   : > { %v1982_v0 = vpop.eup %1981  ;;  %v989_v57 = vpack.c.b16 %v988_v59, %v987_v55 }
 0x1c3   : > { %v929_v52 = vmul.f32 %v1982_v0, %v2392_v48  ;;  %v884_v39 = vpop.xlane.xlu1 %883  ;;  %v1984_v2 = vpop.eup %1983  ;;  %v1831_v0 = vld [vmem:[#allocation2 + $0x18] sm:$0xff] }
 0x1c4   : > { %1734 = vmatmul.msk.bf16.vlgmr.msra.gmra.mxu1 %vm534_vm0, %v989_v57  ;;  %1985 = vrcp.f32 %v884_v39  ;;  %v931_v25 = vmul.f32 %v1984_v2, %v2362_v16  ;;  %v1834_v2 = vld [vmem:[#allocation2 + $0x30] sm:$0xff] }
 0x1c5   : > { %v945_v4 = vpack.c.bf16 %v929_v52, %v929_v52  ;;  %1987 = vrcp.f32 %v899_v53  ;;  %v890_v48 = vpop.xlane.xlu2 %889  ;;  %v893_v28 = vpop.xlane.xlu0 %892 }
 0x1c6   : > { %1989 = vrcp.f32 %v905_v37  ;;  %v947_v12 = vpack.c.bf16 %v931_v25, %v931_v25 }
 0x1c7   : > { %v1015_v7 = vunpack.c.l.b16 %v945_v4  ;;  %1991 = vrcp.f32 %v908_v8 }
 0x1c8   : > { %v1043_v19 = vunpack.c.l.b16 %v947_v12 }
 0x1c9   : > { %v1017_v10 = vpack.c.b16 %v1016_v6, %v1015_v7  ;;  %v1832_v6 = vld [vmem:[#allocation2 + $0x20] sm:$0xff]  ;;  %v1835_v7 = vld [vmem:[#allocation2 + $0x38] sm:$0xff] }
 0x1ca   : > { %v1986_v11 = vpop.eup %1985 }
 0x1cb   : > { %v932_v13 = vmul.f32 %v1986_v11, %v2407_v1  ;;  %1739 = vmatmul.msk.bf16.vlgmr.msra.gmra.mxu2 %vm534_vm0, %v1017_v10  ;;  %v902_v15 = vpop.xlane.xlu1 %901  ;;  %v1988_v18 = vpop.eup %1987 }
 0x1cc   : > { %1993 = vrcp.f32 %v902_v15  ;;  %v937_v16 = vmul.f32 %v1988_v18, %v2386_v45  ;;  %v1990_v21 = vpop.eup %1989  ;;  %1290 = vmatpush.bf16.msra.mxu2 %v1830_v61 }
 0x1cd   : > { %v948_v62 = vpack.c.bf16 %v932_v13, %v932_v13  ;;  %1995 = vrcp.f32 %v890_v48  ;;  %v1992_v22 = vpop.eup %1991  ;;  %v939_v31 = vmul.f32 %v1990_v21, %v2397_v56  ;;  %v1833_v48 = vld [vmem:[#allocation2 + $0x28] sm:$0xff] }
 0x1ce   : > { %v953_v27 = vpack.c.bf16 %v937_v16, %v937_v16  ;;  %v940_v32 = vmul.f32 %v1992_v22, %v2401_v63 }
 0x1cf   : > { %v1044_v20 = vunpack.c.l.b16 %v948_v62  ;;  %v955_v34 = vpack.c.bf16 %v939_v31, %v939_v31 }
 0x1d0   : > { %v1127_v45 = vunpack.c.l.b16 %v953_v27  ;;  %v956_v38 = vpack.c.bf16 %v940_v32, %v940_v32 }
 0x1d1   : > { %v1045_v24 = vpack.c.b16 %v1044_v20, %v1043_v19  ;;  %v1155_v56 = vunpack.c.l.b16 %v955_v34 }
 0x1d2   : > { %v1994_v26 = vpop.eup %1993  ;;  %v1156_v63 = vunpack.c.l.b16 %v956_v38 }
 0x1d3   : > { %v938_v29 = vmul.f32 %v1994_v26, %v2420_v51  ;;  %1744 = vmatmul.msk.bf16.vlgmr.msra.gmra.mxu3 %vm534_vm0, %v1045_v24  ;;  %v887_v1 = vpop.xlane.xlu1 %886  ;;  %v1996_v30 = vpop.eup %1995 }
 0x1d4   : > { %1997 = vrcp.f32 %v887_v1  ;;  %v934_v35 = vmul.f32 %v1996_v30, %v2414_v5  ;;  %v1157_v42 = vpack.c.b16 %v1156_v63, %v1155_v56  ;;  %1318 = vmatpush.bf16.msra.mxu3 %v1831_v0 }
 0x1d5   : > { %v954_v33 = vpack.c.bf16 %v938_v29, %v938_v29  ;;  %1999 = vrcp.f32 %v893_v28 }
 0x1d6   : > { %v950_v51 = vpack.c.bf16 %v934_v35, %v934_v35 }
 0x1d7   : > { %v1128_v36 = vunpack.c.l.b16 %v954_v33 }
 0x1d8   : > { %v1072_v23 = vunpack.c.l.b16 %v950_v51 }
 0x1d9   : > { %v1129_v40 = vpack.c.b16 %v1128_v36, %v1127_v45 }
 0x1da   : > { %v1998_v41 = vpop.eup %1997 }
 0x1db   : > { %v933_v43 = vmul.f32 %v1998_v41, %v2425_v14  ;;  %1759 = vmatmul.msk.bf16.vlgmr.msrb.gmra.mxu2 %vm534_vm0, %v1129_v40  ;;  %v896_v44 = vpop.xlane.xlu1 %895  ;;  %v2000_v46 = vpop.eup %1999 }
 0x1dc   : > { %2001 = vrcp.f32 %v896_v44  ;;  %v935_v9 = vmul.f32 %v2000_v46, %v2410_v3  ;;  %v1829_v3 = vld [vmem:[#allocation2 + $0x8] sm:$0xff]  ;;  %1402 = vmatpush.bf16.msrb.mxu2 %v1834_v2 }
 0x1dd   : > { %v949_v47 = vpack.c.bf16 %v933_v43, %v933_v43  ;;  %1262 = vmatpush.bf16.msra.mxu1 %v1829_v3 }
 0x1de   : > { %v951_v53 = vpack.c.bf16 %v935_v9, %v935_v9 }
 0x1df   : > { %v1071_v5 = vunpack.c.l.b16 %v949_v47 }
 0x1e0   : > { %v1099_v55 = vunpack.c.l.b16 %v951_v53 }
 0x1e1   : > { %v1073_v49 = vpack.c.b16 %v1072_v23, %v1071_v5 }
 0x1e2   : > { %v2002_v50 = vpop.eup %2001 }
 0x1e3   : > { %v936_v54 = vmul.f32 %v2002_v50, %v2429_v17  ;;  %1749 = vmatmul.msk.bf16.vlgmr.msrb.gmra.mxu0 %vm534_vm0, %v1073_v49  ;;  %1764 = vmatmul.msk.bf16.vlgmr.msrb.gmra.mxu3 %vm534_vm0, %v1157_v42 }
 0x1e4   : > { %1346 = vmatpush.bf16.msrb.mxu0 %v1832_v6  ;;  %1430 = vmatpush.bf16.msrb.mxu3 %v1835_v7 }
 0x1e5   : > { %v952_v14 = vpack.c.bf16 %v936_v54, %v936_v54 }
 0x1e7   : > { %v1100_v59 = vunpack.c.l.b16 %v952_v14 }
 0x1e9   : > { %v1101_v37 = vpack.c.b16 %v1100_v59, %v1099_v55 }
 0x1eb   : > { %1754 = vmatmul.msk.bf16.vlgmr.msrb.gmra.mxu1 %vm534_vm0, %v1101_v37 }
 0x1ec   : > { %1374 = vmatpush.bf16.msrb.mxu1 %v1833_v48 }
 0x239   : > { %v980_v57 = vpop.f32.mrf.mxu0 }
 0x23a   : > { %v1181_v17 = vpack.c.bf16 %v980_v57, %v980_v57 }
 0x23c   : > { %v1215_v4 = vunpack.c.l.b16 %v1181_v17 }
 0x241   : > { %v982_v58 = vpop.f32.mrf.mxu0  ;;  %v1008_v52 = vpop.f32.mrf.mxu1 }
 0x242   : > { %v1182_v39 = vpack.c.bf16 %v982_v58, %v982_v58  ;;  %v1183_v10 = vpack.c.bf16 %v1008_v52, %v1008_v52 }
 0x244   : > { %v1216_v25 = vunpack.c.l.b16 %v1182_v39  ;;  %v1243_v13 = vunpack.c.l.b16 %v1183_v10 }
 0x246   : > { %v1217_v8 = vpack.c.b16 %v1216_v25, %v1215_v4 }
 0x248   : > { %1769 = vmatmul.msk.bf16.vlgmr.msra.gmra.mxu0 %vm534_vm0, %v1217_v8 }
 0x249   : > { %v1010_v11 = vpop.f32.mrf.mxu1 }
 0x24a   : > { %v1184_v12 = vpack.c.bf16 %v1010_v11, %v1010_v11 }
 0x24c   : > { %v1244_v15 = vunpack.c.l.b16 %v1184_v12  ;;  %v1869_v12 = vld [vmem:[%s421_s24] sm:$0xff]  }
 0x24e   : > { %v1245_v18 = vpack.c.b16 %v1244_v15, %v1243_v13  ;;  %v1036_v62 = vpop.f32.mrf.mxu2  ;;  %v1936_v15 = vld [vmem:[#allocation4] ss:$0 sm:$0xff] }
 0x24f   : > { %v1185_v19 = vpack.c.bf16 %v1036_v62, %v1036_v62 }
 0x250   : > { %1774 = vmatmul.msk.bf16.vlgmr.msra.gmra.mxu1 %vm534_vm0, %v1245_v18 }
 0x251   : > { %v1271_v22 = vunpack.c.l.b16 %v1185_v19 }
 0x256   : > { %v1038_v16 = vpop.f32.mrf.mxu2  ;;  %v1064_v20 = vpop.f32.mrf.mxu3 }
 0x257   : > { %v1186_v21 = vpack.c.bf16 %v1038_v16, %v1038_v16  ;;  %v1187_v27 = vpack.c.bf16 %v1064_v20, %v1064_v20  ;;  %v1870_v20 = vunpack.c.l.bf16 %v1869_v12 }
 0x259   : > { %v1272_v24 = vunpack.c.l.b16 %v1186_v21  ;;  %v1299_v31 = vunpack.c.l.b16 %v1187_v27 }
 0x25b   : > { %v1273_v26 = vpack.c.b16 %v1272_v24, %v1271_v22 }
 0x25d   : > { %1779 = vmatmul.msk.bf16.vlgmr.msra.gmra.mxu2 %vm534_vm0, %v1273_v26 }
 0x25e   : > { %v1066_v28 = vpop.f32.mrf.mxu3  ;;  %v1148_v29 = vpop.f32.mrf.mxu2 }
 0x25f   : > { %v1188_v1 = vpack.c.bf16 %v1066_v28, %v1066_v28  ;;  %v1193_v45 = vpack.c.bf16 %v1148_v29, %v1148_v29 }
 0x260   : > { %v1092_v30 = vpop.f32.mrf.mxu0 }
 0x261   : > { %v1300_v32 = vunpack.c.l.b16 %v1188_v1  ;;  %v1189_v34 = vpack.c.bf16 %v1092_v30, %v1092_v30  ;;  %v1383_v51 = vunpack.c.l.b16 %v1193_v45 }
 0x263   : > { %v1301_v33 = vpack.c.b16 %v1300_v32, %v1299_v31  ;;  %v1327_v46 = vunpack.c.l.b16 %v1189_v34  ;;  %v1871_v32 = vunpack.c.h.bf16 %v1869_v12 }
 0x265   : > { %1784 = vmatmul.msk.bf16.vlgmr.msra.gmra.mxu3 %vm534_vm0, %v1301_v33 }
 0x266   : > { %v1150_v35 = vpop.f32.mrf.mxu2  ;;  %v1176_v36 = vpop.f32.mrf.mxu3 }
 0x267   : > { %v1194_v38 = vpack.c.bf16 %v1150_v35, %v1150_v35  ;;  %v1195_v47 = vpack.c.bf16 %v1176_v36, %v1176_v36  ;;  %v2155_v36 = vmov 128.0  }
 0x268   : > { %v1094_v40 = vpop.f32.mrf.mxu0  ;;  %v1120_v41 = vpop.f32.mrf.mxu1  ;;  %2003 = vrcp.f32 %v2155_v36 }
 0x269   : > { %v1384_v43 = vunpack.c.l.b16 %v1194_v38  ;;  %v1190_v44 = vpack.c.bf16 %v1094_v40, %v1094_v40  ;;  %v1191_v5 = vpack.c.bf16 %v1120_v41, %v1120_v41  ;;  %v1411_v50 = vunpack.c.l.b16 %v1195_v47 }
 0x26b   : > { %v1385_v56 = vpack.c.b16 %v1384_v43, %v1383_v51  ;;  %v1328_v63 = vunpack.c.l.b16 %v1190_v44  ;;  %v1355_v14 = vunpack.c.l.b16 %v1191_v5 }
 0x26d   : > { %v1329_v9 = vpack.c.b16 %v1328_v63, %v1327_v46  ;;  %1799 = vmatmul.msk.bf16.vlgmr.msrb.gmra.mxu2 %vm534_vm0, %v1385_v56 }
 0x26e   : > { %v1178_v23 = vpop.f32.mrf.mxu3  ;;  %v2004_v34 = vpop.eup %2003 }
 0x26f   : > { %v1196_v42 = vpack.c.bf16 %v1178_v23, %v1178_v23  ;;  %1789 = vmatmul.msk.bf16.vlgmr.msrb.gmra.mxu0 %vm534_vm0, %v1329_v9  ;;  %v1468_v38 = vmul.f32 128.0, %v2004_v34  ;;  %vm1472_vm1 = vweird.f32 %v2004_v34 }
 0x270   : > { %v1122_v49 = vpop.f32.mrf.mxu1 }
 0x271   : > { %v1412_v53 = vunpack.c.l.b16 %v1196_v42  ;;  %v1192_v54 = vpack.c.bf16 %v1122_v49, %v1122_v49  ;;  %v1469_v40 = vsub.f32 1.0, %v1468_v38 }
 0x273   : > { %v1413_v55 = vpack.c.b16 %v1412_v53, %v1411_v50  ;;  %v1356_v59 = vunpack.c.l.b16 %v1192_v54  ;;  %v1470_v41 = vmul.f32 %v2004_v34, %v1469_v40 }
 0x275   : > { %v1357_v37 = vpack.c.b16 %v1356_v59, %v1355_v14  ;;  %1804 = vmatmul.msk.bf16.vlgmr.msrb.gmra.mxu3 %vm534_vm0, %v1413_v55  ;;  %v1471_v51 = vadd.f32 %v2004_v34, %v1470_v41 }
 0x277   : > { %1794 = vmatmul.msk.bf16.vlgmr.msrb.gmra.mxu1 %vm534_vm0, %v1357_v37  ;;  %v1473_v43 = vsel %vm1472_vm1, %v2004_v34, %v1471_v51 }
 0x2c5   : > { %v1236_v60 = vpop.f32.mrf.mxu0 }
 0x2cd   : > { %v1264_v61 = vpop.f32.mrf.mxu1  ;;  %v1238_v0 = vpop.f32.mrf.mxu0 }
 0x2ce   : > { %v1437_v52 = vadd.f32 %v1264_v61, %v1236_v60 }
 0x2d5   : > { %v1266_v58 = vpop.f32.mrf.mxu1 }
 0x2d6   : > { %v1444_v10 = vadd.f32 %v1266_v58, %v1238_v0 }
 0x2e0   : > { %v1292_v3 = vpop.f32.mrf.mxu2 }
 0x2e1   : > { %v1438_v2 = vadd.f32 %v1437_v52, %v1292_v3 }
 0x2e8   : > { %v1320_v57 = vpop.f32.mrf.mxu3  ;;  %v1294_v17 = vpop.f32.mrf.mxu2 }
 0x2e9   : > { %v1439_v25 = vadd.f32 %v1438_v2, %v1320_v57  ;;  %v1445_v48 = vadd.f32 %v1444_v10, %v1294_v17  ;;  %v1938_v10 = vld [vmem:[#allocation7] ss:$0 sm:$0xff] }
 0x2ec   : > { %v1348_v39 = vpop.f32.mrf.mxu0 }
 0x2ed   : > { %v1440_v6 = vadd.f32 %v1439_v25, %v1348_v39 }
 0x2f0   : > { %v1322_v4 = vpop.f32.mrf.mxu3  ;;  %v1404_v7 = vpop.f32.mrf.mxu2 }
 0x2f1   : > { %v1446_v19 = vadd.f32 %v1445_v48, %v1322_v4  ;;  %v1937_v4 = vld [vmem:[#allocation6] ss:$0 sm:$0xff] }
 0x2f4   : > { %v1376_v8 = vpop.f32.mrf.mxu1  ;;  %v1350_v18 = vpop.f32.mrf.mxu0 }
 0x2f5   : > { %v1441_v11 = vadd.f32 %v1440_v6, %v1376_v8  ;;  %v1447_v21 = vadd.f32 %v1446_v19, %v1350_v18 }
 0x2f7   : > { %v1442_v13 = vadd.f32 %v1441_v11, %v1404_v7 }
 0x2f8   : > { %v1432_v62 = vpop.f32.mrf.mxu3  ;;  %v1406_v28 = vpop.f32.mrf.mxu2 }
 0x2f9   : > { %v1443_v16 = vadd.f32 %v1442_v13, %v1432_v62 }
 0x2fb   : > { %v1455_v22 = vadd.f32 %v1936_v15, %v1443_v16 }
 0x2fc   : > { %v1378_v24 = vpop.f32.mrf.mxu1 }
 0x2fd   : > { %v1448_v26 = vadd.f32 %v1447_v21, %v1378_v24  ;;  %v1461_v27 = vadd.f32 %v1870_v20, %v1455_v22 }
 0x2ff   : > { %1463 = vadd.xlane.f32.xlu2 %v1461_v27  ;;  %v1449_v29 = vadd.f32 %v1448_v26, %v1406_v28  ;;  %v1476_v1 = vmul.f32 %v1461_v27, %v1461_v27 }
 0x300   : > { %v1434_v30 = vpop.f32.mrf.mxu3 }
 0x301   : > { %v1450_v31 = vadd.f32 %v1449_v29, %v1434_v30  ;;  %1478 = vadd.xlane.f32.xlu1 %v1476_v1 }
 0x303   : > { %v1456_v33 = vadd.f32 %v1936_v15, %v1450_v31 }
 0x305   : > { %v1462_v45 = vadd.f32 %v1871_v32, %v1456_v33 }
 0x307   : > { %1465 = vadd.xlane.f32.xlu0 %v1462_v45  ;;  %v1477_v35 = vmul.f32 %v1462_v45, %v1462_v45 }
 0x309   : > { %1480 = vadd.xlane.f32.xlu2 %v1477_v35 }
 0x372   : > { %v1464_v44 = vpop.xlane.xlu2 %1463 }
 0x373   : > { %v1474_v46 = vmul.f32 %v1473_v43, %v1464_v44 }
 0x374   : > { %v1479_v56 = vpop.xlane.xlu1 %1478 }
 0x375   : > { %v1484_v63 = vmul.f32 %v1474_v46, %v1474_v46  ;;  %v1482_v47 = vmul.f32 %v1479_v56, %v1473_v43  ;;  %v1488_v39 = vsub.f32 %v1461_v27, %v1474_v46 }
 0x377   : > { %v1486_v9 = vsub.f32 %v1482_v47, %v1484_v63 }
 0x379   : > { %v1490_v23 = vadd.f32 1e-05, %v1486_v9 }
 0x37a   : > { %v1466_v5 = vpop.xlane.xlu0 %1465 }
 0x37b   : > { %2005 = vrsqrt.f32 %v1490_v23  ;;  %v1475_v42 = vmul.f32 %v1473_v43, %v1466_v5  ;;  %vm1498_vm3 = vweird.f32 %v1490_v23 }
 0x37c   : > { %v1481_v49 = vpop.xlane.xlu2 %1480 }
 0x37d   : > { %v1485_v50 = vmul.f32 %v1475_v42, %v1475_v42  ;;  %v1483_v53 = vmul.f32 %v1481_v49, %v1473_v43  ;;  %v1489_v7 = vsub.f32 %v1462_v45, %v1475_v42 }
 0x37f   : > { %v1487_v54 = vsub.f32 %v1483_v53, %v1485_v50 }
 0x381   : > { %v2006_v14 = vpop.eup %2005  ;;  %v1491_v55 = vadd.f32 1e-05, %v1487_v54 }
 0x382   : > { %v1493_v59 = vmul.f32 %v2006_v14, %v1490_v23  ;;  %vm1499_vm2 = vweird.f32 %v2006_v14 }
 0x383   : > { %2007 = vrsqrt.f32 %v1491_v55  ;;  %vm1500_vm4 = vmor %vm1498_vm3, %vm1499_vm2  ;;  %vm1508_vm6 = vweird.f32 %v1491_v55 }
 0x384   : > { %v1494_v37 = vmul.f32 %v2006_v14, %v1493_v59 }
 0x386   : > { %v1495_v60 = vmul.f32 0.5, %v1494_v37 }
 0x388   : > { %v1496_v3 = vsub.f32 1.5, %v1495_v60 }
 0x389   : > { %v2008_v61 = vpop.eup %2007 }
 0x38a   : > { %v1497_v0 = vmul.f32 %v2006_v14, %v1496_v3  ;;  %v1503_v57 = vmul.f32 %v2008_v61, %v1491_v55  ;;  %vm1509_vm5 = vweird.f32 %v2008_v61 }
 0x38b   : > { %vm1510_vm7 = vmor %vm1508_vm6, %vm1509_vm5 }
 0x38c   : > { %v1504_v17 = vmul.f32 %v2008_v61, %v1503_v57  ;;  %v1501_v58 = vsel %vm1500_vm4, %v2006_v14, %v1497_v0 }
 0x38d   : > { %v1512_v25 = vmul.f32 %v1501_v58, %v1488_v39 }
 0x38e   : > { %v1505_v52 = vmul.f32 0.5, %v1504_v17 }
 0x38f   : > { %v1518_v11 = vmul.f32 %v1937_v4, %v1512_v25 }
 0x390   : > { %v1506_v2 = vsub.f32 1.5, %v1505_v52 }
 0x391   : > { %v1524_v13 = vadd.f32 %v1938_v10, %v1518_v11 }
 0x392   : > { %v1507_v6 = vmul.f32 %v2008_v61, %v1506_v2 }
 0x394   : > { %v1511_v8 = vsel %vm1510_vm7, %v2008_v61, %v1507_v6 }
 0x395   : > { %v1513_v12 = vmul.f32 %v1511_v8, %v1489_v7 }
 0x397   : > { %v1519_v48 = vmul.f32 %v1937_v4, %v1513_v12 }
 0x399   : > { %v1525_v15 = vadd.f32 %v1938_v10, %v1519_v48 }
 0x39b   : > { %v1875_v18 = vpack.c.bf16 %v1525_v15, %v1524_v13 }
 0x39d   : > { %1876 = vst [vmem:[%s426_s28] sm:$0xff] %v1875_v18  }
 0x39e PF: > { %s21_s27 = sadd.s32 1, %s2147_s27  }
 0x39f   : > { %p18_p7 = scmp.ge.s32.totalorder %s21_s27, 4  }
 0x3a1   :  { %20 = sbr.rel (!%p18_p7) target bundleno = 3 (0x3), region = 108 }
 0x3a6   :  { %1551 = vsyncpa [#allocation3], 1 }
 0x3a7   :  { %1553 = vsyncpa [#allocation3 + $0x1], 1 }
 0x3a8   :  { %1554 = vsyncpa [#allocation5], 1 }
 0x3a9   :  { %1555 = vsyncpa [#allocation8], 1 }

// kernel: simple_vit_forward.25
= control target key start
LH: loop header
LB: loop body
LE: loop exit
PB: predicated region body
PF: predicated region fallthrough
CT: control target
= control target key end

     0   :  { %s961_s24 = smov 0   ;;  %s1147_s0 = inlined_call_operand.vmem [shape: bf16[32,128], index: 0, kind: input, shape index: {}]   ;;  %s1148_s1 = inlined_call_operand.vmem [shape: bf16[128,256], index: 1, kind: input, shape index: {}]   ;;  %s1149_s2 = inlined_call_operand.vmem [shape: f32[1,256], index: 2, kind: input, shape index: {}]   ;;  %s1150_s3 = inlined_call_operand.vmem [shape: bf16[256,128], index: 3, kind: input, shape index: {}]   ;;  %s1151_s4 = inlined_call_operand.vmem [shape: f32[1,128], index: 4, kind: input, shape index: {}]   ;;  %s1152_s5 = inlined_call_operand.vmem [shape: f32[1,128], index: 5, kind: input, shape index: {}]   ;;  %s1153_s6 = inlined_call_operand.vmem [shape: f32[1,128], index: 6, kind: input, shape index: {}]   ;;  %s1154_s7 = inlined_call_operand.vmem [shape: bf16[32,128], index: 7, kind: output, shape index: {}]  }
   0x1 LB: > { %s713_s25 = sadd.s32 4294967295, %s918_s24   ;;  %p717_p0 = scmp.ge.s32.totalorder %s918_s24, 1  ;;  %s918_s24 = sphi %s961_s24, %s17_s24  }
   0x2   : > { %p238_p1 = scmp.lt.s32.totalorder %s918_s24, 3 }
   0x4   : > { %p239_p2 = pnand %p717_p0, %p238_p1 }
   0x5   : > { %s718_s30 = sshll.u32 (!%p239_p2), %s713_s25, 1 }
   0x6   : > { %242 = sbr.rel (%p239_p2) target bundleno = 482 (0x1e2), region = 48  ;;  %p271_p3 = scmp.lt.s32.totalorder (!%p239_p2), %s718_s30, 3 }
   0xb   : > { %v784_v0 = vld [vmem:[%s1148_s1 + $0x70] sm:$0xf]  ;;  %v872_v1 = vld [vmem:[%s1148_s1 + $0x74] sm:$0xf0]  ;;  %v871_v2 = vld [vmem:[%s1148_s1 + $0x74] sm:$0xf] }
   0xc   : > { %v785_v3 = vor.u32 %v872_v1, %v784_v0  ;;  %v786_v4 = vld [vmem:[%s1148_s1 + $0x78] sm:$0xf0]  ;;  %v776_v5 = vld [vmem:[%s1148_s1 + $0x60] sm:$0xf]  ;;  %v870_v6 = vld [vmem:[%s1148_s1 + $0x64] sm:$0xf0] }
   0xd   : > { %v789_v7 = vor.u32 %v871_v2, %v786_v4  ;;  %v869_v8 = vld [vmem:[%s1148_s1 + $0x64] sm:$0xf]  ;;  %v778_v9 = vld [vmem:[%s1148_s1 + $0x68] sm:$0xf0]  ;;  %v777_v10 = vor.u32 %v870_v6, %v776_v5  ;;  %v768_v12 = vld [vmem:[%s1148_s1 + $0x50] sm:$0xf] }
   0xe   : > { %392 = vmatpush.bf16.msra.mxu0 %v785_v3  ;;  %v781_v11 = vor.u32 %v869_v8, %v778_v9  ;;  %v868_v13 = vld [vmem:[%s1148_s1 + $0x54] sm:$0xf0]  ;;  %v867_v14 = vld [vmem:[%s1148_s1 + $0x54] sm:$0xf]  ;;  %v770_v15 = vld [vmem:[%s1148_s1 + $0x58] sm:$0xf0] }
   0xf   : > { %406 = vmatpush.bf16.msra.mxu1 %v789_v7  ;;  %v769_v16 = vor.u32 %v868_v13, %v768_v12  ;;  %v773_v17 = vor.u32 %v867_v14, %v770_v15  ;;  %v760_v18 = vld [vmem:[%s1148_s1 + $0x40] sm:$0xf]  ;;  %v866_v19 = vld [vmem:[%s1148_s1 + $0x44] sm:$0xf0]  ;;  %v865_v20 = vld [vmem:[%s1148_s1 + $0x44] sm:$0xf] }
  0x10   : > { %v762_v21 = vld [vmem:[%s1148_s1 + $0x48] sm:$0xf0]  ;;  %v880_v22 = vld [vmem:[%s1150_s3 + $0x38] sm:$0xff]  ;;  %v761_v23 = vor.u32 %v866_v19, %v760_v18  ;;  %v752_v24 = vld [vmem:[%s1148_s1 + $0x30] sm:$0xf]  ;;  %s1156_s30 = smov (!%p271_p3, %s718_s30), 3 }
  0x11   : > { %v888_v25 = vld [vmem:[%s1150_s3 + $0x78] sm:$0xff]  ;;  %v765_v26 = vor.u32 %v865_v20, %v762_v21  ;;  %v863_v28 = vld [vmem:[%s1148_s1 + $0x34] sm:$0xf]  ;;  %558 = vmatpush.bf16.msra.mxu2 %v880_v22  ;;  %v744_v34 = vld [vmem:[%s1148_s1 + $0x20] sm:$0xf]  ;;  %s719_s16 = sshll.u32 %s1156_s30, 2 }
  0x12   : > { %393 = vmatpush.bf16.msra.mxu0 %v777_v10  ;;  %v864_v27 = vld [vmem:[%s1148_s1 + $0x34] sm:$0xf0]  ;;  %v879_v29 = vld [vmem:[%s1150_s3 + $0x30] sm:$0xff]  ;;  %v754_v30 = vld [vmem:[%s1148_s1 + $0x38] sm:$0xf0]  ;;  %572 = vmatpush.bf16.msra.mxu3 %v888_v25  ;;  %s1099_s23 = scalar_lea.vmem %s1147_s0, %s719_s16  ;;  %s280_s10 = scalar_lea.vmem %s1154_s7, %s719_s16 }
  0x13   : > { %407 = vmatpush.bf16.msra.mxu1 %v781_v11  ;;  %v887_v31 = vld [vmem:[%s1150_s3 + $0x70] sm:$0xff]  ;;  %v753_v32 = vor.u32 %v864_v27, %v752_v24  ;;  %v757_v33 = vor.u32 %v863_v28, %v754_v30  ;;  %v862_v35 = vld [vmem:[%s1148_s1 + $0x24] sm:$0xf0]  ;;  %v861_v37 = vld [vmem:[%s1148_s1 + $0x24] sm:$0xf] }
  0x14   : > { %v878_v36 = vld [vmem:[%s1150_s3 + $0x28] sm:$0xff]  ;;  %v745_v40 = vor.u32 %v862_v35, %v744_v34  ;;  %v736_v42 = vld [vmem:[%s1148_s1 + $0x10] sm:$0xf]  ;;  %v860_v43 = vld [vmem:[%s1148_s1 + $0x14] sm:$0xf0]  ;;  %v920_v34 = vmov 128.0  }
  0x15   : > { %559 = vmatpush.bf16.msra.mxu2 %v879_v29  ;;  %v746_v38 = vld [vmem:[%s1148_s1 + $0x28] sm:$0xf0]  ;;  %v877_v44 = vld [vmem:[%s1150_s3 + $0x20] sm:$0xff]  ;;  %v859_v45 = vld [vmem:[%s1148_s1 + $0x14] sm:$0xf]  ;;  %v737_v48 = vor.u32 %v860_v43, %v736_v42  ;;  %906 = vrcp.f32 %v920_v34 }
  0x16   : > { %394 = vmatpush.bf16.msra.mxu0 %v769_v16  ;;  %573 = vmatpush.bf16.msra.mxu3 %v887_v31  ;;  %v886_v39 = vld [vmem:[%s1150_s3 + $0x68] sm:$0xff]  ;;  %v749_v41 = vor.u32 %v861_v37, %v746_v38  ;;  %v738_v46 = vld [vmem:[%s1148_s1 + $0x18] sm:$0xf0]  ;;  %v885_v47 = vld [vmem:[%s1150_s3 + $0x60] sm:$0xff] }
  0x17   : > { %408 = vmatpush.bf16.msra.mxu1 %v773_v17  ;;  %v741_v49 = vor.u32 %v859_v45, %v738_v46  ;;  %v728_v50 = vld [vmem:[%s1148_s1] sm:$0xf]  ;;  %v858_v51 = vld [vmem:[%s1148_s1 + $0x4] sm:$0xf0]  ;;  %v857_v52 = vld [vmem:[%s1148_s1 + $0x4] sm:$0xf] }
  0x18   : > { %v730_v53 = vld [vmem:[%s1148_s1 + $0x8] sm:$0xf0]  ;;  %v729_v54 = vor.u32 %v858_v51, %v728_v50  ;;  %v856_v56 = vld [vmem:[%s1099_s23] sm:$0xff]  ;;  %v876_v57 = vld [vmem:[%s1150_s3 + $0x18] sm:$0xff] }
  0x19   : > { %560 = vmatpush.bf16.msra.mxu2 %v878_v36  ;;  %v733_v55 = vor.u32 %v857_v52, %v730_v53  ;;  %v884_v58 = vld [vmem:[%s1150_s3 + $0x58] sm:$0xff]  ;;  %v875_v59 = vld [vmem:[%s1150_s3 + $0x10] sm:$0xff]  ;;  %v874_v61 = vld [vmem:[%s1150_s3 + $0x8] sm:$0xff] }
  0x1a   : > { %395 = vmatpush.bf16.msra.mxu0 %v761_v23  ;;  %574 = vmatpush.bf16.msra.mxu3 %v886_v39  ;;  %v883_v60 = vld [vmem:[%s1150_s3 + $0x50] sm:$0xff]  ;;  %v882_v62 = vld [vmem:[%s1150_s3 + $0x48] sm:$0xff]  ;;  %v873_v63 = vld [vmem:[%s1150_s3] sm:$0xff] }
  0x1b   : > { %409 = vmatpush.bf16.msra.mxu1 %v765_v26  ;;  %v881_v0 = vld [vmem:[%s1150_s3 + $0x40] sm:$0xff]  ;;  %v907_v35 = vpop.eup %906 }
  0x1c   : > { %v300_v1 = vld [vmem:[%s1149_s2] sm:$0x3]  ;;  %v595_v36 = vmul.f32 128.0, %v907_v35  ;;  %vm599_vm0 = vweird.f32 %v907_v35 }
  0x1d   : > { %561 = vmatpush.bf16.msra.mxu2 %v877_v44  ;;  %v302_v4 = vperm.slane %v300_v1, 0  ;;  %v303_v5 = vperm.slane %v300_v1, 1  ;;  %v903_v18 = vld [vmem:[%s1151_s4] ss:$0 sm:$0xff] }
  0x1e   : > { %396 = vmatpush.bf16.msra.mxu0 %v753_v32  ;;  %575 = vmatpush.bf16.msra.mxu3 %v885_v47  ;;  %v282_v19 = vld [vmem:[%s1099_s23] sm:$0xff]   ;;  %v596_v37 = vsub.f32 1.0, %v595_v36 }
  0x1f   : > { %410 = vmatpush.bf16.msra.mxu1 %v757_v33  ;;  %v586_v23 = vunpack.c.l.bf16 %v282_v19  ;;  %v587_v29 = vunpack.c.h.bf16 %v282_v19 }
  0x20   : > { %v597_v38 = vmul.f32 %v907_v35, %v596_v37 }
  0x21   : > { %562 = vmatpush.bf16.msra.mxu2 %v876_v57 }
  0x22   : > { %397 = vmatpush.bf16.msra.mxu0 %v745_v40  ;;  %576 = vmatpush.bf16.msra.mxu3 %v884_v58  ;;  %v598_v39 = vadd.f32 %v907_v35, %v597_v38 }
  0x23   : > { %411 = vmatpush.bf16.msra.mxu1 %v749_v41 }
  0x24   : > { %v600_v40 = vsel %vm599_vm0, %v907_v35, %v598_v39 }
  0x25   : > { %563 = vmatpush.bf16.msra.mxu2 %v875_v59 }
  0x26   : > { %398 = vmatpush.bf16.msra.mxu0 %v737_v48  ;;  %577 = vmatpush.bf16.msra.mxu3 %v883_v60 }
  0x27   : > { %412 = vmatpush.bf16.msra.mxu1 %v741_v49 }
  0x29   : > { %564 = vmatpush.bf16.msra.mxu2 %v874_v61 }
  0x2a   : > { %399 = vmatpush.bf16.msra.mxu0 %v729_v54  ;;  %578 = vmatpush.bf16.msra.mxu3 %v882_v62 }
  0x2b   : > { %413 = vmatpush.bf16.msra.mxu1 %v733_v55 }
  0x2d   : > { %400 = vmatmul.bf16.vlgmr.msra.gmra.mxu0 %v856_v56  ;;  %565 = vmatpush.bf16.msra.mxu2 %v873_v63 }
  0x2e   : > { %414 = vmatmul.bf16.vlgmr.msra.gmra.mxu1 %v856_v56  ;;  %579 = vmatpush.bf16.msra.mxu3 %v881_v0 }
  0xaa   : > { %v401_v2 = vpop.f32.mrf.mxu0 }
  0xab   : > { %v415_v3 = vpop.f32.mrf.mxu1  ;;  %v402_v6 = vadd.f32 %v401_v2, %v302_v4 }
  0xac   : > { %v416_v7 = vadd.f32 %v415_v3, %v303_v5 }
  0xad   : > { %v420_v12 = vmax.f32 %v402_v6, 0.0 }
  0xae   : > { %v421_v14 = vmax.f32 %v416_v7, 0.0 }
  0xb2   : > { %v403_v8 = vpop.f32.mrf.mxu0 }
  0xb3   : > { %v404_v9 = vadd.f32 %v403_v8, %v302_v4  ;;  %v417_v10 = vpop.f32.mrf.mxu1  ;;  %v904_v4 = vld [vmem:[%s1152_s5] ss:$0 sm:$0xff] }
  0xb4   : > { %v418_v11 = vadd.f32 %v417_v10, %v303_v5 }
  0xb5   : > { %v422_v13 = vmax.f32 %v404_v9, 0.0  ;;  %v905_v9 = vld [vmem:[%s1153_s6] ss:$0 sm:$0xff] }
  0xb6   : > { %v423_v15 = vmax.f32 %v418_v11, 0.0 }
  0xb7   : > { %v424_v16 = vpack.c.bf16 %v422_v13, %v420_v12 }
  0xb8   : > { %v425_v17 = vpack.c.bf16 %v423_v15, %v421_v14 }
  0xb9   : > { %566 = vmatmul.bf16.vlgmr.msra.gmra.mxu2 %v424_v16 }
  0xba   : > { %580 = vmatmul.bf16.vlgmr.msra.gmra.mxu3 %v425_v17 }
 0x13c   : > { %v567_v20 = vpop.f32.mrf.mxu2 }
 0x13d   : > { %v568_v21 = vadd.f32 %v903_v18, %v567_v20  ;;  %v581_v22 = vpop.f32.mrf.mxu3 }
 0x13f   : > { %v582_v24 = vadd.f32 %v581_v22, %v568_v21 }
 0x141   : > { %v588_v25 = vadd.f32 %v586_v23, %v582_v24 }
 0x143   : > { %590 = vadd.xlane.f32.xlu0 %v588_v25  ;;  %v603_v26 = vmul.f32 %v588_v25, %v588_v25 }
 0x144   : > { %v569_v27 = vpop.f32.mrf.mxu2 }
 0x145   : > { %v570_v28 = vadd.f32 %v903_v18, %v569_v27  ;;  %605 = vadd.xlane.f32.xlu1 %v603_v26  ;;  %v583_v30 = vpop.f32.mrf.mxu3 }
 0x147   : > { %v584_v31 = vadd.f32 %v583_v30, %v570_v28 }
 0x149   : > { %v589_v32 = vadd.f32 %v587_v29, %v584_v31 }
 0x14b   : > { %592 = vadd.xlane.f32.xlu0 %v589_v32  ;;  %v604_v33 = vmul.f32 %v589_v32, %v589_v32 }
 0x14d   : > { %607 = vadd.xlane.f32.xlu1 %v604_v33 }
 0x1b6   : > { %v591_v41 = vpop.xlane.xlu0 %590 }
 0x1b7   : > { %v601_v42 = vmul.f32 %v600_v40, %v591_v41 }
 0x1b8   : > { %v606_v43 = vpop.xlane.xlu1 %605 }
 0x1b9   : > { %v611_v44 = vmul.f32 %v601_v42, %v601_v42  ;;  %v609_v45 = vmul.f32 %v606_v43, %v600_v40  ;;  %v615_v2 = vsub.f32 %v588_v25, %v601_v42 }
 0x1bb   : > { %v613_v46 = vsub.f32 %v609_v45, %v611_v44 }
 0x1bd   : > { %v617_v47 = vadd.f32 1e-05, %v613_v46 }
 0x1be   : > { %v593_v48 = vpop.xlane.xlu0 %592 }
 0x1bf   : > { %908 = vrsqrt.f32 %v617_v47  ;;  %v602_v49 = vmul.f32 %v600_v40, %v593_v48  ;;  %vm625_vm2 = vweird.f32 %v617_v47 }
 0x1c0   : > { %v608_v50 = vpop.xlane.xlu1 %607 }
 0x1c1   : > { %v612_v51 = vmul.f32 %v602_v49, %v602_v49  ;;  %v610_v52 = vmul.f32 %v608_v50, %v600_v40  ;;  %v616_v7 = vsub.f32 %v589_v32, %v602_v49 }
 0x1c3   : > { %v614_v53 = vsub.f32 %v610_v52, %v612_v51 }
 0x1c5   : > { %v909_v54 = vpop.eup %908  ;;  %v618_v55 = vadd.f32 1e-05, %v614_v53 }
 0x1c6   : > { %v620_v56 = vmul.f32 %v909_v54, %v617_v47  ;;  %vm626_vm1 = vweird.f32 %v909_v54 }
 0x1c7   : > { %910 = vrsqrt.f32 %v618_v55  ;;  %vm627_vm3 = vmor %vm625_vm2, %vm626_vm1  ;;  %vm635_vm5 = vweird.f32 %v618_v55 }
 0x1c8   : > { %v621_v57 = vmul.f32 %v909_v54, %v620_v56 }
 0x1ca   : > { %v622_v58 = vmul.f32 0.5, %v621_v57 }
 0x1cc   : > { %v623_v59 = vsub.f32 1.5, %v622_v58 }
 0x1cd   : > { %v911_v60 = vpop.eup %910 }
 0x1ce   : > { %v624_v61 = vmul.f32 %v909_v54, %v623_v59  ;;  %v630_v62 = vmul.f32 %v911_v60, %v618_v55  ;;  %vm636_vm4 = vweird.f32 %v911_v60 }
 0x1cf   : > { %vm637_vm6 = vmor %vm635_vm5, %vm636_vm4 }
 0x1d0   : > { %v631_v63 = vmul.f32 %v911_v60, %v630_v62  ;;  %v628_v0 = vsel %vm627_vm3, %v909_v54, %v624_v61 }
 0x1d1   : > { %v639_v5 = vmul.f32 %v628_v0, %v615_v2 }
 0x1d2   : > { %v632_v1 = vmul.f32 0.5, %v631_v63 }
 0x1d3   : > { %v645_v10 = vmul.f32 %v904_v4, %v639_v5 }
 0x1d4   : > { %v633_v3 = vsub.f32 1.5, %v632_v1 }
 0x1d5   : > { %v651_v13 = vadd.f32 %v905_v9, %v645_v10 }
 0x1d6   : > { %v634_v6 = vmul.f32 %v911_v60, %v633_v3 }
 0x1d8   : > { %v638_v8 = vsel %vm637_vm6, %v911_v60, %v634_v6 }
 0x1d9   : > { %v640_v11 = vmul.f32 %v638_v8, %v616_v7 }
 0x1db   : > { %v646_v12 = vmul.f32 %v904_v4, %v640_v11 }
 0x1dd   : > { %v652_v14 = vadd.f32 %v905_v9, %v646_v12 }
 0x1df   : > { %v892_v15 = vpack.c.bf16 %v652_v14, %v651_v13 }
 0x1e1   : > { %893 = vst [vmem:[%s280_s10] sm:$0xff] %v892_v15  }
 0x1e2 PF: > { %s17_s24 = sadd.s32 1, %s918_s24  }
 0x1e3   : > { %p14_p4 = scmp.ge.s32.totalorder %s17_s24, 4  }
 0x1e5   :  { %16 = sbr.rel (!%p14_p4) target bundleno = 1 (0x1), region = 78 }

// kernel: simple_vit_forward.24
= control target key start
LH: loop header
LB: loop body
LE: loop exit
PB: predicated region body
PF: predicated region fallthrough
CT: control target
= control target key end

     0   :  { %s1910_s27 = smov 0   ;;  %s2184_s0 = inlined_call_operand.vmem [shape: bf16[2,8,16,16], index: 0, kind: input, shape index: {}]   ;;  %s2185_s1 = inlined_call_operand.vmem [shape: bf16[2,8,16,16], index: 1, kind: input, shape index: {}]   ;;  %s2186_s2 = inlined_call_operand.vmem [shape: bf16[2,8,16,16], index: 2, kind: input, shape index: {}]   ;;  %s2187_s3 = inlined_call_operand.vmem [shape: bf16[8,16,128], index: 3, kind: input, shape index: {}]   ;;  %s2188_s4 = inlined_call_operand.vmem [shape: f32[1,128], index: 4, kind: input, shape index: {}]   ;;  %s2189_s5 = inlined_call_operand.vmem [shape: bf16[2,16,128], index: 5, kind: input, shape index: {}]   ;;  %s2190_s6 = inlined_call_operand.vmem [shape: f32[1,128], index: 6, kind: input, shape index: {}]   ;;  %s2191_s7 = inlined_call_operand.vmem [shape: f32[1,128], index: 7, kind: input, shape index: {}]   ;;  %s2192_s8 = inlined_call_operand.vmem [shape: bf16[2,16,128], index: 8, kind: output, shape index: {}]  }
   0x1 LB: > { %s1560_s28 = sadd.s32 4294967295, %s1862_s27   ;;  %p1564_p0 = scmp.ge.s32.totalorder %s1862_s27, 1  ;;  %s1862_s27 = sphi %s1910_s27, %s18_s27  }
   0x2   : > { %p292_p1 = scmp.lt.s32.totalorder %s1862_s27, 3 }
   0x4   : > { %p293_p2 = pnand %p1564_p0, %p292_p1 }
   0x5   : > { %p341_p3 = scmp.lt.s32.totalorder (!%p293_p2), %s1560_s28, 1 }
   0x6   : > { %296 = sbr.rel (%p293_p2) target bundleno = 909 (0x38d), region = 52 }
   0xb   : > { %s2194_s28 = smov (!%p341_p3, %s1560_s28), 1  ;;  %vm473_vm0 = vcmask 130048  }
   0xc   : > { %s1921_s29 = sshll.u32 %s2194_s28, 6 }
   0xd   : > { %s1927_s10 = scalar_lea.vmem %s2185_s1, %s1921_s29  ;;  %s1936_s13 = scalar_lea.vmem %s2184_s0, %s1921_s29 }
   0xe   : > { %v1702_v0 = vld [vmem:[%s1927_s10] sm:$0xff]  ;;  %v1704_v1 = vld [vmem:[%s1927_s10 + $0x10] sm:$0xff]  ;;  %v1705_v2 = vld [vmem:[%s1927_s10 + $0x18] sm:$0xff]  ;;  %s2095_s16 = scalar_lea.vmem %s2186_s2, %s1921_s29 }
   0xf   : > { %v1727_v3 = vld [vmem:[%s1936_s13] sm:$0xff]   ;;  %v1768_v4 = vld [vmem:[%s1936_s13 + $0x10] sm:$0xff]   ;;  %v1769_v5 = vld [vmem:[%s1936_s13 + $0x18] sm:$0xff]   ;;  %v478_v6 = vsel %vm473_vm0, %v1702_v0, 0  ;;  %v538_v7 = vsel %vm473_vm0, %v1704_v1, 0  ;;  %v568_v8 = vsel %vm473_vm0, %v1705_v2, 0 }
  0x10   : > { %v1728_v9 = vunpack.c.l.bf16 %v1727_v3  ;;  %v1703_v10 = vld [vmem:[%s1927_s10 + $0x8] sm:$0xff]  ;;  %v1708_v11 = vld [vmem:[%s1927_s10 + $0x30] sm:$0xff]  ;;  %v1709_v12 = vld [vmem:[%s1927_s10 + $0x38] sm:$0xff]  ;;  %487 = vmatpush.bf16.xpose.msra.mxu0 %v478_v6  ;;  %547 = vmatpush.bf16.xpose.msra.mxu2 %v538_v7  ;;  %v1729_v13 = vunpack.c.h.bf16 %v1727_v3  ;;  %v1736_v14 = vunpack.c.l.bf16 %v1768_v4  ;;  %v1737_v15 = vunpack.c.h.bf16 %v1768_v4 }
  0x11   : > { %v1740_v16 = vunpack.c.l.bf16 %v1769_v5  ;;  %v1767_v17 = vld [vmem:[%s1936_s13 + $0x8] sm:$0xff]   ;;  %577 = vmatpush.bf16.xpose.msra.mxu3 %v568_v8  ;;  %v1741_v19 = vunpack.c.h.bf16 %v1769_v5  ;;  %v508_v20 = vsel %vm473_vm0, %v1703_v10, 0  ;;  %v658_v21 = vsel %vm473_vm0, %v1708_v11, 0  ;;  %v1772_v34 = vld [vmem:[%s1936_s13 + $0x30] sm:$0xff]   ;;  %v1773_v39 = vld [vmem:[%s1936_s13 + $0x38] sm:$0xff]  }
  0x12   : > { %v399_v18 = vmul.f32 0.25, %v1728_v9  ;;  %v400_v22 = vmul.f32 0.25, %v1729_v13  ;;  %v403_v23 = vmul.f32 0.25, %v1736_v14  ;;  %v404_v24 = vmul.f32 0.25, %v1737_v15  ;;  %517 = vmatpush.bf16.xpose.msra.mxu1 %v508_v20  ;;  %v1706_v44 = vld [vmem:[%s1927_s10 + $0x20] sm:$0xff]  ;;  %v1707_v54 = vld [vmem:[%s1927_s10 + $0x28] sm:$0xff] }
  0x13   : > { %v405_v25 = vmul.f32 0.25, %v1740_v16  ;;  %v406_v27 = vmul.f32 0.25, %v1741_v19  ;;  %v688_v28 = vsel %vm473_vm0, %v1709_v12, 0  ;;  %v1732_v29 = vunpack.c.l.bf16 %v1767_v17  ;;  %v1770_v53 = vld [vmem:[%s1936_s13 + $0x20] sm:$0xff]   ;;  %v1771_v2 = vld [vmem:[%s1936_s13 + $0x28] sm:$0xff]   ;;  %s1700_s13 = sshll.u32 %s2194_s28, 3 }
  0x14   : > { %v415_v26 = vpack.c.bf16 %v399_v18, %v399_v18  ;;  %v416_v30 = vpack.c.bf16 %v400_v22, %v400_v22  ;;  %v419_v31 = vpack.c.bf16 %v403_v23, %v403_v23  ;;  %v420_v32 = vpack.c.bf16 %v404_v24, %v404_v24  ;;  %s365_s25 = scalar_lea.vmem %s2192_s8, %s1700_s13 }
  0x15   : > { %v421_v33 = vpack.c.bf16 %v405_v25, %v405_v25  ;;  %v422_v36 = vpack.c.bf16 %v406_v27, %v406_v27  ;;  %v1733_v37 = vunpack.c.h.bf16 %v1767_v17  ;;  %v401_v38 = vmul.f32 0.25, %v1732_v29 }
  0x16   : > { %v465_v35 = vunpack.c.l.b16 %v415_v26  ;;  %v466_v40 = vunpack.c.l.b16 %v416_v30  ;;  %v526_v41 = vunpack.c.l.b16 %v419_v31  ;;  %v527_v42 = vunpack.c.l.b16 %v420_v32 }
  0x17   : > { %v556_v43 = vunpack.c.l.b16 %v421_v33  ;;  %v557_v45 = vunpack.c.l.b16 %v422_v36  ;;  %v402_v46 = vmul.f32 0.25, %v1733_v37  ;;  %v417_v47 = vpack.c.bf16 %v401_v38, %v401_v38 }
  0x18   : > { %667 = vmatpush.bf16.xpose.msrb.mxu2 %v658_v21  ;;  %v1752_v48 = vunpack.c.l.bf16 %v1772_v34  ;;  %v467_v49 = vpack.c.b16 %v466_v40, %v465_v35  ;;  %v528_v50 = vpack.c.b16 %v527_v42, %v526_v41  ;;  %v1753_v51 = vunpack.c.h.bf16 %v1772_v34 }
  0x19   : > { %697 = vmatpush.bf16.xpose.msrb.mxu3 %v688_v28  ;;  %v1756_v52 = vunpack.c.l.bf16 %v1773_v39  ;;  %v558_v55 = vpack.c.b16 %v557_v45, %v556_v43  ;;  %v418_v56 = vpack.c.bf16 %v402_v46, %v402_v46  ;;  %v496_v57 = vunpack.c.l.b16 %v417_v47 }
  0x1a   : > { %v411_v58 = vmul.f32 0.25, %v1752_v48  ;;  %1579 = vmatmul.msk.bf16.vlgmr.msra.gmra.mxu0 %vm473_vm0, %v467_v49  ;;  %1589 = vmatmul.msk.bf16.vlgmr.msra.gmra.mxu2 %vm473_vm0, %v528_v50  ;;  %v412_v59 = vmul.f32 0.25, %v1753_v51  ;;  %v1757_v60 = vunpack.c.h.bf16 %v1773_v39  ;;  %v598_v62 = vsel %vm473_vm0, %v1706_v44, 0 }
  0x1b   : > { %v413_v61 = vmul.f32 0.25, %v1756_v52  ;;  %1594 = vmatmul.msk.bf16.vlgmr.msra.gmra.mxu3 %vm473_vm0, %v558_v55  ;;  %v497_v63 = vunpack.c.l.b16 %v418_v56  ;;  %607 = vmatpush.bf16.xpose.msrb.mxu0 %v598_v62  ;;  %v1744_v0 = vunpack.c.l.bf16 %v1770_v53  ;;  %v1745_v1 = vunpack.c.h.bf16 %v1770_v53 }
  0x1c   : > { %v414_v3 = vmul.f32 0.25, %v1757_v60  ;;  %v628_v4 = vsel %vm473_vm0, %v1707_v54, 0  ;;  %v427_v8 = vpack.c.bf16 %v411_v58, %v411_v58  ;;  %v428_v9 = vpack.c.bf16 %v412_v59, %v412_v59 }
  0x1d   : > { %v498_v5 = vpack.c.b16 %v497_v63, %v496_v57  ;;  %v407_v6 = vmul.f32 0.25, %v1744_v0  ;;  %v408_v7 = vmul.f32 0.25, %v1745_v1  ;;  %637 = vmatpush.bf16.xpose.msrb.mxu1 %v628_v4  ;;  %v429_v10 = vpack.c.bf16 %v413_v61, %v413_v61 }
  0x1e   : > { %v1748_v11 = vunpack.c.l.bf16 %v1771_v2  ;;  %v430_v12 = vpack.c.bf16 %v414_v3, %v414_v3  ;;  %v1749_v15 = vunpack.c.h.bf16 %v1771_v2  ;;  %v646_v18 = vunpack.c.l.b16 %v427_v8 }
  0x1f   : > { %1584 = vmatmul.msk.bf16.vlgmr.msra.gmra.mxu1 %vm473_vm0, %v498_v5  ;;  %v423_v13 = vpack.c.bf16 %v407_v6, %v407_v6  ;;  %v424_v14 = vpack.c.bf16 %v408_v7, %v408_v7  ;;  %v647_v19 = vunpack.c.l.b16 %v428_v9  ;;  %v676_v22 = vunpack.c.l.b16 %v429_v10 }
  0x20   : > { %v409_v16 = vmul.f32 0.25, %v1748_v11  ;;  %v410_v17 = vmul.f32 0.25, %v1749_v15  ;;  %v677_v23 = vunpack.c.l.b16 %v430_v12 }
  0x21   : > { %v586_v20 = vunpack.c.l.b16 %v423_v13  ;;  %v587_v21 = vunpack.c.l.b16 %v424_v14  ;;  %v648_v26 = vpack.c.b16 %v647_v19, %v646_v18 }
  0x22   : > { %v425_v24 = vpack.c.bf16 %v409_v16, %v409_v16  ;;  %v426_v25 = vpack.c.bf16 %v410_v17, %v410_v17  ;;  %v678_v28 = vpack.c.b16 %v677_v23, %v676_v22 }
  0x23   : > { %v588_v27 = vpack.c.b16 %v587_v21, %v586_v20 }
  0x24   : > { %v616_v29 = vunpack.c.l.b16 %v425_v24  ;;  %v617_v30 = vunpack.c.l.b16 %v426_v25 }
  0x26   : > { %v618_v31 = vpack.c.b16 %v617_v30, %v616_v29 }
  0x2a   : > { %1609 = vmatmul.msk.bf16.vlgmr.msrb.gmra.mxu2 %vm473_vm0, %v648_v26  ;;  %1599 = vmatmul.msk.bf16.vlgmr.msrb.gmra.mxu0 %vm473_vm0, %v588_v27 }
  0x2b   : > { %1614 = vmatmul.msk.bf16.vlgmr.msrb.gmra.mxu3 %vm473_vm0, %v678_v28 }
  0x2f   : > { %1604 = vmatmul.msk.bf16.vlgmr.msrb.gmra.mxu1 %vm473_vm0, %v618_v31 }
  0x97   : > { %v489_v32 = vpop.f32.mrf.mxu0 }
  0x98   : > { %v704_v33 = vsel %vm473_vm0, %v489_v32, -inf }
  0x99   : > { %705 = vmax.xlane.f32.xlu2 %v704_v33 }
  0x9c   : > { %v1974_v40 = vpop.f32.mrf.mxu1 }
  0x9d   : > { %v1968_v34 = vpop.f32.mrf.mxu2  ;;  %v710_v46 = vsel %vm473_vm0, %v1974_v40, -inf }
  0x9e   : > { %v579_v35 = vpop.f32.mrf.mxu3  ;;  %v716_v36 = vsel %vm473_vm0, %v1968_v34, -inf }
  0x9f   : > { %v722_v37 = vsel %vm473_vm0, %v579_v35, -inf  ;;  %717 = vmax.xlane.f32.xlu0 %v716_v36  ;;  %v491_v38 = vpop.f32.mrf.mxu0 }
  0xa0   : > { %723 = vmax.xlane.f32.xlu1 %v722_v37  ;;  %v707_v39 = vsel %vm473_vm0, %v491_v38, -inf }
  0xa1   : > { %708 = vmax.xlane.f32.xlu2 %v707_v39 }
  0xa4   : > { %v1981_v45 = vpop.f32.mrf.mxu1 }
  0xa5   : > { %v551_v41 = vpop.f32.mrf.mxu2  ;;  %v713_v48 = vsel %vm473_vm0, %v1981_v45, -inf }
  0xa6   : > { %v1976_v42 = vpop.f32.mrf.mxu3  ;;  %v719_v43 = vsel %vm473_vm0, %v551_v41, -inf }
  0xa7   : > { %v725_v44 = vsel %vm473_vm0, %v1976_v42, -inf  ;;  %720 = vmax.xlane.f32.xlu0 %v719_v43  ;;  %v1990_v51 = vpop.f32.mrf.mxu0 }
  0xa8   : > { %726 = vmax.xlane.f32.xlu1 %v725_v44  ;;  %v728_v59 = vsel %vm473_vm0, %v1990_v51, -inf }
  0xac   : > { %v2002_v57 = vpop.f32.mrf.mxu1 }
  0xad   : > { %v669_v47 = vpop.f32.mrf.mxu2  ;;  %v734_v60 = vsel %vm473_vm0, %v2002_v57, -inf }
  0xae   : > { %v1987_v49 = vpop.f32.mrf.mxu3  ;;  %v740_v50 = vsel %vm473_vm0, %v669_v47, -inf }
  0xaf   : > { %711 = vmax.xlane.f32.xlu0 %v710_v46  ;;  %741 = vmax.xlane.f32.xlu2 %v740_v50  ;;  %v746_v53 = vsel %vm473_vm0, %v1987_v49, -inf  ;;  %v2004_v58 = vpop.f32.mrf.mxu0 }
  0xb0   : > { %714 = vmax.xlane.f32.xlu1 %v713_v48  ;;  %v731_v61 = vsel %vm473_vm0, %v2004_v58, -inf }
  0xb4   : > { %v2012_v62 = vpop.f32.mrf.mxu1 }
  0xb5   : > { %v1992_v52 = vpop.f32.mrf.mxu2  ;;  %v737_v63 = vsel %vm473_vm0, %v2012_v62, -inf }
  0xb6   : > { %v1996_v54 = vpop.f32.mrf.mxu3  ;;  %v743_v55 = vsel %vm473_vm0, %v1992_v52, -inf }
  0xb7   : > { %744 = vmax.xlane.f32.xlu0 %v743_v55  ;;  %v749_v56 = vsel %vm473_vm0, %v1996_v54, -inf }
  0xb8   : > { %747 = vmax.xlane.f32.xlu1 %v746_v53  ;;  %750 = vmax.xlane.f32.xlu2 %v749_v56 }
  0xbf   : > { %729 = vmax.xlane.f32.xlu0 %v728_v59 }
  0xc0   : > { %735 = vmax.xlane.f32.xlu2 %v734_v60  ;;  %732 = vmax.xlane.f32.xlu1 %v731_v61 }
  0xc7   : > { %738 = vmax.xlane.f32.xlu0 %v737_v63 }
 0x10c   : > { %v706_v0 = vpop.xlane.xlu2 %705 }
 0x10d   : > { %v752_v1 = vsub.f32 %v489_v32, %v706_v0 }
 0x10f   : > { %v768_v2 = vmul.f32 1.442695, %v752_v1 }
 0x111   : > { %1786 = vpow2.f32 %v768_v2 }
 0x112   : > { %v718_v3 = vpop.xlane.xlu0 %717 }
 0x113   : > { %v724_v4 = vpop.xlane.xlu1 %723  ;;  %v756_v26 = vsub.f32 %v1968_v34, %v718_v3 }
 0x114   : > { %v758_v5 = vsub.f32 %v579_v35, %v724_v4  ;;  %v709_v6 = vpop.xlane.xlu2 %708 }
 0x115   : > { %v753_v8 = vsub.f32 %v491_v38, %v709_v6  ;;  %v776_v32 = vmul.f32 1.442695, %v756_v26  ;;  %v1713_v26 = vld [vmem:[%s2095_s16 + $0x18] sm:$0xff] }
 0x116   : > { %v780_v7 = vmul.f32 1.442695, %v758_v5  ;;  %1001 = vmatpush.bf16.msra.mxu3 %v1713_v26 }
 0x117   : > { %v2016_v9 = vpop.eup %1786  ;;  %v770_v11 = vmul.f32 1.442695, %v753_v8 }
 0x118   : > { %1788 = vpow2.f32 %v780_v7  ;;  %v800_v10 = vsel %vm473_vm0, %v2016_v9, 0.0 }
 0x119   : > { %801 = vadd.xlane.f32.xlu2 %v800_v10  ;;  %1790 = vpow2.f32 %v770_v11 }
 0x11a   : > { %v721_v12 = vpop.xlane.xlu0 %720 }
 0x11b   : > { %v727_v13 = vpop.xlane.xlu1 %726  ;;  %v757_v14 = vsub.f32 %v551_v41, %v721_v12 }
 0x11c   : > { %v759_v38 = vsub.f32 %v1976_v42, %v727_v13 }
 0x11d   : > { %v778_v15 = vmul.f32 1.442695, %v757_v14 }
 0x11e   : > { %v2020_v16 = vpop.eup %1788  ;;  %v782_v42 = vmul.f32 1.442695, %v759_v38 }
 0x11f   : > { %1792 = vpow2.f32 %v778_v15  ;;  %v818_v17 = vsel %vm473_vm0, %v2020_v16, 0.0  ;;  %v2025_v23 = vpop.eup %1790 }
 0x120   : > { %819 = vadd.xlane.f32.xlu0 %v818_v17  ;;  %v803_v31 = vsel %vm473_vm0, %v2025_v23, 0.0 }
 0x122   : > { %v712_v18 = vpop.xlane.xlu0 %711  ;;  %v742_v19 = vpop.xlane.xlu2 %741 }
 0x123   : > { %v754_v20 = vsub.f32 %v1974_v40, %v712_v18  ;;  %v715_v21 = vpop.xlane.xlu1 %714  ;;  %v764_v22 = vsub.f32 %v669_v47, %v742_v19  ;;  %v1711_v19 = vld [vmem:[%s2095_s16 + $0x8] sm:$0xff] }
 0x124   : > { %v755_v24 = vsub.f32 %v1981_v45, %v715_v21  ;;  %945 = vmatpush.bf16.msra.mxu1 %v1711_v19 }
 0x125   : > { %v2028_v25 = vpop.eup %1792  ;;  %v772_v27 = vmul.f32 1.442695, %v754_v20  ;;  %v792_v28 = vmul.f32 1.442695, %v764_v22  ;;  %v1712_v22 = vld [vmem:[%s2095_s16 + $0x10] sm:$0xff] }
 0x126   : > { %v774_v29 = vmul.f32 1.442695, %v755_v24  ;;  %v815_v30 = vsel %vm473_vm0, %v2028_v25, 0.0  ;;  %973 = vmatpush.bf16.msra.mxu2 %v1712_v22 }
 0x127   : > { %1794 = vpow2.f32 %v772_v27  ;;  %816 = vadd.xlane.f32.xlu2 %v815_v30 }
 0x128   : > { %1796 = vpow2.f32 %v774_v29  ;;  %804 = vadd.xlane.f32.xlu0 %v803_v31 }
 0x129   : > { %1798 = vpow2.f32 %v792_v28 }
 0x12a   : > { %1800 = vpow2.f32 %v776_v32  ;;  %v745_v40 = vpop.xlane.xlu0 %744 }
 0x12b   : > { %v748_v33 = vpop.xlane.xlu1 %747  ;;  %v751_v35 = vpop.xlane.xlu2 %750  ;;  %v765_v55 = vsub.f32 %v1992_v52, %v745_v40  ;;  %v1716_v40 = vld [vmem:[%s2095_s16 + $0x30] sm:$0xff] }
 0x12c   : > { %v766_v36 = vsub.f32 %v1987_v49, %v748_v33  ;;  %v767_v34 = vsub.f32 %v1996_v54, %v751_v35  ;;  %1085 = vmatpush.bf16.msrb.mxu2 %v1716_v40 }
 0x12d   : > { %v2037_v37 = vpop.eup %1794  ;;  %v794_v52 = vmul.f32 1.442695, %v765_v55 }
 0x12e   : > { %v2040_v39 = vpop.eup %1796  ;;  %v796_v41 = vmul.f32 1.442695, %v766_v36  ;;  %v798_v43 = vmul.f32 1.442695, %v767_v34  ;;  %v806_v44 = vsel %vm473_vm0, %v2037_v37, 0.0 }
 0x12f   : > { %v2044_v45 = vpop.eup %1798  ;;  %v809_v46 = vsel %vm473_vm0, %v2040_v39, 0.0  ;;  %807 = vadd.xlane.f32.xlu1 %v806_v44 }
 0x130   : > { %1802 = vpow2.f32 %v796_v41  ;;  %810 = vadd.xlane.f32.xlu2 %v809_v46  ;;  %v836_v47 = vsel %vm473_vm0, %v2044_v45, 0.0  ;;  %v2050_v48 = vpop.eup %1800  ;;  %v1717_v41 = vld [vmem:[%s2095_s16 + $0x38] sm:$0xff] }
 0x131   : > { %1804 = vpow2.f32 %v798_v43  ;;  %837 = vadd.xlane.f32.xlu0 %v836_v47  ;;  %v812_v61 = vsel %vm473_vm0, %v2050_v48, 0.0  ;;  %1113 = vmatpush.bf16.msrb.mxu3 %v1717_v41 }
 0x132   : > { %1806 = vpow2.f32 %v782_v42 }
 0x133   : > { %v736_v49 = vpop.xlane.xlu2 %735  ;;  %v733_v50 = vpop.xlane.xlu1 %732 }
 0x134   : > { %v762_v53 = vsub.f32 %v2002_v57, %v736_v49  ;;  %v761_v54 = vsub.f32 %v2004_v58, %v733_v50  ;;  %v730_v57 = vpop.xlane.xlu0 %729 }
 0x135   : > { %v760_v2 = vsub.f32 %v1990_v51, %v730_v57 }
 0x136   : > { %v2055_v56 = vpop.eup %1802  ;;  %v788_v59 = vmul.f32 1.442695, %v762_v53  ;;  %v786_v60 = vmul.f32 1.442695, %v761_v54 }
 0x137   : > { %v2059_v63 = vpop.eup %1804  ;;  %v842_v0 = vsel %vm473_vm0, %v2055_v56, 0.0  ;;  %813 = vadd.xlane.f32.xlu1 %v812_v61  ;;  %v784_v8 = vmul.f32 1.442695, %v760_v2  ;;  %v1715_v61 = vld [vmem:[%s2095_s16 + $0x28] sm:$0xff] }
 0x138   : > { %1808 = vpow2.f32 %v788_v59  ;;  %843 = vadd.xlane.f32.xlu2 %v842_v0  ;;  %v845_v58 = vsel %vm473_vm0, %v2059_v63, 0.0  ;;  %v2065_v1 = vpop.eup %1806  ;;  %1057 = vmatpush.bf16.msrb.mxu1 %v1715_v61  ;;  %v1721_v61 = vld [vmem:[%s2187_s3 + $0x18] sm:$0xff] }
 0x139   : > { %1810 = vpow2.f32 %v786_v60  ;;  %846 = vadd.xlane.f32.xlu0 %v845_v58  ;;  %v821_v4 = vsel %vm473_vm0, %v2065_v1, 0.0  ;;  %v1714_v60 = vld [vmem:[%s2095_s16 + $0x20] sm:$0xff] }
 0x13a   : > { %1812 = vpow2.f32 %v794_v52 }
 0x13b   : > { %1814 = vpow2.f32 %v784_v8 }
 0x13c   : > { %v739_v10 = vpop.xlane.xlu0 %738 }
 0x13d   : > { %v763_v11 = vsub.f32 %v2012_v62, %v739_v10  ;;  %v1710_v62 = vld [vmem:[%s2095_s16] sm:$0xff]  ;;  %s360_s16 = scalar_lea.vmem %s2189_s5, %s1700_s13 }
 0x13e   : > { %v2068_v3 = vpop.eup %1808  ;;  %917 = vmatpush.bf16.msra.mxu0 %v1710_v62 }
 0x13f   : > { %v2072_v5 = vpop.eup %1810  ;;  %v830_v6 = vsel %vm473_vm0, %v2068_v3, 0.0  ;;  %822 = vadd.xlane.f32.xlu1 %v821_v4  ;;  %v790_v13 = vmul.f32 1.442695, %v763_v11 }
 0x140   : > { %v827_v7 = vsel %vm473_vm0, %v2072_v5, 0.0  ;;  %v2078_v51 = vpop.eup %1812 }
 0x141   : > { %831 = vadd.xlane.f32.xlu0 %v830_v6  ;;  %828 = vadd.xlane.f32.xlu2 %v827_v7  ;;  %v839_v12 = vsel %vm473_vm0, %v2078_v51, 0.0  ;;  %v2083_v14 = vpop.eup %1814  ;;  %1816 = vpow2.f32 %v790_v13 }
 0x142   : > { %v824_v15 = vsel %vm473_vm0, %v2083_v14, 0.0  ;;  %1029 = vmatpush.bf16.msrb.mxu0 %v1714_v60  ;;  %v1719_v60 = vld [vmem:[%s2187_s3 + $0x8] sm:$0xff] }
 0x147   : > { %840 = vadd.xlane.f32.xlu1 %v839_v12  ;;  %v2087_v17 = vpop.eup %1816 }
 0x148   : > { %v833_v18 = vsel %vm473_vm0, %v2087_v17, 0.0 }
 0x14f   : > { %825 = vadd.xlane.f32.xlu1 %v824_v15 }
 0x157   : > { %834 = vadd.xlane.f32.xlu1 %v833_v18 }
 0x18c   : > { %v802_v20 = vpop.xlane.xlu2 %801 }
 0x18d   : > { %1818 = vrcp.f32 %v802_v20 }
 0x193   : > { %v820_v21 = vpop.xlane.xlu0 %819  ;;  %v1819_v28 = vpop.eup %1818 }
 0x194   : > { %v864_v29 = vmul.f32 %v1819_v28, %v2016_v9 }
 0x196   : > { %v880_v32 = vpack.c.bf16 %v864_v29, %v864_v29 }
 0x198   : > { %v898_v34 = vunpack.c.l.b16 %v880_v32 }
 0x19a   : > { %v817_v24 = vpop.xlane.xlu2 %816 }
 0x19b   : > { %v805_v27 = vpop.xlane.xlu0 %804 }
 0x19c   : > { %1820 = vrcp.f32 %v805_v27 }
 0x1a2   : > { %v1821_v30 = vpop.eup %1820  ;;  %v808_v31 = vpop.xlane.xlu1 %807 }
 0x1a3   : > { %v865_v33 = vmul.f32 %v1821_v30, %v2025_v23  ;;  %v811_v35 = vpop.xlane.xlu2 %810  ;;  %1822 = vrcp.f32 %v808_v31 }
 0x1a4   : > { %1824 = vrcp.f32 %v811_v35  ;;  %v838_v53 = vpop.xlane.xlu0 %837 }
 0x1a5   : > { %1826 = vrcp.f32 %v817_v24  ;;  %v881_v36 = vpack.c.bf16 %v865_v33, %v865_v33 }
 0x1a7   : > { %v899_v38 = vunpack.c.l.b16 %v881_v36 }
 0x1a9   : > { %v1823_v43 = vpop.eup %1822  ;;  %v900_v44 = vpack.c.b16 %v899_v38, %v898_v34 }
 0x1aa   : > { %v1825_v46 = vpop.eup %1824  ;;  %v866_v47 = vmul.f32 %v1823_v43, %v2037_v37  ;;  %v814_v9 = vpop.xlane.xlu1 %813 }
 0x1ab   : > { %v1827_v23 = vpop.eup %1826  ;;  %v867_v42 = vmul.f32 %v1825_v46, %v2040_v39  ;;  %1619 = vmatmul.msk.bf16.vlgmr.msra.gmra.mxu0 %vm473_vm0, %v900_v44  ;;  %1828 = vrcp.f32 %v814_v9  ;;  %v844_v37 = vpop.xlane.xlu2 %843 }
 0x1ac   : > { %v882_v49 = vpack.c.bf16 %v866_v47, %v866_v47  ;;  %1830 = vrcp.f32 %v820_v21  ;;  %v869_v54 = vmul.f32 %v1827_v23, %v2028_v25  ;;  %v847_v8 = vpop.xlane.xlu0 %846 }
 0x1ad   : > { %v883_v50 = vpack.c.bf16 %v867_v42, %v867_v42 }
 0x1ae   : > { %v926_v55 = vunpack.c.l.b16 %v882_v49  ;;  %v885_v58 = vpack.c.bf16 %v869_v54, %v869_v54 }
 0x1af   : > { %v927_v59 = vunpack.c.l.b16 %v883_v50 }
 0x1b0   : > { %v955_v6 = vunpack.c.l.b16 %v885_v58 }
 0x1b1   : > { %v1829_v0 = vpop.eup %1828  ;;  %v928_v57 = vpack.c.b16 %v927_v59, %v926_v55 }
 0x1b2   : > { %v868_v52 = vmul.f32 %v1829_v0, %v2050_v48  ;;  %v823_v39 = vpop.xlane.xlu1 %822  ;;  %v1831_v2 = vpop.eup %1830 }
 0x1b3   : > { %1624 = vmatmul.msk.bf16.vlgmr.msra.gmra.mxu1 %vm473_vm0, %v928_v57  ;;  %1832 = vrcp.f32 %v823_v39  ;;  %v870_v25 = vmul.f32 %v1831_v2, %v2020_v16  ;;  %v1724_v2 = vld [vmem:[%s2187_s3 + $0x30] sm:$0xff] }
 0x1b4   : > { %v884_v4 = vpack.c.bf16 %v868_v52, %v868_v52  ;;  %1834 = vrcp.f32 %v838_v53  ;;  %v829_v48 = vpop.xlane.xlu2 %828  ;;  %v832_v28 = vpop.xlane.xlu0 %831  ;;  %1201 = vmatpush.bf16.msra.mxu1 %v1719_v60 }
 0x1b5   : > { %1836 = vrcp.f32 %v844_v37  ;;  %v886_v12 = vpack.c.bf16 %v870_v25, %v870_v25 }
 0x1b6   : > { %v954_v7 = vunpack.c.l.b16 %v884_v4  ;;  %1838 = vrcp.f32 %v847_v8 }
 0x1b7   : > { %v982_v19 = vunpack.c.l.b16 %v886_v12 }
 0x1b8   : > { %v956_v10 = vpack.c.b16 %v955_v6, %v954_v7  ;;  %v1722_v6 = vld [vmem:[%s2187_s3 + $0x20] sm:$0xff]  ;;  %v1725_v7 = vld [vmem:[%s2187_s3 + $0x38] sm:$0xff] }
 0x1b9   : > { %v1833_v11 = vpop.eup %1832 }
 0x1ba   : > { %v871_v13 = vmul.f32 %v1833_v11, %v2065_v1  ;;  %1629 = vmatmul.msk.bf16.vlgmr.msra.gmra.mxu2 %vm473_vm0, %v956_v10  ;;  %v841_v15 = vpop.xlane.xlu1 %840  ;;  %v1835_v18 = vpop.eup %1834 }
 0x1bb   : > { %1840 = vrcp.f32 %v841_v15  ;;  %v876_v16 = vmul.f32 %v1835_v18, %v2044_v45  ;;  %v1837_v21 = vpop.eup %1836 }
 0x1bc   : > { %v887_v62 = vpack.c.bf16 %v871_v13, %v871_v13  ;;  %1842 = vrcp.f32 %v829_v48  ;;  %v1839_v22 = vpop.eup %1838  ;;  %v878_v31 = vmul.f32 %v1837_v21, %v2055_v56  ;;  %v1723_v48 = vld [vmem:[%s2187_s3 + $0x28] sm:$0xff] }
 0x1bd   : > { %v892_v27 = vpack.c.bf16 %v876_v16, %v876_v16  ;;  %v879_v32 = vmul.f32 %v1839_v22, %v2059_v63 }
 0x1be   : > { %v983_v20 = vunpack.c.l.b16 %v887_v62  ;;  %v894_v34 = vpack.c.bf16 %v878_v31, %v878_v31 }
 0x1bf   : > { %v1066_v45 = vunpack.c.l.b16 %v892_v27  ;;  %v895_v38 = vpack.c.bf16 %v879_v32, %v879_v32 }
 0x1c0   : > { %v984_v24 = vpack.c.b16 %v983_v20, %v982_v19  ;;  %v1094_v56 = vunpack.c.l.b16 %v894_v34 }
 0x1c1   : > { %v1841_v26 = vpop.eup %1840  ;;  %v1095_v63 = vunpack.c.l.b16 %v895_v38 }
 0x1c2   : > { %v877_v29 = vmul.f32 %v1841_v26, %v2078_v51  ;;  %1634 = vmatmul.msk.bf16.vlgmr.msra.gmra.mxu3 %vm473_vm0, %v984_v24  ;;  %v826_v1 = vpop.xlane.xlu1 %825  ;;  %v1843_v30 = vpop.eup %1842 }
 0x1c3   : > { %1844 = vrcp.f32 %v826_v1  ;;  %v873_v35 = vmul.f32 %v1843_v30, %v2072_v5  ;;  %v1096_v42 = vpack.c.b16 %v1095_v63, %v1094_v56  ;;  %1257 = vmatpush.bf16.msra.mxu3 %v1721_v61 }
 0x1c4   : > { %v893_v33 = vpack.c.bf16 %v877_v29, %v877_v29  ;;  %1846 = vrcp.f32 %v832_v28 }
 0x1c5   : > { %v889_v51 = vpack.c.bf16 %v873_v35, %v873_v35 }
 0x1c6   : > { %v1067_v36 = vunpack.c.l.b16 %v893_v33 }
 0x1c7   : > { %v1011_v23 = vunpack.c.l.b16 %v889_v51 }
 0x1c8   : > { %v1068_v40 = vpack.c.b16 %v1067_v36, %v1066_v45 }
 0x1c9   : > { %v1845_v41 = vpop.eup %1844 }
 0x1ca   : > { %v872_v43 = vmul.f32 %v1845_v41, %v2083_v14  ;;  %1649 = vmatmul.msk.bf16.vlgmr.msrb.gmra.mxu2 %vm473_vm0, %v1068_v40  ;;  %v835_v44 = vpop.xlane.xlu1 %834  ;;  %v1847_v46 = vpop.eup %1846 }
 0x1cb   : > { %1848 = vrcp.f32 %v835_v44  ;;  %v874_v9 = vmul.f32 %v1847_v46, %v2068_v3  ;;  %v1718_v3 = vld [vmem:[%s2187_s3] sm:$0xff] }
 0x1cc   : > { %v888_v47 = vpack.c.bf16 %v872_v43, %v872_v43  ;;  %1173 = vmatpush.bf16.msra.mxu0 %v1718_v3 }
 0x1cd   : > { %v890_v53 = vpack.c.bf16 %v874_v9, %v874_v9 }
 0x1ce   : > { %v1010_v5 = vunpack.c.l.b16 %v888_v47 }
 0x1cf   : > { %v1038_v55 = vunpack.c.l.b16 %v890_v53 }
 0x1d0   : > { %v1012_v49 = vpack.c.b16 %v1011_v23, %v1010_v5 }
 0x1d1   : > { %v1849_v50 = vpop.eup %1848 }
 0x1d2   : > { %v875_v54 = vmul.f32 %v1849_v50, %v2087_v17  ;;  %1639 = vmatmul.msk.bf16.vlgmr.msrb.gmra.mxu0 %vm473_vm0, %v1012_v49  ;;  %1654 = vmatmul.msk.bf16.vlgmr.msrb.gmra.mxu3 %vm473_vm0, %v1096_v42  ;;  %v1720_v17 = vld [vmem:[%s2187_s3 + $0x10] sm:$0xff] }
 0x1d3   : > { %1229 = vmatpush.bf16.msra.mxu2 %v1720_v17  ;;  %1285 = vmatpush.bf16.msrb.mxu0 %v1722_v6 }
 0x1d4   : > { %v891_v14 = vpack.c.bf16 %v875_v54, %v875_v54  ;;  %1369 = vmatpush.bf16.msrb.mxu3 %v1725_v7 }
 0x1d6   : > { %v1039_v59 = vunpack.c.l.b16 %v891_v14 }
 0x1d7   : > { %1341 = vmatpush.bf16.msrb.mxu2 %v1724_v2 }
 0x1d8   : > { %v1040_v37 = vpack.c.b16 %v1039_v59, %v1038_v55 }
 0x1da   : > { %1644 = vmatmul.msk.bf16.vlgmr.msrb.gmra.mxu1 %vm473_vm0, %v1040_v37 }
 0x1db   : > { %1313 = vmatpush.bf16.msrb.mxu1 %v1723_v48 }
 0x228   : > { %v919_v0 = vpop.f32.mrf.mxu0 }
 0x229   : > { %v1120_v57 = vpack.c.bf16 %v919_v0, %v919_v0 }
 0x22b   : > { %v1154_v4 = vunpack.c.l.b16 %v1120_v57 }
 0x230   : > { %v921_v58 = vpop.f32.mrf.mxu0  ;;  %v947_v52 = vpop.f32.mrf.mxu1 }
 0x231   : > { %v1121_v39 = vpack.c.bf16 %v921_v58, %v921_v58  ;;  %v1122_v10 = vpack.c.bf16 %v947_v52, %v947_v52 }
 0x233   : > { %v1155_v25 = vunpack.c.l.b16 %v1121_v39  ;;  %v1182_v13 = vunpack.c.l.b16 %v1122_v10 }
 0x235   : > { %v1156_v8 = vpack.c.b16 %v1155_v25, %v1154_v4 }
 0x237   : > { %1659 = vmatmul.msk.bf16.vlgmr.msra.gmra.mxu0 %vm473_vm0, %v1156_v8 }
 0x238   : > { %v949_v11 = vpop.f32.mrf.mxu1 }
 0x239   : > { %v1123_v12 = vpack.c.bf16 %v949_v11, %v949_v11 }
 0x23b   : > { %v1183_v15 = vunpack.c.l.b16 %v1123_v12  ;;  %v1759_v12 = vld [vmem:[%s360_s16] sm:$0xff]  }
 0x23d   : > { %v1184_v18 = vpack.c.b16 %v1183_v15, %v1182_v13  ;;  %v975_v62 = vpop.f32.mrf.mxu2  ;;  %v1783_v15 = vld [vmem:[%s2188_s4] ss:$0 sm:$0xff] }
 0x23e   : > { %v1124_v19 = vpack.c.bf16 %v975_v62, %v975_v62 }
 0x23f   : > { %1664 = vmatmul.msk.bf16.vlgmr.msra.gmra.mxu1 %vm473_vm0, %v1184_v18 }
 0x240   : > { %v1210_v22 = vunpack.c.l.b16 %v1124_v19 }
 0x245   : > { %v977_v16 = vpop.f32.mrf.mxu2  ;;  %v1003_v20 = vpop.f32.mrf.mxu3 }
 0x246   : > { %v1125_v21 = vpack.c.bf16 %v977_v16, %v977_v16  ;;  %v1126_v27 = vpack.c.bf16 %v1003_v20, %v1003_v20  ;;  %v1760_v20 = vunpack.c.l.bf16 %v1759_v12 }
 0x248   : > { %v1211_v24 = vunpack.c.l.b16 %v1125_v21  ;;  %v1238_v31 = vunpack.c.l.b16 %v1126_v27 }
 0x24a   : > { %v1212_v26 = vpack.c.b16 %v1211_v24, %v1210_v22 }
 0x24c   : > { %1669 = vmatmul.msk.bf16.vlgmr.msra.gmra.mxu2 %vm473_vm0, %v1212_v26 }
 0x24d   : > { %v1005_v28 = vpop.f32.mrf.mxu3  ;;  %v1087_v29 = vpop.f32.mrf.mxu2 }
 0x24e   : > { %v1127_v1 = vpack.c.bf16 %v1005_v28, %v1005_v28  ;;  %v1132_v45 = vpack.c.bf16 %v1087_v29, %v1087_v29 }
 0x24f   : > { %v1031_v30 = vpop.f32.mrf.mxu0 }
 0x250   : > { %v1239_v32 = vunpack.c.l.b16 %v1127_v1  ;;  %v1128_v34 = vpack.c.bf16 %v1031_v30, %v1031_v30  ;;  %v1322_v51 = vunpack.c.l.b16 %v1132_v45 }
 0x252   : > { %v1240_v33 = vpack.c.b16 %v1239_v32, %v1238_v31  ;;  %v1266_v46 = vunpack.c.l.b16 %v1128_v34  ;;  %v1761_v32 = vunpack.c.h.bf16 %v1759_v12 }
 0x254   : > { %1674 = vmatmul.msk.bf16.vlgmr.msra.gmra.mxu3 %vm473_vm0, %v1240_v33 }
 0x255   : > { %v1089_v35 = vpop.f32.mrf.mxu2  ;;  %v1115_v36 = vpop.f32.mrf.mxu3 }
 0x256   : > { %v1133_v38 = vpack.c.bf16 %v1089_v35, %v1089_v35  ;;  %v1134_v47 = vpack.c.bf16 %v1115_v36, %v1115_v36  ;;  %v1864_v36 = vmov 128.0  }
 0x257   : > { %v1033_v40 = vpop.f32.mrf.mxu0  ;;  %v1059_v41 = vpop.f32.mrf.mxu1  ;;  %1850 = vrcp.f32 %v1864_v36 }
 0x258   : > { %v1323_v43 = vunpack.c.l.b16 %v1133_v38  ;;  %v1129_v44 = vpack.c.bf16 %v1033_v40, %v1033_v40  ;;  %v1130_v5 = vpack.c.bf16 %v1059_v41, %v1059_v41  ;;  %v1350_v50 = vunpack.c.l.b16 %v1134_v47 }
 0x25a   : > { %v1324_v56 = vpack.c.b16 %v1323_v43, %v1322_v51  ;;  %v1267_v63 = vunpack.c.l.b16 %v1129_v44  ;;  %v1294_v14 = vunpack.c.l.b16 %v1130_v5 }
 0x25c   : > { %v1268_v9 = vpack.c.b16 %v1267_v63, %v1266_v46  ;;  %1689 = vmatmul.msk.bf16.vlgmr.msrb.gmra.mxu2 %vm473_vm0, %v1324_v56 }
 0x25d   : > { %v1117_v23 = vpop.f32.mrf.mxu3  ;;  %v1851_v34 = vpop.eup %1850 }
 0x25e   : > { %v1135_v42 = vpack.c.bf16 %v1117_v23, %v1117_v23  ;;  %1679 = vmatmul.msk.bf16.vlgmr.msrb.gmra.mxu0 %vm473_vm0, %v1268_v9  ;;  %v1407_v38 = vmul.f32 128.0, %v1851_v34  ;;  %vm1411_vm1 = vweird.f32 %v1851_v34 }
 0x25f   : > { %v1061_v49 = vpop.f32.mrf.mxu1 }
 0x260   : > { %v1351_v53 = vunpack.c.l.b16 %v1135_v42  ;;  %v1131_v54 = vpack.c.bf16 %v1061_v49, %v1061_v49  ;;  %v1408_v40 = vsub.f32 1.0, %v1407_v38 }
 0x262   : > { %v1352_v55 = vpack.c.b16 %v1351_v53, %v1350_v50  ;;  %v1295_v59 = vunpack.c.l.b16 %v1131_v54  ;;  %v1409_v41 = vmul.f32 %v1851_v34, %v1408_v40 }
 0x264   : > { %v1296_v37 = vpack.c.b16 %v1295_v59, %v1294_v14  ;;  %1694 = vmatmul.msk.bf16.vlgmr.msrb.gmra.mxu3 %vm473_vm0, %v1352_v55  ;;  %v1410_v51 = vadd.f32 %v1851_v34, %v1409_v41 }
 0x266   : > { %1684 = vmatmul.msk.bf16.vlgmr.msrb.gmra.mxu1 %vm473_vm0, %v1296_v37  ;;  %v1412_v43 = vsel %vm1411_vm1, %v1851_v34, %v1410_v51 }
 0x2b4   : > { %v1175_v3 = vpop.f32.mrf.mxu0 }
 0x2bc   : > { %v1203_v17 = vpop.f32.mrf.mxu1  ;;  %v1177_v61 = vpop.f32.mrf.mxu0 }
 0x2bd   : > { %v1376_v52 = vadd.f32 %v1203_v17, %v1175_v3 }
 0x2c4   : > { %v1205_v58 = vpop.f32.mrf.mxu1 }
 0x2c5   : > { %v1383_v10 = vadd.f32 %v1205_v58, %v1177_v61 }
 0x2cf   : > { %v1231_v60 = vpop.f32.mrf.mxu2 }
 0x2d0   : > { %v1377_v2 = vadd.f32 %v1376_v52, %v1231_v60 }
 0x2d7   : > { %v1259_v0 = vpop.f32.mrf.mxu3  ;;  %v1233_v57 = vpop.f32.mrf.mxu2 }
 0x2d8   : > { %v1378_v25 = vadd.f32 %v1377_v2, %v1259_v0  ;;  %v1384_v48 = vadd.f32 %v1383_v10, %v1233_v57  ;;  %v1785_v10 = vld [vmem:[%s2191_s7] ss:$0 sm:$0xff] }
 0x2db   : > { %v1287_v39 = vpop.f32.mrf.mxu0 }
 0x2dc   : > { %v1379_v6 = vadd.f32 %v1378_v25, %v1287_v39 }
 0x2df   : > { %v1261_v4 = vpop.f32.mrf.mxu3  ;;  %v1343_v7 = vpop.f32.mrf.mxu2 }
 0x2e0   : > { %v1385_v19 = vadd.f32 %v1384_v48, %v1261_v4  ;;  %v1784_v4 = vld [vmem:[%s2190_s6] ss:$0 sm:$0xff] }
 0x2e3   : > { %v1315_v8 = vpop.f32.mrf.mxu1  ;;  %v1289_v18 = vpop.f32.mrf.mxu0 }
 0x2e4   : > { %v1380_v11 = vadd.f32 %v1379_v6, %v1315_v8  ;;  %v1386_v21 = vadd.f32 %v1385_v19, %v1289_v18 }
 0x2e6   : > { %v1381_v13 = vadd.f32 %v1380_v11, %v1343_v7 }
 0x2e7   : > { %v1371_v62 = vpop.f32.mrf.mxu3  ;;  %v1345_v28 = vpop.f32.mrf.mxu2 }
 0x2e8   : > { %v1382_v16 = vadd.f32 %v1381_v13, %v1371_v62 }
 0x2ea   : > { %v1394_v22 = vadd.f32 %v1783_v15, %v1382_v16 }
 0x2eb   : > { %v1317_v24 = vpop.f32.mrf.mxu1 }
 0x2ec   : > { %v1387_v26 = vadd.f32 %v1386_v21, %v1317_v24  ;;  %v1400_v27 = vadd.f32 %v1760_v20, %v1394_v22 }
 0x2ee   : > { %1402 = vadd.xlane.f32.xlu2 %v1400_v27  ;;  %v1388_v29 = vadd.f32 %v1387_v26, %v1345_v28  ;;  %v1415_v1 = vmul.f32 %v1400_v27, %v1400_v27 }
 0x2ef   : > { %v1373_v30 = vpop.f32.mrf.mxu3 }
 0x2f0   : > { %v1389_v31 = vadd.f32 %v1388_v29, %v1373_v30  ;;  %1417 = vadd.xlane.f32.xlu1 %v1415_v1 }
 0x2f2   : > { %v1395_v33 = vadd.f32 %v1783_v15, %v1389_v31 }
 0x2f4   : > { %v1401_v45 = vadd.f32 %v1761_v32, %v1395_v33 }
 0x2f6   : > { %1404 = vadd.xlane.f32.xlu0 %v1401_v45  ;;  %v1416_v35 = vmul.f32 %v1401_v45, %v1401_v45 }
 0x2f8   : > { %1419 = vadd.xlane.f32.xlu2 %v1416_v35 }
 0x361   : > { %v1403_v44 = vpop.xlane.xlu2 %1402 }
 0x362   : > { %v1413_v46 = vmul.f32 %v1412_v43, %v1403_v44 }
 0x363   : > { %v1418_v56 = vpop.xlane.xlu1 %1417 }
 0x364   : > { %v1423_v63 = vmul.f32 %v1413_v46, %v1413_v46  ;;  %v1421_v47 = vmul.f32 %v1418_v56, %v1412_v43  ;;  %v1427_v39 = vsub.f32 %v1400_v27, %v1413_v46 }
 0x366   : > { %v1425_v9 = vsub.f32 %v1421_v47, %v1423_v63 }
 0x368   : > { %v1429_v23 = vadd.f32 1e-05, %v1425_v9 }
 0x369   : > { %v1405_v5 = vpop.xlane.xlu0 %1404 }
 0x36a   : > { %1852 = vrsqrt.f32 %v1429_v23  ;;  %v1414_v42 = vmul.f32 %v1412_v43, %v1405_v5  ;;  %vm1437_vm3 = vweird.f32 %v1429_v23 }
 0x36b   : > { %v1420_v49 = vpop.xlane.xlu2 %1419 }
 0x36c   : > { %v1424_v50 = vmul.f32 %v1414_v42, %v1414_v42  ;;  %v1422_v53 = vmul.f32 %v1420_v49, %v1412_v43  ;;  %v1428_v7 = vsub.f32 %v1401_v45, %v1414_v42 }
 0x36e   : > { %v1426_v54 = vsub.f32 %v1422_v53, %v1424_v50 }
 0x370   : > { %v1853_v14 = vpop.eup %1852  ;;  %v1430_v55 = vadd.f32 1e-05, %v1426_v54 }
 0x371   : > { %v1432_v59 = vmul.f32 %v1853_v14, %v1429_v23  ;;  %vm1438_vm2 = vweird.f32 %v1853_v14 }
 0x372   : > { %1854 = vrsqrt.f32 %v1430_v55  ;;  %vm1439_vm4 = vmor %vm1437_vm3, %vm1438_vm2  ;;  %vm1447_vm6 = vweird.f32 %v1430_v55 }
 0x373   : > { %v1433_v37 = vmul.f32 %v1853_v14, %v1432_v59 }
 0x375   : > { %v1434_v3 = vmul.f32 0.5, %v1433_v37 }
 0x377   : > { %v1435_v60 = vsub.f32 1.5, %v1434_v3 }
 0x378   : > { %v1855_v17 = vpop.eup %1854 }
 0x379   : > { %v1436_v61 = vmul.f32 %v1853_v14, %v1435_v60  ;;  %v1442_v0 = vmul.f32 %v1855_v17, %v1430_v55  ;;  %vm1448_vm5 = vweird.f32 %v1855_v17 }
 0x37a   : > { %vm1449_vm7 = vmor %vm1447_vm6, %vm1448_vm5 }
 0x37b   : > { %v1443_v57 = vmul.f32 %v1855_v17, %v1442_v0  ;;  %v1440_v58 = vsel %vm1439_vm4, %v1853_v14, %v1436_v61 }
 0x37c   : > { %v1451_v25 = vmul.f32 %v1440_v58, %v1427_v39 }
 0x37d   : > { %v1444_v52 = vmul.f32 0.5, %v1443_v57 }
 0x37e   : > { %v1457_v11 = vmul.f32 %v1784_v4, %v1451_v25 }
 0x37f   : > { %v1445_v2 = vsub.f32 1.5, %v1444_v52 }
 0x380   : > { %v1463_v13 = vadd.f32 %v1785_v10, %v1457_v11 }
 0x381   : > { %v1446_v6 = vmul.f32 %v1855_v17, %v1445_v2 }
 0x383   : > { %v1450_v8 = vsel %vm1449_vm7, %v1855_v17, %v1446_v6 }
 0x384   : > { %v1452_v12 = vmul.f32 %v1450_v8, %v1428_v7 }
 0x386   : > { %v1458_v48 = vmul.f32 %v1784_v4, %v1452_v12 }
 0x388   : > { %v1464_v15 = vadd.f32 %v1785_v10, %v1458_v48 }
 0x38a   : > { %v1765_v18 = vpack.c.bf16 %v1464_v15, %v1463_v13 }
 0x38c   : > { %1766 = vst [vmem:[%s365_s25] sm:$0xff] %v1765_v18  }
 0x38d PF: > { %s18_s27 = sadd.s32 1, %s1862_s27  }
 0x38e   : > { %p15_p4 = scmp.ge.s32.totalorder %s18_s27, 4  }
 0x390   :  { %17 = sbr.rel (!%p15_p4) target bundleno = 1 (0x1), region = 91 }

// kernel: simple_vit_forward.29
= control target key start
LH: loop header
LB: loop body
LE: loop exit
PB: predicated region body
PF: predicated region fallthrough
CT: control target
= control target key end

     0   :  { %s661_s12 = smov 0   ;;  %s663_s13 = smov 0   ;;  %s800_s0 = inlined_call_operand.vmem [shape: bf16[32,128], index: 0, kind: input, shape index: {}]   ;;  %s801_s1 = inlined_call_operand.vmem [shape: bf16[128,256], index: 1, kind: input, shape index: {}]   ;;  %s802_s2 = inlined_call_operand.vmem [shape: f32[1,256], index: 2, kind: input, shape index: {}]   ;;  %s803_s3 = inlined_call_operand.vmem [shape: bf16[32,256], index: 3, kind: output, shape index: {}]  }
   0x1   :  { %s665_s14 = smov 0  }
   0x2 LB: > { %s25_s15 = sadd.s32 1, %s635_s13  ;;  %p499_p0 = scmp.ge.s32.totalorder %s639_s14, 1  ;;  %s639_s14 = sphi %s665_s14, %s13_s14   ;;  %s635_s13 = sphi %s663_s13, %s805_s13   ;;  %s631_s12 = sphi %s661_s12, %s804_s12  }
   0x3   : > { %p27_p1 = scmp.ge.s32.totalorder %s25_s15, 2  ;;  %p173_p2 = scmp.lt.s32.totalorder %s639_s14, 3 }
   0x5   : > { %s807_s15 = smov (%p27_p1, %s25_s15), 0  ;;  %p174_p3 = pnand %p499_p0, %p173_p2 }
   0x6   : > { %s500_s6 = sshll.u32 (!%p174_p3), %s631_s12, 1 }
   0x7   : > { %177 = sbr.rel (%p174_p3) target bundleno = 186 (0xba), region = 32  ;;  %p212_p4 = scmp.lt.s32.totalorder (!%p174_p3), %s500_s6, 3 }
   0xc   : > { %v567_v0 = vld [vmem:[%s801_s1 + $0x70] sm:$0xf]  ;;  %v592_v1 = vld [vmem:[%s801_s1 + $0x74] sm:$0xf0]  ;;  %v591_v2 = vld [vmem:[%s801_s1 + $0x74] sm:$0xf] }
   0xd   : > { %v568_v3 = vor.u32 %v592_v1, %v567_v0  ;;  %v569_v4 = vld [vmem:[%s801_s1 + $0x78] sm:$0xf0]  ;;  %v559_v5 = vld [vmem:[%s801_s1 + $0x60] sm:$0xf]  ;;  %v590_v6 = vld [vmem:[%s801_s1 + $0x64] sm:$0xf0] }
   0xe   : > { %v572_v7 = vor.u32 %v591_v2, %v569_v4  ;;  %v589_v8 = vld [vmem:[%s801_s1 + $0x64] sm:$0xf]  ;;  %v561_v9 = vld [vmem:[%s801_s1 + $0x68] sm:$0xf0]  ;;  %v560_v10 = vor.u32 %v590_v6, %v559_v5  ;;  %v551_v12 = vld [vmem:[%s801_s1 + $0x50] sm:$0xf] }
   0xf   : > { %350 = vmatpush.bf16.msra.mxu0 %v568_v3  ;;  %v564_v11 = vor.u32 %v589_v8, %v561_v9  ;;  %v588_v13 = vld [vmem:[%s801_s1 + $0x54] sm:$0xf0]  ;;  %v587_v14 = vld [vmem:[%s801_s1 + $0x54] sm:$0xf]  ;;  %v553_v15 = vld [vmem:[%s801_s1 + $0x58] sm:$0xf0] }
  0x10   : > { %364 = vmatpush.bf16.msra.mxu1 %v572_v7  ;;  %v552_v16 = vor.u32 %v588_v13, %v551_v12  ;;  %v556_v17 = vor.u32 %v587_v14, %v553_v15  ;;  %v543_v18 = vld [vmem:[%s801_s1 + $0x40] sm:$0xf]  ;;  %v586_v19 = vld [vmem:[%s801_s1 + $0x44] sm:$0xf0]  ;;  %v585_v20 = vld [vmem:[%s801_s1 + $0x44] sm:$0xf] }
  0x11   : > { %v545_v21 = vld [vmem:[%s801_s1 + $0x48] sm:$0xf0]  ;;  %v544_v22 = vor.u32 %v586_v19, %v543_v18  ;;  %v535_v24 = vld [vmem:[%s801_s1 + $0x30] sm:$0xf]  ;;  %v584_v25 = vld [vmem:[%s801_s1 + $0x34] sm:$0xf0] }
  0x12   : > { %v548_v23 = vor.u32 %v585_v20, %v545_v21  ;;  %v583_v26 = vld [vmem:[%s801_s1 + $0x34] sm:$0xf]  ;;  %v537_v27 = vld [vmem:[%s801_s1 + $0x38] sm:$0xf0]  ;;  %v536_v28 = vor.u32 %v584_v25, %v535_v24  ;;  %v527_v30 = vld [vmem:[%s801_s1 + $0x20] sm:$0xf] }
  0x13   : > { %351 = vmatpush.bf16.msra.mxu0 %v560_v10  ;;  %v540_v29 = vor.u32 %v583_v26, %v537_v27  ;;  %v582_v31 = vld [vmem:[%s801_s1 + $0x24] sm:$0xf0]  ;;  %v581_v32 = vld [vmem:[%s801_s1 + $0x24] sm:$0xf]  ;;  %v529_v33 = vld [vmem:[%s801_s1 + $0x28] sm:$0xf0] }
  0x14   : > { %365 = vmatpush.bf16.msra.mxu1 %v564_v11  ;;  %v528_v34 = vor.u32 %v582_v31, %v527_v30  ;;  %v532_v35 = vor.u32 %v581_v32, %v529_v33  ;;  %v519_v36 = vld [vmem:[%s801_s1 + $0x10] sm:$0xf]  ;;  %v580_v37 = vld [vmem:[%s801_s1 + $0x14] sm:$0xf0]  ;;  %s809_s6 = smov (!%p212_p4, %s500_s6), 3 }
  0x15   : > { %v579_v38 = vld [vmem:[%s801_s1 + $0x14] sm:$0xf]  ;;  %v521_v39 = vld [vmem:[%s801_s1 + $0x18] sm:$0xf0]  ;;  %v520_v40 = vor.u32 %v580_v37, %v519_v36  ;;  %v511_v42 = vld [vmem:[%s801_s1] sm:$0xf] }
  0x16   : > { %v524_v41 = vor.u32 %v579_v38, %v521_v39  ;;  %v578_v43 = vld [vmem:[%s801_s1 + $0x4] sm:$0xf0]  ;;  %s501_s30 = sshll.u32 %s809_s6, 2  ;;  %v577_v44 = vld [vmem:[%s801_s1 + $0x4] sm:$0xf]  ;;  %s575_s18 = sshll.u32 %s809_s6, 3 }
  0x17   : > { %352 = vmatpush.bf16.msra.mxu0 %v552_v16  ;;  %v513_v45 = vld [vmem:[%s801_s1 + $0x8] sm:$0xf0]  ;;  %v512_v46 = vor.u32 %v578_v43, %v511_v42  ;;  %s215_s11 = scalar_lea.vmem %s800_s0, %s501_s30  ;;  %v258_v49 = vld [vmem:[%s802_s2] sm:$0x3]  ;;  %s237_s20 = scalar_lea.vmem %s803_s3, %s575_s18 }
  0x18   : > { %366 = vmatpush.bf16.msra.mxu1 %v556_v17  ;;  %v516_v47 = vor.u32 %v577_v44, %v513_v45  ;;  %v576_v48 = vld [vmem:[%s215_s11] sm:$0xff]  ;;  %v260_v50 = vperm.slane %v258_v49, 0  ;;  %v261_v51 = vperm.slane %v258_v49, 1 }
  0x1b   : > { %353 = vmatpush.bf16.msra.mxu0 %v544_v22 }
  0x1c   : > { %367 = vmatpush.bf16.msra.mxu1 %v548_v23 }
  0x1f   : > { %354 = vmatpush.bf16.msra.mxu0 %v536_v28 }
  0x20   : > { %368 = vmatpush.bf16.msra.mxu1 %v540_v29 }
  0x23   : > { %355 = vmatpush.bf16.msra.mxu0 %v528_v34 }
  0x24   : > { %369 = vmatpush.bf16.msra.mxu1 %v532_v35 }
  0x27   : > { %356 = vmatpush.bf16.msra.mxu0 %v520_v40 }
  0x28   : > { %370 = vmatpush.bf16.msra.mxu1 %v524_v41 }
  0x2b   : > { %357 = vmatpush.bf16.msra.mxu0 %v512_v46 }
  0x2c   : > { %371 = vmatpush.bf16.msra.mxu1 %v516_v47 }
  0x2e   : > { %358 = vmatmul.bf16.vlgmr.msra.gmra.mxu0 %v576_v48 }
  0x2f   : > { %372 = vmatmul.bf16.vlgmr.msra.gmra.mxu1 %v576_v48 }
  0xab   : > { %v359_v52 = vpop.f32.mrf.mxu0 }
  0xac   : > { %v360_v53 = vadd.f32 %v359_v52, %v260_v50  ;;  %v373_v54 = vpop.f32.mrf.mxu1 }
  0xad   : > { %v374_v55 = vadd.f32 %v373_v54, %v261_v51 }
  0xaf   : > { %v378_v56 = vpack.c.bf16 %v374_v55, %v360_v53 }
  0xb1   : > { %380 = vst [vmem:[%s237_s20] sm:$0xff] %v378_v56 }
  0xb3   : > { %v361_v57 = vpop.f32.mrf.mxu0 }
  0xb4   : > { %v362_v58 = vadd.f32 %v361_v57, %v260_v50  ;;  %v375_v59 = vpop.f32.mrf.mxu1 }
  0xb5   : > { %v376_v60 = vadd.f32 %v375_v59, %v261_v51 }
  0xb7   : > { %v379_v61 = vpack.c.bf16 %v376_v60, %v362_v58 }
  0xb9   : > { %381 = vst [vmem:[%s237_s20 + $0x8] sm:$0xff] %v379_v61 }
  0xba PF: > { %s13_s14 = sadd.s32 1, %s639_s14   ;;  %s804_s12 = smov %s635_s13 }
  0xbb   : > { %p10_p5 = scmp.ge.s32.totalorder %s13_s14, 4   ;;  %s805_s13 = smov %s807_s15 }
  0xbd   :  { %12 = sbr.rel (!%p10_p5) target bundleno = 2 (0x2), region = 68 }

// kernel: simple_vit_forward.26
= control target key start
LH: loop header
LB: loop body
LE: loop exit
PB: predicated region body
PF: predicated region fallthrough
CT: control target
= control target key end

     0   :  { %s583_s0 = inlined_call_operand.vmem [shape: bf16[8,128], index: 0, kind: input, shape index: {}]   ;;  %s584_s1 = inlined_call_operand.vmem [shape: bf16[128,384], index: 1, kind: input, shape index: {}]   ;;  %s585_s2 = inlined_call_operand.vmem [shape: f32[1,384], index: 2, kind: input, shape index: {}]   ;;  %s586_s3 = inlined_call_operand.vmem [shape: bf16[8,384], index: 3, kind: output, shape index: {}]  }
   0x1   :  { %v371_v0 = vld [vmem:[%s584_s1 + $0xa8] sm:$0xf]  ;;  %v405_v1 = vld [vmem:[%s584_s1 + $0xb0] sm:$0xf0]  ;;  %v404_v2 = vld [vmem:[%s584_s1 + $0xac] sm:$0xf] }
   0x2   :  { %v372_v3 = vor.u32 %v405_v1, %v371_v0  ;;  %v373_v4 = vld [vmem:[%s584_s1 + $0xb4] sm:$0xf0]  ;;  %v379_v5 = vld [vmem:[%s584_s1 + $0xb0] sm:$0xf]  ;;  %v406_v6 = vld [vmem:[%s584_s1 + $0xb8] sm:$0xf0] }
   0x3   :  { %v376_v7 = vor.u32 %v404_v2, %v373_v4  ;;  %v380_v8 = vor.u32 %v406_v6, %v379_v5  ;;  %v359_v9 = vld [vmem:[%s584_s1 + $0x90] sm:$0xf]  ;;  %v402_v10 = vld [vmem:[%s584_s1 + $0x98] sm:$0xf0]  ;;  %v401_v11 = vld [vmem:[%s584_s1 + $0x94] sm:$0xf] }
   0x4   :  { %190 = vmatpush.bf16.msra.mxu0 %v372_v3  ;;  %v360_v12 = vor.u32 %v402_v10, %v359_v9  ;;  %v361_v13 = vld [vmem:[%s584_s1 + $0x9c] sm:$0xf0]  ;;  %v367_v14 = vld [vmem:[%s584_s1 + $0x98] sm:$0xf]  ;;  %v403_v15 = vld [vmem:[%s584_s1 + $0xa0] sm:$0xf0] }
   0x5   :  { %204 = vmatpush.bf16.msra.mxu1 %v376_v7  ;;  %218 = vmatpush.bf16.msra.mxu2 %v380_v8  ;;  %v364_v16 = vor.u32 %v401_v11, %v361_v13  ;;  %v368_v17 = vor.u32 %v403_v15, %v367_v14  ;;  %v347_v18 = vld [vmem:[%s584_s1 + $0x78] sm:$0xf]  ;;  %v399_v19 = vld [vmem:[%s584_s1 + $0x80] sm:$0xf0]  ;;  %v398_v20 = vld [vmem:[%s584_s1 + $0x7c] sm:$0xf] }
   0x6   :  { %v349_v21 = vld [vmem:[%s584_s1 + $0x84] sm:$0xf0]  ;;  %v355_v22 = vld [vmem:[%s584_s1 + $0x80] sm:$0xf]  ;;  %v400_v23 = vld [vmem:[%s584_s1 + $0x88] sm:$0xf0]  ;;  %v348_v24 = vor.u32 %v399_v19, %v347_v18 }
   0x7   :  { %v352_v25 = vor.u32 %v398_v20, %v349_v21  ;;  %v356_v26 = vor.u32 %v400_v23, %v355_v22  ;;  %v335_v27 = vld [vmem:[%s584_s1 + $0x60] sm:$0xf]  ;;  %v396_v28 = vld [vmem:[%s584_s1 + $0x68] sm:$0xf0]  ;;  %v395_v29 = vld [vmem:[%s584_s1 + $0x64] sm:$0xf] }
   0x8   :  { %191 = vmatpush.bf16.msra.mxu0 %v360_v12  ;;  %v337_v30 = vld [vmem:[%s584_s1 + $0x6c] sm:$0xf0]  ;;  %v343_v31 = vld [vmem:[%s584_s1 + $0x68] sm:$0xf]  ;;  %v397_v32 = vld [vmem:[%s584_s1 + $0x70] sm:$0xf0]  ;;  %v336_v33 = vor.u32 %v396_v28, %v335_v27 }
   0x9   :  { %205 = vmatpush.bf16.msra.mxu1 %v364_v16  ;;  %219 = vmatpush.bf16.msra.mxu2 %v368_v17  ;;  %v340_v34 = vor.u32 %v395_v29, %v337_v30  ;;  %v344_v35 = vor.u32 %v397_v32, %v343_v31  ;;  %v323_v36 = vld [vmem:[%s584_s1 + $0x48] sm:$0xf]  ;;  %v393_v37 = vld [vmem:[%s584_s1 + $0x50] sm:$0xf0]  ;;  %v392_v38 = vld [vmem:[%s584_s1 + $0x4c] sm:$0xf] }
   0xa   :  { %v325_v39 = vld [vmem:[%s584_s1 + $0x54] sm:$0xf0]  ;;  %v331_v40 = vld [vmem:[%s584_s1 + $0x50] sm:$0xf]  ;;  %v394_v41 = vld [vmem:[%s584_s1 + $0x58] sm:$0xf0]  ;;  %v324_v42 = vor.u32 %v393_v37, %v323_v36 }
   0xb   :  { %v328_v43 = vor.u32 %v392_v38, %v325_v39  ;;  %v332_v44 = vor.u32 %v394_v41, %v331_v40  ;;  %v311_v45 = vld [vmem:[%s584_s1 + $0x30] sm:$0xf]  ;;  %v390_v46 = vld [vmem:[%s584_s1 + $0x38] sm:$0xf0]  ;;  %v389_v47 = vld [vmem:[%s584_s1 + $0x34] sm:$0xf] }
   0xc   :  { %192 = vmatpush.bf16.msra.mxu0 %v348_v24  ;;  %v313_v48 = vld [vmem:[%s584_s1 + $0x3c] sm:$0xf0]  ;;  %v319_v49 = vld [vmem:[%s584_s1 + $0x38] sm:$0xf]  ;;  %v391_v50 = vld [vmem:[%s584_s1 + $0x40] sm:$0xf0]  ;;  %v312_v51 = vor.u32 %v390_v46, %v311_v45 }
   0xd   :  { %206 = vmatpush.bf16.msra.mxu1 %v352_v25  ;;  %220 = vmatpush.bf16.msra.mxu2 %v356_v26  ;;  %v316_v52 = vor.u32 %v389_v47, %v313_v48  ;;  %v320_v53 = vor.u32 %v391_v50, %v319_v49  ;;  %v299_v54 = vld [vmem:[%s584_s1 + $0x18] sm:$0xf]  ;;  %v387_v55 = vld [vmem:[%s584_s1 + $0x20] sm:$0xf0]  ;;  %v386_v56 = vld [vmem:[%s584_s1 + $0x1c] sm:$0xf] }
   0xe   :  { %v301_v57 = vld [vmem:[%s584_s1 + $0x24] sm:$0xf0]  ;;  %v307_v58 = vld [vmem:[%s584_s1 + $0x20] sm:$0xf]  ;;  %v388_v59 = vld [vmem:[%s584_s1 + $0x28] sm:$0xf0]  ;;  %v300_v60 = vor.u32 %v387_v55, %v299_v54 }
   0xf   :  { %v304_v61 = vor.u32 %v386_v56, %v301_v57  ;;  %v308_v62 = vor.u32 %v388_v59, %v307_v58  ;;  %v287_v63 = vld [vmem:[%s584_s1] sm:$0xf]  ;;  %v384_v0 = vld [vmem:[%s584_s1 + $0x8] sm:$0xf0]  ;;  %v383_v1 = vld [vmem:[%s584_s1 + $0x4] sm:$0xf] }
  0x10   :  { %193 = vmatpush.bf16.msra.mxu0 %v336_v33  ;;  %v289_v2 = vld [vmem:[%s584_s1 + $0xc] sm:$0xf0]  ;;  %v295_v3 = vld [vmem:[%s584_s1 + $0x8] sm:$0xf]  ;;  %v385_v4 = vld [vmem:[%s584_s1 + $0x10] sm:$0xf0]  ;;  %v288_v5 = vor.u32 %v384_v0, %v287_v63 }
  0x11   :  { %207 = vmatpush.bf16.msra.mxu1 %v340_v34  ;;  %221 = vmatpush.bf16.msra.mxu2 %v344_v35  ;;  %v292_v6 = vor.u32 %v383_v1, %v289_v2  ;;  %v296_v7 = vor.u32 %v385_v4, %v295_v3  ;;  %v382_v8 = vld [vmem:[%s583_s0] sm:$0xff] }
  0x12   :  { %v48_v9 = vld [vmem:[%s585_s2] sm:$0x7] }
  0x13   :  { %v50_v10 = vperm.slane %v48_v9, 0  ;;  %v51_v11 = vperm.slane %v48_v9, 1  ;;  %v52_v17 = vperm.slane %v48_v9, 2 }
  0x14   :  { %194 = vmatpush.bf16.msra.mxu0 %v324_v42 }
  0x15   :  { %208 = vmatpush.bf16.msra.mxu1 %v328_v43  ;;  %222 = vmatpush.bf16.msra.mxu2 %v332_v44 }
  0x18   :  { %195 = vmatpush.bf16.msra.mxu0 %v312_v51 }
  0x19   :  { %209 = vmatpush.bf16.msra.mxu1 %v316_v52  ;;  %223 = vmatpush.bf16.msra.mxu2 %v320_v53 }
  0x1c   :  { %196 = vmatpush.bf16.msra.mxu0 %v300_v60 }
  0x1d   :  { %210 = vmatpush.bf16.msra.mxu1 %v304_v61  ;;  %224 = vmatpush.bf16.msra.mxu2 %v308_v62 }
  0x20   :  { %197 = vmatpush.bf16.msra.mxu0 %v288_v5 }
  0x21   :  { %211 = vmatpush.bf16.msra.mxu1 %v292_v6  ;;  %225 = vmatpush.bf16.msra.mxu2 %v296_v7 }
  0x23   :  { %198 = vmatmul.bf16.vlgmr.msra.gmra.mxu0 %v382_v8 }
  0x24   :  { %212 = vmatmul.bf16.vlgmr.msra.gmra.mxu1 %v382_v8  ;;  %226 = vmatmul.bf16.vlgmr.msra.gmra.mxu2 %v382_v8 }
  0xa0   :  { %v199_v12 = vpop.f32.mrf.mxu0 }
  0xa1   :  { %v200_v13 = vadd.f32 %v199_v12, %v50_v10  ;;  %v213_v14 = vpop.f32.mrf.mxu1 }
  0xa2   :  { %v214_v15 = vadd.f32 %v213_v14, %v51_v11 }
  0xa4   :  { %v232_v16 = vpack.c.bf16 %v214_v15, %v200_v13 }
  0xa6   :  { %257 = vst [vmem:[%s586_s3] sm:$0xff] %v232_v16 }
  0xa7   :  { %v227_v18 = vpop.f32.mrf.mxu2 }
  0xa8   :  { %v228_v19 = vadd.f32 %v227_v18, %v52_v17  ;;  %v201_v20 = vpop.f32.mrf.mxu0 }
  0xa9   :  { %v215_v21 = vpop.f32.mrf.mxu1 }
  0xaa   :  { %v233_v22 = vpack.c.bf16 %v228_v19, %v228_v19 }
  0xac   :  { %237 = vst [vmem:[#allocation2 + $0x8] sm:$0xf] %v233_v22 }
  0xaf   :  { %v229_v23 = vpop.f32.mrf.mxu2 }
  0xb3   :  { %v268_v24 = vld [vmem:[#allocation2 + $0x8] sm:$0xf] }
  0xb4   :  { %381 = vst [vmem:[%s586_s3 + $0x8] sm:$0xf] %v268_v24 }

// kernel: simple_vit_forward.28
= control target key start
LH: loop header
LB: loop body
LE: loop exit
PB: predicated region body
PF: predicated region fallthrough
CT: control target
= control target key end

     0   :  { %s253_s0 = inlined_call_operand.vmem [shape: bf16[8,128], index: 0, kind: input, shape index: {}]   ;;  %s254_s1 = inlined_call_operand.vmem [shape: bf16[128,128], index: 1, kind: input, shape index: {}]   ;;  %s255_s2 = inlined_call_operand.vmem [shape: f32[1,128], index: 2, kind: input, shape index: {}]   ;;  %s256_s3 = inlined_call_operand.vmem [shape: bf16[8,128], index: 3, kind: output, shape index: {}]  }
   0x1   :  { %v193_v0 = vld [vmem:[%s254_s1 + $0x38] sm:$0xff]  ;;  %v192_v1 = vld [vmem:[%s254_s1 + $0x30] sm:$0xff]  ;;  %v191_v2 = vld [vmem:[%s254_s1 + $0x28] sm:$0xff] }
   0x2   :  { %90 = vmatpush.bf16.msra.mxu0 %v193_v0  ;;  %v190_v3 = vld [vmem:[%s254_s1 + $0x20] sm:$0xff]  ;;  %v189_v4 = vld [vmem:[%s254_s1 + $0x18] sm:$0xff]  ;;  %v188_v5 = vld [vmem:[%s254_s1 + $0x10] sm:$0xff] }
   0x3   :  { %v187_v6 = vld [vmem:[%s254_s1 + $0x8] sm:$0xff]  ;;  %v186_v7 = vld [vmem:[%s254_s1] sm:$0xff] }
   0x4   :  { %v185_v8 = vld [vmem:[%s253_s0] sm:$0xff] }
   0x5   :  { %v199_v10 = vld [vmem:[%s255_s2] ss:$0 sm:$0xff] }
   0x6   :  { %91 = vmatpush.bf16.msra.mxu0 %v192_v1 }
   0xa   :  { %92 = vmatpush.bf16.msra.mxu0 %v191_v2 }
   0xe   :  { %93 = vmatpush.bf16.msra.mxu0 %v190_v3 }
  0x12   :  { %94 = vmatpush.bf16.msra.mxu0 %v189_v4 }
  0x16   :  { %95 = vmatpush.bf16.msra.mxu0 %v188_v5 }
  0x1a   :  { %96 = vmatpush.bf16.msra.mxu0 %v187_v6 }
  0x1e   :  { %97 = vmatpush.bf16.msra.mxu0 %v186_v7 }
  0x21   :  { %98 = vmatmul.bf16.vlgmr.msra.gmra.mxu0 %v185_v8 }
  0x9e   :  { %v99_v9 = vpop.f32.mrf.mxu0 }
  0x9f   :  { %v100_v12 = vadd.f32 %v199_v10, %v99_v9 }
  0xa6   :  { %v101_v11 = vpop.f32.mrf.mxu0 }
  0xa7   :  { %v102_v13 = vadd.f32 %v199_v10, %v101_v11 }
  0xa9   :  { %v197_v14 = vpack.c.bf16 %v102_v13, %v100_v12 }
  0xab   :  { %198 = vst [vmem:[#allocation2] sm:$0xff] %v197_v14  }
  0xb2   :  { %v126_v15 = vld [vmem:[#allocation2] sm:$0xf] }
  0xb3   :  { %127 = vst [vmem:[%s256_s3] sm:$0xf] %v126_v15 }

// kernel: simple_vit_forward.27
= control target key start
LH: loop header
LB: loop body
LE: loop exit
PB: predicated region body
PF: predicated region fallthrough
CT: control target
= control target key end

     0   :  { %s1387_s30 = smov 0   ;;  %s1580_s0 = inlined_call_operand.vmem [shape: bf16[2,8,4,16], index: 0, kind: input, shape index: {}]   ;;  %s1581_s1 = inlined_call_operand.vmem [shape: bf16[2,8,4,16], index: 1, kind: input, shape index: {}]   ;;  %s1582_s2 = inlined_call_operand.vmem [shape: bf16[2,8,4,16], index: 2, kind: input, shape index: {}]   ;;  %s1583_s3 = inlined_call_operand.vmem [shape: bf16[8,16,128], index: 3, kind: input, shape index: {}]   ;;  %s1584_s4 = inlined_call_operand.vmem [shape: f32[1,128], index: 4, kind: input, shape index: {}]   ;;  %s1585_s5 = inlined_call_operand.vmem [shape: bf16[2,4,128], index: 5, kind: input, shape index: {}]   ;;  %s1586_s6 = inlined_call_operand.vmem [shape: f32[1,128], index: 6, kind: input, shape index: {}]   ;;  %s1587_s7 = inlined_call_operand.vmem [shape: f32[1,128], index: 7, kind: input, shape index: {}]   ;;  %s1588_s8 = inlined_call_operand.vmem [shape: f32[4,4], index: 8, kind: input, shape index: {}]   ;;  %s1589_s9 = inlined_call_operand.vmem [shape: bf16[2,4,128], index: 9, kind: output, shape index: {}]  }
   0x1 LB: > { %s1198_s10 = sadd.s32 4294967295, %s1334_s30   ;;  %p1202_p0 = scmp.ge.s32.totalorder %s1334_s30, 1  ;;  %s1334_s30 = sphi %s1387_s30, %s19_s30  }
   0x2   : > { %p316_p1 = scmp.lt.s32.totalorder %s1334_s30, 3 }
   0x4   : > { %p317_p2 = pnand %p1202_p0, %p316_p1 }
   0x5   : > { %p365_p3 = scmp.lt.s32.totalorder (!%p317_p2), %s1198_s10, 1 }
   0x6   : > { %320 = sbr.rel (%p317_p2) target bundleno = 866 (0x362), region = 56 }
   0xb   : > { %s1591_s10 = smov (!%p365_p3, %s1198_s10), 1  ;;  %vm438_vm0 = vcmask 130048   ;;  %v437_v48 = vld [vmem:[%s1588_s8] sm:$0xf]  ;;  %vm591_vm1 = vcmask 27648   ;;  %vm692_vm2 = vcmask 1041408  }
   0xc   : > { %s1398_s11 = sshll.u32 %s1591_s10, 4  ;;  %vm688_vm3 = vcmask 31744   ;;  %vm1042_vm4 = vcmask 1043456   ;;  %s1209_s20 = sshll.u32 %s1591_s10, 1 }
   0xd   : > { %s1404_s14 = scalar_lea.vmem %s1581_s1, %s1398_s11  ;;  %s1410_s17 = scalar_lea.vmem %s1580_s0, %s1398_s11 }
   0xe   : > { %v421_v0 = vld [vmem:[%s1404_s14] sm:$0x3]  ;;  %v422_v1 = vld [vmem:[%s1404_s14 + $0x2] sm:$0x3]  ;;  %v423_v2 = vld [vmem:[%s1404_s14 + $0x4] sm:$0x3]  ;;  %s379_s22 = scalar_lea.vmem %s1582_s2, %s1398_s11  ;;  %s383_s23 = scalar_lea.vmem %s1585_s5, %s1209_s20 }
   0xf   : > { %v443_v3 = vsel %vm438_vm0, %v421_v0, 0  ;;  %v462_v4 = vsel %vm438_vm0, %v422_v1, 0  ;;  %v481_v5 = vsel %vm438_vm0, %v423_v2, 0  ;;  %v424_v6 = vld [vmem:[%s1404_s14 + $0x6] sm:$0x3]  ;;  %s387_s13 = scalar_lea.vmem %s1589_s9, %s1209_s20 }
  0x10   : > { %452 = vmatpush.bf16.xpose.msra.mxu0 %v443_v3  ;;  %471 = vmatpush.bf16.xpose.msra.mxu1 %v462_v4  ;;  %v500_v7 = vsel %vm438_vm0, %v424_v6, 0  ;;  %v389_v8 = vld [vmem:[%s1410_s17] sm:$0x3]  ;;  %v390_v9 = vld [vmem:[%s1410_s17 + $0x2] sm:$0x3] }
  0x11   : > { %490 = vmatpush.bf16.xpose.msra.mxu2 %v481_v5  ;;  %509 = vmatpush.bf16.xpose.msra.mxu3 %v500_v7  ;;  %v397_v10 = vunpack.c.l.bf16 %v389_v8  ;;  %v398_v11 = vunpack.c.l.bf16 %v390_v9  ;;  %v391_v12 = vld [vmem:[%s1410_s17 + $0x4] sm:$0x3]  ;;  %v392_v13 = vld [vmem:[%s1410_s17 + $0x6] sm:$0x3]  ;;  %v427_v14 = vld [vmem:[%s1404_s14 + $0xc] sm:$0x3] }
  0x12   : > { %v399_v15 = vunpack.c.l.bf16 %v391_v12  ;;  %v400_v16 = vunpack.c.l.bf16 %v392_v13  ;;  %v557_v17 = vsel %vm438_vm0, %v427_v14, 0  ;;  %v428_v18 = vld [vmem:[%s1404_s14 + $0xe] sm:$0x3]  ;;  %v426_v19 = vld [vmem:[%s1404_s14 + $0xa] sm:$0x3] }
  0x13   : > { %v405_v20 = vmul.f32 0.25, %v397_v10  ;;  %v406_v21 = vmul.f32 0.25, %v398_v11  ;;  %v576_v22 = vsel %vm438_vm0, %v428_v18, 0  ;;  %v538_v23 = vsel %vm438_vm0, %v426_v19, 0  ;;  %v425_v24 = vld [vmem:[%s1404_s14 + $0x8] sm:$0x3] }
  0x14   : > { %v407_v25 = vmul.f32 0.25, %v399_v15  ;;  %v408_v26 = vmul.f32 0.25, %v400_v16  ;;  %v519_v27 = vsel %vm438_vm0, %v425_v24, 0  ;;  %v394_v32 = vld [vmem:[%s1410_s17 + $0xa] sm:$0x3] }
  0x15   : > { %v413_v28 = vpack.c.bf16 %v405_v20, %v405_v20  ;;  %v414_v29 = vpack.c.bf16 %v406_v21, %v406_v21  ;;  %v393_v33 = vld [vmem:[%s1410_s17 + $0x8] sm:$0x3]  ;;  %v395_v34 = vld [vmem:[%s1410_s17 + $0xc] sm:$0x3]  ;;  %v396_v35 = vld [vmem:[%s1410_s17 + $0xe] sm:$0x3]  ;;  %v402_v36 = vunpack.c.l.bf16 %v394_v32 }
  0x16   : > { %v415_v30 = vpack.c.bf16 %v407_v25, %v407_v25  ;;  %v416_v31 = vpack.c.bf16 %v408_v26, %v408_v26  ;;  %v401_v37 = vunpack.c.l.bf16 %v393_v33  ;;  %v403_v38 = vunpack.c.l.bf16 %v395_v34 }
  0x17   : > { %1211 = vmatmul.msk.bf16.vlgmr.msra.gmra.mxu0 %vm438_vm0, %v413_v28  ;;  %1212 = vmatmul.msk.bf16.vlgmr.msra.gmra.mxu1 %vm438_vm0, %v414_v29  ;;  %v404_v39 = vunpack.c.l.bf16 %v396_v35  ;;  %v410_v40 = vmul.f32 0.25, %v402_v36 }
  0x18   : > { %547 = vmatpush.bf16.xpose.msrb.mxu1 %v538_v23  ;;  %528 = vmatpush.bf16.xpose.msrb.mxu0 %v519_v27  ;;  %v409_v41 = vmul.f32 0.25, %v401_v37  ;;  %v411_v42 = vmul.f32 0.25, %v403_v38 }
  0x19   : > { %566 = vmatpush.bf16.xpose.msrb.mxu2 %v557_v17  ;;  %585 = vmatpush.bf16.xpose.msrb.mxu3 %v576_v22  ;;  %v412_v43 = vmul.f32 0.25, %v404_v39  ;;  %v418_v44 = vpack.c.bf16 %v410_v40, %v410_v40 }
  0x1a   : > { %1213 = vmatmul.msk.bf16.vlgmr.msra.gmra.mxu2 %vm438_vm0, %v415_v30  ;;  %1214 = vmatmul.msk.bf16.vlgmr.msra.gmra.mxu3 %vm438_vm0, %v416_v31  ;;  %v417_v45 = vpack.c.bf16 %v409_v41, %v409_v41  ;;  %v419_v46 = vpack.c.bf16 %v411_v42, %v411_v42 }
  0x1b   : > { %v420_v47 = vpack.c.bf16 %v412_v43, %v412_v43 }
  0x27   : > { %1216 = vmatmul.msk.bf16.vlgmr.msrb.gmra.mxu1 %vm438_vm0, %v418_v44  ;;  %1215 = vmatmul.msk.bf16.vlgmr.msrb.gmra.mxu0 %vm438_vm0, %v417_v45 }
  0x2a   : > { %1217 = vmatmul.msk.bf16.vlgmr.msrb.gmra.mxu2 %vm438_vm0, %v419_v46  ;;  %1218 = vmatmul.msk.bf16.vlgmr.msrb.gmra.mxu3 %vm438_vm0, %v420_v47 }
  0x94   : > { %v454_v49 = vpop.f32.mrf.mxu0  ;;  %v473_v50 = vpop.f32.mrf.mxu1 }
  0x95   : > { %v455_v51 = vadd.f32 %v454_v49, %v437_v48  ;;  %v474_v53 = vadd.f32 %v473_v50, %v437_v48 }
  0x97   : > { %v592_v52 = vsel %vm591_vm1, %v455_v51, -inf  ;;  %v595_v59 = vsel %vm591_vm1, %v474_v53, -inf }
  0x98   : > { %593 = vmax.xlane.f32.xlu1 %v592_v52 }
  0x9c   : > { %v475_v57 = vpop.f32.mrf.mxu1  ;;  %v456_v58 = vpop.f32.mrf.mxu0 }
  0x9d   : > { %v492_v54 = vpop.f32.mrf.mxu2  ;;  %v511_v55 = vpop.f32.mrf.mxu3  ;;  %v429_v57 = vld [vmem:[%s379_s22] sm:$0x3] }
  0x9e   : > { %v493_v56 = vadd.f32 %v492_v54, %v437_v48  ;;  %v512_v61 = vadd.f32 %v511_v55, %v437_v48  ;;  %v694_v58 = vsel %vm692_vm2, %v429_v57, 0 }
  0x9f   : > { %703 = vmatpush.bf16.msra.mxu0 %v694_v58 }
  0xa0   : > { %v598_v60 = vsel %vm591_vm1, %v493_v56, -inf  ;;  %596 = vmax.xlane.f32.xlu1 %v595_v59  ;;  %v601_v1 = vsel %vm591_vm1, %v512_v61, -inf  ;;  %v431_v59 = vld [vmem:[%s379_s22 + $0x4] sm:$0x3] }
  0xa1   : > { %599 = vmax.xlane.f32.xlu0 %v598_v60  ;;  %v732_v60 = vsel %vm692_vm2, %v431_v59, 0 }
  0xa2   : > { %741 = vmatpush.bf16.msra.mxu2 %v732_v60 }
  0xa4   : > { %v549_v0 = vpop.f32.mrf.mxu1  ;;  %v530_v2 = vpop.f32.mrf.mxu0 }
  0xa5   : > { %v494_v62 = vpop.f32.mrf.mxu2  ;;  %v513_v63 = vpop.f32.mrf.mxu3  ;;  %v550_v3 = vadd.f32 %v549_v0, %v437_v48  ;;  %v531_v5 = vadd.f32 %v530_v2, %v437_v48  ;;  %v433_v2 = vld [vmem:[%s379_s22 + $0x8] sm:$0x3] }
  0xa6   : > { %v430_v63 = vld [vmem:[%s379_s22 + $0x2] sm:$0x3] }
  0xa7   : > { %v607_v4 = vsel %vm591_vm1, %v550_v3, -inf  ;;  %v604_v9 = vsel %vm591_vm1, %v531_v5, -inf  ;;  %v713_v0 = vsel %vm692_vm2, %v430_v63, 0 }
  0xa8   : > { %608 = vmax.xlane.f32.xlu1 %v607_v4  ;;  %722 = vmatpush.bf16.msra.mxu1 %v713_v0 }
  0xa9   : > { %602 = vmax.xlane.f32.xlu0 %v601_v1  ;;  %v435_v1 = vld [vmem:[%s379_s22 + $0xc] sm:$0x3] }
  0xaa   : > { %v808_v4 = vsel %vm692_vm2, %v435_v1, 0 }
  0xab   : > { %817 = vmatpush.bf16.msrb.mxu2 %v808_v4 }
  0xac   : > { %v532_v10 = vpop.f32.mrf.mxu0  ;;  %v551_v11 = vpop.f32.mrf.mxu1 }
  0xad   : > { %v568_v6 = vpop.f32.mrf.mxu2  ;;  %v587_v7 = vpop.f32.mrf.mxu3  ;;  %v434_v10 = vld [vmem:[%s379_s22 + $0xa] sm:$0x3] }
  0xae   : > { %v569_v8 = vadd.f32 %v568_v6, %v437_v48  ;;  %v588_v13 = vadd.f32 %v587_v7, %v437_v48  ;;  %v436_v6 = vld [vmem:[%s379_s22 + $0xe] sm:$0x3] }
  0xaf   : > { %v827_v7 = vsel %vm692_vm2, %v436_v6, 0 }
  0xb0   : > { %v610_v12 = vsel %vm591_vm1, %v569_v8, -inf  ;;  %v613_v16 = vsel %vm591_vm1, %v588_v13, -inf }
  0xb1   : > { %611 = vmax.xlane.f32.xlu2 %v610_v12  ;;  %605 = vmax.xlane.f32.xlu0 %v604_v9  ;;  %v789_v12 = vsel %vm692_vm2, %v434_v10, 0 }
  0xb2   : > { %798 = vmatpush.bf16.msrb.mxu1 %v789_v12 }
  0xb5   : > { %v570_v14 = vpop.f32.mrf.mxu2  ;;  %v589_v15 = vpop.f32.mrf.mxu3 }
  0xb9   : > { %614 = vmax.xlane.f32.xlu2 %v613_v16 }
 0x10b   : > { %v594_v17 = vpop.xlane.xlu1 %593 }
 0x10c   : > { %v616_v18 = vsub.f32 %v455_v51, %v594_v17 }
 0x10e   : > { %v624_v19 = vmul.f32 1.442695, %v616_v18 }
 0x110   : > { %1292 = vpow2.f32 %v624_v19 }
 0x113   : > { %v597_v22 = vpop.xlane.xlu1 %596 }
 0x114   : > { %v600_v20 = vpop.xlane.xlu0 %599  ;;  %v617_v24 = vsub.f32 %v474_v53, %v597_v22 }
 0x115   : > { %v618_v21 = vsub.f32 %v493_v56, %v600_v20 }
 0x116   : > { %v1455_v25 = vpop.eup %1292  ;;  %v626_v27 = vmul.f32 1.442695, %v617_v24 }
 0x117   : > { %v628_v23 = vmul.f32 1.442695, %v618_v21  ;;  %v640_v26 = vsel %vm591_vm1, %v1455_v25, 0.0 }
 0x118   : > { %641 = vadd.xlane.f32.xlu1 %v640_v26 }
 0x119   : > { %1294 = vpow2.f32 %v628_v23 }
 0x11a   : > { %1296 = vpow2.f32 %v626_v27 }
 0x11b   : > { %v609_v33 = vpop.xlane.xlu1 %608 }
 0x11c   : > { %v603_v28 = vpop.xlane.xlu0 %602  ;;  %v621_v40 = vsub.f32 %v550_v3, %v609_v33 }
 0x11d   : > { %v619_v29 = vsub.f32 %v512_v61, %v603_v28  ;;  %v432_v61 = vld [vmem:[%s379_s22 + $0x6] sm:$0x3] }
 0x11e   : > { %v634_v45 = vmul.f32 1.442695, %v621_v40  ;;  %v751_v62 = vsel %vm692_vm2, %v432_v61, 0 }
 0x11f   : > { %v1459_v30 = vpop.eup %1294  ;;  %v630_v31 = vmul.f32 1.442695, %v619_v29  ;;  %760 = vmatpush.bf16.msra.mxu3 %v751_v62 }
 0x120   : > { %v646_v32 = vsel %vm591_vm1, %v1459_v30, 0.0  ;;  %v1463_v36 = vpop.eup %1296 }
 0x121   : > { %1298 = vpow2.f32 %v630_v31  ;;  %647 = vadd.xlane.f32.xlu2 %v646_v32  ;;  %v643_v44 = vsel %vm591_vm1, %v1463_v36, 0.0 }
 0x123   : > { %836 = vmatpush.bf16.msrb.mxu3 %v827_v7 }
 0x124   : > { %v612_v34 = vpop.xlane.xlu2 %611  ;;  %v606_v35 = vpop.xlane.xlu0 %605 }
 0x125   : > { %v622_v37 = vsub.f32 %v569_v8, %v612_v34  ;;  %v620_v38 = vsub.f32 %v531_v5, %v606_v35  ;;  %v770_v5 = vsel %vm692_vm2, %v433_v2, 0 }
 0x126   : > { %779 = vmatpush.bf16.msrb.mxu0 %v770_v5 }
 0x127   : > { %v1465_v39 = vpop.eup %1298  ;;  %v636_v41 = vmul.f32 1.442695, %v622_v37  ;;  %v632_v42 = vmul.f32 1.442695, %v620_v38 }
 0x128   : > { %v649_v43 = vsel %vm591_vm1, %v1465_v39, 0.0 }
 0x129   : > { %1300 = vpow2.f32 %v636_v41  ;;  %650 = vadd.xlane.f32.xlu0 %v649_v43  ;;  %644 = vadd.xlane.f32.xlu2 %v643_v44  ;;  %v1272_v41 = vld [vmem:[%s1583_s3] sm:$0xff]  ;;  %v1275_v43 = vld [vmem:[%s1583_s3 + $0x18] sm:$0xff]  ;;  %v1273_v44 = vld [vmem:[%s1583_s3 + $0x8] sm:$0xff] }
 0x12a   : > { %1302 = vpow2.f32 %v632_v42  ;;  %v1274_v42 = vld [vmem:[%s1583_s3 + $0x10] sm:$0xff] }
 0x12b   : > { %1304 = vpow2.f32 %v634_v45  ;;  %v1278_v45 = vld [vmem:[%s1583_s3 + $0x30] sm:$0xff] }
 0x12c   : > { %v615_v46 = vpop.xlane.xlu2 %614 }
 0x12d   : > { %v623_v47 = vsub.f32 %v588_v13, %v615_v46  ;;  %v1276_v46 = vld [vmem:[%s1583_s3 + $0x20] sm:$0xff] }
 0x12f   : > { %v1471_v48 = vpop.eup %1300  ;;  %v638_v49 = vmul.f32 1.442695, %v623_v47  ;;  %v1279_v47 = vld [vmem:[%s1583_s3 + $0x38] sm:$0xff] }
 0x130   : > { %v1473_v50 = vpop.eup %1302  ;;  %v658_v51 = vsel %vm591_vm1, %v1471_v48, 0.0 }
 0x131   : > { %1306 = vpow2.f32 %v638_v49  ;;  %659 = vadd.xlane.f32.xlu0 %v658_v51  ;;  %v652_v52 = vsel %vm591_vm1, %v1473_v50, 0.0  ;;  %v1479_v53 = vpop.eup %1304 }
 0x132   : > { %653 = vadd.xlane.f32.xlu2 %v652_v52  ;;  %v655_v56 = vsel %vm591_vm1, %v1479_v53, 0.0 }
 0x137   : > { %v1481_v54 = vpop.eup %1306 }
 0x138   : > { %v661_v55 = vsel %vm591_vm1, %v1481_v54, 0.0 }
 0x139   : > { %662 = vadd.xlane.f32.xlu1 %v661_v55  ;;  %656 = vadd.xlane.f32.xlu0 %v655_v56 }
 0x18b   : > { %v642_v3 = vpop.xlane.xlu1 %641 }
 0x18c   : > { %1308 = vrcp.f32 %v642_v3 }
 0x192   : > { %v1309_v8 = vpop.eup %1308 }
 0x193   : > { %v672_v11 = vmul.f32 %v1309_v8, %v1455_v25 }
 0x194   : > { %v648_v9 = vpop.xlane.xlu2 %647 }
 0x195   : > { %1310 = vrcp.f32 %v648_v9  ;;  %v680_v13 = vpack.c.bf16 %v672_v11, %v672_v11 }
 0x197   : > { %1219 = vmatmul.msk.bf16.vlgmr.msra.gmra.mxu0 %vm688_vm3, %v680_v13 }
 0x198   : > { %882 = vmatpush.bf16.msra.mxu0 %v1272_v41 }
 0x19b   : > { %v1311_v14 = vpop.eup %1310 }
 0x19c   : > { %v674_v15 = vmul.f32 %v1311_v14, %v1459_v30  ;;  %v651_v16 = vpop.xlane.xlu0 %650  ;;  %v645_v17 = vpop.xlane.xlu2 %644 }
 0x19d   : > { %1312 = vrcp.f32 %v651_v16 }
 0x19e   : > { %v682_v18 = vpack.c.bf16 %v674_v15, %v674_v15  ;;  %1314 = vrcp.f32 %v645_v17 }
 0x1a0   : > { %1221 = vmatmul.msk.bf16.vlgmr.msra.gmra.mxu2 %vm688_vm3, %v682_v18 }
 0x1a1   : > { %926 = vmatpush.bf16.msra.mxu2 %v1274_v42 }
 0x1a3   : > { %v1313_v19 = vpop.eup %1312 }
 0x1a4   : > { %v1315_v20 = vpop.eup %1314  ;;  %v675_v21 = vmul.f32 %v1313_v19, %v1465_v39  ;;  %v660_v22 = vpop.xlane.xlu0 %659 }
 0x1a5   : > { %v673_v23 = vmul.f32 %v1315_v20, %v1463_v36  ;;  %1316 = vrcp.f32 %v660_v22  ;;  %v654_v24 = vpop.xlane.xlu2 %653 }
 0x1a6   : > { %v683_v25 = vpack.c.bf16 %v675_v21, %v675_v21  ;;  %1318 = vrcp.f32 %v654_v24 }
 0x1a7   : > { %v681_v26 = vpack.c.bf16 %v673_v23, %v673_v23 }
 0x1a8   : > { %1222 = vmatmul.msk.bf16.vlgmr.msra.gmra.mxu3 %vm688_vm3, %v683_v25 }
 0x1a9   : > { %1220 = vmatmul.msk.bf16.vlgmr.msra.gmra.mxu1 %vm688_vm3, %v681_v26  ;;  %948 = vmatpush.bf16.msra.mxu3 %v1275_v43 }
 0x1aa   : > { %904 = vmatpush.bf16.msra.mxu1 %v1273_v44 }
 0x1ab   : > { %v1317_v27 = vpop.eup %1316 }
 0x1ac   : > { %v1319_v28 = vpop.eup %1318  ;;  %v678_v29 = vmul.f32 %v1317_v27, %v1471_v48  ;;  %v657_v30 = vpop.xlane.xlu0 %656  ;;  %v1277_v48 = vld [vmem:[%s1583_s3 + $0x28] sm:$0xff] }
 0x1ad   : > { %v663_v31 = vpop.xlane.xlu1 %662  ;;  %v676_v32 = vmul.f32 %v1319_v28, %v1473_v50  ;;  %1320 = vrcp.f32 %v657_v30 }
 0x1ae   : > { %v686_v33 = vpack.c.bf16 %v678_v29, %v678_v29  ;;  %1322 = vrcp.f32 %v663_v31 }
 0x1af   : > { %v684_v34 = vpack.c.bf16 %v676_v32, %v676_v32 }
 0x1b0   : > { %1225 = vmatmul.msk.bf16.vlgmr.msrb.gmra.mxu2 %vm688_vm3, %v686_v33 }
 0x1b1   : > { %1223 = vmatmul.msk.bf16.vlgmr.msrb.gmra.mxu0 %vm688_vm3, %v684_v34  ;;  %1014 = vmatpush.bf16.msrb.mxu2 %v1278_v45 }
 0x1b2   : > { %970 = vmatpush.bf16.msrb.mxu0 %v1276_v46 }
 0x1b3   : > { %v1321_v35 = vpop.eup %1320 }
 0x1b4   : > { %v1323_v36 = vpop.eup %1322  ;;  %v677_v37 = vmul.f32 %v1321_v35, %v1479_v53  ;;  %v1063_v35 = vld [vmem:[%s383_s23] sm:$0x3] }
 0x1b5   : > { %v679_v38 = vmul.f32 %v1323_v36, %v1481_v54  ;;  %v1064_v41 = vunpack.c.l.bf16 %v1063_v35 }
 0x1b6   : > { %v685_v39 = vpack.c.bf16 %v677_v37, %v677_v37 }
 0x1b7   : > { %v687_v40 = vpack.c.bf16 %v679_v38, %v679_v38  ;;  %v1289_v38 = vld [vmem:[%s1584_s4] ss:$0 sm:$0xff] }
 0x1b9   : > { %1224 = vmatmul.msk.bf16.vlgmr.msrb.gmra.mxu1 %vm688_vm3, %v685_v39  ;;  %1226 = vmatmul.msk.bf16.vlgmr.msrb.gmra.mxu3 %vm688_vm3, %v687_v40 }
 0x1ba   : > { %1036 = vmatpush.bf16.msrb.mxu3 %v1279_v47  ;;  %992 = vmatpush.bf16.msrb.mxu1 %v1277_v48  ;;  %v1336_v48 = vmov 128.0  }
 0x1bb   : > { %1324 = vrcp.f32 %v1336_v48 }
 0x214   : > { %v705_v49 = vpop.f32.mrf.mxu0 }
 0x215   : > { %v842_v50 = vpack.c.bf16 %v705_v49, %v705_v49  ;;  %v1325_v49 = vpop.eup %1324 }
 0x216   : > { %vm1074_vm5 = vweird.f32 %v1325_v49 }
 0x217   : > { %1231 = vmatmul.msk.bf16.vlgmr.msra.gmra.mxu0 %vm438_vm0, %v842_v50  ;;  %v1070_v50 = vmul.f32 128.0, %v1325_v49 }
 0x21c   : > { %v707_v51 = vpop.f32.mrf.mxu0 }
 0x21d   : > { %v1071_v51 = vsub.f32 1.0, %v1070_v50 }
 0x223   : > { %v743_v52 = vpop.f32.mrf.mxu2 }
 0x224   : > { %v844_v53 = vpack.c.bf16 %v743_v52, %v743_v52  ;;  %v1072_v52 = vmul.f32 %v1325_v49, %v1071_v51 }
 0x226   : > { %v724_v54 = vpop.f32.mrf.mxu1  ;;  %1241 = vmatmul.msk.bf16.vlgmr.msra.gmra.mxu2 %vm438_vm0, %v844_v53  ;;  %v1073_v53 = vadd.f32 %v1325_v49, %v1072_v52 }
 0x227   : > { %v843_v55 = vpack.c.bf16 %v724_v54, %v724_v54 }
 0x228   : > { %v1075_v54 = vsel %vm1074_vm5, %v1325_v49, %v1073_v53 }
 0x229   : > { %1236 = vmatmul.msk.bf16.vlgmr.msra.gmra.mxu1 %vm438_vm0, %v843_v55 }
 0x22b   : > { %v745_v56 = vpop.f32.mrf.mxu2  ;;  %v762_v57 = vpop.f32.mrf.mxu3 }
 0x22c   : > { %v845_v58 = vpack.c.bf16 %v762_v57, %v762_v57 }
 0x22e   : > { %v726_v59 = vpop.f32.mrf.mxu1  ;;  %v781_v60 = vpop.f32.mrf.mxu0  ;;  %1246 = vmatmul.msk.bf16.vlgmr.msra.gmra.mxu3 %vm438_vm0, %v845_v58 }
 0x22f   : > { %v846_v61 = vpack.c.bf16 %v781_v60, %v781_v60 }
 0x231   : > { %1251 = vmatmul.msk.bf16.vlgmr.msrb.gmra.mxu0 %vm438_vm0, %v846_v61 }
 0x233   : > { %v764_v62 = vpop.f32.mrf.mxu3  ;;  %v819_v63 = vpop.f32.mrf.mxu2 }
 0x234   : > { %v848_v0 = vpack.c.bf16 %v819_v63, %v819_v63 }
 0x236   : > { %v783_v1 = vpop.f32.mrf.mxu0  ;;  %v800_v2 = vpop.f32.mrf.mxu1  ;;  %1261 = vmatmul.msk.bf16.vlgmr.msrb.gmra.mxu2 %vm438_vm0, %v848_v0 }
 0x237   : > { %v847_v3 = vpack.c.bf16 %v800_v2, %v800_v2 }
 0x239   : > { %1256 = vmatmul.msk.bf16.vlgmr.msrb.gmra.mxu1 %vm438_vm0, %v847_v3 }
 0x23b   : > { %v821_v4 = vpop.f32.mrf.mxu2 }
 0x23c   : > { %v838_v5 = vpop.f32.mrf.mxu3 }
 0x23d   : > { %v849_v6 = vpack.c.bf16 %v838_v5, %v838_v5  ;;  %v1290_v5 = vld [vmem:[%s1586_s6] ss:$0 sm:$0xff] }
 0x23e   : > { %v802_v7 = vpop.f32.mrf.mxu1 }
 0x23f   : > { %1266 = vmatmul.msk.bf16.vlgmr.msrb.gmra.mxu3 %vm438_vm0, %v849_v6  ;;  %v1291_v7 = vld [vmem:[%s1587_s7] ss:$0 sm:$0xff] }
 0x244   : > { %v840_v8 = vpop.f32.mrf.mxu3 }
 0x294   : > { %v884_v9 = vpop.f32.mrf.mxu0 }
 0x295   : > { %v1043_v18 = vsel %vm1042_vm4, %v884_v9, 0.0 }
 0x29c   : > { %v886_v10 = vpop.f32.mrf.mxu0 }
 0x2a6   : > { %v906_v11 = vpop.f32.mrf.mxu1 }
 0x2a7   : > { %v1044_v15 = vsel %vm1042_vm4, %v906_v11, 0.0 }
 0x2a8   : > { %v1045_v20 = vadd.f32 %v1044_v15, %v1043_v18 }
 0x2a9   : > { %v928_v12 = vpop.f32.mrf.mxu2 }
 0x2aa   : > { %v1046_v19 = vsel %vm1042_vm4, %v928_v12, 0.0 }
 0x2ab   : > { %v1047_v22 = vadd.f32 %v1046_v19, %v1045_v20 }
 0x2ae   : > { %v908_v13 = vpop.f32.mrf.mxu1  ;;  %v972_v14 = vpop.f32.mrf.mxu0 }
 0x2af   : > { %v1050_v28 = vsel %vm1042_vm4, %v972_v14, 0.0 }
 0x2b1   : > { %v930_v16 = vpop.f32.mrf.mxu2  ;;  %v950_v17 = vpop.f32.mrf.mxu3 }
 0x2b2   : > { %v1048_v21 = vsel %vm1042_vm4, %v950_v17, 0.0 }
 0x2b3   : > { %v1049_v25 = vadd.f32 %v1048_v21, %v1047_v22 }
 0x2b5   : > { %v1051_v29 = vadd.f32 %v1050_v28, %v1049_v25 }
 0x2b6   : > { %v974_v23 = vpop.f32.mrf.mxu0  ;;  %v994_v24 = vpop.f32.mrf.mxu1 }
 0x2b7   : > { %v1052_v30 = vsel %vm1042_vm4, %v994_v24, 0.0 }
 0x2b8   : > { %v1053_v33 = vadd.f32 %v1052_v30, %v1051_v29 }
 0x2b9   : > { %v952_v26 = vpop.f32.mrf.mxu3  ;;  %v1016_v27 = vpop.f32.mrf.mxu2 }
 0x2ba   : > { %v1054_v32 = vsel %vm1042_vm4, %v1016_v27, 0.0 }
 0x2bb   : > { %v1055_v36 = vadd.f32 %v1054_v32, %v1053_v33 }
 0x2be   : > { %v996_v31 = vpop.f32.mrf.mxu1 }
 0x2c1   : > { %v1018_v34 = vpop.f32.mrf.mxu2 }
 0x2c2   : > { %v1038_v37 = vpop.f32.mrf.mxu3 }
 0x2c3   : > { %v1056_v39 = vsel %vm1042_vm4, %v1038_v37, 0.0 }
 0x2c4   : > { %v1057_v40 = vadd.f32 %v1056_v39, %v1055_v36 }
 0x2c6   : > { %v1062_v42 = vadd.f32 %v1289_v38, %v1057_v40 }
 0x2c8   : > { %v1065_v43 = vadd.f32 %v1064_v41, %v1062_v42 }
 0x2ca   : > { %v1040_v44 = vpop.f32.mrf.mxu3  ;;  %v1066_v45 = vsel %vm1042_vm4, %v1065_v43, 0.0  ;;  %v1077_v46 = vmul.f32 %v1065_v43, %v1065_v43 }
 0x2cb   : > { %1067 = vadd.xlane.f32.xlu1 %v1066_v45 }
 0x2cc   : > { %v1078_v47 = vsel %vm1042_vm4, %v1077_v46, 0.0 }
 0x2cd   : > { %1079 = vadd.xlane.f32.xlu2 %v1078_v47 }
 0x33e   : > { %v1068_v55 = vpop.xlane.xlu1 %1067 }
 0x33f   : > { %v1076_v56 = vmul.f32 %v1075_v54, %v1068_v55 }
 0x340   : > { %v1080_v57 = vpop.xlane.xlu2 %1079 }
 0x341   : > { %v1082_v58 = vmul.f32 %v1076_v56, %v1076_v56  ;;  %v1081_v59 = vmul.f32 %v1080_v57, %v1075_v54  ;;  %v1084_v4 = vsub.f32 %v1065_v43, %v1076_v56 }
 0x343   : > { %v1083_v60 = vsub.f32 %v1081_v59, %v1082_v58 }
 0x345   : > { %v1085_v61 = vadd.f32 1e-05, %v1083_v60 }
 0x347   : > { %1326 = vrsqrt.f32 %v1085_v61  ;;  %vm1092_vm7 = vweird.f32 %v1085_v61 }
 0x34d   : > { %v1327_v62 = vpop.eup %1326 }
 0x34e   : > { %v1087_v63 = vmul.f32 %v1327_v62, %v1085_v61  ;;  %vm1093_vm6 = vweird.f32 %v1327_v62 }
 0x34f   : > { %vm1094_vm8 = vmor %vm1092_vm7, %vm1093_vm6 }
 0x350   : > { %v1088_v0 = vmul.f32 %v1327_v62, %v1087_v63 }
 0x352   : > { %v1089_v1 = vmul.f32 0.5, %v1088_v0 }
 0x354   : > { %v1090_v2 = vsub.f32 1.5, %v1089_v1 }
 0x356   : > { %v1091_v3 = vmul.f32 %v1327_v62, %v1090_v2 }
 0x358   : > { %v1095_v6 = vsel %vm1094_vm8, %v1327_v62, %v1091_v3 }
 0x359   : > { %v1096_v8 = vmul.f32 %v1095_v6, %v1084_v4 }
 0x35b   : > { %v1101_v9 = vmul.f32 %v1290_v5, %v1096_v8 }
 0x35d   : > { %v1106_v10 = vadd.f32 %v1291_v7, %v1101_v9 }
 0x35f   : > { %v1107_v11 = vpack.c.bf16 %v1106_v10, %v1106_v10 }
 0x361   : > { %1108 = vst [vmem:[%s387_s13] sm:$0x3] %v1107_v11 }
 0x362 PF: > { %s19_s30 = sadd.s32 1, %s1334_s30  }
 0x363   : > { %p16_p4 = scmp.ge.s32.totalorder %s19_s30, 4  }
 0x365   :  { %18 = sbr.rel (!%p16_p4) target bundleno = 1 (0x1), region = 95 }

// kernel: simple_vit_forward.31
= control target key start
LH: loop header
LB: loop body
LE: loop exit
PB: predicated region body
PF: predicated region fallthrough
CT: control target
= control target key end

     0   :  { %12 = vsyncpa [#allocation3], 0  ;;  %s953_s0 = inlined_call_operand.vmem [shape: bf16[8,128], index: 0, kind: input, shape index: {}]   ;;  %s954_s1 = inlined_call_operand.vmem [shape: bf16[128,256], index: 1, kind: input, shape index: {}]   ;;  %s955_s2 = inlined_call_operand.vmem [shape: f32[1,256], index: 2, kind: input, shape index: {}]   ;;  %s956_s3 = inlined_call_operand.vmem [shape: bf16[256,128], index: 3, kind: input, shape index: {}]   ;;  %s957_s4 = inlined_call_operand.hbm [shape: f32[1,128], index: 4, kind: input, shape index: {}]   ;;  %s958_s5 = inlined_call_operand.hbm [shape: f32[1,128], index: 5, kind: input, shape index: {}]   ;;  %s959_s6 = inlined_call_operand.hbm [shape: f32[1,128], index: 6, kind: input, shape index: {}]   ;;  %s960_s7 = inlined_call_operand.vmem [shape: bf16[8,128], index: 7, kind: output, shape index: {}]  }
   0x1   :  { %13 = vsyncpa [#allocation5], 0  ;;  %s38_s26 = sshll.u32 %s958_s5, 4  ;;  %s744_s27 = smov [#allocation4]   ;;  %s39_s26 = int_to_ptr.hbm [resolvable:$true] %s38_s26 }
   0x2   :  { %s40_s28 = sshll.u32 %s744_s27, 4  ;;  %s27_s8 = sshll.u32 %s957_s4, 4  ;;  %s41_s28 = int_to_ptr.vmem [resolvable:$true] %s40_s28  ;;  %s28_s8 = int_to_ptr.hbm [resolvable:$true] %s27_s8 }
   0x3   :  { %43 = dma.hbm_to_vmem [thread:$0]  %s39_s26, 16, %s41_s28, [#allocation5]  }
   0x4   :  { %s745_s9 = smov [#allocation2]   ;;  %s49_s13 = sshll.u32 %s959_s6, 4  ;;  %s50_s13 = int_to_ptr.hbm [resolvable:$true] %s49_s13 }
   0x5   :  { %s29_s10 = sshll.u32 %s745_s9, 4  ;;  %s746_s5 = smov [#allocation6]   ;;  %s30_s10 = int_to_ptr.vmem [resolvable:$true] %s29_s10 }
   0x6   :  { %32 = dma.hbm_to_vmem [thread:$0]  %s28_s8, 16, %s30_s10, [#allocation3]  }
   0x7   :  { %s51_s14 = sshll.u32 %s746_s5, 4  ;;  %s52_s14 = int_to_ptr.vmem [resolvable:$true] %s51_s14 }
   0x8   :  { %54 = dma.hbm_to_vmem [thread:$0]  %s50_s13, 16, %s52_s14, [#allocation5]  }
   0x9   :  { %740 = dma.done.wait [#allocation3], 16  }
   0xa   :  { %741 = vsyncadd [#allocation3], 4294967280 }
   0xb   :  { %742 = dma.done.wait [#allocation5], 32  }
   0xc   :  { %743 = vsyncadd [#allocation5], 4294967264  ;;  %v547_v0 = vld [vmem:[%s954_s1 + $0x70] sm:$0xf]  ;;  %v633_v1 = vld [vmem:[%s954_s1 + $0x74] sm:$0xf0] }
   0xd   :  { %v632_v2 = vld [vmem:[%s954_s1 + $0x74] sm:$0xf]  ;;  %v548_v3 = vor.u32 %v633_v1, %v547_v0  ;;  %v549_v4 = vld [vmem:[%s954_s1 + $0x78] sm:$0xf0]  ;;  %v539_v5 = vld [vmem:[%s954_s1 + $0x60] sm:$0xf] }
   0xe   :  { %v631_v6 = vld [vmem:[%s954_s1 + $0x64] sm:$0xf0]  ;;  %v552_v7 = vor.u32 %v632_v2, %v549_v4  ;;  %v630_v8 = vld [vmem:[%s954_s1 + $0x64] sm:$0xf]  ;;  %v541_v9 = vld [vmem:[%s954_s1 + $0x68] sm:$0xf0] }
   0xf   :  { %177 = vmatpush.bf16.msra.mxu0 %v548_v3  ;;  %v540_v10 = vor.u32 %v631_v6, %v539_v5  ;;  %v544_v11 = vor.u32 %v630_v8, %v541_v9  ;;  %v531_v12 = vld [vmem:[%s954_s1 + $0x50] sm:$0xf]  ;;  %v629_v13 = vld [vmem:[%s954_s1 + $0x54] sm:$0xf0]  ;;  %v628_v14 = vld [vmem:[%s954_s1 + $0x54] sm:$0xf] }
  0x10   :  { %191 = vmatpush.bf16.msra.mxu1 %v552_v7  ;;  %v533_v15 = vld [vmem:[%s954_s1 + $0x58] sm:$0xf0]  ;;  %v532_v16 = vor.u32 %v629_v13, %v531_v12  ;;  %v523_v18 = vld [vmem:[%s954_s1 + $0x40] sm:$0xf]  ;;  %v627_v19 = vld [vmem:[%s954_s1 + $0x44] sm:$0xf0] }
  0x11   :  { %v536_v17 = vor.u32 %v628_v14, %v533_v15  ;;  %v626_v20 = vld [vmem:[%s954_s1 + $0x44] sm:$0xf]  ;;  %v525_v21 = vld [vmem:[%s954_s1 + $0x48] sm:$0xf0]  ;;  %v524_v22 = vor.u32 %v627_v19, %v523_v18  ;;  %v641_v23 = vld [vmem:[%s956_s3 + $0x38] sm:$0xff] }
  0x12   :  { %v649_v24 = vld [vmem:[%s956_s3 + $0x78] sm:$0xff]  ;;  %v528_v25 = vor.u32 %v626_v20, %v525_v21  ;;  %v515_v26 = vld [vmem:[%s954_s1 + $0x30] sm:$0xf]  ;;  %v624_v28 = vld [vmem:[%s954_s1 + $0x34] sm:$0xf]  ;;  %343 = vmatpush.bf16.msra.mxu2 %v641_v23 }
  0x13   :  { %178 = vmatpush.bf16.msra.mxu0 %v540_v10  ;;  %v625_v27 = vld [vmem:[%s954_s1 + $0x34] sm:$0xf0]  ;;  %v517_v29 = vld [vmem:[%s954_s1 + $0x38] sm:$0xf0]  ;;  %357 = vmatpush.bf16.msra.mxu3 %v649_v24  ;;  %v640_v30 = vld [vmem:[%s956_s3 + $0x30] sm:$0xff] }
  0x14   :  { %192 = vmatpush.bf16.msra.mxu1 %v544_v11  ;;  %v648_v31 = vld [vmem:[%s956_s3 + $0x70] sm:$0xff]  ;;  %v516_v32 = vor.u32 %v625_v27, %v515_v26  ;;  %v520_v33 = vor.u32 %v624_v28, %v517_v29  ;;  %v507_v34 = vld [vmem:[%s954_s1 + $0x20] sm:$0xf]  ;;  %v623_v35 = vld [vmem:[%s954_s1 + $0x24] sm:$0xf0] }
  0x15   :  { %v622_v36 = vld [vmem:[%s954_s1 + $0x24] sm:$0xf]  ;;  %v509_v37 = vld [vmem:[%s954_s1 + $0x28] sm:$0xf0]  ;;  %v508_v40 = vor.u32 %v623_v35, %v507_v34  ;;  %v499_v42 = vld [vmem:[%s954_s1 + $0x10] sm:$0xf] }
  0x16   :  { %344 = vmatpush.bf16.msra.mxu2 %v640_v30  ;;  %v639_v38 = vld [vmem:[%s956_s3 + $0x28] sm:$0xff]  ;;  %v512_v41 = vor.u32 %v622_v36, %v509_v37  ;;  %v621_v43 = vld [vmem:[%s954_s1 + $0x14] sm:$0xf0]  ;;  %v620_v44 = vld [vmem:[%s954_s1 + $0x14] sm:$0xf]  ;;  %v747_v34 = vmov 128.0  }
  0x17   :  { %179 = vmatpush.bf16.msra.mxu0 %v532_v16  ;;  %358 = vmatpush.bf16.msra.mxu3 %v648_v31  ;;  %v647_v39 = vld [vmem:[%s956_s3 + $0x68] sm:$0xff]  ;;  %v501_v45 = vld [vmem:[%s954_s1 + $0x18] sm:$0xf0]  ;;  %v638_v46 = vld [vmem:[%s956_s3 + $0x20] sm:$0xff]  ;;  %v500_v48 = vor.u32 %v621_v43, %v499_v42  ;;  %662 = vrcp.f32 %v747_v34 }
  0x18   :  { %193 = vmatpush.bf16.msra.mxu1 %v536_v17  ;;  %v646_v47 = vld [vmem:[%s956_s3 + $0x60] sm:$0xff]  ;;  %v504_v49 = vor.u32 %v620_v44, %v501_v45  ;;  %v619_v51 = vld [vmem:[%s954_s1 + $0x4] sm:$0xf0]  ;;  %v493_v53 = vld [vmem:[%s954_s1 + $0x8] sm:$0xf0] }
  0x19   :  { %v491_v50 = vld [vmem:[%s954_s1] sm:$0xf]  ;;  %v618_v52 = vld [vmem:[%s954_s1 + $0x4] sm:$0xf]  ;;  %v637_v57 = vld [vmem:[%s956_s3 + $0x18] sm:$0xff] }
  0x1a   :  { %345 = vmatpush.bf16.msra.mxu2 %v639_v38  ;;  %v492_v54 = vor.u32 %v619_v51, %v491_v50  ;;  %v496_v55 = vor.u32 %v618_v52, %v493_v53  ;;  %v617_v56 = vld [vmem:[%s953_s0] sm:$0xff]  ;;  %v645_v58 = vld [vmem:[%s956_s3 + $0x58] sm:$0xff]  ;;  %v636_v59 = vld [vmem:[%s956_s3 + $0x10] sm:$0xff] }
  0x1b   :  { %180 = vmatpush.bf16.msra.mxu0 %v524_v22  ;;  %359 = vmatpush.bf16.msra.mxu3 %v647_v39  ;;  %v644_v60 = vld [vmem:[%s956_s3 + $0x50] sm:$0xff]  ;;  %v635_v61 = vld [vmem:[%s956_s3 + $0x8] sm:$0xff]  ;;  %v634_v63 = vld [vmem:[%s956_s3] sm:$0xff] }
  0x1c   :  { %194 = vmatpush.bf16.msra.mxu1 %v528_v25  ;;  %v643_v62 = vld [vmem:[%s956_s3 + $0x48] sm:$0xff]  ;;  %v642_v0 = vld [vmem:[%s956_s3 + $0x40] sm:$0xff] }
  0x1d   :  { %v85_v1 = vld [vmem:[%s955_s2] sm:$0x3]  ;;  %v663_v35 = vpop.eup %662 }
  0x1e   :  { %346 = vmatpush.bf16.msra.mxu2 %v638_v46  ;;  %v87_v4 = vperm.slane %v85_v1, 0  ;;  %v88_v5 = vperm.slane %v85_v1, 1  ;;  %v659_v18 = vld [vmem:[#allocation2] ss:$0 sm:$0xff]  ;;  %v380_v36 = vmul.f32 128.0, %v663_v35  ;;  %vm384_vm0 = vweird.f32 %v663_v35 }
  0x1f   :  { %181 = vmatpush.bf16.msra.mxu0 %v516_v32  ;;  %360 = vmatpush.bf16.msra.mxu3 %v646_v47  ;;  %v67_v19 = vld [vmem:[%s953_s0] sm:$0xff]  }
  0x20   :  { %195 = vmatpush.bf16.msra.mxu1 %v520_v33  ;;  %v371_v23 = vunpack.c.l.bf16 %v67_v19  ;;  %v372_v29 = vunpack.c.h.bf16 %v67_v19  ;;  %v381_v37 = vsub.f32 1.0, %v380_v36 }
  0x22   :  { %347 = vmatpush.bf16.msra.mxu2 %v637_v57  ;;  %v382_v38 = vmul.f32 %v663_v35, %v381_v37 }
  0x23   :  { %182 = vmatpush.bf16.msra.mxu0 %v508_v40  ;;  %361 = vmatpush.bf16.msra.mxu3 %v645_v58 }
  0x24   :  { %196 = vmatpush.bf16.msra.mxu1 %v512_v41  ;;  %v383_v39 = vadd.f32 %v663_v35, %v382_v38 }
  0x26   :  { %348 = vmatpush.bf16.msra.mxu2 %v636_v59  ;;  %v385_v40 = vsel %vm384_vm0, %v663_v35, %v383_v39 }
  0x27   :  { %183 = vmatpush.bf16.msra.mxu0 %v500_v48  ;;  %362 = vmatpush.bf16.msra.mxu3 %v644_v60 }
  0x28   :  { %197 = vmatpush.bf16.msra.mxu1 %v504_v49 }
  0x2a   :  { %349 = vmatpush.bf16.msra.mxu2 %v635_v61 }
  0x2b   :  { %184 = vmatpush.bf16.msra.mxu0 %v492_v54  ;;  %363 = vmatpush.bf16.msra.mxu3 %v643_v62 }
  0x2c   :  { %198 = vmatpush.bf16.msra.mxu1 %v496_v55 }
  0x2e   :  { %185 = vmatmul.bf16.vlgmr.msra.gmra.mxu0 %v617_v56  ;;  %350 = vmatpush.bf16.msra.mxu2 %v634_v63 }
  0x2f   :  { %199 = vmatmul.bf16.vlgmr.msra.gmra.mxu1 %v617_v56  ;;  %364 = vmatpush.bf16.msra.mxu3 %v642_v0 }
  0xab   :  { %v186_v2 = vpop.f32.mrf.mxu0 }
  0xac   :  { %v200_v3 = vpop.f32.mrf.mxu1  ;;  %v187_v6 = vadd.f32 %v186_v2, %v87_v4 }
  0xad   :  { %v201_v7 = vadd.f32 %v200_v3, %v88_v5 }
  0xae   :  { %v205_v12 = vmax.f32 %v187_v6, 0.0 }
  0xaf   :  { %v206_v14 = vmax.f32 %v201_v7, 0.0 }
  0xb3   :  { %v188_v8 = vpop.f32.mrf.mxu0 }
  0xb4   :  { %v189_v9 = vadd.f32 %v188_v8, %v87_v4  ;;  %v202_v10 = vpop.f32.mrf.mxu1  ;;  %v660_v4 = vld [vmem:[#allocation4] ss:$0 sm:$0xff] }
  0xb5   :  { %v203_v11 = vadd.f32 %v202_v10, %v88_v5 }
  0xb6   :  { %v207_v13 = vmax.f32 %v189_v9, 0.0  ;;  %v661_v9 = vld [vmem:[#allocation6] ss:$0 sm:$0xff] }
  0xb7   :  { %v208_v15 = vmax.f32 %v203_v11, 0.0 }
  0xb8   :  { %v209_v16 = vpack.c.bf16 %v207_v13, %v205_v12 }
  0xb9   :  { %v210_v17 = vpack.c.bf16 %v208_v15, %v206_v14 }
  0xba   :  { %351 = vmatmul.bf16.vlgmr.msra.gmra.mxu2 %v209_v16 }
  0xbb   :  { %365 = vmatmul.bf16.vlgmr.msra.gmra.mxu3 %v210_v17 }
 0x13d   :  { %v352_v20 = vpop.f32.mrf.mxu2 }
 0x13e   :  { %v353_v21 = vadd.f32 %v659_v18, %v352_v20  ;;  %v366_v22 = vpop.f32.mrf.mxu3 }
 0x140   :  { %v367_v24 = vadd.f32 %v366_v22, %v353_v21 }
 0x142   :  { %v373_v25 = vadd.f32 %v371_v23, %v367_v24 }
 0x144   :  { %375 = vadd.xlane.f32.xlu0 %v373_v25  ;;  %v388_v26 = vmul.f32 %v373_v25, %v373_v25 }
 0x145   :  { %v354_v27 = vpop.f32.mrf.mxu2 }
 0x146   :  { %v355_v28 = vadd.f32 %v659_v18, %v354_v27  ;;  %390 = vadd.xlane.f32.xlu1 %v388_v26  ;;  %v368_v30 = vpop.f32.mrf.mxu3 }
 0x148   :  { %v369_v31 = vadd.f32 %v368_v30, %v355_v28 }
 0x14a   :  { %v374_v32 = vadd.f32 %v372_v29, %v369_v31 }
 0x14c   :  { %377 = vadd.xlane.f32.xlu0 %v374_v32  ;;  %v389_v33 = vmul.f32 %v374_v32, %v374_v32 }
 0x14e   :  { %392 = vadd.xlane.f32.xlu1 %v389_v33 }
 0x1b7   :  { %v376_v41 = vpop.xlane.xlu0 %375 }
 0x1b8   :  { %v386_v42 = vmul.f32 %v385_v40, %v376_v41 }
 0x1b9   :  { %v391_v43 = vpop.xlane.xlu1 %390 }
 0x1ba   :  { %v396_v44 = vmul.f32 %v386_v42, %v386_v42  ;;  %v394_v45 = vmul.f32 %v391_v43, %v385_v40  ;;  %v400_v2 = vsub.f32 %v373_v25, %v386_v42 }
 0x1bc   :  { %v398_v46 = vsub.f32 %v394_v45, %v396_v44 }
 0x1be   :  { %v402_v47 = vadd.f32 1e-05, %v398_v46 }
 0x1bf   :  { %v378_v48 = vpop.xlane.xlu0 %377 }
 0x1c0   :  { %664 = vrsqrt.f32 %v402_v47  ;;  %v387_v49 = vmul.f32 %v385_v40, %v378_v48  ;;  %vm410_vm2 = vweird.f32 %v402_v47 }
 0x1c1   :  { %v393_v50 = vpop.xlane.xlu1 %392 }
 0x1c2   :  { %v397_v51 = vmul.f32 %v387_v49, %v387_v49  ;;  %v395_v52 = vmul.f32 %v393_v50, %v385_v40  ;;  %v401_v7 = vsub.f32 %v374_v32, %v387_v49 }
 0x1c4   :  { %v399_v53 = vsub.f32 %v395_v52, %v397_v51 }
 0x1c6   :  { %v665_v54 = vpop.eup %664  ;;  %v403_v55 = vadd.f32 1e-05, %v399_v53 }
 0x1c7   :  { %v405_v56 = vmul.f32 %v665_v54, %v402_v47  ;;  %vm411_vm1 = vweird.f32 %v665_v54 }
 0x1c8   :  { %666 = vrsqrt.f32 %v403_v55  ;;  %vm412_vm3 = vmor %vm410_vm2, %vm411_vm1  ;;  %vm420_vm5 = vweird.f32 %v403_v55 }
 0x1c9   :  { %v406_v57 = vmul.f32 %v665_v54, %v405_v56 }
 0x1cb   :  { %v407_v58 = vmul.f32 0.5, %v406_v57 }
 0x1cd   :  { %v408_v59 = vsub.f32 1.5, %v407_v58 }
 0x1ce   :  { %v667_v60 = vpop.eup %666 }
 0x1cf   :  { %v409_v61 = vmul.f32 %v665_v54, %v408_v59  ;;  %v415_v62 = vmul.f32 %v667_v60, %v403_v55  ;;  %vm421_vm4 = vweird.f32 %v667_v60 }
 0x1d0   :  { %vm422_vm6 = vmor %vm420_vm5, %vm421_vm4 }
 0x1d1   :  { %v416_v63 = vmul.f32 %v667_v60, %v415_v62  ;;  %v413_v0 = vsel %vm412_vm3, %v665_v54, %v409_v61 }
 0x1d2   :  { %v424_v5 = vmul.f32 %v413_v0, %v400_v2 }
 0x1d3   :  { %v417_v1 = vmul.f32 0.5, %v416_v63 }
 0x1d4   :  { %v430_v10 = vmul.f32 %v660_v4, %v424_v5 }
 0x1d5   :  { %v418_v3 = vsub.f32 1.5, %v417_v1 }
 0x1d6   :  { %v436_v13 = vadd.f32 %v661_v9, %v430_v10 }
 0x1d7   :  { %v419_v6 = vmul.f32 %v667_v60, %v418_v3 }
 0x1d9   :  { %v423_v8 = vsel %vm422_vm6, %v667_v60, %v419_v6 }
 0x1da   :  { %v425_v11 = vmul.f32 %v423_v8, %v401_v7 }
 0x1dc   :  { %v431_v12 = vmul.f32 %v660_v4, %v425_v11 }
 0x1de   :  { %v437_v14 = vadd.f32 %v661_v9, %v431_v12 }
 0x1e0   :  { %v653_v15 = vpack.c.bf16 %v437_v14, %v436_v13 }
 0x1e2   :  { %654 = vst [vmem:[#allocation7] sm:$0xff] %v653_v15  }
 0x1e9   :  { %v460_v16 = vld [vmem:[#allocation7] sm:$0xf] }
 0x1ea   :  { %461 = vst [vmem:[%s960_s7] sm:$0xf] %v460_v16 }
 0x1eb   :  { %479 = vsyncpa [#allocation3], 1 }
 0x1ec   :  { %480 = vsyncpa [#allocation5], 1 }

// kernel: simple_vit_forward.30
= control target key start
LH: loop header
LB: loop body
LE: loop exit
PB: predicated region body
PF: predicated region fallthrough
CT: control target
= control target key end

     0   :  { %13 = vsyncpa [#allocation3], 0  ;;  %s1902_s0 = inlined_call_operand.vmem [shape: bf16[2,8,4,16], index: 0, kind: input, shape index: {}]   ;;  %s1903_s1 = inlined_call_operand.vmem [shape: bf16[2,8,16,16], index: 1, kind: input, shape index: {}]   ;;  %s1904_s2 = inlined_call_operand.vmem [shape: bf16[2,8,16,16], index: 2, kind: input, shape index: {}]   ;;  %s1905_s3 = inlined_call_operand.vmem [shape: bf16[8,16,128], index: 3, kind: input, shape index: {}]   ;;  %s1906_s4 = inlined_call_operand.hbm [shape: f32[1,128], index: 4, kind: input, shape index: {}]   ;;  %s1907_s5 = inlined_call_operand.vmem [shape: bf16[2,4,128], index: 5, kind: input, shape index: {}]   ;;  %s1908_s6 = inlined_call_operand.hbm [shape: f32[1,128], index: 6, kind: input, shape index: {}]   ;;  %s1909_s7 = inlined_call_operand.hbm [shape: f32[1,128], index: 7, kind: input, shape index: {}]   ;;  %s1910_s8 = inlined_call_operand.vmem [shape: bf16[2,4,128], index: 8, kind: output, shape index: {}]  }
   0x1   :  { %14 = vsyncpa [#allocation5], 0  ;;  %s1725_s27 = smov 0  }
   0x2 LB: > { %s266_s30 = sshll.u32 %s1908_s6, 4  ;;  %s1323_s9 = sadd.s32 4294967295, %s1674_s27   ;;  %s1674_s27 = sphi %s1725_s27, %s20_s27   ;;  %s267_s30 = int_to_ptr.hbm [resolvable:$true] %s266_s30 }
   0x3   : > { %p1325_p0 = scmp.ge.s32.totalorder %s1674_s27, 1  ;;  %p239_p1 = scmp.lt.s32.totalorder %s1674_s27, 3 }
   0x4   : > { %p1513_p2 = scmp.eq.s32.totalorder %s1323_s9, 0  ;;  %s1676_s11 = smov [#allocation4]  }
   0x5   : > { %p1736_p3 = pnand %p1325_p0, %p239_p1  ;;  %s268_s12 = sshll.u32 %s1676_s11, 4  ;;  %s269_s12 = int_to_ptr.vmem [resolvable:$true] %s268_s12 }
   0x6   : > { %s254_s15 = sshll.u32 %s1906_s4, 4  ;;  %s278_s18 = sshll.u32 %s1909_s7, 4  ;;  %s255_s15 = int_to_ptr.hbm [resolvable:$true] %s254_s15  ;;  %s279_s18 = int_to_ptr.hbm [resolvable:$true] %s278_s18 }
   0x7   : > { %p1503_p4 = pneg %p1736_p3  ;;  %s1677_s19 = smov [#allocation2]  }
   0x8   : > { %s256_s20 = sshll.u32 %s1677_s19, 4  ;;  %s1678_s21 = smov [#allocation6]   ;;  %s257_s20 = int_to_ptr.vmem [resolvable:$true] %s256_s20 }
   0x9   : > { %p1504_p5 = pnand %p1513_p2, %p1503_p4  ;;  %s280_s22 = sshll.u32 %s1678_s21, 4  ;;  %s281_s22 = int_to_ptr.vmem [resolvable:$true] %s280_s22 }
   0xa   : > { %324 = sbr.rel (%p1736_p3) target bundleno = 873 (0x369), region = 52 }
   0xb   : > { %1509 = dma.hbm_to_vmem [thread:$0]  (!%p1504_p5), %s267_s30, 16, %s269_s12, [#allocation5]  }
   0xc   : > { %1506 = dma.hbm_to_vmem [thread:$0]  (!%p1504_p5), %s255_s15, 16, %s257_s20, [#allocation3]  }
   0xd   : > { %1512 = dma.hbm_to_vmem [thread:$0]  (!%p1504_p5), %s279_s18, 16, %s281_s22, [#allocation5]  }
   0xf   : > { %1665 = dma.done.wait (%p1513_p2), [#allocation3], 16  }
  0x10   : > { %1667 = vsyncadd (%p1513_p2), [#allocation3], 4294967280 }
  0x11   : > { %1669 = dma.done.wait (%p1513_p2), [#allocation5], 32  }
  0x12   : > { %1671 = vsyncadd (%p1513_p2), [#allocation5], 4294967264  ;;  %p382_p6 = scmp.lt.s32.totalorder %s1323_s9, 1  ;;  %vm475_vm0 = vcmask 130048   ;;  %vm663_vm1 = vcmask 125952   ;;  %vm1136_vm2 = vcmask 1043456  }
  0x14   : > { %s1913_s9 = smov (!%p382_p6, %s1323_s9), 1 }
  0x15   : > { %s1465_s23 = sshll.u32 %s1913_s9, 6  ;;  %s1464_s24 = sshll.u32 %s1913_s9, 4 }
  0x16   : > { %s391_s28 = scalar_lea.vmem %s1903_s1, %s1465_s23  ;;  %s1767_s10 = scalar_lea.vmem %s1902_s0, %s1464_s24 }
  0x17   : > { %v1467_v0 = vld [vmem:[%s391_s28] sm:$0xff]  ;;  %v1468_v1 = vld [vmem:[%s391_s28 + $0x8] sm:$0xff]  ;;  %v1469_v2 = vld [vmem:[%s391_s28 + $0x10] sm:$0xff]  ;;  %s396_s13 = scalar_lea.vmem %s1904_s2, %s1465_s23 }
  0x18   : > { %v1470_v3 = vld [vmem:[%s391_s28 + $0x18] sm:$0xff]  ;;  %v406_v4 = vld [vmem:[%s1767_s10] sm:$0x3]  ;;  %v407_v5 = vld [vmem:[%s1767_s10 + $0x2] sm:$0x3]  ;;  %v480_v6 = vsel %vm475_vm0, %v1467_v0, 0 }
  0x19   : > { %v504_v7 = vsel %vm475_vm0, %v1468_v1, 0  ;;  %v528_v8 = vsel %vm475_vm0, %v1469_v2, 0  ;;  %v414_v9 = vunpack.c.l.bf16 %v406_v4  ;;  %v408_v10 = vld [vmem:[%s1767_s10 + $0x4] sm:$0x3]  ;;  %v1473_v11 = vld [vmem:[%s391_s28 + $0x30] sm:$0xff]  ;;  %489 = vmatpush.bf16.xpose.msra.mxu0 %v480_v6  ;;  %v552_v12 = vsel %vm475_vm0, %v1470_v3, 0 }
  0x1a   : > { %513 = vmatpush.bf16.xpose.msra.mxu1 %v504_v7  ;;  %v415_v13 = vunpack.c.l.bf16 %v407_v5  ;;  %v416_v14 = vunpack.c.l.bf16 %v408_v10  ;;  %v409_v15 = vld [vmem:[%s1767_s10 + $0x6] sm:$0x3]  ;;  %v1474_v16 = vld [vmem:[%s391_s28 + $0x38] sm:$0xff]  ;;  %v1472_v17 = vld [vmem:[%s391_s28 + $0x28] sm:$0xff]  ;;  %537 = vmatpush.bf16.xpose.msra.mxu2 %v528_v8  ;;  %v624_v20 = vsel %vm475_vm0, %v1473_v11, 0 }
  0x1b   : > { %561 = vmatpush.bf16.xpose.msra.mxu3 %v552_v12  ;;  %v422_v18 = vmul.f32 0.25, %v414_v9  ;;  %v417_v19 = vunpack.c.l.bf16 %v409_v15  ;;  %v1471_v21 = vld [vmem:[%s391_s28 + $0x20] sm:$0xff]  ;;  %v648_v24 = vsel %vm475_vm0, %v1474_v16, 0  ;;  %v600_v25 = vsel %vm475_vm0, %v1472_v17, 0  ;;  %v411_v32 = vld [vmem:[%s1767_s10 + $0xa] sm:$0x3] }
  0x1c   : > { %v423_v22 = vmul.f32 0.25, %v415_v13  ;;  %v424_v23 = vmul.f32 0.25, %v416_v14  ;;  %v576_v28 = vsel %vm475_vm0, %v1471_v21, 0  ;;  %v410_v33 = vld [vmem:[%s1767_s10 + $0x8] sm:$0x3]  ;;  %v419_v36 = vunpack.c.l.bf16 %v411_v32 }
  0x1d   : > { %v430_v26 = vpack.c.bf16 %v422_v18, %v422_v18  ;;  %v425_v27 = vmul.f32 0.25, %v417_v19  ;;  %v412_v34 = vld [vmem:[%s1767_s10 + $0xc] sm:$0x3]  ;;  %v413_v35 = vld [vmem:[%s1767_s10 + $0xe] sm:$0x3]  ;;  %v418_v37 = vunpack.c.l.bf16 %v410_v33  ;;  %s1340_s10 = sshll.u32 %s1913_s9, 1 }
  0x1e   : > { %v431_v29 = vpack.c.bf16 %v423_v22, %v423_v22  ;;  %v432_v30 = vpack.c.bf16 %v424_v23, %v424_v23  ;;  %v420_v38 = vunpack.c.l.bf16 %v412_v34  ;;  %v421_v39 = vunpack.c.l.bf16 %v413_v35  ;;  %s404_s16 = scalar_lea.vmem %s1910_s8, %s1340_s10 }
  0x1f   : > { %v433_v31 = vpack.c.bf16 %v425_v27, %v425_v27  ;;  %v427_v40 = vmul.f32 0.25, %v419_v36  ;;  %v426_v41 = vmul.f32 0.25, %v418_v37 }
  0x20   : > { %1346 = vmatmul.msk.bf16.vlgmr.msra.gmra.mxu0 %vm475_vm0, %v430_v26  ;;  %v428_v42 = vmul.f32 0.25, %v420_v38  ;;  %v429_v43 = vmul.f32 0.25, %v421_v39 }
  0x21   : > { %585 = vmatpush.bf16.xpose.msrb.mxu0 %v576_v28  ;;  %1351 = vmatmul.msk.bf16.vlgmr.msra.gmra.mxu1 %vm475_vm0, %v431_v29  ;;  %v435_v44 = vpack.c.bf16 %v427_v40, %v427_v40  ;;  %v434_v45 = vpack.c.bf16 %v426_v41, %v426_v41 }
  0x22   : > { %633 = vmatpush.bf16.xpose.msrb.mxu2 %v624_v20  ;;  %609 = vmatpush.bf16.xpose.msrb.mxu1 %v600_v25  ;;  %v436_v46 = vpack.c.bf16 %v428_v42, %v428_v42  ;;  %v437_v47 = vpack.c.bf16 %v429_v43, %v429_v43 }
  0x23   : > { %657 = vmatpush.bf16.xpose.msrb.mxu3 %v648_v24  ;;  %1356 = vmatmul.msk.bf16.vlgmr.msra.gmra.mxu2 %vm475_vm0, %v432_v30 }
  0x24   : > { %1361 = vmatmul.msk.bf16.vlgmr.msra.gmra.mxu3 %vm475_vm0, %v433_v31 }
  0x30   : > { %1366 = vmatmul.msk.bf16.vlgmr.msrb.gmra.mxu0 %vm475_vm0, %v434_v45 }
  0x31   : > { %1371 = vmatmul.msk.bf16.vlgmr.msrb.gmra.mxu1 %vm475_vm0, %v435_v44 }
  0x33   : > { %1376 = vmatmul.msk.bf16.vlgmr.msrb.gmra.mxu2 %vm475_vm0, %v436_v46 }
  0x34   : > { %1381 = vmatmul.msk.bf16.vlgmr.msrb.gmra.mxu3 %vm475_vm0, %v437_v47 }
  0x9d   : > { %v491_v48 = vpop.f32.mrf.mxu0 }
  0x9e   : > { %v515_v49 = vpop.f32.mrf.mxu1  ;;  %v664_v50 = vsel %vm663_vm1, %v491_v48, -inf }
  0x9f   : > { %665 = vmax.xlane.f32.xlu1 %v664_v50  ;;  %v667_v53 = vsel %vm663_vm1, %v515_v49, -inf  ;;  %v1478_v50 = vld [vmem:[%s396_s13 + $0x18] sm:$0xff] }
  0xa0   : > { %842 = vmatpush.bf16.msra.mxu3 %v1478_v50 }
  0xa5   : > { %v493_v56 = vpop.f32.mrf.mxu0 }
  0xa6   : > { %v539_v51 = vpop.f32.mrf.mxu2  ;;  %v517_v55 = vpop.f32.mrf.mxu1 }
  0xa7   : > { %v563_v52 = vpop.f32.mrf.mxu3  ;;  %v670_v54 = vsel %vm663_vm1, %v539_v51, -inf  ;;  %668 = vmax.xlane.f32.xlu1 %v667_v53  ;;  %v1479_v53 = vld [vmem:[%s396_s13 + $0x20] sm:$0xff]  ;;  %v1482_v55 = vld [vmem:[%s396_s13 + $0x38] sm:$0xff] }
  0xa8   : > { %671 = vmax.xlane.f32.xlu0 %v670_v54  ;;  %v673_v57 = vsel %vm663_vm1, %v563_v52, -inf  ;;  %930 = vmatpush.bf16.msrb.mxu3 %v1482_v55 }
  0xad   : > { %v587_v61 = vpop.f32.mrf.mxu0 }
  0xae   : > { %v541_v58 = vpop.f32.mrf.mxu2  ;;  %v611_v60 = vpop.f32.mrf.mxu1  ;;  %v676_v63 = vsel %vm663_vm1, %v587_v61, -inf }
  0xaf   : > { %v565_v59 = vpop.f32.mrf.mxu3  ;;  %v679_v62 = vsel %vm663_vm1, %v611_v60, -inf  ;;  %v1480_v58 = vld [vmem:[%s396_s13 + $0x28] sm:$0xff] }
  0xb0   : > { %674 = vmax.xlane.f32.xlu0 %v673_v57  ;;  %680 = vmax.xlane.f32.xlu1 %v679_v62 }
  0xb5   : > { %v589_v3 = vpop.f32.mrf.mxu0 }
  0xb6   : > { %v635_v0 = vpop.f32.mrf.mxu2  ;;  %v613_v4 = vpop.f32.mrf.mxu1 }
  0xb7   : > { %v659_v1 = vpop.f32.mrf.mxu3  ;;  %v682_v2 = vsel %vm663_vm1, %v635_v0, -inf }
  0xb8   : > { %683 = vmax.xlane.f32.xlu2 %v682_v2  ;;  %677 = vmax.xlane.f32.xlu0 %v676_v63  ;;  %v685_v5 = vsel %vm663_vm1, %v659_v1, -inf }
  0xbe   : > { %v637_v6 = vpop.f32.mrf.mxu2 }
  0xbf   : > { %v661_v7 = vpop.f32.mrf.mxu3 }
  0xc0   : > { %686 = vmax.xlane.f32.xlu2 %v685_v5 }
 0x112   : > { %v666_v8 = vpop.xlane.xlu1 %665 }
 0x113   : > { %v688_v9 = vsub.f32 %v491_v48, %v666_v8  ;;  %v1475_v48 = vld [vmem:[%s396_s13] sm:$0xff] }
 0x114   : > { %776 = vmatpush.bf16.msra.mxu0 %v1475_v48 }
 0x115   : > { %v696_v10 = vmul.f32 1.442695, %v688_v9 }
 0x117   : > { %1534 = vpow2.f32 %v696_v10 }
 0x118   : > { %864 = vmatpush.bf16.msrb.mxu0 %v1479_v53 }
 0x11a   : > { %v669_v13 = vpop.xlane.xlu1 %668 }
 0x11b   : > { %v672_v11 = vpop.xlane.xlu0 %671  ;;  %v689_v15 = vsub.f32 %v515_v49, %v669_v13  ;;  %v1477_v49 = vld [vmem:[%s396_s13 + $0x10] sm:$0xff] }
 0x11c   : > { %v690_v12 = vsub.f32 %v539_v51, %v672_v11  ;;  %820 = vmatpush.bf16.msra.mxu2 %v1477_v49  ;;  %v1476_v51 = vld [vmem:[%s396_s13 + $0x8] sm:$0xff] }
 0x11d   : > { %v1801_v16 = vpop.eup %1534  ;;  %v698_v18 = vmul.f32 1.442695, %v689_v15  ;;  %798 = vmatpush.bf16.msra.mxu1 %v1476_v51 }
 0x11e   : > { %v700_v14 = vmul.f32 1.442695, %v690_v12  ;;  %v712_v17 = vsel %vm663_vm1, %v1801_v16, 0.0 }
 0x11f   : > { %713 = vadd.xlane.f32.xlu1 %v712_v17 }
 0x120   : > { %1536 = vpow2.f32 %v700_v14 }
 0x121   : > { %1538 = vpow2.f32 %v698_v18  ;;  %886 = vmatpush.bf16.msrb.mxu1 %v1480_v58 }
 0x123   : > { %v675_v19 = vpop.xlane.xlu0 %674  ;;  %v681_v24 = vpop.xlane.xlu1 %680 }
 0x124   : > { %v691_v20 = vsub.f32 %v563_v52, %v675_v19  ;;  %v693_v31 = vsub.f32 %v611_v60, %v681_v24  ;;  %v1481_v52 = vld [vmem:[%s396_s13 + $0x30] sm:$0xff]  ;;  %v1483_v24 = vld [vmem:[%s1905_s3] sm:$0xff]  ;;  %s400_s13 = scalar_lea.vmem %s1907_s5, %s1340_s10 }
 0x125   : > { %908 = vmatpush.bf16.msrb.mxu2 %v1481_v52 }
 0x126   : > { %v1805_v21 = vpop.eup %1536  ;;  %v702_v22 = vmul.f32 1.442695, %v691_v20  ;;  %v706_v36 = vmul.f32 1.442695, %v693_v31  ;;  %v1488_v31 = vld [vmem:[%s1905_s3 + $0x28] sm:$0xff] }
 0x127   : > { %v718_v23 = vsel %vm663_vm1, %v1805_v21, 0.0  ;;  %v1809_v27 = vpop.eup %1538 }
 0x128   : > { %1540 = vpow2.f32 %v702_v22  ;;  %719 = vadd.xlane.f32.xlu2 %v718_v23  ;;  %v715_v34 = vsel %vm663_vm1, %v1809_v27, 0.0 }
 0x12b   : > { %v684_v25 = vpop.xlane.xlu2 %683  ;;  %v678_v26 = vpop.xlane.xlu0 %677 }
 0x12c   : > { %v694_v28 = vsub.f32 %v635_v0, %v684_v25  ;;  %v692_v29 = vsub.f32 %v587_v61, %v678_v26  ;;  %v1485_v25 = vld [vmem:[%s1905_s3 + $0x10] sm:$0xff]  ;;  %v1486_v26 = vld [vmem:[%s1905_s3 + $0x18] sm:$0xff] }
 0x12e   : > { %v1811_v30 = vpop.eup %1540  ;;  %v708_v32 = vmul.f32 1.442695, %v694_v28  ;;  %v704_v33 = vmul.f32 1.442695, %v692_v29  ;;  %v1487_v28 = vld [vmem:[%s1905_s3 + $0x20] sm:$0xff]  ;;  %v1489_v29 = vld [vmem:[%s1905_s3 + $0x30] sm:$0xff] }
 0x12f   : > { %v721_v35 = vsel %vm663_vm1, %v1811_v30, 0.0 }
 0x130   : > { %1542 = vpow2.f32 %v708_v32  ;;  %716 = vadd.xlane.f32.xlu2 %v715_v34  ;;  %722 = vadd.xlane.f32.xlu0 %v721_v35 }
 0x131   : > { %1544 = vpow2.f32 %v704_v33 }
 0x132   : > { %1546 = vpow2.f32 %v706_v36 }
 0x133   : > { %v687_v37 = vpop.xlane.xlu2 %686 }
 0x134   : > { %v695_v38 = vsub.f32 %v659_v1, %v687_v37 }
 0x136   : > { %v1543_v39 = vpop.eup %1542  ;;  %v710_v40 = vmul.f32 1.442695, %v695_v38 }
 0x137   : > { %v1545_v41 = vpop.eup %1544  ;;  %v730_v42 = vsel %vm663_vm1, %v1543_v39, 0.0 }
 0x138   : > { %1548 = vpow2.f32 %v710_v40  ;;  %731 = vadd.xlane.f32.xlu0 %v730_v42  ;;  %v724_v43 = vsel %vm663_vm1, %v1545_v41, 0.0  ;;  %v1819_v44 = vpop.eup %1546 }
 0x139   : > { %725 = vadd.xlane.f32.xlu2 %v724_v43  ;;  %v727_v47 = vsel %vm663_vm1, %v1819_v44, 0.0 }
 0x13e   : > { %v1821_v45 = vpop.eup %1548 }
 0x13f   : > { %v733_v46 = vsel %vm663_vm1, %v1821_v45, 0.0 }
 0x140   : > { %734 = vadd.xlane.f32.xlu1 %v733_v46  ;;  %728 = vadd.xlane.f32.xlu0 %v727_v47 }
 0x192   : > { %v714_v54 = vpop.xlane.xlu1 %713 }
 0x193   : > { %1550 = vrcp.f32 %v714_v54 }
 0x199   : > { %v1551_v56 = vpop.eup %1550 }
 0x19a   : > { %v744_v59 = vmul.f32 %v1551_v56, %v1801_v16 }
 0x19b   : > { %v720_v57 = vpop.xlane.xlu2 %719 }
 0x19c   : > { %1552 = vrcp.f32 %v720_v57  ;;  %v752_v60 = vpack.c.bf16 %v744_v59, %v744_v59 }
 0x19e   : > { %1386 = vmatmul.msk.bf16.vlgmr.msra.gmra.mxu0 %vm475_vm0, %v752_v60 }
 0x19f   : > { %976 = vmatpush.bf16.msra.mxu0 %v1483_v24 }
 0x1a2   : > { %v1553_v61 = vpop.eup %1552 }
 0x1a3   : > { %v746_v62 = vmul.f32 %v1553_v61, %v1805_v21  ;;  %v717_v63 = vpop.xlane.xlu2 %716  ;;  %v723_v0 = vpop.xlane.xlu0 %722 }
 0x1a4   : > { %1554 = vrcp.f32 %v717_v63 }
 0x1a5   : > { %v754_v1 = vpack.c.bf16 %v746_v62, %v746_v62  ;;  %1556 = vrcp.f32 %v723_v0 }
 0x1a7   : > { %1396 = vmatmul.msk.bf16.vlgmr.msra.gmra.mxu2 %vm475_vm0, %v754_v1 }
 0x1a8   : > { %1020 = vmatpush.bf16.msra.mxu2 %v1485_v25 }
 0x1aa   : > { %v1555_v2 = vpop.eup %1554 }
 0x1ab   : > { %v1557_v3 = vpop.eup %1556  ;;  %v745_v4 = vmul.f32 %v1555_v2, %v1809_v27  ;;  %v732_v5 = vpop.xlane.xlu0 %731  ;;  %v1484_v27 = vld [vmem:[%s1905_s3 + $0x8] sm:$0xff] }
 0x1ac   : > { %v747_v6 = vmul.f32 %v1557_v3, %v1811_v30  ;;  %v726_v7 = vpop.xlane.xlu2 %725  ;;  %1558 = vrcp.f32 %v732_v5  ;;  %v1490_v30 = vld [vmem:[%s1905_s3 + $0x38] sm:$0xff] }
 0x1ad   : > { %v753_v8 = vpack.c.bf16 %v745_v4, %v745_v4  ;;  %1560 = vrcp.f32 %v726_v7 }
 0x1ae   : > { %v755_v9 = vpack.c.bf16 %v747_v6, %v747_v6 }
 0x1af   : > { %1391 = vmatmul.msk.bf16.vlgmr.msra.gmra.mxu1 %vm475_vm0, %v753_v8 }
 0x1b0   : > { %1401 = vmatmul.msk.bf16.vlgmr.msra.gmra.mxu3 %vm475_vm0, %v755_v9  ;;  %998 = vmatpush.bf16.msra.mxu1 %v1484_v27 }
 0x1b1   : > { %1042 = vmatpush.bf16.msra.mxu3 %v1486_v26 }
 0x1b2   : > { %v1559_v10 = vpop.eup %1558 }
 0x1b3   : > { %v1561_v11 = vpop.eup %1560  ;;  %v750_v12 = vmul.f32 %v1559_v10, %v1543_v39  ;;  %v735_v13 = vpop.xlane.xlu1 %734 }
 0x1b4   : > { %v729_v14 = vpop.xlane.xlu0 %728  ;;  %v748_v15 = vmul.f32 %v1561_v11, %v1545_v41  ;;  %1562 = vrcp.f32 %v735_v13 }
 0x1b5   : > { %v758_v16 = vpack.c.bf16 %v750_v12, %v750_v12  ;;  %1564 = vrcp.f32 %v729_v14 }
 0x1b6   : > { %v756_v17 = vpack.c.bf16 %v748_v15, %v748_v15 }
 0x1b7   : > { %1416 = vmatmul.msk.bf16.vlgmr.msrb.gmra.mxu2 %vm475_vm0, %v758_v16 }
 0x1b8   : > { %1406 = vmatmul.msk.bf16.vlgmr.msrb.gmra.mxu0 %vm475_vm0, %v756_v17  ;;  %1108 = vmatpush.bf16.msrb.mxu2 %v1489_v29 }
 0x1b9   : > { %1064 = vmatpush.bf16.msrb.mxu0 %v1487_v28 }
 0x1ba   : > { %v1563_v18 = vpop.eup %1562 }
 0x1bb   : > { %v1565_v19 = vpop.eup %1564  ;;  %v751_v20 = vmul.f32 %v1563_v18, %v1821_v45  ;;  %v1157_v18 = vld [vmem:[%s400_s13] sm:$0x3] }
 0x1bc   : > { %v749_v21 = vmul.f32 %v1565_v19, %v1819_v44  ;;  %v1158_v24 = vunpack.c.l.bf16 %v1157_v18 }
 0x1bd   : > { %v759_v22 = vpack.c.bf16 %v751_v20, %v751_v20 }
 0x1be   : > { %v757_v23 = vpack.c.bf16 %v749_v21, %v749_v21  ;;  %v1531_v21 = vld [vmem:[#allocation2] ss:$0 sm:$0xff] }
 0x1c0   : > { %1411 = vmatmul.msk.bf16.vlgmr.msrb.gmra.mxu1 %vm475_vm0, %v757_v23  ;;  %1421 = vmatmul.msk.bf16.vlgmr.msrb.gmra.mxu3 %vm475_vm0, %v759_v22 }
 0x1c1   : > { %1130 = vmatpush.bf16.msrb.mxu3 %v1490_v30  ;;  %1086 = vmatpush.bf16.msrb.mxu1 %v1488_v31  ;;  %v1679_v31 = vmov 128.0  }
 0x1c2   : > { %1566 = vrcp.f32 %v1679_v31 }
 0x21b   : > { %v778_v32 = vpop.f32.mrf.mxu0 }
 0x21c   : > { %v936_v33 = vpack.c.bf16 %v778_v32, %v778_v32  ;;  %v1567_v32 = vpop.eup %1566 }
 0x21d   : > { %vm1168_vm3 = vweird.f32 %v1567_v32 }
 0x21e   : > { %1426 = vmatmul.msk.bf16.vlgmr.msra.gmra.mxu0 %vm475_vm0, %v936_v33  ;;  %v1164_v33 = vmul.f32 128.0, %v1567_v32 }
 0x223   : > { %v780_v34 = vpop.f32.mrf.mxu0 }
 0x224   : > { %v1165_v34 = vsub.f32 1.0, %v1164_v33 }
 0x22a   : > { %v822_v35 = vpop.f32.mrf.mxu2 }
 0x22b   : > { %v938_v36 = vpack.c.bf16 %v822_v35, %v822_v35  ;;  %v1166_v35 = vmul.f32 %v1567_v32, %v1165_v34 }
 0x22c   : > { %v800_v37 = vpop.f32.mrf.mxu1 }
 0x22d   : > { %v937_v38 = vpack.c.bf16 %v800_v37, %v800_v37  ;;  %1436 = vmatmul.msk.bf16.vlgmr.msra.gmra.mxu2 %vm475_vm0, %v938_v36  ;;  %v1167_v36 = vadd.f32 %v1567_v32, %v1166_v35 }
 0x22f   : > { %1431 = vmatmul.msk.bf16.vlgmr.msra.gmra.mxu1 %vm475_vm0, %v937_v38  ;;  %v1169_v37 = vsel %vm1168_vm3, %v1567_v32, %v1167_v36 }
 0x232   : > { %v824_v39 = vpop.f32.mrf.mxu2 }
 0x233   : > { %v844_v40 = vpop.f32.mrf.mxu3 }
 0x234   : > { %v939_v41 = vpack.c.bf16 %v844_v40, %v844_v40  ;;  %v802_v42 = vpop.f32.mrf.mxu1 }
 0x235   : > { %v866_v43 = vpop.f32.mrf.mxu0 }
 0x236   : > { %v940_v44 = vpack.c.bf16 %v866_v43, %v866_v43  ;;  %1441 = vmatmul.msk.bf16.vlgmr.msra.gmra.mxu3 %vm475_vm0, %v939_v41 }
 0x238   : > { %1446 = vmatmul.msk.bf16.vlgmr.msrb.gmra.mxu0 %vm475_vm0, %v940_v44 }
 0x23a   : > { %v910_v45 = vpop.f32.mrf.mxu2 }
 0x23b   : > { %v846_v46 = vpop.f32.mrf.mxu3  ;;  %v942_v47 = vpack.c.bf16 %v910_v45, %v910_v45 }
 0x23d   : > { %v868_v48 = vpop.f32.mrf.mxu0  ;;  %v888_v49 = vpop.f32.mrf.mxu1  ;;  %1456 = vmatmul.msk.bf16.vlgmr.msrb.gmra.mxu2 %vm475_vm0, %v942_v47 }
 0x23e   : > { %v941_v50 = vpack.c.bf16 %v888_v49, %v888_v49 }
 0x240   : > { %1451 = vmatmul.msk.bf16.vlgmr.msrb.gmra.mxu1 %vm475_vm0, %v941_v50 }
 0x242   : > { %v912_v51 = vpop.f32.mrf.mxu2 }
 0x243   : > { %v932_v52 = vpop.f32.mrf.mxu3 }
 0x244   : > { %v943_v53 = vpack.c.bf16 %v932_v52, %v932_v52  ;;  %v1532_v52 = vld [vmem:[#allocation4] ss:$0 sm:$0xff] }
 0x245   : > { %v890_v54 = vpop.f32.mrf.mxu1 }
 0x246   : > { %1461 = vmatmul.msk.bf16.vlgmr.msrb.gmra.mxu3 %vm475_vm0, %v943_v53  ;;  %v1533_v54 = vld [vmem:[#allocation6] ss:$0 sm:$0xff] }
 0x24b   : > { %v934_v55 = vpop.f32.mrf.mxu3 }
 0x29b   : > { %v978_v56 = vpop.f32.mrf.mxu0 }
 0x29c   : > { %v1137_v1 = vsel %vm1136_vm2, %v978_v56, 0.0 }
 0x2a3   : > { %v980_v57 = vpop.f32.mrf.mxu0 }
 0x2ac   : > { %v1000_v58 = vpop.f32.mrf.mxu1 }
 0x2ad   : > { %v1138_v62 = vsel %vm1136_vm2, %v1000_v58, 0.0 }
 0x2ae   : > { %v1139_v3 = vadd.f32 %v1138_v62, %v1137_v1 }
 0x2b0   : > { %v1022_v59 = vpop.f32.mrf.mxu2 }
 0x2b1   : > { %v1140_v2 = vsel %vm1136_vm2, %v1022_v59, 0.0 }
 0x2b2   : > { %v1141_v5 = vadd.f32 %v1140_v2, %v1139_v3 }
 0x2b4   : > { %v1002_v60 = vpop.f32.mrf.mxu1 }
 0x2b5   : > { %v1066_v61 = vpop.f32.mrf.mxu0 }
 0x2b6   : > { %v1144_v11 = vsel %vm1136_vm2, %v1066_v61, 0.0 }
 0x2b8   : > { %v1024_v63 = vpop.f32.mrf.mxu2 }
 0x2b9   : > { %v1044_v0 = vpop.f32.mrf.mxu3 }
 0x2ba   : > { %v1142_v4 = vsel %vm1136_vm2, %v1044_v0, 0.0 }
 0x2bb   : > { %v1143_v8 = vadd.f32 %v1142_v4, %v1141_v5 }
 0x2bd   : > { %v1068_v6 = vpop.f32.mrf.mxu0  ;;  %v1088_v7 = vpop.f32.mrf.mxu1  ;;  %v1145_v12 = vadd.f32 %v1144_v11, %v1143_v8 }
 0x2be   : > { %v1146_v13 = vsel %vm1136_vm2, %v1088_v7, 0.0 }
 0x2bf   : > { %v1147_v16 = vadd.f32 %v1146_v13, %v1145_v12 }
 0x2c0   : > { %v1110_v9 = vpop.f32.mrf.mxu2 }
 0x2c1   : > { %v1046_v10 = vpop.f32.mrf.mxu3  ;;  %v1148_v15 = vsel %vm1136_vm2, %v1110_v9, 0.0 }
 0x2c2   : > { %v1149_v19 = vadd.f32 %v1148_v15, %v1147_v16 }
 0x2c5   : > { %v1090_v14 = vpop.f32.mrf.mxu1 }
 0x2c8   : > { %v1112_v17 = vpop.f32.mrf.mxu2 }
 0x2c9   : > { %v1132_v20 = vpop.f32.mrf.mxu3 }
 0x2ca   : > { %v1150_v22 = vsel %vm1136_vm2, %v1132_v20, 0.0 }
 0x2cb   : > { %v1151_v23 = vadd.f32 %v1150_v22, %v1149_v19 }
 0x2cd   : > { %v1156_v25 = vadd.f32 %v1531_v21, %v1151_v23 }
 0x2cf   : > { %v1159_v26 = vadd.f32 %v1158_v24, %v1156_v25 }
 0x2d1   : > { %v1134_v27 = vpop.f32.mrf.mxu3  ;;  %v1160_v28 = vsel %vm1136_vm2, %v1159_v26, 0.0  ;;  %v1171_v29 = vmul.f32 %v1159_v26, %v1159_v26 }
 0x2d2   : > { %1161 = vadd.xlane.f32.xlu1 %v1160_v28 }
 0x2d3   : > { %v1172_v30 = vsel %vm1136_vm2, %v1171_v29, 0.0 }
 0x2d4   : > { %1173 = vadd.xlane.f32.xlu2 %v1172_v30 }
 0x345   : > { %v1162_v38 = vpop.xlane.xlu1 %1161 }
 0x346   : > { %v1170_v39 = vmul.f32 %v1169_v37, %v1162_v38 }
 0x347   : > { %v1174_v40 = vpop.xlane.xlu2 %1173 }
 0x348   : > { %v1176_v41 = vmul.f32 %v1170_v39, %v1170_v39  ;;  %v1175_v42 = vmul.f32 %v1174_v40, %v1169_v37  ;;  %v1178_v51 = vsub.f32 %v1159_v26, %v1170_v39 }
 0x34a   : > { %v1177_v43 = vsub.f32 %v1175_v42, %v1176_v41 }
 0x34c   : > { %v1179_v44 = vadd.f32 1e-05, %v1177_v43 }
 0x34e   : > { %1568 = vrsqrt.f32 %v1179_v44  ;;  %vm1186_vm5 = vweird.f32 %v1179_v44 }
 0x354   : > { %v1569_v45 = vpop.eup %1568 }
 0x355   : > { %v1181_v46 = vmul.f32 %v1569_v45, %v1179_v44  ;;  %vm1187_vm4 = vweird.f32 %v1569_v45 }
 0x356   : > { %vm1188_vm6 = vmor %vm1186_vm5, %vm1187_vm4 }
 0x357   : > { %v1182_v47 = vmul.f32 %v1569_v45, %v1181_v46 }
 0x359   : > { %v1183_v48 = vmul.f32 0.5, %v1182_v47 }
 0x35b   : > { %v1184_v49 = vsub.f32 1.5, %v1183_v48 }
 0x35d   : > { %v1185_v50 = vmul.f32 %v1569_v45, %v1184_v49 }
 0x35f   : > { %v1189_v53 = vsel %vm1188_vm6, %v1569_v45, %v1185_v50 }
 0x360   : > { %v1190_v55 = vmul.f32 %v1189_v53, %v1178_v51 }
 0x362   : > { %v1195_v56 = vmul.f32 %v1532_v52, %v1190_v55 }
 0x364   : > { %v1200_v57 = vadd.f32 %v1533_v54, %v1195_v56 }
 0x366   : > { %v1201_v58 = vpack.c.bf16 %v1200_v57, %v1200_v57 }
 0x368   : > { %1202 = vst [vmem:[%s404_s16] sm:$0x3] %v1201_v58 }
 0x369 PF: > { %s20_s27 = sadd.s32 1, %s1674_s27  }
 0x36a   : > { %p17_p7 = scmp.ge.s32.totalorder %s20_s27, 4  }
 0x36c   :  { %19 = sbr.rel (!%p17_p7) target bundleno = 2 (0x2), region = 104 }
 0x371   :  { %1222 = vsyncpa [#allocation3], 1 }
 0x372   :  { %1224 = vsyncpa [#allocation3 + $0x1], 1 }
 0x373   :  { %1225 = vsyncpa [#allocation5], 1 }

// kernel: simple_vit_forward.33
= control target key start
LH: loop header
LB: loop body
LE: loop exit
PB: predicated region body
PF: predicated region fallthrough
CT: control target
= control target key end

     0   :  { %14 = vsyncpa [#allocation3], 0  ;;  %s1806_s0 = inlined_call_operand.vmem [shape: bf16[2,8,4,16], index: 0, kind: input, shape index: {}]   ;;  %s1807_s1 = inlined_call_operand.vmem [shape: bf16[2,8,4,16], index: 1, kind: input, shape index: {}]   ;;  %s1808_s2 = inlined_call_operand.vmem [shape: bf16[2,8,4,16], index: 2, kind: input, shape index: {}]   ;;  %s1809_s3 = inlined_call_operand.vmem [shape: bf16[8,16,128], index: 3, kind: input, shape index: {}]   ;;  %s1810_s4 = inlined_call_operand.hbm [shape: f32[1,128], index: 4, kind: input, shape index: {}]   ;;  %s1811_s5 = inlined_call_operand.vmem [shape: bf16[2,4,128], index: 5, kind: input, shape index: {}]   ;;  %s1812_s6 = inlined_call_operand.hbm [shape: f32[1,128], index: 6, kind: input, shape index: {}]   ;;  %s1813_s7 = inlined_call_operand.hbm [shape: f32[1,128], index: 7, kind: input, shape index: {}]   ;;  %s1814_s8 = inlined_call_operand.vmem [shape: f32[4,4], index: 8, kind: input, shape index: {}]   ;;  %s1815_s9 = inlined_call_operand.vmem [shape: bf16[2,4,128], index: 9, kind: output, shape index: {}]  }
   0x1   :  { %15 = vsyncpa [#allocation5], 0  ;;  %s1600_s30 = smov 0  }
   0x2 LB: > { %s288_s12 = sshll.u32 %s1812_s6, 4  ;;  %s1273_s13 = sadd.s32 4294967295, %s1544_s30   ;;  %s1544_s30 = sphi %s1600_s30, %s21_s30   ;;  %s289_s12 = int_to_ptr.hbm [resolvable:$true] %s288_s12 }
   0x3   : > { %p1275_p0 = scmp.ge.s32.totalorder %s1544_s30, 1  ;;  %p261_p1 = scmp.lt.s32.totalorder %s1544_s30, 3 }
   0x4   : > { %p1383_p2 = scmp.eq.s32.totalorder %s1273_s13, 0  ;;  %s1546_s15 = smov [#allocation4]  }
   0x5   : > { %p1611_p3 = pnand %p1275_p0, %p261_p1  ;;  %s290_s16 = sshll.u32 %s1546_s15, 4  ;;  %s291_s16 = int_to_ptr.vmem [resolvable:$true] %s290_s16 }
   0x6   : > { %s276_s19 = sshll.u32 %s1810_s4, 4  ;;  %s300_s22 = sshll.u32 %s1813_s7, 4  ;;  %s277_s19 = int_to_ptr.hbm [resolvable:$true] %s276_s19  ;;  %s301_s22 = int_to_ptr.hbm [resolvable:$true] %s300_s22 }
   0x7   : > { %p1373_p4 = pneg %p1611_p3  ;;  %s1547_s23 = smov [#allocation2]  }
   0x8   : > { %s278_s24 = sshll.u32 %s1547_s23, 4  ;;  %s1548_s25 = smov [#allocation6]   ;;  %s279_s24 = int_to_ptr.vmem [resolvable:$true] %s278_s24 }
   0x9   : > { %p1374_p5 = pnand %p1383_p2, %p1373_p4  ;;  %s302_s26 = sshll.u32 %s1548_s25, 4  ;;  %s303_s26 = int_to_ptr.vmem [resolvable:$true] %s302_s26 }
   0xa   : > { %349 = sbr.rel (%p1611_p3) target bundleno = 875 (0x36b), region = 56 }
   0xb   : > { %1379 = dma.hbm_to_vmem [thread:$0]  (!%p1374_p5), %s289_s12, 16, %s291_s16, [#allocation5]  }
   0xc   : > { %1376 = dma.hbm_to_vmem [thread:$0]  (!%p1374_p5), %s277_s19, 16, %s279_s24, [#allocation3]  }
   0xd   : > { %1382 = dma.hbm_to_vmem [thread:$0]  (!%p1374_p5), %s301_s22, 16, %s303_s26, [#allocation5]  }
   0xf   : > { %1535 = dma.done.wait (%p1383_p2), [#allocation3], 16  }
  0x10   : > { %1537 = vsyncadd (%p1383_p2), [#allocation3], 4294967280 }
  0x11   : > { %1539 = dma.done.wait (%p1383_p2), [#allocation5], 32  }
  0x12   : > { %1541 = vsyncadd (%p1383_p2), [#allocation5], 4294967264  ;;  %p409_p6 = scmp.lt.s32.totalorder %s1273_s13, 1  ;;  %vm482_vm0 = vcmask 130048   ;;  %v481_v48 = vld [vmem:[%s1814_s8] sm:$0xf] }
  0x13   : > { %vm635_vm1 = vcmask 27648   ;;  %vm736_vm2 = vcmask 1041408   ;;  %vm732_vm3 = vcmask 31744   ;;  %vm1086_vm4 = vcmask 1043456  }
  0x14   : > { %s1818_s13 = smov (!%p409_p6, %s1273_s13), 1 }
  0x15   : > { %s1633_s27 = sshll.u32 %s1818_s13, 4  ;;  %s1290_s17 = sshll.u32 %s1818_s13, 1 }
  0x16   : > { %s1639_s10 = scalar_lea.vmem %s1807_s1, %s1633_s27  ;;  %s1645_s14 = scalar_lea.vmem %s1806_s0, %s1633_s27 }
  0x17   : > { %v465_v0 = vld [vmem:[%s1639_s10] sm:$0x3]  ;;  %v466_v1 = vld [vmem:[%s1639_s10 + $0x2] sm:$0x3]  ;;  %v467_v2 = vld [vmem:[%s1639_s10 + $0x4] sm:$0x3]  ;;  %s423_s19 = scalar_lea.vmem %s1808_s2, %s1633_s27  ;;  %s427_s20 = scalar_lea.vmem %s1811_s5, %s1290_s17 }
  0x18   : > { %v487_v3 = vsel %vm482_vm0, %v465_v0, 0  ;;  %v506_v4 = vsel %vm482_vm0, %v466_v1, 0  ;;  %v525_v5 = vsel %vm482_vm0, %v467_v2, 0  ;;  %v468_v6 = vld [vmem:[%s1639_s10 + $0x6] sm:$0x3]  ;;  %s431_s23 = scalar_lea.vmem %s1815_s9, %s1290_s17 }
  0x19   : > { %496 = vmatpush.bf16.xpose.msra.mxu0 %v487_v3  ;;  %515 = vmatpush.bf16.xpose.msra.mxu1 %v506_v4  ;;  %v544_v7 = vsel %vm482_vm0, %v468_v6, 0  ;;  %v433_v8 = vld [vmem:[%s1645_s14] sm:$0x3]  ;;  %v434_v9 = vld [vmem:[%s1645_s14 + $0x2] sm:$0x3] }
  0x1a   : > { %534 = vmatpush.bf16.xpose.msra.mxu2 %v525_v5  ;;  %553 = vmatpush.bf16.xpose.msra.mxu3 %v544_v7  ;;  %v441_v10 = vunpack.c.l.bf16 %v433_v8  ;;  %v442_v11 = vunpack.c.l.bf16 %v434_v9  ;;  %v435_v12 = vld [vmem:[%s1645_s14 + $0x4] sm:$0x3]  ;;  %v436_v13 = vld [vmem:[%s1645_s14 + $0x6] sm:$0x3]  ;;  %v471_v14 = vld [vmem:[%s1639_s10 + $0xc] sm:$0x3] }
  0x1b   : > { %v443_v15 = vunpack.c.l.bf16 %v435_v12  ;;  %v444_v16 = vunpack.c.l.bf16 %v436_v13  ;;  %v601_v17 = vsel %vm482_vm0, %v471_v14, 0  ;;  %v472_v18 = vld [vmem:[%s1639_s10 + $0xe] sm:$0x3]  ;;  %v470_v19 = vld [vmem:[%s1639_s10 + $0xa] sm:$0x3] }
  0x1c   : > { %v449_v20 = vmul.f32 0.25, %v441_v10  ;;  %v450_v21 = vmul.f32 0.25, %v442_v11  ;;  %v620_v22 = vsel %vm482_vm0, %v472_v18, 0  ;;  %v582_v23 = vsel %vm482_vm0, %v470_v19, 0  ;;  %v469_v24 = vld [vmem:[%s1639_s10 + $0x8] sm:$0x3] }
  0x1d   : > { %v451_v25 = vmul.f32 0.25, %v443_v15  ;;  %v452_v26 = vmul.f32 0.25, %v444_v16  ;;  %v563_v27 = vsel %vm482_vm0, %v469_v24, 0  ;;  %v438_v32 = vld [vmem:[%s1645_s14 + $0xa] sm:$0x3] }
  0x1e   : > { %v457_v28 = vpack.c.bf16 %v449_v20, %v449_v20  ;;  %v458_v29 = vpack.c.bf16 %v450_v21, %v450_v21  ;;  %v437_v33 = vld [vmem:[%s1645_s14 + $0x8] sm:$0x3]  ;;  %v439_v34 = vld [vmem:[%s1645_s14 + $0xc] sm:$0x3]  ;;  %v440_v35 = vld [vmem:[%s1645_s14 + $0xe] sm:$0x3]  ;;  %v446_v36 = vunpack.c.l.bf16 %v438_v32 }
  0x1f   : > { %v459_v30 = vpack.c.bf16 %v451_v25, %v451_v25  ;;  %v460_v31 = vpack.c.bf16 %v452_v26, %v452_v26  ;;  %v445_v37 = vunpack.c.l.bf16 %v437_v33  ;;  %v447_v38 = vunpack.c.l.bf16 %v439_v34 }
  0x20   : > { %1292 = vmatmul.msk.bf16.vlgmr.msra.gmra.mxu0 %vm482_vm0, %v457_v28  ;;  %1293 = vmatmul.msk.bf16.vlgmr.msra.gmra.mxu1 %vm482_vm0, %v458_v29  ;;  %v448_v39 = vunpack.c.l.bf16 %v440_v35  ;;  %v454_v40 = vmul.f32 0.25, %v446_v36 }
  0x21   : > { %591 = vmatpush.bf16.xpose.msrb.mxu1 %v582_v23  ;;  %572 = vmatpush.bf16.xpose.msrb.mxu0 %v563_v27  ;;  %v453_v41 = vmul.f32 0.25, %v445_v37  ;;  %v455_v42 = vmul.f32 0.25, %v447_v38 }
  0x22   : > { %610 = vmatpush.bf16.xpose.msrb.mxu2 %v601_v17  ;;  %629 = vmatpush.bf16.xpose.msrb.mxu3 %v620_v22  ;;  %v456_v43 = vmul.f32 0.25, %v448_v39  ;;  %v462_v44 = vpack.c.bf16 %v454_v40, %v454_v40 }
  0x23   : > { %1294 = vmatmul.msk.bf16.vlgmr.msra.gmra.mxu2 %vm482_vm0, %v459_v30  ;;  %1295 = vmatmul.msk.bf16.vlgmr.msra.gmra.mxu3 %vm482_vm0, %v460_v31  ;;  %v461_v45 = vpack.c.bf16 %v453_v41, %v453_v41  ;;  %v463_v46 = vpack.c.bf16 %v455_v42, %v455_v42 }
  0x24   : > { %v464_v47 = vpack.c.bf16 %v456_v43, %v456_v43 }
  0x30   : > { %1297 = vmatmul.msk.bf16.vlgmr.msrb.gmra.mxu1 %vm482_vm0, %v462_v44  ;;  %1296 = vmatmul.msk.bf16.vlgmr.msrb.gmra.mxu0 %vm482_vm0, %v461_v45 }
  0x33   : > { %1298 = vmatmul.msk.bf16.vlgmr.msrb.gmra.mxu2 %vm482_vm0, %v463_v46  ;;  %1299 = vmatmul.msk.bf16.vlgmr.msrb.gmra.mxu3 %vm482_vm0, %v464_v47 }
  0x9d   : > { %v498_v49 = vpop.f32.mrf.mxu0  ;;  %v517_v50 = vpop.f32.mrf.mxu1 }
  0x9e   : > { %v499_v51 = vadd.f32 %v498_v49, %v481_v48  ;;  %v518_v53 = vadd.f32 %v517_v50, %v481_v48 }
  0xa0   : > { %v636_v52 = vsel %vm635_vm1, %v499_v51, -inf  ;;  %v639_v59 = vsel %vm635_vm1, %v518_v53, -inf }
  0xa1   : > { %637 = vmax.xlane.f32.xlu1 %v636_v52 }
  0xa5   : > { %v519_v57 = vpop.f32.mrf.mxu1  ;;  %v500_v58 = vpop.f32.mrf.mxu0 }
  0xa6   : > { %v536_v54 = vpop.f32.mrf.mxu2  ;;  %v555_v55 = vpop.f32.mrf.mxu3  ;;  %v473_v57 = vld [vmem:[%s423_s19] sm:$0x3] }
  0xa7   : > { %v537_v56 = vadd.f32 %v536_v54, %v481_v48  ;;  %v556_v61 = vadd.f32 %v555_v55, %v481_v48  ;;  %v738_v58 = vsel %vm736_vm2, %v473_v57, 0 }
  0xa8   : > { %747 = vmatpush.bf16.msra.mxu0 %v738_v58 }
  0xa9   : > { %v642_v60 = vsel %vm635_vm1, %v537_v56, -inf  ;;  %640 = vmax.xlane.f32.xlu1 %v639_v59  ;;  %v645_v1 = vsel %vm635_vm1, %v556_v61, -inf  ;;  %v475_v59 = vld [vmem:[%s423_s19 + $0x4] sm:$0x3] }
  0xaa   : > { %643 = vmax.xlane.f32.xlu0 %v642_v60  ;;  %v776_v60 = vsel %vm736_vm2, %v475_v59, 0 }
  0xab   : > { %785 = vmatpush.bf16.msra.mxu2 %v776_v60 }
  0xad   : > { %v593_v0 = vpop.f32.mrf.mxu1  ;;  %v574_v2 = vpop.f32.mrf.mxu0 }
  0xae   : > { %v538_v62 = vpop.f32.mrf.mxu2  ;;  %v557_v63 = vpop.f32.mrf.mxu3  ;;  %v594_v3 = vadd.f32 %v593_v0, %v481_v48  ;;  %v575_v5 = vadd.f32 %v574_v2, %v481_v48  ;;  %v477_v2 = vld [vmem:[%s423_s19 + $0x8] sm:$0x3] }
  0xaf   : > { %v474_v63 = vld [vmem:[%s423_s19 + $0x2] sm:$0x3] }
  0xb0   : > { %v651_v4 = vsel %vm635_vm1, %v594_v3, -inf  ;;  %v648_v9 = vsel %vm635_vm1, %v575_v5, -inf  ;;  %v757_v0 = vsel %vm736_vm2, %v474_v63, 0 }
  0xb1   : > { %652 = vmax.xlane.f32.xlu1 %v651_v4  ;;  %766 = vmatpush.bf16.msra.mxu1 %v757_v0 }
  0xb2   : > { %646 = vmax.xlane.f32.xlu0 %v645_v1  ;;  %v479_v1 = vld [vmem:[%s423_s19 + $0xc] sm:$0x3] }
  0xb3   : > { %v852_v4 = vsel %vm736_vm2, %v479_v1, 0 }
  0xb4   : > { %861 = vmatpush.bf16.msrb.mxu2 %v852_v4 }
  0xb5   : > { %v576_v10 = vpop.f32.mrf.mxu0  ;;  %v595_v11 = vpop.f32.mrf.mxu1 }
  0xb6   : > { %v612_v6 = vpop.f32.mrf.mxu2  ;;  %v631_v7 = vpop.f32.mrf.mxu3  ;;  %v478_v10 = vld [vmem:[%s423_s19 + $0xa] sm:$0x3] }
  0xb7   : > { %v613_v8 = vadd.f32 %v612_v6, %v481_v48  ;;  %v632_v13 = vadd.f32 %v631_v7, %v481_v48  ;;  %v480_v6 = vld [vmem:[%s423_s19 + $0xe] sm:$0x3] }
  0xb8   : > { %v871_v7 = vsel %vm736_vm2, %v480_v6, 0 }
  0xb9   : > { %v654_v12 = vsel %vm635_vm1, %v613_v8, -inf  ;;  %v657_v16 = vsel %vm635_vm1, %v632_v13, -inf }
  0xba   : > { %655 = vmax.xlane.f32.xlu2 %v654_v12  ;;  %649 = vmax.xlane.f32.xlu0 %v648_v9  ;;  %v833_v12 = vsel %vm736_vm2, %v478_v10, 0 }
  0xbb   : > { %842 = vmatpush.bf16.msrb.mxu1 %v833_v12 }
  0xbe   : > { %v614_v14 = vpop.f32.mrf.mxu2  ;;  %v633_v15 = vpop.f32.mrf.mxu3 }
  0xc2   : > { %658 = vmax.xlane.f32.xlu2 %v657_v16 }
 0x114   : > { %v638_v17 = vpop.xlane.xlu1 %637 }
 0x115   : > { %v660_v18 = vsub.f32 %v499_v51, %v638_v17 }
 0x117   : > { %v668_v19 = vmul.f32 1.442695, %v660_v18 }
 0x119   : > { %1404 = vpow2.f32 %v668_v19 }
 0x11c   : > { %v641_v22 = vpop.xlane.xlu1 %640 }
 0x11d   : > { %v644_v20 = vpop.xlane.xlu0 %643  ;;  %v661_v24 = vsub.f32 %v518_v53, %v641_v22 }
 0x11e   : > { %v662_v21 = vsub.f32 %v537_v56, %v644_v20 }
 0x11f   : > { %v1690_v25 = vpop.eup %1404  ;;  %v670_v27 = vmul.f32 1.442695, %v661_v24 }
 0x120   : > { %v672_v23 = vmul.f32 1.442695, %v662_v21  ;;  %v684_v26 = vsel %vm635_vm1, %v1690_v25, 0.0 }
 0x121   : > { %685 = vadd.xlane.f32.xlu1 %v684_v26 }
 0x122   : > { %1406 = vpow2.f32 %v672_v23 }
 0x123   : > { %1408 = vpow2.f32 %v670_v27 }
 0x124   : > { %v653_v33 = vpop.xlane.xlu1 %652 }
 0x125   : > { %v647_v28 = vpop.xlane.xlu0 %646  ;;  %v665_v40 = vsub.f32 %v594_v3, %v653_v33 }
 0x126   : > { %v663_v29 = vsub.f32 %v556_v61, %v647_v28  ;;  %v476_v61 = vld [vmem:[%s423_s19 + $0x6] sm:$0x3] }
 0x127   : > { %v678_v45 = vmul.f32 1.442695, %v665_v40  ;;  %v795_v62 = vsel %vm736_vm2, %v476_v61, 0 }
 0x128   : > { %v1694_v30 = vpop.eup %1406  ;;  %v674_v31 = vmul.f32 1.442695, %v663_v29  ;;  %804 = vmatpush.bf16.msra.mxu3 %v795_v62 }
 0x129   : > { %v690_v32 = vsel %vm635_vm1, %v1694_v30, 0.0  ;;  %v1698_v36 = vpop.eup %1408 }
 0x12a   : > { %1410 = vpow2.f32 %v674_v31  ;;  %691 = vadd.xlane.f32.xlu2 %v690_v32  ;;  %v687_v44 = vsel %vm635_vm1, %v1698_v36, 0.0 }
 0x12c   : > { %880 = vmatpush.bf16.msrb.mxu3 %v871_v7 }
 0x12d   : > { %v656_v34 = vpop.xlane.xlu2 %655  ;;  %v650_v35 = vpop.xlane.xlu0 %649 }
 0x12e   : > { %v666_v37 = vsub.f32 %v613_v8, %v656_v34  ;;  %v664_v38 = vsub.f32 %v575_v5, %v650_v35  ;;  %v814_v5 = vsel %vm736_vm2, %v477_v2, 0 }
 0x12f   : > { %823 = vmatpush.bf16.msrb.mxu0 %v814_v5 }
 0x130   : > { %v1700_v39 = vpop.eup %1410  ;;  %v680_v41 = vmul.f32 1.442695, %v666_v37  ;;  %v676_v42 = vmul.f32 1.442695, %v664_v38 }
 0x131   : > { %v693_v43 = vsel %vm635_vm1, %v1700_v39, 0.0 }
 0x132   : > { %1412 = vpow2.f32 %v680_v41  ;;  %694 = vadd.xlane.f32.xlu0 %v693_v43  ;;  %688 = vadd.xlane.f32.xlu2 %v687_v44  ;;  %v1353_v41 = vld [vmem:[%s1809_s3] sm:$0xff]  ;;  %v1356_v43 = vld [vmem:[%s1809_s3 + $0x18] sm:$0xff]  ;;  %v1354_v44 = vld [vmem:[%s1809_s3 + $0x8] sm:$0xff] }
 0x133   : > { %1414 = vpow2.f32 %v676_v42  ;;  %v1355_v42 = vld [vmem:[%s1809_s3 + $0x10] sm:$0xff] }
 0x134   : > { %1416 = vpow2.f32 %v678_v45  ;;  %v1359_v45 = vld [vmem:[%s1809_s3 + $0x30] sm:$0xff] }
 0x135   : > { %v659_v46 = vpop.xlane.xlu2 %658 }
 0x136   : > { %v667_v47 = vsub.f32 %v632_v13, %v659_v46  ;;  %v1357_v46 = vld [vmem:[%s1809_s3 + $0x20] sm:$0xff] }
 0x138   : > { %v1706_v48 = vpop.eup %1412  ;;  %v682_v49 = vmul.f32 1.442695, %v667_v47  ;;  %v1360_v47 = vld [vmem:[%s1809_s3 + $0x38] sm:$0xff] }
 0x139   : > { %v1708_v50 = vpop.eup %1414  ;;  %v702_v51 = vsel %vm635_vm1, %v1706_v48, 0.0 }
 0x13a   : > { %1418 = vpow2.f32 %v682_v49  ;;  %703 = vadd.xlane.f32.xlu0 %v702_v51  ;;  %v696_v52 = vsel %vm635_vm1, %v1708_v50, 0.0  ;;  %v1714_v53 = vpop.eup %1416 }
 0x13b   : > { %697 = vadd.xlane.f32.xlu2 %v696_v52  ;;  %v699_v56 = vsel %vm635_vm1, %v1714_v53, 0.0 }
 0x140   : > { %v1716_v54 = vpop.eup %1418 }
 0x141   : > { %v705_v55 = vsel %vm635_vm1, %v1716_v54, 0.0 }
 0x142   : > { %706 = vadd.xlane.f32.xlu1 %v705_v55  ;;  %700 = vadd.xlane.f32.xlu0 %v699_v56 }
 0x194   : > { %v686_v3 = vpop.xlane.xlu1 %685 }
 0x195   : > { %1420 = vrcp.f32 %v686_v3 }
 0x19b   : > { %v1421_v8 = vpop.eup %1420 }
 0x19c   : > { %v716_v11 = vmul.f32 %v1421_v8, %v1690_v25 }
 0x19d   : > { %v692_v9 = vpop.xlane.xlu2 %691 }
 0x19e   : > { %1422 = vrcp.f32 %v692_v9  ;;  %v724_v13 = vpack.c.bf16 %v716_v11, %v716_v11 }
 0x1a0   : > { %1300 = vmatmul.msk.bf16.vlgmr.msra.gmra.mxu0 %vm732_vm3, %v724_v13 }
 0x1a1   : > { %926 = vmatpush.bf16.msra.mxu0 %v1353_v41 }
 0x1a4   : > { %v1423_v14 = vpop.eup %1422 }
 0x1a5   : > { %v718_v15 = vmul.f32 %v1423_v14, %v1694_v30  ;;  %v695_v16 = vpop.xlane.xlu0 %694  ;;  %v689_v17 = vpop.xlane.xlu2 %688 }
 0x1a6   : > { %1424 = vrcp.f32 %v695_v16 }
 0x1a7   : > { %v726_v18 = vpack.c.bf16 %v718_v15, %v718_v15  ;;  %1426 = vrcp.f32 %v689_v17 }
 0x1a9   : > { %1302 = vmatmul.msk.bf16.vlgmr.msra.gmra.mxu2 %vm732_vm3, %v726_v18 }
 0x1aa   : > { %970 = vmatpush.bf16.msra.mxu2 %v1355_v42 }
 0x1ac   : > { %v1425_v19 = vpop.eup %1424 }
 0x1ad   : > { %v1427_v20 = vpop.eup %1426  ;;  %v719_v21 = vmul.f32 %v1425_v19, %v1700_v39  ;;  %v704_v22 = vpop.xlane.xlu0 %703 }
 0x1ae   : > { %v717_v23 = vmul.f32 %v1427_v20, %v1698_v36  ;;  %1428 = vrcp.f32 %v704_v22  ;;  %v698_v24 = vpop.xlane.xlu2 %697 }
 0x1af   : > { %v727_v25 = vpack.c.bf16 %v719_v21, %v719_v21  ;;  %1430 = vrcp.f32 %v698_v24 }
 0x1b0   : > { %v725_v26 = vpack.c.bf16 %v717_v23, %v717_v23 }
 0x1b1   : > { %1303 = vmatmul.msk.bf16.vlgmr.msra.gmra.mxu3 %vm732_vm3, %v727_v25 }
 0x1b2   : > { %1301 = vmatmul.msk.bf16.vlgmr.msra.gmra.mxu1 %vm732_vm3, %v725_v26  ;;  %992 = vmatpush.bf16.msra.mxu3 %v1356_v43 }
 0x1b3   : > { %948 = vmatpush.bf16.msra.mxu1 %v1354_v44 }
 0x1b4   : > { %v1429_v27 = vpop.eup %1428 }
 0x1b5   : > { %v1431_v28 = vpop.eup %1430  ;;  %v722_v29 = vmul.f32 %v1429_v27, %v1706_v48  ;;  %v701_v30 = vpop.xlane.xlu0 %700  ;;  %v1358_v48 = vld [vmem:[%s1809_s3 + $0x28] sm:$0xff] }
 0x1b6   : > { %v707_v31 = vpop.xlane.xlu1 %706  ;;  %v720_v32 = vmul.f32 %v1431_v28, %v1708_v50  ;;  %1432 = vrcp.f32 %v701_v30 }
 0x1b7   : > { %v730_v33 = vpack.c.bf16 %v722_v29, %v722_v29  ;;  %1434 = vrcp.f32 %v707_v31 }
 0x1b8   : > { %v728_v34 = vpack.c.bf16 %v720_v32, %v720_v32 }
 0x1b9   : > { %1306 = vmatmul.msk.bf16.vlgmr.msrb.gmra.mxu2 %vm732_vm3, %v730_v33 }
 0x1ba   : > { %1304 = vmatmul.msk.bf16.vlgmr.msrb.gmra.mxu0 %vm732_vm3, %v728_v34  ;;  %1058 = vmatpush.bf16.msrb.mxu2 %v1359_v45 }
 0x1bb   : > { %1014 = vmatpush.bf16.msrb.mxu0 %v1357_v46 }
 0x1bc   : > { %v1433_v35 = vpop.eup %1432 }
 0x1bd   : > { %v1435_v36 = vpop.eup %1434  ;;  %v721_v37 = vmul.f32 %v1433_v35, %v1714_v53  ;;  %v1107_v35 = vld [vmem:[%s427_s20] sm:$0x3] }
 0x1be   : > { %v723_v38 = vmul.f32 %v1435_v36, %v1716_v54  ;;  %v1108_v41 = vunpack.c.l.bf16 %v1107_v35 }
 0x1bf   : > { %v729_v39 = vpack.c.bf16 %v721_v37, %v721_v37 }
 0x1c0   : > { %v731_v40 = vpack.c.bf16 %v723_v38, %v723_v38  ;;  %v1401_v38 = vld [vmem:[#allocation2] ss:$0 sm:$0xff] }
 0x1c2   : > { %1305 = vmatmul.msk.bf16.vlgmr.msrb.gmra.mxu1 %vm732_vm3, %v729_v39  ;;  %1307 = vmatmul.msk.bf16.vlgmr.msrb.gmra.mxu3 %vm732_vm3, %v731_v40 }
 0x1c3   : > { %1080 = vmatpush.bf16.msrb.mxu3 %v1360_v47  ;;  %1036 = vmatpush.bf16.msrb.mxu1 %v1358_v48  ;;  %v1549_v48 = vmov 128.0  }
 0x1c4   : > { %1436 = vrcp.f32 %v1549_v48 }
 0x21d   : > { %v749_v49 = vpop.f32.mrf.mxu0 }
 0x21e   : > { %v886_v50 = vpack.c.bf16 %v749_v49, %v749_v49  ;;  %v1437_v49 = vpop.eup %1436 }
 0x21f   : > { %vm1118_vm5 = vweird.f32 %v1437_v49 }
 0x220   : > { %1312 = vmatmul.msk.bf16.vlgmr.msra.gmra.mxu0 %vm482_vm0, %v886_v50  ;;  %v1114_v50 = vmul.f32 128.0, %v1437_v49 }
 0x225   : > { %v751_v51 = vpop.f32.mrf.mxu0 }
 0x226   : > { %v1115_v51 = vsub.f32 1.0, %v1114_v50 }
 0x22c   : > { %v787_v52 = vpop.f32.mrf.mxu2 }
 0x22d   : > { %v888_v53 = vpack.c.bf16 %v787_v52, %v787_v52  ;;  %v1116_v52 = vmul.f32 %v1437_v49, %v1115_v51 }
 0x22f   : > { %v768_v54 = vpop.f32.mrf.mxu1  ;;  %1322 = vmatmul.msk.bf16.vlgmr.msra.gmra.mxu2 %vm482_vm0, %v888_v53  ;;  %v1117_v53 = vadd.f32 %v1437_v49, %v1116_v52 }
 0x230   : > { %v887_v55 = vpack.c.bf16 %v768_v54, %v768_v54 }
 0x231   : > { %v1119_v54 = vsel %vm1118_vm5, %v1437_v49, %v1117_v53 }
 0x232   : > { %1317 = vmatmul.msk.bf16.vlgmr.msra.gmra.mxu1 %vm482_vm0, %v887_v55 }
 0x234   : > { %v789_v56 = vpop.f32.mrf.mxu2  ;;  %v806_v57 = vpop.f32.mrf.mxu3 }
 0x235   : > { %v889_v58 = vpack.c.bf16 %v806_v57, %v806_v57 }
 0x237   : > { %v770_v59 = vpop.f32.mrf.mxu1  ;;  %v825_v60 = vpop.f32.mrf.mxu0  ;;  %1327 = vmatmul.msk.bf16.vlgmr.msra.gmra.mxu3 %vm482_vm0, %v889_v58 }
 0x238   : > { %v890_v61 = vpack.c.bf16 %v825_v60, %v825_v60 }
 0x23a   : > { %1332 = vmatmul.msk.bf16.vlgmr.msrb.gmra.mxu0 %vm482_vm0, %v890_v61 }
 0x23c   : > { %v808_v62 = vpop.f32.mrf.mxu3  ;;  %v863_v63 = vpop.f32.mrf.mxu2 }
 0x23d   : > { %v892_v0 = vpack.c.bf16 %v863_v63, %v863_v63 }
 0x23f   : > { %v827_v1 = vpop.f32.mrf.mxu0  ;;  %v844_v2 = vpop.f32.mrf.mxu1  ;;  %1342 = vmatmul.msk.bf16.vlgmr.msrb.gmra.mxu2 %vm482_vm0, %v892_v0 }
 0x240   : > { %v891_v3 = vpack.c.bf16 %v844_v2, %v844_v2 }
 0x242   : > { %1337 = vmatmul.msk.bf16.vlgmr.msrb.gmra.mxu1 %vm482_vm0, %v891_v3 }
 0x244   : > { %v865_v4 = vpop.f32.mrf.mxu2 }
 0x245   : > { %v882_v5 = vpop.f32.mrf.mxu3 }
 0x246   : > { %v893_v6 = vpack.c.bf16 %v882_v5, %v882_v5  ;;  %v1402_v5 = vld [vmem:[#allocation4] ss:$0 sm:$0xff] }
 0x247   : > { %v846_v7 = vpop.f32.mrf.mxu1 }
 0x248   : > { %1347 = vmatmul.msk.bf16.vlgmr.msrb.gmra.mxu3 %vm482_vm0, %v893_v6  ;;  %v1403_v7 = vld [vmem:[#allocation6] ss:$0 sm:$0xff] }
 0x24d   : > { %v884_v8 = vpop.f32.mrf.mxu3 }
 0x29d   : > { %v928_v9 = vpop.f32.mrf.mxu0 }
 0x29e   : > { %v1087_v18 = vsel %vm1086_vm4, %v928_v9, 0.0 }
 0x2a5   : > { %v930_v10 = vpop.f32.mrf.mxu0 }
 0x2af   : > { %v950_v11 = vpop.f32.mrf.mxu1 }
 0x2b0   : > { %v1088_v15 = vsel %vm1086_vm4, %v950_v11, 0.0 }
 0x2b1   : > { %v1089_v20 = vadd.f32 %v1088_v15, %v1087_v18 }
 0x2b2   : > { %v972_v12 = vpop.f32.mrf.mxu2 }
 0x2b3   : > { %v1090_v19 = vsel %vm1086_vm4, %v972_v12, 0.0 }
 0x2b4   : > { %v1091_v22 = vadd.f32 %v1090_v19, %v1089_v20 }
 0x2b7   : > { %v952_v13 = vpop.f32.mrf.mxu1  ;;  %v1016_v14 = vpop.f32.mrf.mxu0 }
 0x2b8   : > { %v1094_v28 = vsel %vm1086_vm4, %v1016_v14, 0.0 }
 0x2ba   : > { %v974_v16 = vpop.f32.mrf.mxu2  ;;  %v994_v17 = vpop.f32.mrf.mxu3 }
 0x2bb   : > { %v1092_v21 = vsel %vm1086_vm4, %v994_v17, 0.0 }
 0x2bc   : > { %v1093_v25 = vadd.f32 %v1092_v21, %v1091_v22 }
 0x2be   : > { %v1095_v29 = vadd.f32 %v1094_v28, %v1093_v25 }
 0x2bf   : > { %v1018_v23 = vpop.f32.mrf.mxu0  ;;  %v1038_v24 = vpop.f32.mrf.mxu1 }
 0x2c0   : > { %v1096_v30 = vsel %vm1086_vm4, %v1038_v24, 0.0 }
 0x2c1   : > { %v1097_v33 = vadd.f32 %v1096_v30, %v1095_v29 }
 0x2c2   : > { %v996_v26 = vpop.f32.mrf.mxu3  ;;  %v1060_v27 = vpop.f32.mrf.mxu2 }
 0x2c3   : > { %v1098_v32 = vsel %vm1086_vm4, %v1060_v27, 0.0 }
 0x2c4   : > { %v1099_v36 = vadd.f32 %v1098_v32, %v1097_v33 }
 0x2c7   : > { %v1040_v31 = vpop.f32.mrf.mxu1 }
 0x2ca   : > { %v1062_v34 = vpop.f32.mrf.mxu2 }
 0x2cb   : > { %v1082_v37 = vpop.f32.mrf.mxu3 }
 0x2cc   : > { %v1100_v39 = vsel %vm1086_vm4, %v1082_v37, 0.0 }
 0x2cd   : > { %v1101_v40 = vadd.f32 %v1100_v39, %v1099_v36 }
 0x2cf   : > { %v1106_v42 = vadd.f32 %v1401_v38, %v1101_v40 }
 0x2d1   : > { %v1109_v43 = vadd.f32 %v1108_v41, %v1106_v42 }
 0x2d3   : > { %v1084_v44 = vpop.f32.mrf.mxu3  ;;  %v1110_v45 = vsel %vm1086_vm4, %v1109_v43, 0.0  ;;  %v1121_v46 = vmul.f32 %v1109_v43, %v1109_v43 }
 0x2d4   : > { %1111 = vadd.xlane.f32.xlu1 %v1110_v45 }
 0x2d5   : > { %v1122_v47 = vsel %vm1086_vm4, %v1121_v46, 0.0 }
 0x2d6   : > { %1123 = vadd.xlane.f32.xlu2 %v1122_v47 }
 0x347   : > { %v1112_v55 = vpop.xlane.xlu1 %1111 }
 0x348   : > { %v1120_v56 = vmul.f32 %v1119_v54, %v1112_v55 }
 0x349   : > { %v1124_v57 = vpop.xlane.xlu2 %1123 }
 0x34a   : > { %v1126_v58 = vmul.f32 %v1120_v56, %v1120_v56  ;;  %v1125_v59 = vmul.f32 %v1124_v57, %v1119_v54  ;;  %v1128_v4 = vsub.f32 %v1109_v43, %v1120_v56 }
 0x34c   : > { %v1127_v60 = vsub.f32 %v1125_v59, %v1126_v58 }
 0x34e   : > { %v1129_v61 = vadd.f32 1e-05, %v1127_v60 }
 0x350   : > { %1438 = vrsqrt.f32 %v1129_v61  ;;  %vm1136_vm7 = vweird.f32 %v1129_v61 }
 0x356   : > { %v1439_v62 = vpop.eup %1438 }
 0x357   : > { %v1131_v63 = vmul.f32 %v1439_v62, %v1129_v61  ;;  %vm1137_vm6 = vweird.f32 %v1439_v62 }
 0x358   : > { %vm1138_vm8 = vmor %vm1136_vm7, %vm1137_vm6 }
 0x359   : > { %v1132_v0 = vmul.f32 %v1439_v62, %v1131_v63 }
 0x35b   : > { %v1133_v1 = vmul.f32 0.5, %v1132_v0 }
 0x35d   : > { %v1134_v2 = vsub.f32 1.5, %v1133_v1 }
 0x35f   : > { %v1135_v3 = vmul.f32 %v1439_v62, %v1134_v2 }
 0x361   : > { %v1139_v6 = vsel %vm1138_vm8, %v1439_v62, %v1135_v3 }
 0x362   : > { %v1140_v8 = vmul.f32 %v1139_v6, %v1128_v4 }
 0x364   : > { %v1145_v9 = vmul.f32 %v1402_v5, %v1140_v8 }
 0x366   : > { %v1150_v10 = vadd.f32 %v1403_v7, %v1145_v9 }
 0x368   : > { %v1151_v11 = vpack.c.bf16 %v1150_v10, %v1150_v10 }
 0x36a   : > { %1152 = vst [vmem:[%s431_s23] sm:$0x3] %v1151_v11 }
 0x36b PF: > { %s21_s30 = sadd.s32 1, %s1544_s30  }
 0x36c   : > { %p18_p7 = scmp.ge.s32.totalorder %s21_s30, 4  }
 0x36e   :  { %20 = sbr.rel (!%p18_p7) target bundleno = 2 (0x2), region = 108 }
 0x373   :  { %1172 = vsyncpa [#allocation3], 1 }
 0x374   :  { %1174 = vsyncpa [#allocation3 + $0x1], 1 }
 0x375   :  { %1175 = vsyncpa [#allocation5], 1 }

// kernel: simple_vit_forward.34
= control target key start
LH: loop header
LB: loop body
LE: loop exit
PB: predicated region body
PF: predicated region fallthrough
CT: control target
= control target key end

     0   :  { %8 = vsyncpa [#allocation3], 0  ;;  %s242_s15 = smov [#allocation2]   ;;  %s296_s0 = inlined_call_operand.vmem [shape: bf16[8,128], index: 0, kind: input, shape index: {}]   ;;  %s297_s1 = inlined_call_operand.vmem [shape: bf16[128,128], index: 1, kind: input, shape index: {}]   ;;  %s298_s2 = inlined_call_operand.hbm [shape: f32[1,128], index: 2, kind: input, shape index: {}]   ;;  %s299_s3 = inlined_call_operand.vmem [shape: bf16[8,128], index: 3, kind: output, shape index: {}]  }
   0x1   :  { %s18_s14 = sshll.u32 %s298_s2, 4  ;;  %s20_s16 = sshll.u32 %s242_s15, 4  ;;  %s19_s14 = int_to_ptr.hbm [resolvable:$true] %s18_s14  ;;  %s21_s16 = int_to_ptr.vmem [resolvable:$true] %s20_s16 }
   0x2   :  { %23 = dma.hbm_to_vmem [thread:$0]  %s19_s14, 16, %s21_s16, [#allocation3]  }
   0x3   :  { %240 = dma.done.wait [#allocation3], 16  }
   0x4   :  { %241 = vsyncadd [#allocation3], 4294967280  ;;  %v208_v0 = vld [vmem:[%s297_s1 + $0x38] sm:$0xff]  ;;  %v207_v1 = vld [vmem:[%s297_s1 + $0x30] sm:$0xff] }
   0x5   :  { %104 = vmatpush.bf16.msra.mxu0 %v208_v0  ;;  %v206_v2 = vld [vmem:[%s297_s1 + $0x28] sm:$0xff]  ;;  %v205_v3 = vld [vmem:[%s297_s1 + $0x20] sm:$0xff]  ;;  %v204_v4 = vld [vmem:[%s297_s1 + $0x18] sm:$0xff] }
   0x6   :  { %v203_v5 = vld [vmem:[%s297_s1 + $0x10] sm:$0xff]  ;;  %v202_v6 = vld [vmem:[%s297_s1 + $0x8] sm:$0xff]  ;;  %v201_v7 = vld [vmem:[%s297_s1] sm:$0xff] }
   0x7   :  { %v200_v8 = vld [vmem:[%s296_s0] sm:$0xff] }
   0x8   :  { %v215_v10 = vld [vmem:[#allocation2] ss:$0 sm:$0xff] }
   0x9   :  { %105 = vmatpush.bf16.msra.mxu0 %v207_v1 }
   0xd   :  { %106 = vmatpush.bf16.msra.mxu0 %v206_v2 }
  0x11   :  { %107 = vmatpush.bf16.msra.mxu0 %v205_v3 }
  0x15   :  { %108 = vmatpush.bf16.msra.mxu0 %v204_v4 }
  0x19   :  { %109 = vmatpush.bf16.msra.mxu0 %v203_v5 }
  0x1d   :  { %110 = vmatpush.bf16.msra.mxu0 %v202_v6 }
  0x21   :  { %111 = vmatpush.bf16.msra.mxu0 %v201_v7 }
  0x24   :  { %112 = vmatmul.bf16.vlgmr.msra.gmra.mxu0 %v200_v8 }
  0xa1   :  { %v113_v9 = vpop.f32.mrf.mxu0 }
  0xa2   :  { %v114_v12 = vadd.f32 %v215_v10, %v113_v9 }
  0xa9   :  { %v115_v11 = vpop.f32.mrf.mxu0 }
  0xaa   :  { %v116_v13 = vadd.f32 %v215_v10, %v115_v11 }
  0xac   :  { %v212_v14 = vpack.c.bf16 %v116_v13, %v114_v12 }
  0xae   :  { %213 = vst [vmem:[#allocation4] sm:$0xff] %v212_v14  }
  0xb5   :  { %v140_v15 = vld [vmem:[#allocation4] sm:$0xf] }
  0xb6   :  { %141 = vst [vmem:[%s299_s3] sm:$0xf] %v140_v15 }
  0xb7   :  { %159 = vsyncpa [#allocation3], 1 }

</bundles_post_ra>
